<compile_context>
chip_gen: v5e
topology: v5e:2x2
jax: 0.10.0
libtpu: 0.0.40
codegen_flags: <defaults>
</compile_context>

<pallas_src>
import functools

import numpy as np
import jax
import jax.numpy as jnp
from jax.experimental import pallas as pl
from jax.experimental.pallas import tpu as pltpu

_EPS = 1e-3
_INV_SQRT2 = 0.7071067811865476


def _gelu(x, approx=False):
    if approx:
        # tanh approximation (routes the transcendental to the EUP slot);
        # changes numerics vs torch.nn.GELU()'s erf default -> off by default.
        k = 0.7978845608028654
        return 0.5 * x * (1.0 + jnp.tanh(k * (x + 0.044715 * x * x * x)))
    return 0.5 * x * (1.0 + jax.lax.erf(x * _INV_SQRT2))


def conv_block_kernel(
    xbuf_ref,            # (N*C, lr + 2*s)  per-(n,c) rows, flattened padded volume + halo
    mask_ref,            # (1, lr)          1.0 at interior voxels, 0.0 at halo / rounding pad
    par_ref,             # (rmax, ncols)    packed params (dw taps, bn gammas/betas, pw columns)
    out_ref,             # (N*Cout, lr)     lane-dense output slab
    *, n_batch, c_in, c_out, lr, wpad, hpwp, inv_count, approx_gelu,
       col_dw, col_bn1, col_bn2, col_bn3, col_w1, col_w2,
):
    nc = n_batch * c_in
    nco = n_batch * c_out

    # ---- depthwise 3x3x3 (padding=1, groups=C): 27 lane-offset window FMAs ----
    # Register-resident accumulation; halo outputs are garbage and are excluded
    # from BN statistics by `mask` and dropped by the wrapper.  No bias: it is
    # cancelled by the training-mode BN below.
    acc = None
    t = 0
    for kd in range(3):
        for kh in range(3):
            for kw in range(3):
                off = kd * hpwp + kh * wpad + kw                      # static, in [0, 2*s]
                w_t = par_ref[0:nc, col_dw + t:col_dw + t + 1]        # (nc, 1)
                term = xbuf_ref[:, off:off + lr] * w_t                # ref slice per tap
                acc = term if acc is None else acc + term
                t += 1

    def bn_gelu(x, col_bn, cpr):
        # training-mode BN as one FMA; interior-masked biased statistics.
        # x: (n_batch*cpr, lr), row = n*cpr + channel.
        xm = x * mask_ref[...]
        rs = jnp.sum(xm, axis=-1, keepdims=True)            # (n*cpr, 1) per-row sums
        rs2 = jnp.sum(xm * x, axis=-1, keepdims=True)
        cs, cs2 = rs[0:cpr], rs2[0:cpr]                      # reduce over the N row-groups
        for nn in range(1, n_batch):
            cs = cs + rs[nn * cpr:(nn + 1) * cpr]
            cs2 = cs2 + rs2[nn * cpr:(nn + 1) * cpr]
        mean = cs * inv_count
        var = jnp.maximum(cs2 * inv_count - mean * mean, 0.0)
        g = par_ref[0:cpr, col_bn:col_bn + 1]
        bt = par_ref[0:cpr, col_bn + 1:col_bn + 2]
        a_c = g * jax.lax.rsqrt(var + _EPS)
        b_c = bt - mean * a_c
        a = jnp.concatenate([a_c] * n_batch, axis=0)         # broadcast back over n
        b = jnp.concatenate([b_c] * n_batch, axis=0)
        return _gelu(x * a + b, approx_gelu)

    def pointwise(x, col_w, rout):
        # (rout, lr) <- block-diagonal rank-1 VPU FMAs over the N-folded rows.
        # Bias folded out (cancelled by the following training-mode BN).
        y = par_ref[0:rout, col_w:col_w + 1] * x[0:1, :]
        for j in range(1, nc):
            y = y + par_ref[0:rout, col_w + j:col_w + j + 1] * x[j:j + 1, :]
        return y

    h = bn_gelu(acc, col_bn1, c_in)        # bn1 + gelu1
    h = pointwise(h, col_w1, nc)           # pointwise_conv1
    h = bn_gelu(h, col_bn2, c_in)          # bn2 + gelu2
    h = pointwise(h, col_w2, nco)          # pointwise_conv2
    h = bn_gelu(h, col_bn3, c_out)         # bn3 + gelu3
    out_ref[...] = h.astype(out_ref.dtype)  # lane-dense store (lr multiple of 128)


def conv_block_forward(x, params, *, approx_gelu=False):
    """x: (N, C, D, H, W) float32 (PyTorch NCDHW). Returns (N, Cout, D, H, W)."""
    n, c, d, h, w = x.shape
    c_out = params["pw2_w"].shape[0]

    dpad, hpad, wpad = d + 2, h + 2, w + 2
    hpwp = hpad * wpad
    l = dpad * hpwp                                   # per-sample padded flat length
    lr = ((l + 127) // 128) * 128                     # lane-dense (multiple of 128)
    s = hpwp + wpad + 1                               # max |tap offset| from centre

    nc = n * c
    nco = n * c_out
    rmax = max(nc, nco)

    # ---- input prep (cheap XLA glue): zero pad spatially, one row per (n, c),
    #      flattened padded volume on lanes, lane halo so every tap slice is
    #      in-bounds, rounding pad to a multiple of 128.
    x_pad = jnp.pad(x, ((0, 0), (0, 0), (1, 1), (1, 1), (1, 1)))     # (N,C,Dp,Hp,Wp)
    xrows = x_pad.reshape(nc, l)
    xbuf = jnp.pad(xrows, ((0, 0), (s, s + (lr - l))))               # (nc, lr + 2*s)

    # static 0/1 interior mask (excludes halo ring + rounding tail from BN stats)
    m_np = np.zeros((dpad, hpad, wpad), np.float32)
    m_np[1:-1, 1:-1, 1:-1] = 1.0
    mask_np = np.zeros((1, lr), np.float32)
    mask_np[0, :l] = m_np.reshape(-1)
    mask = jnp.asarray(mask_np)

    # ---- packed parameter slab (one VMEM input instead of 9+ tiny ones) -----
    col_dw, col_bn1, col_bn2, col_bn3 = 0, 27, 29, 31
    col_w1 = 33
    col_w2 = col_w1 + nc
    ncols = col_w2 + nc

    def put(mat, rows):
        mat = jnp.asarray(mat, jnp.float32).reshape(rows, -1)
        return jnp.pad(mat, ((0, rmax - rows), (0, 0)))

    eye_n = jnp.eye(n, dtype=jnp.float32)
    dw_cols = jnp.tile(params["dw_w"].reshape(c, 27), (n, 1))          # (nc, 27)
    w1bd = jnp.kron(eye_n, params["pw1_w"].reshape(c, c))              # (nc, nc)
    w2bd = jnp.kron(eye_n, params["pw2_w"].reshape(c_out, c))          # (nco, nc)
    par = jnp.concatenate(
        [put(dw_cols, nc),
         put(params["bn1_g"], c), put(params["bn1_b"], c),
         put(params["bn2_g"], c), put(params["bn2_b"], c),
         put(params["bn3_g"], c_out), put(params["bn3_b"], c_out),
         put(w1bd, nc), put(w2bd, nco)], axis=1)                       # (rmax, ncols)
    assert par.shape == (rmax, ncols)
    # NOTE: dw_b / pw1_b / pw2_b are intentionally not passed: each per-channel
    # constant is cancelled exactly by the following training-mode BatchNorm.

    kernel = functools.partial(
        conv_block_kernel, n_batch=n, c_in=c, c_out=c_out, lr=lr, wpad=wpad,
        hpwp=hpwp, inv_count=1.0 / float(n * d * h * w), approx_gelu=approx_gelu,
        col_dw=col_dw, col_bn1=col_bn1, col_bn2=col_bn2, col_bn3=col_bn3,
        col_w1=col_w1, col_w2=col_w2)

    vmem = pl.BlockSpec(memory_space=pltpu.MemorySpace.VMEM)

    # generation-aware VMEM cap (v7x has 64 MiB per TC; v5e/v6e have 128 MiB)
    est_bytes = 4 * (nc * (lr + 2 * s) + lr + rmax * ncols + nco * lr)
    try:
        cap = int(pltpu.get_tpu_info().vmem_capacity_bytes)
    except Exception:
        cap = 64 * 2**20
    vmem_limit = int(min(cap - 8 * 2**20, max(16 * 2**20, 8 * est_bytes)))

    out_flat = pl.pallas_call(
        kernel,
        out_shape=jax.ShapeDtypeStruct((nco, lr), jnp.float32),
        in_specs=[vmem, vmem, vmem],
        out_specs=vmem,
        compiler_params=pltpu.CompilerParams(vmem_limit_bytes=vmem_limit),
    )(xbuf, mask, par)

    out = out_flat[:, :l].reshape(n, c_out, dpad, hpad, wpad)
    return out[:, :, 1:-1, 1:-1, 1:-1]                                 # drop halo (NCDHW)


# ---------------------------- pure-JAX reference ----------------------------
def reference_forward(x, params):
    c = x.shape[1]

    def bn(t, g, b):
        mean = jnp.mean(t, axis=(0, 2, 3, 4), keepdims=True)
        var = jnp.mean(jnp.square(t - mean), axis=(0, 2, 3, 4), keepdims=True)
        return (t - mean) * jax.lax.rsqrt(var + _EPS) * g[None, :, None, None, None] \
            + b[None, :, None, None, None]

    t = jax.lax.conv_general_dilated(
        x, params["dw_w"], window_strides=(1, 1, 1),
        padding=((1, 1), (1, 1), (1, 1)),
        dimension_numbers=("NCDHW", "OIDHW", "NCDHW"),
        feature_group_count=c,
    ) + params["dw_b"][None, :, None, None, None]
    t = _gelu(bn(t, params["bn1_g"], params["bn1_b"]))
    t = jnp.einsum("oi,nidhw->nodhw", params["pw1_w"][:, :, 0, 0, 0], t) \
        + params["pw1_b"][None, :, None, None, None]
    t = _gelu(bn(t, params["bn2_g"], params["bn2_b"]))
    t = jnp.einsum("oi,nidhw->nodhw", params["pw2_w"][:, :, 0, 0, 0], t) \
        + params["pw2_b"][None, :, None, None, None]
    t = _gelu(bn(t, params["bn3_g"], params["bn3_b"]))
    return t


def init_params(key, c_in, c_out):
    ks = jax.random.split(key, 12)
    f32 = jnp.float32
    return {
        "dw_w": 0.2 * jax.random.normal(ks[0], (c_in, 1, 3, 3, 3), f32),
        "dw_b": 0.1 * jax.random.normal(ks[1], (c_in,), f32),
        "pw1_w": 0.2 * jax.random.normal(ks[2], (c_in, c_in, 1, 1, 1), f32),
        "pw1_b": 0.1 * jax.random.normal(ks[3], (c_in,), f32),
        "pw2_w": 0.2 * jax.random.normal(ks[4], (c_out, c_in, 1, 1, 1), f32),
        "pw2_b": 0.1 * jax.random.normal(ks[5], (c_out,), f32),
        "bn1_g": 1.0 + 0.1 * jax.random.normal(ks[6], (c_in,), f32),
        "bn1_b": 0.1 * jax.random.normal(ks[7], (c_in,), f32),
        "bn2_g": 1.0 + 0.1 * jax.random.normal(ks[8], (c_in,), f32),
        "bn2_b": 0.1 * jax.random.normal(ks[9], (c_in,), f32),
        "bn3_g": 1.0 + 0.1 * jax.random.normal(ks[10], (c_out,), f32),
        "bn3_b": 0.1 * jax.random.normal(ks[11], (c_out,), f32),
    }


if __name__ == "__main__":
    N, C_IN, C_OUT, D, H, W = 2, 4, 8, 8, 8, 8
    key = jax.random.PRNGKey(0)
    k_x, k_p = jax.random.split(key)
    x = jax.random.normal(k_x, (N, C_IN, D, H, W), jnp.float32)
    params = init_params(k_p, C_IN, C_OUT)

    out = jax.block_until_ready(jax.jit(conv_block_forward)(x, params))
    ref = jax.block_until_ready(jax.jit(reference_forward)(x, params))

    assert out.shape == (N, C_OUT, D, H, W)
    err = jnp.max(jnp.abs(out - ref))
    assert jnp.allclose(out, ref, atol=5e-4, rtol=5e-4), f"max abs err {err}"
    print("KERNEL_OK")
</pallas_src>

<mosaic_0001>
module attributes {stable_mosaic.version = 11 : i64} {
  func.func @conv_block_kernel(%arg0: memref<8x1246xf32, #tpu.memory_space<vmem>>, %arg1: memref<1x1024xf32, #tpu.memory_space<vmem>>, %arg2: memref<16x49xf32, #tpu.memory_space<vmem>>, %arg3: memref<16x1024xf32, #tpu.memory_space<vmem>>) attributes {dimension_semantics = [], scalar_prefetch = 0 : i64, scratch_operands = 0 : i64, tpu.core_type = #tpu.core_type<tc>} {
    %c0 = arith.constant 0 : index
    %c0_0 = arith.constant 0 : index
    %0 = vector.load %arg2[%c0, %c0_0] : memref<16x49xf32, #tpu.memory_space<vmem>>, vector<8x1xf32>
    %c0_1 = arith.constant 0 : index
    %c0_2 = arith.constant 0 : index
    %1 = vector.load %arg0[%c0_1, %c0_2] : memref<8x1246xf32, #tpu.memory_space<vmem>>, vector<8x1024xf32>
    %2 = vector.broadcast %0 : vector<8x1xf32> to vector<8x1024xf32>
    %3 = arith.mulf %1, %2 : vector<8x1024xf32>
    %c0_3 = arith.constant 0 : index
    %c1 = arith.constant 1 : index
    %4 = vector.load %arg2[%c0_3, %c1] : memref<16x49xf32, #tpu.memory_space<vmem>>, vector<8x1xf32>
    %c0_4 = arith.constant 0 : index
    %c1_5 = arith.constant 1 : index
    %5 = vector.load %arg0[%c0_4, %c1_5] : memref<8x1246xf32, #tpu.memory_space<vmem>>, vector<8x1024xf32>
    %6 = vector.broadcast %4 : vector<8x1xf32> to vector<8x1024xf32>
    %7 = arith.mulf %5, %6 : vector<8x1024xf32>
    %8 = arith.addf %3, %7 : vector<8x1024xf32>
    %c0_6 = arith.constant 0 : index
    %c2 = arith.constant 2 : index
    %9 = vector.load %arg2[%c0_6, %c2] : memref<16x49xf32, #tpu.memory_space<vmem>>, vector<8x1xf32>
    %c0_7 = arith.constant 0 : index
    %c2_8 = arith.constant 2 : index
    %10 = vector.load %arg0[%c0_7, %c2_8] : memref<8x1246xf32, #tpu.memory_space<vmem>>, vector<8x1024xf32>
    %11 = vector.broadcast %9 : vector<8x1xf32> to vector<8x1024xf32>
    %12 = arith.mulf %10, %11 : vector<8x1024xf32>
    %13 = arith.addf %8, %12 : vector<8x1024xf32>
    %c0_9 = arith.constant 0 : index
    %c3 = arith.constant 3 : index
    %14 = vector.load %arg2[%c0_9, %c3] : memref<16x49xf32, #tpu.memory_space<vmem>>, vector<8x1xf32>
    %c0_10 = arith.constant 0 : index
    %c10 = arith.constant 10 : index
    %15 = vector.load %arg0[%c0_10, %c10] : memref<8x1246xf32, #tpu.memory_space<vmem>>, vector<8x1024xf32>
    %16 = vector.broadcast %14 : vector<8x1xf32> to vector<8x1024xf32>
    %17 = arith.mulf %15, %16 : vector<8x1024xf32>
    %18 = arith.addf %13, %17 : vector<8x1024xf32>
    %c0_11 = arith.constant 0 : index
    %c4 = arith.constant 4 : index
    %19 = vector.load %arg2[%c0_11, %c4] : memref<16x49xf32, #tpu.memory_space<vmem>>, vector<8x1xf32>
    %c0_12 = arith.constant 0 : index
    %c11 = arith.constant 11 : index
    %20 = vector.load %arg0[%c0_12, %c11] : memref<8x1246xf32, #tpu.memory_space<vmem>>, vector<8x1024xf32>
    %21 = vector.broadcast %19 : vector<8x1xf32> to vector<8x1024xf32>
    %22 = arith.mulf %20, %21 : vector<8x1024xf32>
    %23 = arith.addf %18, %22 : vector<8x1024xf32>
    %c0_13 = arith.constant 0 : index
    %c5 = arith.constant 5 : index
    %24 = vector.load %arg2[%c0_13, %c5] : memref<16x49xf32, #tpu.memory_space<vmem>>, vector<8x1xf32>
    %c0_14 = arith.constant 0 : index
    %c12 = arith.constant 12 : index
    %25 = vector.load %arg0[%c0_14, %c12] : memref<8x1246xf32, #tpu.memory_space<vmem>>, vector<8x1024xf32>
    %26 = vector.broadcast %24 : vector<8x1xf32> to vector<8x1024xf32>
    %27 = arith.mulf %25, %26 : vector<8x1024xf32>
    %28 = arith.addf %23, %27 : vector<8x1024xf32>
    %c0_15 = arith.constant 0 : index
    %c6 = arith.constant 6 : index
    %29 = vector.load %arg2[%c0_15, %c6] : memref<16x49xf32, #tpu.memory_space<vmem>>, vector<8x1xf32>
    %c0_16 = arith.constant 0 : index
    %c20 = arith.constant 20 : index
    %30 = vector.load %arg0[%c0_16, %c20] : memref<8x1246xf32, #tpu.memory_space<vmem>>, vector<8x1024xf32>
    %31 = vector.broadcast %29 : vector<8x1xf32> to vector<8x1024xf32>
    %32 = arith.mulf %30, %31 : vector<8x1024xf32>
    %33 = arith.addf %28, %32 : vector<8x1024xf32>
    %c0_17 = arith.constant 0 : index
    %c7 = arith.constant 7 : index
    %34 = vector.load %arg2[%c0_17, %c7] : memref<16x49xf32, #tpu.memory_space<vmem>>, vector<8x1xf32>
    %c0_18 = arith.constant 0 : index
    %c21 = arith.constant 21 : index
    %35 = vector.load %arg0[%c0_18, %c21] : memref<8x1246xf32, #tpu.memory_space<vmem>>, vector<8x1024xf32>
    %36 = vector.broadcast %34 : vector<8x1xf32> to vector<8x1024xf32>
    %37 = arith.mulf %35, %36 : vector<8x1024xf32>
    %38 = arith.addf %33, %37 : vector<8x1024xf32>
    %c0_19 = arith.constant 0 : index
    %c8 = arith.constant 8 : index
    %39 = vector.load %arg2[%c0_19, %c8] : memref<16x49xf32, #tpu.memory_space<vmem>>, vector<8x1xf32>
    %c0_20 = arith.constant 0 : index
    %c22 = arith.constant 22 : index
    %40 = vector.load %arg0[%c0_20, %c22] : memref<8x1246xf32, #tpu.memory_space<vmem>>, vector<8x1024xf32>
    %41 = vector.broadcast %39 : vector<8x1xf32> to vector<8x1024xf32>
    %42 = arith.mulf %40, %41 : vector<8x1024xf32>
    %43 = arith.addf %38, %42 : vector<8x1024xf32>
    %c0_21 = arith.constant 0 : index
    %c9 = arith.constant 9 : index
    %44 = vector.load %arg2[%c0_21, %c9] : memref<16x49xf32, #tpu.memory_space<vmem>>, vector<8x1xf32>
    %c0_22 = arith.constant 0 : index
    %c100 = arith.constant 100 : index
    %45 = vector.load %arg0[%c0_22, %c100] : memref<8x1246xf32, #tpu.memory_space<vmem>>, vector<8x1024xf32>
    %46 = vector.broadcast %44 : vector<8x1xf32> to vector<8x1024xf32>
    %47 = arith.mulf %45, %46 : vector<8x1024xf32>
    %48 = arith.addf %43, %47 : vector<8x1024xf32>
    %c0_23 = arith.constant 0 : index
    %c10_24 = arith.constant 10 : index
    %49 = vector.load %arg2[%c0_23, %c10_24] : memref<16x49xf32, #tpu.memory_space<vmem>>, vector<8x1xf32>
    %c0_25 = arith.constant 0 : index
    %c101 = arith.constant 101 : index
    %50 = vector.load %arg0[%c0_25, %c101] : memref<8x1246xf32, #tpu.memory_space<vmem>>, vector<8x1024xf32>
    %51 = vector.broadcast %49 : vector<8x1xf32> to vector<8x1024xf32>
    %52 = arith.mulf %50, %51 : vector<8x1024xf32>
    %53 = arith.addf %48, %52 : vector<8x1024xf32>
    %c0_26 = arith.constant 0 : index
    %c11_27 = arith.constant 11 : index
    %54 = vector.load %arg2[%c0_26, %c11_27] : memref<16x49xf32, #tpu.memory_space<vmem>>, vector<8x1xf32>
    %c0_28 = arith.constant 0 : index
    %c102 = arith.constant 102 : index
    %55 = vector.load %arg0[%c0_28, %c102] : memref<8x1246xf32, #tpu.memory_space<vmem>>, vector<8x1024xf32>
    %56 = vector.broadcast %54 : vector<8x1xf32> to vector<8x1024xf32>
    %57 = arith.mulf %55, %56 : vector<8x1024xf32>
    %58 = arith.addf %53, %57 : vector<8x1024xf32>
    %c0_29 = arith.constant 0 : index
    %c12_30 = arith.constant 12 : index
    %59 = vector.load %arg2[%c0_29, %c12_30] : memref<16x49xf32, #tpu.memory_space<vmem>>, vector<8x1xf32>
    %c0_31 = arith.constant 0 : index
    %c110 = arith.constant 110 : index
    %60 = vector.load %arg0[%c0_31, %c110] : memref<8x1246xf32, #tpu.memory_space<vmem>>, vector<8x1024xf32>
    %61 = vector.broadcast %59 : vector<8x1xf32> to vector<8x1024xf32>
    %62 = arith.mulf %60, %61 : vector<8x1024xf32>
    %63 = arith.addf %58, %62 : vector<8x1024xf32>
    %c0_32 = arith.constant 0 : index
    %c13 = arith.constant 13 : index
    %64 = vector.load %arg2[%c0_32, %c13] : memref<16x49xf32, #tpu.memory_space<vmem>>, vector<8x1xf32>
    %c0_33 = arith.constant 0 : index
    %c111 = arith.constant 111 : index
    %65 = vector.load %arg0[%c0_33, %c111] : memref<8x1246xf32, #tpu.memory_space<vmem>>, vector<8x1024xf32>
    %66 = vector.broadcast %64 : vector<8x1xf32> to vector<8x1024xf32>
    %67 = arith.mulf %65, %66 : vector<8x1024xf32>
    %68 = arith.addf %63, %67 : vector<8x1024xf32>
    %c0_34 = arith.constant 0 : index
    %c14 = arith.constant 14 : index
    %69 = vector.load %arg2[%c0_34, %c14] : memref<16x49xf32, #tpu.memory_space<vmem>>, vector<8x1xf32>
    %c0_35 = arith.constant 0 : index
    %c112 = arith.constant 112 : index
    %70 = vector.load %arg0[%c0_35, %c112] : memref<8x1246xf32, #tpu.memory_space<vmem>>, vector<8x1024xf32>
    %71 = vector.broadcast %69 : vector<8x1xf32> to vector<8x1024xf32>
    %72 = arith.mulf %70, %71 : vector<8x1024xf32>
    %73 = arith.addf %68, %72 : vector<8x1024xf32>
    %c0_36 = arith.constant 0 : index
    %c15 = arith.constant 15 : index
    %74 = vector.load %arg2[%c0_36, %c15] : memref<16x49xf32, #tpu.memory_space<vmem>>, vector<8x1xf32>
    %c0_37 = arith.constant 0 : index
    %c120 = arith.constant 120 : index
    %75 = vector.load %arg0[%c0_37, %c120] : memref<8x1246xf32, #tpu.memory_space<vmem>>, vector<8x1024xf32>
    %76 = vector.broadcast %74 : vector<8x1xf32> to vector<8x1024xf32>
    %77 = arith.mulf %75, %76 : vector<8x1024xf32>
    %78 = arith.addf %73, %77 : vector<8x1024xf32>
    %c0_38 = arith.constant 0 : index
    %c16 = arith.constant 16 : index
    %79 = vector.load %arg2[%c0_38, %c16] : memref<16x49xf32, #tpu.memory_space<vmem>>, vector<8x1xf32>
    %c0_39 = arith.constant 0 : index
    %c121 = arith.constant 121 : index
    %80 = vector.load %arg0[%c0_39, %c121] : memref<8x1246xf32, #tpu.memory_space<vmem>>, vector<8x1024xf32>
    %81 = vector.broadcast %79 : vector<8x1xf32> to vector<8x1024xf32>
    %82 = arith.mulf %80, %81 : vector<8x1024xf32>
    %83 = arith.addf %78, %82 : vector<8x1024xf32>
    %c0_40 = arith.constant 0 : index
    %c17 = arith.constant 17 : index
    %84 = vector.load %arg2[%c0_40, %c17] : memref<16x49xf32, #tpu.memory_space<vmem>>, vector<8x1xf32>
    %c0_41 = arith.constant 0 : index
    %c122 = arith.constant 122 : index
    %85 = vector.load %arg0[%c0_41, %c122] : memref<8x1246xf32, #tpu.memory_space<vmem>>, vector<8x1024xf32>
    %86 = vector.broadcast %84 : vector<8x1xf32> to vector<8x1024xf32>
    %87 = arith.mulf %85, %86 : vector<8x1024xf32>
    %88 = arith.addf %83, %87 : vector<8x1024xf32>
    %c0_42 = arith.constant 0 : index
    %c18 = arith.constant 18 : index
    %89 = vector.load %arg2[%c0_42, %c18] : memref<16x49xf32, #tpu.memory_space<vmem>>, vector<8x1xf32>
    %c0_43 = arith.constant 0 : index
    %c200 = arith.constant 200 : index
    %90 = vector.load %arg0[%c0_43, %c200] : memref<8x1246xf32, #tpu.memory_space<vmem>>, vector<8x1024xf32>
    %91 = vector.broadcast %89 : vector<8x1xf32> to vector<8x1024xf32>
    %92 = arith.mulf %90, %91 : vector<8x1024xf32>
    %93 = arith.addf %88, %92 : vector<8x1024xf32>
    %c0_44 = arith.constant 0 : index
    %c19 = arith.constant 19 : index
    %94 = vector.load %arg2[%c0_44, %c19] : memref<16x49xf32, #tpu.memory_space<vmem>>, vector<8x1xf32>
    %c0_45 = arith.constant 0 : index
    %c201 = arith.constant 201 : index
    %95 = vector.load %arg0[%c0_45, %c201] : memref<8x1246xf32, #tpu.memory_space<vmem>>, vector<8x1024xf32>
    %96 = vector.broadcast %94 : vector<8x1xf32> to vector<8x1024xf32>
    %97 = arith.mulf %95, %96 : vector<8x1024xf32>
    %98 = arith.addf %93, %97 : vector<8x1024xf32>
    %c0_46 = arith.constant 0 : index
    %c20_47 = arith.constant 20 : index
    %99 = vector.load %arg2[%c0_46, %c20_47] : memref<16x49xf32, #tpu.memory_space<vmem>>, vector<8x1xf32>
    %c0_48 = arith.constant 0 : index
    %c202 = arith.constant 202 : index
    %100 = vector.load %arg0[%c0_48, %c202] : memref<8x1246xf32, #tpu.memory_space<vmem>>, vector<8x1024xf32>
    %101 = vector.broadcast %99 : vector<8x1xf32> to vector<8x1024xf32>
    %102 = arith.mulf %100, %101 : vector<8x1024xf32>
    %103 = arith.addf %98, %102 : vector<8x1024xf32>
    %c0_49 = arith.constant 0 : index
    %c21_50 = arith.constant 21 : index
    %104 = vector.load %arg2[%c0_49, %c21_50] : memref<16x49xf32, #tpu.memory_space<vmem>>, vector<8x1xf32>
    %c0_51 = arith.constant 0 : index
    %c210 = arith.constant 210 : index
    %105 = vector.load %arg0[%c0_51, %c210] : memref<8x1246xf32, #tpu.memory_space<vmem>>, vector<8x1024xf32>
    %106 = vector.broadcast %104 : vector<8x1xf32> to vector<8x1024xf32>
    %107 = arith.mulf %105, %106 : vector<8x1024xf32>
    %108 = arith.addf %103, %107 : vector<8x1024xf32>
    %c0_52 = arith.constant 0 : index
    %c22_53 = arith.constant 22 : index
    %109 = vector.load %arg2[%c0_52, %c22_53] : memref<16x49xf32, #tpu.memory_space<vmem>>, vector<8x1xf32>
    %c0_54 = arith.constant 0 : index
    %c211 = arith.constant 211 : index
    %110 = vector.load %arg0[%c0_54, %c211] : memref<8x1246xf32, #tpu.memory_space<vmem>>, vector<8x1024xf32>
    %111 = vector.broadcast %109 : vector<8x1xf32> to vector<8x1024xf32>
    %112 = arith.mulf %110, %111 : vector<8x1024xf32>
    %113 = arith.addf %108, %112 : vector<8x1024xf32>
    %c0_55 = arith.constant 0 : index
    %c23 = arith.constant 23 : index
    %114 = vector.load %arg2[%c0_55, %c23] : memref<16x49xf32, #tpu.memory_space<vmem>>, vector<8x1xf32>
    %c0_56 = arith.constant 0 : index
    %c212 = arith.constant 212 : index
    %115 = vector.load %arg0[%c0_56, %c212] : memref<8x1246xf32, #tpu.memory_space<vmem>>, vector<8x1024xf32>
    %116 = vector.broadcast %114 : vector<8x1xf32> to vector<8x1024xf32>
    %117 = arith.mulf %115, %116 : vector<8x1024xf32>
    %118 = arith.addf %113, %117 : vector<8x1024xf32>
    %c0_57 = arith.constant 0 : index
    %c24 = arith.constant 24 : index
    %119 = vector.load %arg2[%c0_57, %c24] : memref<16x49xf32, #tpu.memory_space<vmem>>, vector<8x1xf32>
    %c0_58 = arith.constant 0 : index
    %c220 = arith.constant 220 : index
    %120 = vector.load %arg0[%c0_58, %c220] : memref<8x1246xf32, #tpu.memory_space<vmem>>, vector<8x1024xf32>
    %121 = vector.broadcast %119 : vector<8x1xf32> to vector<8x1024xf32>
    %122 = arith.mulf %120, %121 : vector<8x1024xf32>
    %123 = arith.addf %118, %122 : vector<8x1024xf32>
    %c0_59 = arith.constant 0 : index
    %c25 = arith.constant 25 : index
    %124 = vector.load %arg2[%c0_59, %c25] : memref<16x49xf32, #tpu.memory_space<vmem>>, vector<8x1xf32>
    %c0_60 = arith.constant 0 : index
    %c221 = arith.constant 221 : index
    %125 = vector.load %arg0[%c0_60, %c221] : memref<8x1246xf32, #tpu.memory_space<vmem>>, vector<8x1024xf32>
    %126 = vector.broadcast %124 : vector<8x1xf32> to vector<8x1024xf32>
    %127 = arith.mulf %125, %126 : vector<8x1024xf32>
    %128 = arith.addf %123, %127 : vector<8x1024xf32>
    %c0_61 = arith.constant 0 : index
    %c26 = arith.constant 26 : index
    %129 = vector.load %arg2[%c0_61, %c26] : memref<16x49xf32, #tpu.memory_space<vmem>>, vector<8x1xf32>
    %c0_62 = arith.constant 0 : index
    %c222 = arith.constant 222 : index
    %130 = vector.load %arg0[%c0_62, %c222] : memref<8x1246xf32, #tpu.memory_space<vmem>>, vector<8x1024xf32>
    %131 = vector.broadcast %129 : vector<8x1xf32> to vector<8x1024xf32>
    %132 = arith.mulf %130, %131 : vector<8x1024xf32>
    %133 = arith.addf %128, %132 : vector<8x1024xf32>
    %c0_63 = arith.constant 0 : index
    %c0_64 = arith.constant 0 : index
    %134 = vector.load %arg1[%c0_63, %c0_64] : memref<1x1024xf32, #tpu.memory_space<vmem>>, vector<1x1024xf32>
    %135 = vector.broadcast %134 : vector<1x1024xf32> to vector<8x1024xf32>
    %136 = arith.mulf %133, %135 : vector<8x1024xf32>
    %cst = arith.constant dense<0.000000e+00> : vector<8xf32>
    %137 = vector.multi_reduction <add>, %136, %cst [1] : vector<8x1024xf32> to vector<8xf32>
    %138 = vector.shape_cast %137 : vector<8xf32> to vector<8x1xf32>
    %139 = arith.mulf %136, %133 : vector<8x1024xf32>
    %cst_65 = arith.constant dense<0.000000e+00> : vector<8xf32>
    %140 = vector.multi_reduction <add>, %139, %cst_65 [1] : vector<8x1024xf32> to vector<8xf32>
    %141 = vector.shape_cast %140 : vector<8xf32> to vector<8x1xf32>
    %142 = vector.extract_strided_slice %138 {offsets = [0, 0], sizes = [4, 1], strides = [1, 1]} : vector<8x1xf32> to vector<4x1xf32>
    %143 = vector.extract_strided_slice %141 {offsets = [0, 0], sizes = [4, 1], strides = [1, 1]} : vector<8x1xf32> to vector<4x1xf32>
    %144 = vector.extract_strided_slice %138 {offsets = [4, 0], sizes = [4, 1], strides = [1, 1]} : vector<8x1xf32> to vector<4x1xf32>
    %145 = arith.addf %142, %144 : vector<4x1xf32>
    %146 = vector.extract_strided_slice %141 {offsets = [4, 0], sizes = [4, 1], strides = [1, 1]} : vector<8x1xf32> to vector<4x1xf32>
    %147 = arith.addf %143, %146 : vector<4x1xf32>
    %cst_66 = arith.constant 9.765625E-4 : f32
    %148 = vector.broadcast %cst_66 : f32 to vector<4x1xf32>
    %149 = arith.mulf %145, %148 : vector<4x1xf32>
    %cst_67 = arith.constant 9.765625E-4 : f32
    %150 = vector.broadcast %cst_67 : f32 to vector<4x1xf32>
    %151 = arith.mulf %147, %150 : vector<4x1xf32>
    %152 = arith.mulf %149, %149 : vector<4x1xf32>
    %153 = arith.subf %151, %152 : vector<4x1xf32>
    %cst_68 = arith.constant 0.000000e+00 : f32
    %154 = vector.broadcast %cst_68 : f32 to vector<4x1xf32>
    %155 = arith.maximumf %153, %154 : vector<4x1xf32>
    %c0_69 = arith.constant 0 : index
    %c27 = arith.constant 27 : index
    %156 = vector.load %arg2[%c0_69, %c27] : memref<16x49xf32, #tpu.memory_space<vmem>>, vector<4x1xf32>
    %c0_70 = arith.constant 0 : index
    %c28 = arith.constant 28 : index
    %157 = vector.load %arg2[%c0_70, %c28] : memref<16x49xf32, #tpu.memory_space<vmem>>, vector<4x1xf32>
    %cst_71 = arith.constant 1.000000e-03 : f32
    %158 = vector.broadcast %cst_71 : f32 to vector<4x1xf32>
    %159 = arith.addf %155, %158 : vector<4x1xf32>
    %160 = math.rsqrt %159 : vector<4x1xf32>
    %161 = arith.mulf %156, %160 : vector<4x1xf32>
    %162 = arith.mulf %149, %161 : vector<4x1xf32>
    %163 = arith.subf %157, %162 : vector<4x1xf32>
    %164 = tpu.concatenate %161, %161 in 0 : vector<4x1xf32>, vector<4x1xf32> -> vector<8x1xf32>
    %165 = tpu.concatenate %163, %163 in 0 : vector<4x1xf32>, vector<4x1xf32> -> vector<8x1xf32>
    %166 = vector.broadcast %164 : vector<8x1xf32> to vector<8x1024xf32>
    %167 = arith.mulf %133, %166 : vector<8x1024xf32>
    %168 = vector.broadcast %165 : vector<8x1xf32> to vector<8x1024xf32>
    %169 = arith.addf %167, %168 : vector<8x1024xf32>
    %cst_72 = arith.constant 5.000000e-01 : f32
    %170 = vector.broadcast %cst_72 : f32 to vector<8x1024xf32>
    %171 = arith.mulf %170, %169 : vector<8x1024xf32>
    %cst_73 = arith.constant 0.707106769 : f32
    %172 = vector.broadcast %cst_73 : f32 to vector<8x1024xf32>
    %173 = arith.mulf %169, %172 : vector<8x1024xf32>
    %174 = math.erf %173 : vector<8x1024xf32>
    %cst_74 = arith.constant 1.000000e+00 : f32
    %175 = vector.broadcast %cst_74 : f32 to vector<8x1024xf32>
    %176 = arith.addf %175, %174 : vector<8x1024xf32>
    %177 = arith.mulf %171, %176 : vector<8x1024xf32>
    %c0_75 = arith.constant 0 : index
    %c33 = arith.constant 33 : index
    %178 = vector.load %arg2[%c0_75, %c33] : memref<16x49xf32, #tpu.memory_space<vmem>>, vector<8x1xf32>
    %179 = vector.extract_strided_slice %177 {offsets = [0, 0], sizes = [1, 1024], strides = [1, 1]} : vector<8x1024xf32> to vector<1x1024xf32>
    %180 = vector.broadcast %178 : vector<8x1xf32> to vector<8x1024xf32>
    %181 = vector.broadcast %179 : vector<1x1024xf32> to vector<8x1024xf32>
    %182 = arith.mulf %180, %181 : vector<8x1024xf32>
    %c0_76 = arith.constant 0 : index
    %c34 = arith.constant 34 : index
    %183 = vector.load %arg2[%c0_76, %c34] : memref<16x49xf32, #tpu.memory_space<vmem>>, vector<8x1xf32>
    %184 = vector.extract_strided_slice %177 {offsets = [1, 0], sizes = [1, 1024], strides = [1, 1]} : vector<8x1024xf32> to vector<1x1024xf32>
    %185 = vector.broadcast %183 : vector<8x1xf32> to vector<8x1024xf32>
    %186 = vector.broadcast %184 : vector<1x1024xf32> to vector<8x1024xf32>
    %187 = arith.mulf %185, %186 : vector<8x1024xf32>
    %188 = arith.addf %182, %187 : vector<8x1024xf32>
    %c0_77 = arith.constant 0 : index
    %c35 = arith.constant 35 : index
    %189 = vector.load %arg2[%c0_77, %c35] : memref<16x49xf32, #tpu.memory_space<vmem>>, vector<8x1xf32>
    %190 = vector.extract_strided_slice %177 {offsets = [2, 0], sizes = [1, 1024], strides = [1, 1]} : vector<8x1024xf32> to vector<1x1024xf32>
    %191 = vector.broadcast %189 : vector<8x1xf32> to vector<8x1024xf32>
    %192 = vector.broadcast %190 : vector<1x1024xf32> to vector<8x1024xf32>
    %193 = arith.mulf %191, %192 : vector<8x1024xf32>
    %194 = arith.addf %188, %193 : vector<8x1024xf32>
    %c0_78 = arith.constant 0 : index
    %c36 = arith.constant 36 : index
    %195 = vector.load %arg2[%c0_78, %c36] : memref<16x49xf32, #tpu.memory_space<vmem>>, vector<8x1xf32>
    %196 = vector.extract_strided_slice %177 {offsets = [3, 0], sizes = [1, 1024], strides = [1, 1]} : vector<8x1024xf32> to vector<1x1024xf32>
    %197 = vector.broadcast %195 : vector<8x1xf32> to vector<8x1024xf32>
    %198 = vector.broadcast %196 : vector<1x1024xf32> to vector<8x1024xf32>
    %199 = arith.mulf %197, %198 : vector<8x1024xf32>
    %200 = arith.addf %194, %199 : vector<8x1024xf32>
    %c0_79 = arith.constant 0 : index
    %c37 = arith.constant 37 : index
    %201 = vector.load %arg2[%c0_79, %c37] : memref<16x49xf32, #tpu.memory_space<vmem>>, vector<8x1xf32>
    %202 = vector.extract_strided_slice %177 {offsets = [4, 0], sizes = [1, 1024], strides = [1, 1]} : vector<8x1024xf32> to vector<1x1024xf32>
    %203 = vector.broadcast %201 : vector<8x1xf32> to vector<8x1024xf32>
    %204 = vector.broadcast %202 : vector<1x1024xf32> to vector<8x1024xf32>
    %205 = arith.mulf %203, %204 : vector<8x1024xf32>
    %206 = arith.addf %200, %205 : vector<8x1024xf32>
    %c0_80 = arith.constant 0 : index
    %c38 = arith.constant 38 : index
    %207 = vector.load %arg2[%c0_80, %c38] : memref<16x49xf32, #tpu.memory_space<vmem>>, vector<8x1xf32>
    %208 = vector.extract_strided_slice %177 {offsets = [5, 0], sizes = [1, 1024], strides = [1, 1]} : vector<8x1024xf32> to vector<1x1024xf32>
    %209 = vector.broadcast %207 : vector<8x1xf32> to vector<8x1024xf32>
    %210 = vector.broadcast %208 : vector<1x1024xf32> to vector<8x1024xf32>
    %211 = arith.mulf %209, %210 : vector<8x1024xf32>
    %212 = arith.addf %206, %211 : vector<8x1024xf32>
    %c0_81 = arith.constant 0 : index
    %c39 = arith.constant 39 : index
    %213 = vector.load %arg2[%c0_81, %c39] : memref<16x49xf32, #tpu.memory_space<vmem>>, vector<8x1xf32>
    %214 = vector.extract_strided_slice %177 {offsets = [6, 0], sizes = [1, 1024], strides = [1, 1]} : vector<8x1024xf32> to vector<1x1024xf32>
    %215 = vector.broadcast %213 : vector<8x1xf32> to vector<8x1024xf32>
    %216 = vector.broadcast %214 : vector<1x1024xf32> to vector<8x1024xf32>
    %217 = arith.mulf %215, %216 : vector<8x1024xf32>
    %218 = arith.addf %212, %217 : vector<8x1024xf32>
    %c0_82 = arith.constant 0 : index
    %c40 = arith.constant 40 : index
    %219 = vector.load %arg2[%c0_82, %c40] : memref<16x49xf32, #tpu.memory_space<vmem>>, vector<8x1xf32>
    %220 = vector.extract_strided_slice %177 {offsets = [7, 0], sizes = [1, 1024], strides = [1, 1]} : vector<8x1024xf32> to vector<1x1024xf32>
    %221 = vector.broadcast %219 : vector<8x1xf32> to vector<8x1024xf32>
    %222 = vector.broadcast %220 : vector<1x1024xf32> to vector<8x1024xf32>
    %223 = arith.mulf %221, %222 : vector<8x1024xf32>
    %224 = arith.addf %218, %223 : vector<8x1024xf32>
    %c0_83 = arith.constant 0 : index
    %c0_84 = arith.constant 0 : index
    %225 = vector.load %arg1[%c0_83, %c0_84] : memref<1x1024xf32, #tpu.memory_space<vmem>>, vector<1x1024xf32>
    %226 = vector.broadcast %225 : vector<1x1024xf32> to vector<8x1024xf32>
    %227 = arith.mulf %224, %226 : vector<8x1024xf32>
    %cst_85 = arith.constant dense<0.000000e+00> : vector<8xf32>
    %228 = vector.multi_reduction <add>, %227, %cst_85 [1] : vector<8x1024xf32> to vector<8xf32>
    %229 = vector.shape_cast %228 : vector<8xf32> to vector<8x1xf32>
    %230 = arith.mulf %227, %224 : vector<8x1024xf32>
    %cst_86 = arith.constant dense<0.000000e+00> : vector<8xf32>
    %231 = vector.multi_reduction <add>, %230, %cst_86 [1] : vector<8x1024xf32> to vector<8xf32>
    %232 = vector.shape_cast %231 : vector<8xf32> to vector<8x1xf32>
    %233 = vector.extract_strided_slice %229 {offsets = [0, 0], sizes = [4, 1], strides = [1, 1]} : vector<8x1xf32> to vector<4x1xf32>
    %234 = vector.extract_strided_slice %232 {offsets = [0, 0], sizes = [4, 1], strides = [1, 1]} : vector<8x1xf32> to vector<4x1xf32>
    %235 = vector.extract_strided_slice %229 {offsets = [4, 0], sizes = [4, 1], strides = [1, 1]} : vector<8x1xf32> to vector<4x1xf32>
    %236 = arith.addf %233, %235 : vector<4x1xf32>
    %237 = vector.extract_strided_slice %232 {offsets = [4, 0], sizes = [4, 1], strides = [1, 1]} : vector<8x1xf32> to vector<4x1xf32>
    %238 = arith.addf %234, %237 : vector<4x1xf32>
    %cst_87 = arith.constant 9.765625E-4 : f32
    %239 = vector.broadcast %cst_87 : f32 to vector<4x1xf32>
    %240 = arith.mulf %236, %239 : vector<4x1xf32>
    %cst_88 = arith.constant 9.765625E-4 : f32
    %241 = vector.broadcast %cst_88 : f32 to vector<4x1xf32>
    %242 = arith.mulf %238, %241 : vector<4x1xf32>
    %243 = arith.mulf %240, %240 : vector<4x1xf32>
    %244 = arith.subf %242, %243 : vector<4x1xf32>
    %cst_89 = arith.constant 0.000000e+00 : f32
    %245 = vector.broadcast %cst_89 : f32 to vector<4x1xf32>
    %246 = arith.maximumf %244, %245 : vector<4x1xf32>
    %c0_90 = arith.constant 0 : index
    %c29 = arith.constant 29 : index
    %247 = vector.load %arg2[%c0_90, %c29] : memref<16x49xf32, #tpu.memory_space<vmem>>, vector<4x1xf32>
    %c0_91 = arith.constant 0 : index
    %c30 = arith.constant 30 : index
    %248 = vector.load %arg2[%c0_91, %c30] : memref<16x49xf32, #tpu.memory_space<vmem>>, vector<4x1xf32>
    %cst_92 = arith.constant 1.000000e-03 : f32
    %249 = vector.broadcast %cst_92 : f32 to vector<4x1xf32>
    %250 = arith.addf %246, %249 : vector<4x1xf32>
    %251 = math.rsqrt %250 : vector<4x1xf32>
    %252 = arith.mulf %247, %251 : vector<4x1xf32>
    %253 = arith.mulf %240, %252 : vector<4x1xf32>
    %254 = arith.subf %248, %253 : vector<4x1xf32>
    %255 = tpu.concatenate %252, %252 in 0 : vector<4x1xf32>, vector<4x1xf32> -> vector<8x1xf32>
    %256 = tpu.concatenate %254, %254 in 0 : vector<4x1xf32>, vector<4x1xf32> -> vector<8x1xf32>
    %257 = vector.broadcast %255 : vector<8x1xf32> to vector<8x1024xf32>
    %258 = arith.mulf %224, %257 : vector<8x1024xf32>
    %259 = vector.broadcast %256 : vector<8x1xf32> to vector<8x1024xf32>
    %260 = arith.addf %258, %259 : vector<8x1024xf32>
    %cst_93 = arith.constant 5.000000e-01 : f32
    %261 = vector.broadcast %cst_93 : f32 to vector<8x1024xf32>
    %262 = arith.mulf %261, %260 : vector<8x1024xf32>
    %cst_94 = arith.constant 0.707106769 : f32
    %263 = vector.broadcast %cst_94 : f32 to vector<8x1024xf32>
    %264 = arith.mulf %260, %263 : vector<8x1024xf32>
    %265 = math.erf %264 : vector<8x1024xf32>
    %cst_95 = arith.constant 1.000000e+00 : f32
    %266 = vector.broadcast %cst_95 : f32 to vector<8x1024xf32>
    %267 = arith.addf %266, %265 : vector<8x1024xf32>
    %268 = arith.mulf %262, %267 : vector<8x1024xf32>
    %c0_96 = arith.constant 0 : index
    %c41 = arith.constant 41 : index
    %269 = vector.load %arg2[%c0_96, %c41] : memref<16x49xf32, #tpu.memory_space<vmem>>, vector<16x1xf32>
    %270 = vector.extract_strided_slice %268 {offsets = [0, 0], sizes = [1, 1024], strides = [1, 1]} : vector<8x1024xf32> to vector<1x1024xf32>
    %271 = vector.broadcast %269 : vector<16x1xf32> to vector<16x1024xf32>
    %272 = vector.broadcast %270 : vector<1x1024xf32> to vector<16x1024xf32>
    %273 = arith.mulf %271, %272 : vector<16x1024xf32>
    %c0_97 = arith.constant 0 : index
    %c42 = arith.constant 42 : index
    %274 = vector.load %arg2[%c0_97, %c42] : memref<16x49xf32, #tpu.memory_space<vmem>>, vector<16x1xf32>
    %275 = vector.extract_strided_slice %268 {offsets = [1, 0], sizes = [1, 1024], strides = [1, 1]} : vector<8x1024xf32> to vector<1x1024xf32>
    %276 = vector.broadcast %274 : vector<16x1xf32> to vector<16x1024xf32>
    %277 = vector.broadcast %275 : vector<1x1024xf32> to vector<16x1024xf32>
    %278 = arith.mulf %276, %277 : vector<16x1024xf32>
    %279 = arith.addf %273, %278 : vector<16x1024xf32>
    %c0_98 = arith.constant 0 : index
    %c43 = arith.constant 43 : index
    %280 = vector.load %arg2[%c0_98, %c43] : memref<16x49xf32, #tpu.memory_space<vmem>>, vector<16x1xf32>
    %281 = vector.extract_strided_slice %268 {offsets = [2, 0], sizes = [1, 1024], strides = [1, 1]} : vector<8x1024xf32> to vector<1x1024xf32>
    %282 = vector.broadcast %280 : vector<16x1xf32> to vector<16x1024xf32>
    %283 = vector.broadcast %281 : vector<1x1024xf32> to vector<16x1024xf32>
    %284 = arith.mulf %282, %283 : vector<16x1024xf32>
    %285 = arith.addf %279, %284 : vector<16x1024xf32>
    %c0_99 = arith.constant 0 : index
    %c44 = arith.constant 44 : index
    %286 = vector.load %arg2[%c0_99, %c44] : memref<16x49xf32, #tpu.memory_space<vmem>>, vector<16x1xf32>
    %287 = vector.extract_strided_slice %268 {offsets = [3, 0], sizes = [1, 1024], strides = [1, 1]} : vector<8x1024xf32> to vector<1x1024xf32>
    %288 = vector.broadcast %286 : vector<16x1xf32> to vector<16x1024xf32>
    %289 = vector.broadcast %287 : vector<1x1024xf32> to vector<16x1024xf32>
    %290 = arith.mulf %288, %289 : vector<16x1024xf32>
    %291 = arith.addf %285, %290 : vector<16x1024xf32>
    %c0_100 = arith.constant 0 : index
    %c45 = arith.constant 45 : index
    %292 = vector.load %arg2[%c0_100, %c45] : memref<16x49xf32, #tpu.memory_space<vmem>>, vector<16x1xf32>
    %293 = vector.extract_strided_slice %268 {offsets = [4, 0], sizes = [1, 1024], strides = [1, 1]} : vector<8x1024xf32> to vector<1x1024xf32>
    %294 = vector.broadcast %292 : vector<16x1xf32> to vector<16x1024xf32>
    %295 = vector.broadcast %293 : vector<1x1024xf32> to vector<16x1024xf32>
    %296 = arith.mulf %294, %295 : vector<16x1024xf32>
    %297 = arith.addf %291, %296 : vector<16x1024xf32>
    %c0_101 = arith.constant 0 : index
    %c46 = arith.constant 46 : index
    %298 = vector.load %arg2[%c0_101, %c46] : memref<16x49xf32, #tpu.memory_space<vmem>>, vector<16x1xf32>
    %299 = vector.extract_strided_slice %268 {offsets = [5, 0], sizes = [1, 1024], strides = [1, 1]} : vector<8x1024xf32> to vector<1x1024xf32>
    %300 = vector.broadcast %298 : vector<16x1xf32> to vector<16x1024xf32>
    %301 = vector.broadcast %299 : vector<1x1024xf32> to vector<16x1024xf32>
    %302 = arith.mulf %300, %301 : vector<16x1024xf32>
    %303 = arith.addf %297, %302 : vector<16x1024xf32>
    %c0_102 = arith.constant 0 : index
    %c47 = arith.constant 47 : index
    %304 = vector.load %arg2[%c0_102, %c47] : memref<16x49xf32, #tpu.memory_space<vmem>>, vector<16x1xf32>
    %305 = vector.extract_strided_slice %268 {offsets = [6, 0], sizes = [1, 1024], strides = [1, 1]} : vector<8x1024xf32> to vector<1x1024xf32>
    %306 = vector.broadcast %304 : vector<16x1xf32> to vector<16x1024xf32>
    %307 = vector.broadcast %305 : vector<1x1024xf32> to vector<16x1024xf32>
    %308 = arith.mulf %306, %307 : vector<16x1024xf32>
    %309 = arith.addf %303, %308 : vector<16x1024xf32>
    %c0_103 = arith.constant 0 : index
    %c48 = arith.constant 48 : index
    %310 = vector.load %arg2[%c0_103, %c48] : memref<16x49xf32, #tpu.memory_space<vmem>>, vector<16x1xf32>
    %311 = vector.extract_strided_slice %268 {offsets = [7, 0], sizes = [1, 1024], strides = [1, 1]} : vector<8x1024xf32> to vector<1x1024xf32>
    %312 = vector.broadcast %310 : vector<16x1xf32> to vector<16x1024xf32>
    %313 = vector.broadcast %311 : vector<1x1024xf32> to vector<16x1024xf32>
    %314 = arith.mulf %312, %313 : vector<16x1024xf32>
    %315 = arith.addf %309, %314 : vector<16x1024xf32>
    %c0_104 = arith.constant 0 : index
    %c0_105 = arith.constant 0 : index
    %316 = vector.load %arg1[%c0_104, %c0_105] : memref<1x1024xf32, #tpu.memory_space<vmem>>, vector<1x1024xf32>
    %317 = vector.broadcast %316 : vector<1x1024xf32> to vector<16x1024xf32>
    %318 = arith.mulf %315, %317 : vector<16x1024xf32>
    %cst_106 = arith.constant dense<0.000000e+00> : vector<16xf32>
    %319 = vector.multi_reduction <add>, %318, %cst_106 [1] : vector<16x1024xf32> to vector<16xf32>
    %320 = vector.shape_cast %319 : vector<16xf32> to vector<16x1xf32>
    %321 = arith.mulf %318, %315 : vector<16x1024xf32>
    %cst_107 = arith.constant dense<0.000000e+00> : vector<16xf32>
    %322 = vector.multi_reduction <add>, %321, %cst_107 [1] : vector<16x1024xf32> to vector<16xf32>
    %323 = vector.shape_cast %322 : vector<16xf32> to vector<16x1xf32>
    %324 = vector.extract_strided_slice %320 {offsets = [0, 0], sizes = [8, 1], strides = [1, 1]} : vector<16x1xf32> to vector<8x1xf32>
    %325 = vector.extract_strided_slice %323 {offsets = [0, 0], sizes = [8, 1], strides = [1, 1]} : vector<16x1xf32> to vector<8x1xf32>
    %326 = vector.extract_strided_slice %320 {offsets = [8, 0], sizes = [8, 1], strides = [1, 1]} : vector<16x1xf32> to vector<8x1xf32>
    %327 = arith.addf %324, %326 : vector<8x1xf32>
    %328 = vector.extract_strided_slice %323 {offsets = [8, 0], sizes = [8, 1], strides = [1, 1]} : vector<16x1xf32> to vector<8x1xf32>
    %329 = arith.addf %325, %328 : vector<8x1xf32>
    %cst_108 = arith.constant 9.765625E-4 : f32
    %330 = vector.broadcast %cst_108 : f32 to vector<8x1xf32>
    %331 = arith.mulf %327, %330 : vector<8x1xf32>
    %cst_109 = arith.constant 9.765625E-4 : f32
    %332 = vector.broadcast %cst_109 : f32 to vector<8x1xf32>
    %333 = arith.mulf %329, %332 : vector<8x1xf32>
    %334 = arith.mulf %331, %331 : vector<8x1xf32>
    %335 = arith.subf %333, %334 : vector<8x1xf32>
    %cst_110 = arith.constant 0.000000e+00 : f32
    %336 = vector.broadcast %cst_110 : f32 to vector<8x1xf32>
    %337 = arith.maximumf %335, %336 : vector<8x1xf32>
    %c0_111 = arith.constant 0 : index
    %c31 = arith.constant 31 : index
    %338 = vector.load %arg2[%c0_111, %c31] : memref<16x49xf32, #tpu.memory_space<vmem>>, vector<8x1xf32>
    %c0_112 = arith.constant 0 : index
    %c32 = arith.constant 32 : index
    %339 = vector.load %arg2[%c0_112, %c32] : memref<16x49xf32, #tpu.memory_space<vmem>>, vector<8x1xf32>
    %cst_113 = arith.constant 1.000000e-03 : f32
    %340 = vector.broadcast %cst_113 : f32 to vector<8x1xf32>
    %341 = arith.addf %337, %340 : vector<8x1xf32>
    %342 = math.rsqrt %341 : vector<8x1xf32>
    %343 = arith.mulf %338, %342 : vector<8x1xf32>
    %344 = arith.mulf %331, %343 : vector<8x1xf32>
    %345 = arith.subf %339, %344 : vector<8x1xf32>
    %346 = tpu.concatenate %343, %343 in 0 : vector<8x1xf32>, vector<8x1xf32> -> vector<16x1xf32>
    %347 = tpu.concatenate %345, %345 in 0 : vector<8x1xf32>, vector<8x1xf32> -> vector<16x1xf32>
    %348 = vector.broadcast %346 : vector<16x1xf32> to vector<16x1024xf32>
    %349 = arith.mulf %315, %348 : vector<16x1024xf32>
    %350 = vector.broadcast %347 : vector<16x1xf32> to vector<16x1024xf32>
    %351 = arith.addf %349, %350 : vector<16x1024xf32>
    %cst_114 = arith.constant 5.000000e-01 : f32
    %352 = vector.broadcast %cst_114 : f32 to vector<16x1024xf32>
    %353 = arith.mulf %352, %351 : vector<16x1024xf32>
    %cst_115 = arith.constant 0.707106769 : f32
    %354 = vector.broadcast %cst_115 : f32 to vector<16x1024xf32>
    %355 = arith.mulf %351, %354 : vector<16x1024xf32>
    %356 = math.erf %355 : vector<16x1024xf32>
    %cst_116 = arith.constant 1.000000e+00 : f32
    %357 = vector.broadcast %cst_116 : f32 to vector<16x1024xf32>
    %358 = arith.addf %357, %356 : vector<16x1024xf32>
    %359 = arith.mulf %353, %358 : vector<16x1024xf32>
    %c0_117 = arith.constant 0 : index
    %c0_118 = arith.constant 0 : index
    %360 = vector.load %arg3[%c0_117, %c0_118] : memref<16x1024xf32, #tpu.memory_space<vmem>>, vector<16x1024xf32>
    tpu.vector_store %arg3[%c0_117, %c0_118], %359 {strides = array<i32>} : memref<16x1024xf32, #tpu.memory_space<vmem>>, vector<16x1024xf32>,
    return
  }
}

</mosaic_0001>

<bundles_post_ra>
// kernel: conv_block_forward.1
= control target key start
LH: loop header
LB: loop body
LE: loop exit
PB: predicated region body
PF: predicated region fallthrough
CT: control target
= control target key end

     0   :  { %v4387_v0 = vmov 0   ;;  %v4388_v2 = vmov 3   ;;  %v4389_v3 = vmov 1   ;;  %v4390_v4 = vmov 2   ;;  %s4393_s20 = smov 127   ;;  %s4394_s27 = smov 126   ;;  %s8985_s2 = inlined_call_operand.vmem [shape: f32[16,49], index: 2, kind: input, shape index: {}]   ;;  %s8986_s0 = inlined_call_operand.vmem [shape: f32[8,1246], index: 0, kind: input, shape index: {}]   ;;  %s8987_s1 = inlined_call_operand.vmem [shape: f32[1,1024], index: 1, kind: input, shape index: {}]   ;;  %s8988_s3 = inlined_call_operand.vmem [shape: f32[16,1024], index: 3, kind: output, shape index: {}]  }
   0x1   :  { %4239 = vset.pattern.permute.xlu0 %v4387_v0  ;;  %v4490_v1 = vld [vmem:[%s8985_s2] sm:$0xff]  ;;  %4242 = vset.pattern.permute.xlu2 %v4388_v2  ;;  %v4391_v5 = vmov 4   ;;  %v4392_v6 = vmov 5   ;;  %v4503_v9 = vld [vmem:[%s8986_s0 + $0x30] sm:$0xff]  ;;  %v4521_v15 = vld [vmem:[%s8986_s0 + $0x18] sm:$0xff]  ;;  %s4395_s7 = smov 118  }
   0x2   :  { %25 = vperm.xlu0 %4239, %v4490_v1   ;;  %176 = vperm.xlu2 %4242, %v4490_v1   ;;  %v4508_v10 = vld [vmem:[%s8986_s0 + $0x10] sm:$0xff]  ;;  %v4513_v11 = vld [vmem:[%s8986_s0] sm:$0xff]  ;;  %v4527_v18 = vld [vmem:[%s8986_s0 + $0x8] sm:$0xff]  ;;  %s4396_s8 = smov 117   ;;  %v4397_v45 = vmov 6   ;;  %v4398_v48 = vmov 8  }
   0x3   :  { %v4532_v19 = vld [vmem:[%s8986_s0 + $0x20] sm:$0xff]  ;;  %v4540_v22 = vld [vmem:[%s8986_s0 + $0x38] sm:$0xff]  ;;  %v4545_v23 = vld [vmem:[%s8986_s0 + $0x28] sm:$0xff]  ;;  %v4399_v51 = vmov 11   ;;  %v4400_v54 = vmov 16   ;;  %v4401_v58 = vmov 7  }
   0x4   :  { %v4554_v28 = vld [vmem:[%s8986_s0 + $0x40] sm:$0xff]  ;;  %4246 = vset.pattern.permute.xlu1 %v4401_v58  ;;  %v4402_v59 = vmov 21   ;;  %s4403_s9 = smov 116   ;;  %v4404_v0 = vmov 26   ;;  %s4419_s10 = smov 108   ;;  %vm85_vm0 = vcmask 1039360  }
   0x5   :  { %s4420_s11 = smov 107   ;;  %s4421_s12 = smov 106   ;;  %vm150_vm1 = vcmask 1031168   ;;  %vm215_vm2 = vcmask 965632   ;;  %vm280_vm3 = vcmask 957440   ;;  %vm345_vm4 = vcmask 949248  }
   0x6   :  { %s4422_s13 = smov 28   ;;  %s4423_s14 = smov 27   ;;  %vm410_vm5 = vcmask 883712   ;;  %vm475_vm6 = vcmask 875520   ;;  %vm540_vm7 = vcmask 867328   ;;  %vm800_vm8 = vcmask 146432  }
   0x7   :  { %s4424_s15 = smov 26   ;;  %s4425_s16 = smov 18   ;;  %vm605_vm9 = vcmask 228352   ;;  %vm670_vm10 = vcmask 220160   ;;  %vm995_vm11 = vcmask 64512   ;;  %vm735_vm12 = vcmask 211968  }
   0x8   :  { %s4426_s17 = smov 17   ;;  %s4427_s18 = smov 16   ;;  %vm1125_vm13 = vcmask 48128   ;;  %vm9081_vm14 = vcmask 138240   ;;  %vm930_vm15 = vcmask 130048  }
   0x9   :  { %s4428_s19 = smov 8   ;;  %s4430_s21 = smov 6  }
   0xa   :  { %4240 = vset.pattern.permute.xlu0 %v4389_v3  ;;  %4244 = vset.pattern.permute.xlu2 %v4392_v6  ;;  %s4431_s28 = smov 56   ;;  %s4432_s4 = smov 55  }
   0xb   :  { %46 = vperm.xlu0 %4240, %v4490_v1   ;;  %306 = vperm.xlu2 %4244, %v4490_v1   ;;  %s4438_s25 = smov 35   ;;  %s4465_s26 = smov 1  }
  0x13   :  { %4241 = vset.pattern.permute.xlu0 %v4390_v4  ;;  %4247 = vset.pattern.permute.xlu2 %v4398_v48 }
  0x14   :  { %111 = vperm.xlu0 %4241, %v4490_v1  }
  0x1c   :  { %4243 = vset.pattern.permute.xlu0 %v4391_v5  ;;  %v4405_v5 = vmov 10  }
  0x1d   :  { %241 = vperm.xlu0 %4243, %v4490_v1  }
  0x25   :  { %4245 = vset.pattern.permute.xlu0 %v4397_v45 }
  0x5c   :  { %v177_v27 = vpop.permute.xlu2 %176 }
  0x5d   :  { %v179_v29 = vmul.f32 %v177_v27, %v4513_v11  ;;  %v182_v34 = vmul.f32 %v177_v27, %v4521_v15  ;;  %v185_v35 = vmul.f32 %v177_v27, %v4503_v9  ;;  %v181_v42 = vmul.f32 %v177_v27, %v4508_v10 }
  0x5e   :  { %v184_v46 = vmul.f32 %v177_v27, %v4545_v23  ;;  %v180_v47 = vmul.f32 %v177_v27, %v4527_v18  ;;  %v187_v49 = vmul.f32 %v177_v27, %v4554_v28  ;;  %v183_v50 = vmul.f32 %v177_v27, %v4532_v19 }
  0x5f   :  { %v186_v53 = vmul.f32 %v177_v27, %v4540_v22 }
  0x65   :  { %v4599_v55 = vpop.permute.xlu2 %306 }
  0x66   :  { %v309_v63 = vmul.f32 %v4599_v55, %v4513_v11  ;;  %v313_v6 = vmul.f32 %v4599_v55, %v4532_v19 }
  0x74   :  { %v4498_v7 = vpop.permute.xlu0 %25 }
  0x7d   :  { %v47_v8 = vpop.permute.xlu0 %46 }
  0x7e   :  { %v55_v12 = vmul.f32 %v47_v8, %v4503_v9  ;;  %v51_v13 = vmul.f32 %v47_v8, %v4508_v10  ;;  %v49_v14 = vmul.f32 %v47_v8, %v4513_v11  ;;  %v52_v17 = vmul.f32 %v47_v8, %v4521_v15 }
  0x7f   :  { %v50_v20 = vmul.f32 %v47_v8, %v4527_v18  ;;  %v54_v25 = vmul.f32 %v47_v8, %v4545_v23  ;;  %v53_v26 = vmul.f32 %v47_v8, %v4532_v19  ;;  %v57_v30 = vmul.f32 %v47_v8, %v4554_v28 }
  0x80   :  { %79 = vrot.lane.b32.xlu0 %v55_v12, %s4393_s20  ;;  %71 = vrot.lane.b32.xlu2 %v51_v13, %s4393_s20  ;;  %v56_v31 = vmul.f32 %v47_v8, %v4540_v22 }
  0x81   :  { %67 = vrot.lane.b32.xlu1 %v49_v14, %s4393_s20  ;;  %v4406_v14 = vmov 13  }
  0x86   :  { %v112_v16 = vpop.permute.xlu0 %111 }
  0x87   :  { %v118_v21 = vmul.f32 %v112_v16, %v4532_v19  ;;  %v121_v24 = vmul.f32 %v112_v16, %v4540_v22  ;;  %v115_v32 = vmul.f32 %v112_v16, %v4527_v18  ;;  %v114_v33 = vmul.f32 %v112_v16, %v4513_v11 }
  0x88   :  { %73 = vrot.lane.b32.xlu2 %v52_v17, %s4393_s20  ;;  %v117_v36 = vmul.f32 %v112_v16, %v4521_v15  ;;  %v116_v37 = vmul.f32 %v112_v16, %v4508_v10  ;;  %v120_v40 = vmul.f32 %v112_v16, %v4503_v9  ;;  %v119_v41 = vmul.f32 %v112_v16, %v4545_v23 }
  0x89   :  { %69 = vrot.lane.b32.xlu1 %v50_v20, %s4393_s20  ;;  %140 = vrot.lane.b32.xlu0 %v118_v21, %s4394_s27  ;;  %v122_v44 = vmul.f32 %v112_v16, %v4554_v28  ;;  %v4407_v21 = vmov 9  }
  0x8f   :  { %v242_v38 = vpop.permute.xlu0 %241 }
  0x90   :  { %77 = vrot.lane.b32.xlu2 %v54_v25, %s4393_s20  ;;  %v248_v39 = vmul.f32 %v242_v38, %v4532_v19  ;;  %v251_v43 = vmul.f32 %v242_v38, %v4540_v22  ;;  %v245_v52 = vmul.f32 %v242_v38, %v4527_v18  ;;  %v247_v56 = vmul.f32 %v242_v38, %v4521_v15 }
  0x91   :  { %75 = vrot.lane.b32.xlu1 %v53_v26, %s4393_s20  ;;  %146 = vrot.lane.b32.xlu0 %v121_v24, %s4394_s27  ;;  %v244_v57 = vmul.f32 %v242_v38, %v4513_v11  ;;  %v250_v61 = vmul.f32 %v242_v38, %v4503_v9  ;;  %v246_v62 = vmul.f32 %v242_v38, %v4508_v10  ;;  %v4408_v24 = vmov 15  }
  0x92   :  { %v249_v2 = vmul.f32 %v242_v38, %v4545_v23  ;;  %v252_v4 = vmul.f32 %v242_v38, %v4554_v28 }
  0x98   :  { %83 = vrot.lane.b32.xlu2 %v57_v30, %s4393_s20 }
  0x99   :  { %81 = vrot.lane.b32.xlu1 %v56_v31, %s4393_s20  ;;  %197 = vrot.lane.b32.xlu0 %v179_v29, %s4395_s7  ;;  %v4409_v29 = vmov 12   ;;  %v4410_v31 = vmov 18   ;;  %s4429_s20 = smov 7  }
  0xa0   :  { %134 = vrot.lane.b32.xlu2 %v115_v32, %s4394_s27 }
  0xa1   :  { %132 = vrot.lane.b32.xlu1 %v114_v33, %s4394_s27  ;;  %203 = vrot.lane.b32.xlu0 %v182_v34, %s4395_s7  ;;  %v4411_v34 = vmov 14  }
  0xa8   :  { %138 = vrot.lane.b32.xlu2 %v117_v36, %s4394_s27 }
  0xa9   :  { %136 = vrot.lane.b32.xlu1 %v116_v37, %s4394_s27  ;;  %209 = vrot.lane.b32.xlu0 %v185_v35, %s4395_s7  ;;  %v4412_v37 = vmov 20  }
  0xb0   :  { %144 = vrot.lane.b32.xlu2 %v120_v40, %s4394_s27 }
  0xb1   :  { %142 = vrot.lane.b32.xlu1 %v119_v41, %s4394_s27  ;;  %270 = vrot.lane.b32.xlu0 %v248_v39, %s4396_s8  ;;  %v4413_v41 = vmov 17  }
  0xb8   :  { %201 = vrot.lane.b32.xlu2 %v181_v42, %s4395_s7  ;;  %v4414_v42 = vmov 23  }
  0xb9   :  { %148 = vrot.lane.b32.xlu1 %v122_v44, %s4394_s27  ;;  %276 = vrot.lane.b32.xlu0 %v251_v43, %s4396_s8 }
  0xc0   :  { %207 = vrot.lane.b32.xlu2 %v184_v46, %s4395_s7  ;;  %v4415_v46 = vmov 19  }
  0xc1   :  { %199 = vrot.lane.b32.xlu1 %v180_v47, %s4395_s7  ;;  %371 = vperm.xlu0 %4245, %v4490_v1   ;;  %v4416_v47 = vmov 25  }
  0xc8   :  { %213 = vrot.lane.b32.xlu2 %v187_v49, %s4395_s7 }
  0xc9   :  { %205 = vrot.lane.b32.xlu1 %v183_v50, %s4395_s7  ;;  %4250 = vset.pattern.permute.xlu0 %v4399_v51  ;;  %v311_v50 = vmul.f32 %v4599_v55, %v4508_v10  ;;  %v4417_v51 = vmov 22  }
  0xca   :  { %696 = vperm.xlu0 %4250, %v4490_v1  }
  0xd0   :  { %264 = vrot.lane.b32.xlu2 %v245_v52, %s4396_s8 }
  0xd1   :  { %211 = vrot.lane.b32.xlu1 %v186_v53, %s4395_s7 }
  0xd2   :  { %4255 = vset.pattern.permute.xlu0 %v4400_v54 }
  0xd3   :  { %1021 = vperm.xlu0 %4255, %v4490_v1  }
  0xd8   :  { %268 = vrot.lane.b32.xlu2 %v247_v56, %s4396_s8 }
  0xd9   :  { %262 = vrot.lane.b32.xlu1 %v244_v57, %s4396_s8  ;;  %v4418_v57 = vmov 24  }
  0xda   :  { %v4606_v60 = vpop.permute.xlu2 %71 }
  0xdb   :  { %4260 = vset.pattern.permute.xlu0 %v4402_v59  ;;  %9139 = vst [vmem:[#allocation2_spill] sm:$0xff] %v4606_v60 }
  0xdc   :  { %1355 = vperm.xlu0 %4260, %v4490_v1  }
  0xe0   :  { %274 = vrot.lane.b32.xlu2 %v250_v61, %s4396_s8 }
  0xe1   :  { %266 = vrot.lane.b32.xlu1 %v246_v62, %s4396_s8  ;;  %v310_v62 = vmul.f32 %v4599_v55, %v4527_v18 }
  0xe2   :  { %v4616_v3 = vpop.permute.xlu2 %73 }
  0xe3   :  { %9140 = vst [vmem:[#allocation3_spill] sm:$0xff] %v4616_v3 }
  0xe4   :  { %327 = vrot.lane.b32.xlu0 %v309_v63, %s4403_s9 }
  0xe5   :  { %4265 = vset.pattern.permute.xlu0 %v4404_v0 }
  0xe8   :  { %501 = vperm.xlu2 %4247, %v4490_v1  }
  0xe9   :  { %272 = vrot.lane.b32.xlu1 %v249_v2, %s4396_s8 }
  0xea   :  { %v4626_v8 = vpop.permute.xlu2 %77 }
  0xec   :  { %1680 = vperm.xlu0 %4265, %v4490_v1  }
  0xf0   :  { %4249 = vset.pattern.permute.xlu2 %v4405_v5 }
  0xf1   :  { %278 = vrot.lane.b32.xlu1 %v252_v4, %s4396_s8  ;;  %631 = vperm.xlu2 %4249, %v4490_v1  }
  0xf2   :  { %v4628_v12 = vpop.permute.xlu0 %79  ;;  %v4639_v20 = vpop.permute.xlu2 %83 }
  0xf3   :  { %9141 = vst [vmem:[#allocation4_spill] sm:$0xff] %v4628_v12  ;;  %v4630_v13 = vpop.permute.xlu1 %67 }
  0xf4   :  { %335 = vrot.lane.b32.xlu0 %v313_v6, %s4403_s9 }
  0xf9   :  { %436 = vperm.xlu1 %4246, %v4490_v1   ;;  %4252 = vset.pattern.permute.xlu2 %v4406_v14 }
  0xfa   :  { %826 = vperm.xlu2 %4252, %v4490_v1   ;;  %v4647_v27 = vpop.permute.xlu2 %134 }
  0xfb   :  { %v4635_v16 = vpop.permute.xlu1 %69  ;;  %v4637_v17 = vpop.permute.xlu0 %140 }
 0x101   :  { %4248 = vset.pattern.permute.xlu1 %v4407_v21 }
 0x102   :  { %566 = vperm.xlu1 %4248, %v4490_v1   ;;  %4254 = vset.pattern.permute.xlu2 %v4408_v24  ;;  %v4655_v33 = vpop.permute.xlu2 %138 }
 0x103   :  { %v4642_v25 = vpop.permute.xlu1 %75  ;;  %v4644_v26 = vpop.permute.xlu0 %146  ;;  %956 = vperm.xlu2 %4254, %v4490_v1  }
 0x10a   :  { %4251 = vset.pattern.permute.xlu1 %v4409_v29  ;;  %v4663_v38 = vpop.permute.xlu2 %144 }
 0x10b   :  { %761 = vperm.xlu1 %4251, %v4490_v1   ;;  %v4650_v30 = vpop.permute.xlu1 %81  ;;  %4257 = vset.pattern.permute.xlu2 %v4410_v31  ;;  %v4652_v32 = vpop.permute.xlu0 %197 }
 0x10c   :  { %1160 = vperm.xlu2 %4257, %v4490_v1  }
 0x112   :  { %v4675_v45 = vpop.permute.xlu2 %201 }
 0x113   :  { %4253 = vset.pattern.permute.xlu1 %v4411_v34  ;;  %v4657_v35 = vpop.permute.xlu1 %132  ;;  %v4659_v36 = vpop.permute.xlu0 %203  ;;  %9144 = vst [vmem:[#allocation7_spill] sm:$0xff] %v4675_v45 }
 0x114   :  { %9142 = vst [vmem:[#allocation5_spill] sm:$0xff] %v4659_v36  ;;  %891 = vperm.xlu1 %4253, %v4490_v1   ;;  %4259 = vset.pattern.permute.xlu2 %v4412_v37 }
 0x115   :  { %1290 = vperm.xlu2 %4259, %v4490_v1  }
 0x11a   :  { %v4685_v52 = vpop.permute.xlu2 %207 }
 0x11b   :  { %v4665_v39 = vpop.permute.xlu1 %136  ;;  %v4667_v40 = vpop.permute.xlu0 %209  ;;  %9146 = vst [vmem:[#allocation9_spill] sm:$0xff] %v4685_v52 }
 0x11c   :  { %9143 = vst [vmem:[#allocation6_spill] sm:$0xff] %v4667_v40  ;;  %4256 = vset.pattern.permute.xlu1 %v4413_v41 }
 0x11d   :  { %1086 = vperm.xlu1 %4256, %v4490_v1   ;;  %4262 = vset.pattern.permute.xlu2 %v4414_v42 }
 0x11e   :  { %1485 = vperm.xlu2 %4262, %v4490_v1  }
 0x122   :  { %v4697_v58 = vpop.permute.xlu2 %213 }
 0x123   :  { %v4671_v43 = vpop.permute.xlu1 %142  ;;  %v4673_v44 = vpop.permute.xlu0 %270 }
 0x125   :  { %4258 = vset.pattern.permute.xlu1 %v4415_v46 }
 0x126   :  { %1225 = vperm.xlu1 %4258, %v4490_v1   ;;  %4264 = vset.pattern.permute.xlu2 %v4416_v47 }
 0x127   :  { %1615 = vperm.xlu2 %4264, %v4490_v1  }
 0x12a   :  { %v4707_v63 = vpop.permute.xlu2 %264 }
 0x12b   :  { %v4679_v48 = vpop.permute.xlu1 %148  ;;  %v4681_v49 = vpop.permute.xlu0 %276 }
 0x12c   :  { %9145 = vst [vmem:[#allocation8_spill] sm:$0xff] %v4681_v49 }
 0x12e   :  { %4261 = vset.pattern.permute.xlu1 %v4417_v51 }
 0x12f   :  { %1420 = vperm.xlu1 %4261, %v4490_v1   ;;  %331 = vrot.lane.b32.xlu2 %v311_v50, %s4403_s9 }
 0x132   :  { %v4718_v5 = vpop.permute.xlu2 %268 }
 0x133   :  { %v4689_v53 = vpop.permute.xlu1 %199  ;;  %v4691_v54 = vpop.permute.xlu0 %371  ;;  %9148 = vst [vmem:[#allocation11_spill] sm:$0xff] %v4718_v5 }
 0x134   :  { %v374_v56 = vmul.f32 %v4691_v54, %v4513_v11  ;;  %v376_v61 = vmul.f32 %v4691_v54, %v4508_v10  ;;  %v375_v4 = vmul.f32 %v4691_v54, %v4527_v18  ;;  %v377_v14 = vmul.f32 %v4691_v54, %v4521_v15 }
 0x135   :  { %v378_v51 = vmul.f32 %v4691_v54, %v4532_v19 }
 0x137   :  { %4263 = vset.pattern.permute.xlu1 %v4418_v57  ;;  %392 = vrot.lane.b32.xlu2 %v374_v56, %s4419_s10  ;;  %v314_v57 = vmul.f32 %v4599_v55, %v4545_v23 }
 0x138   :  { %1550 = vperm.xlu1 %4263, %v4490_v1   ;;  %v312_v1 = vmul.f32 %v4599_v55, %v4521_v15 }
 0x13a   :  { %v4725_v21 = vpop.permute.xlu2 %274 }
 0x13b   :  { %v4699_v59 = vpop.permute.xlu1 %205  ;;  %9150 = vst [vmem:[#allocation13_spill] sm:$0xff] %v4725_v21 }
 0x13f   :  { %396 = vrot.lane.b32.xlu2 %v376_v61, %s4419_s10 }
 0x140   :  { %329 = vrot.lane.b32.xlu1 %v310_v62, %s4403_s9 }
 0x142   :  { %v4730_v29 = vpop.permute.xlu2 %501 }
 0x143   :  { %v4709_v0 = vpop.permute.xlu1 %211  ;;  %v506_v61 = vmul.f32 %v4730_v29, %v4508_v10  ;;  %v505_v62 = vmul.f32 %v4730_v29, %v4527_v18  ;;  %v508_v49 = vmul.f32 %v4730_v29, %v4532_v19 }
 0x148   :  { %333 = vrot.lane.b32.xlu1 %v312_v1, %s4403_s9  ;;  %v504_v1 = vmul.f32 %v4730_v29, %v4513_v11 }
 0x14b   :  { %v4714_v2 = vpop.permute.xlu1 %262  ;;  %v4734_v34 = vpop.permute.xlu2 %631 }
 0x14c   :  { %9147 = vst [vmem:[#allocation10_spill] sm:$0xff] %v4714_v2 }
 0x150   :  { %394 = vrot.lane.b32.xlu1 %v375_v4, %s4419_s10 }
 0x153   :  { %v4721_v6 = vpop.permute.xlu1 %266 }
 0x154   :  { %9149 = vst [vmem:[#allocation12_spill] sm:$0xff] %v4721_v6  ;;  %v4747_v47 = vpop.permute.xlu2 %826 }
 0x158   :  { %398 = vrot.lane.b32.xlu1 %v377_v14, %s4419_s10 }
 0x15b   :  { %v4728_v24 = vpop.permute.xlu1 %272 }
 0x15c   :  { %9151 = vst [vmem:[#allocation14_spill] sm:$0xff] %v4728_v24  ;;  %v4829_v24 = vpop.permute.xlu0 %696 }
 0x15d   :  { %v4766_v4 = vpop.permute.xlu2 %956  ;;  %v699_v2 = vmul.f32 %v4829_v24, %v4513_v11 }
 0x163   :  { %v4732_v31 = vpop.permute.xlu1 %278 }
 0x164   :  { %9152 = vst [vmem:[#allocation15_spill] sm:$0xff] %v4732_v31 }
 0x16b   :  { %v4736_v37 = vpop.permute.xlu1 %436 }
 0x16c   :  { %v441_v41 = vmul.f32 %v4736_v37, %v4508_v10  ;;  %v440_v42 = vmul.f32 %v4736_v37, %v4527_v18  ;;  %v439_v46 = vmul.f32 %v4736_v37, %v4513_v11  ;;  %v442_v50 = vmul.f32 %v4736_v37, %v4521_v15 }
 0x16d   :  { %v444_v31 = vmul.f32 %v4736_v37, %v4545_v23 }
 0x16e   :  { %461 = vrot.lane.b32.xlu1 %v441_v41, %s4420_s11  ;;  %459 = vrot.lane.b32.xlu0 %v440_v42, %s4420_s11  ;;  %v443_v41 = vmul.f32 %v4736_v37, %v4532_v19  ;;  %v379_v42 = vmul.f32 %v4691_v54, %v4545_v23 }
 0x16f   :  { %457 = vrot.lane.b32.xlu2 %v439_v46, %s4420_s11  ;;  %v315_v46 = vmul.f32 %v4599_v55, %v4503_v9 }
 0x174   :  { %v4753_v56 = vpop.permute.xlu1 %566 }
 0x175   :  { %v571_v21 = vmul.f32 %v4753_v56, %v4508_v10 }
 0x176   :  { %463 = vrot.lane.b32.xlu1 %v442_v50, %s4420_s11  ;;  %400 = vrot.lane.b32.xlu0 %v378_v51, %s4419_s10  ;;  %v4781_v50 = vpop.permute.xlu2 %1160 }
 0x177   :  { %337 = vrot.lane.b32.xlu2 %v314_v57, %s4403_s9  ;;  %9153 = vst [vmem:[#allocation16_spill] sm:$0xff] %v4781_v50  ;;  %v570_v57 = vmul.f32 %v4753_v56, %v4527_v18 }
 0x17d   :  { %v4770_v14 = vpop.permute.xlu1 %761 }
 0x17e   :  { %526 = vrot.lane.b32.xlu1 %v506_v61, %s4421_s12  ;;  %524 = vrot.lane.b32.xlu0 %v505_v62, %s4421_s12  ;;  %v569_v61 = vmul.f32 %v4753_v56, %v4513_v11  ;;  %v507_v62 = vmul.f32 %v4730_v29, %v4521_v15 }
 0x17f   :  { %522 = vrot.lane.b32.xlu2 %v504_v1, %s4421_s12  ;;  %v4795_v1 = vpop.permute.xlu2 %1290 }
 0x186   :  { %465 = vrot.lane.b32.xlu1 %v443_v41, %s4420_s11  ;;  %402 = vrot.lane.b32.xlu0 %v379_v42, %s4419_s10  ;;  %v4784_v51 = vpop.permute.xlu1 %891  ;;  %v380_v42 = vmul.f32 %v4691_v54, %v4503_v9 }
 0x187   :  { %339 = vrot.lane.b32.xlu2 %v315_v46, %s4403_s9  ;;  %v316_v46 = vmul.f32 %v4599_v55, %v4540_v22 }
 0x18e   :  { %589 = vrot.lane.b32.xlu1 %v570_v57, %s4422_s13  ;;  %587 = vrot.lane.b32.xlu0 %v569_v61, %s4422_s13  ;;  %v4808_v57 = vpop.permute.xlu2 %1485 }
 0x18f   :  { %528 = vrot.lane.b32.xlu2 %v507_v62, %s4421_s12  ;;  %v4797_v41 = vpop.permute.xlu1 %1086  ;;  %9154 = vst [vmem:[#allocation17_spill] sm:$0xff] %v4808_v57  ;;  %v572_v62 = vmul.f32 %v4753_v56, %v4521_v15  ;;  %v634_v57 = vmul.f32 %v4734_v34, %v4513_v11 }
 0x196   :  { %404 = vrot.lane.b32.xlu1 %v380_v42, %s4419_s10  ;;  %341 = vrot.lane.b32.xlu0 %v316_v46, %s4403_s9  ;;  %v635_v42 = vmul.f32 %v4734_v34, %v4527_v18  ;;  %v4825_v46 = vpop.permute.xlu2 %1615 }
 0x197   :  { %591 = vrot.lane.b32.xlu2 %v571_v21, %s4422_s13  ;;  %v636_v21 = vmul.f32 %v4734_v34, %v4508_v10  ;;  %9156 = vst [vmem:[#allocation19_spill] sm:$0xff] %v4825_v46 }
 0x198   :  { %v4810_v61 = vpop.permute.xlu1 %1225 }
 0x199   :  { %9155 = vst [vmem:[#allocation18_spill] sm:$0xff] %v4810_v61 }
 0x19e   :  { %593 = vrot.lane.b32.xlu1 %v572_v62, %s4422_s13  ;;  %530 = vrot.lane.b32.xlu0 %v508_v49, %s4421_s12  ;;  %v445_v49 = vmul.f32 %v4736_v37, %v4503_v9  ;;  %v317_v62 = vmul.f32 %v4599_v55, %v4554_v28  ;;  %v4844_v46 = vpop.permute.xlu2 %331  ;;  %v509_v55 = vmul.f32 %v4730_v29, %v4545_v23 }
 0x19f   :  { %467 = vrot.lane.b32.xlu2 %v444_v31, %s4420_s11  ;;  %v381_v31 = vmul.f32 %v4691_v54, %v4540_v22  ;;  %9158 = vst [vmem:[#allocation21_spill] sm:$0xff] %v4844_v46  ;;  %v700_v46 = vmul.f32 %v4829_v24, %v4527_v18 }
 0x1a1   :  { %v4831_v6 = vpop.permute.xlu1 %1420 }
 0x1a2   :  { %9157 = vst [vmem:[#allocation20_spill] sm:$0xff] %v4831_v6  ;;  %v573_v6 = vmul.f32 %v4753_v56, %v4532_v19 }
 0x1a6   :  { %656 = vrot.lane.b32.xlu1 %v636_v21, %s4423_s14  ;;  %654 = vrot.lane.b32.xlu0 %v635_v42, %s4423_s14  ;;  %v4847_v21 = vpop.permute.xlu0 %1021  ;;  %v637_v42 = vmul.f32 %v4734_v34, %v4521_v15 }
 0x1a7   :  { %652 = vrot.lane.b32.xlu2 %v634_v57, %s4423_s14 }
 0x1aa   :  { %v4849_v57 = vpop.permute.xlu1 %1550 }
 0x1ab   :  { %9159 = vst [vmem:[#allocation22_spill] sm:$0xff] %v4849_v57  ;;  %v701_v57 = vmul.f32 %v4829_v24, %v4508_v10 }
 0x1ae   :  { %469 = vrot.lane.b32.xlu1 %v445_v49, %s4420_s11  ;;  %406 = vrot.lane.b32.xlu0 %v381_v31, %s4419_s10  ;;  %v4859_v49 = vpop.permute.xlu2 %392  ;;  %v4862_v31 = vpop.permute.xlu0 %1355 }
 0x1af   :  { %343 = vrot.lane.b32.xlu2 %v317_v62, %s4403_s9  ;;  %9160 = vst [vmem:[#allocation23_spill] sm:$0xff] %v4859_v49  ;;  %v510_v49 = vmul.f32 %v4730_v29, %v4503_v9  ;;  %s4434_s9 = smov 46  }
 0x1b0   :  { %9161 = vst [vmem:[#allocation24_spill] sm:$0xff] %v4862_v31  ;;  %v382_v31 = vmul.f32 %v4691_v54, %v4554_v28 }
 0x1b2   :  { %v4864_v62 = vpop.permute.xlu1 %329 }
 0x1b3   :  { %9162 = vst [vmem:[#allocation25_spill] sm:$0xff] %v4864_v62  ;;  %v446_v62 = vmul.f32 %v4736_v37, %v4540_v22 }
 0x1b6   :  { %658 = vrot.lane.b32.xlu1 %v637_v42, %s4423_s14  ;;  %595 = vrot.lane.b32.xlu0 %v573_v6, %s4422_s13  ;;  %v4875_v6 = vpop.permute.xlu2 %396  ;;  %v4877_v42 = vpop.permute.xlu0 %327 }
 0x1b7   :  { %532 = vrot.lane.b32.xlu2 %v509_v55, %s4421_s12  ;;  %9163 = vst [vmem:[#allocation26_spill] sm:$0xff] %v4875_v6 }
 0x1ba   :  { %v4879_v55 = vpop.permute.xlu1 %333 }
 0x1bb   :  { %9164 = vst [vmem:[#allocation27_spill] sm:$0xff] %v4879_v55  ;;  %v574_v55 = vmul.f32 %v4753_v56, %v4545_v23 }
 0x1be   :  { %721 = vrot.lane.b32.xlu1 %v701_v57, %s4424_s15  ;;  %719 = vrot.lane.b32.xlu0 %v700_v46, %s4424_s15  ;;  %v702_v46 = vmul.f32 %v4829_v24, %v4521_v15  ;;  %v638_v57 = vmul.f32 %v4734_v34, %v4532_v19  ;;  %v4898_v6 = vpop.permute.xlu0 %1680 }
 0x1bf   :  { %717 = vrot.lane.b32.xlu2 %v699_v2, %s4424_s15  ;;  %9166 = vst [vmem:[#allocation29_spill] sm:$0xff] %v4898_v6  ;;  %v575_v6 = vmul.f32 %v4753_v56, %v4503_v9 }
 0x1c2   :  { %v4900_v54 = vpop.permute.xlu1 %394 }
 0x1c3   :  { %9167 = vst [vmem:[#allocation30_spill] sm:$0xff] %v4900_v54  ;;  %v447_v54 = vmul.f32 %v4736_v37, %v4554_v28  ;;  %v639_v37 = vmul.f32 %v4734_v34, %v4545_v23 }
 0x1c6   :  { %534 = vrot.lane.b32.xlu1 %v510_v49, %s4421_s12  ;;  %471 = vrot.lane.b32.xlu0 %v446_v62, %s4420_s11  ;;  %v765_v62 = vmul.f32 %v4770_v14, %v4527_v18 }
 0x1c7   :  { %408 = vrot.lane.b32.xlu2 %v382_v31, %s4419_s10  ;;  %v766_v31 = vmul.f32 %v4770_v14, %v4508_v10  ;;  %s4440_s10 = smov 101  }
 0x1c9   :  { %v4890_v2 = vpop.permute.xlu2 %457 }
 0x1ca   :  { %9165 = vst [vmem:[#allocation28_spill] sm:$0xff] %v4890_v2  ;;  %v764_v2 = vmul.f32 %v4770_v14, %v4513_v11 }
 0x1ce   :  { %723 = vrot.lane.b32.xlu1 %v702_v46, %s4424_s15  ;;  %660 = vrot.lane.b32.xlu0 %v638_v57, %s4423_s14  ;;  %v4916_v46 = vpop.permute.xlu0 %335 }
 0x1cf   :  { %597 = vrot.lane.b32.xlu2 %v574_v55, %s4422_s13  ;;  %v4918_v55 = vpop.permute.xlu1 %398 }
 0x1d0   :  { %9169 = vst [vmem:[#allocation32_spill] sm:$0xff] %v4918_v55  ;;  %v703_v55 = vmul.f32 %v4829_v24, %v4532_v19 }
 0x1d1   :  { %v4905_v49 = vpop.permute.xlu2 %337 }
 0x1d2   :  { %9168 = vst [vmem:[#allocation31_spill] sm:$0xff] %v4905_v49  ;;  %v511_v49 = vmul.f32 %v4730_v29, %v4540_v22 }
 0x1d6   :  { %786 = vrot.lane.b32.xlu1 %v766_v31, %s4425_s16  ;;  %784 = vrot.lane.b32.xlu0 %v765_v62, %s4425_s16 }
 0x1d7   :  { %782 = vrot.lane.b32.xlu2 %v764_v2, %s4425_s16 }
 0x1d9   :  { %v4920_v57 = vpop.permute.xlu2 %522 }
 0x1da   :  { %9170 = vst [vmem:[#allocation33_spill] sm:$0xff] %v4920_v57  ;;  %v767_v57 = vmul.f32 %v4770_v14, %v4521_v15 }
 0x1de   :  { %599 = vrot.lane.b32.xlu1 %v575_v6, %s4422_s13  ;;  %536 = vrot.lane.b32.xlu0 %v511_v49, %s4421_s12 }
 0x1df   :  { %473 = vrot.lane.b32.xlu2 %v447_v54, %s4420_s11  ;;  %s4433_s11 = smov 54  }
 0x1e0   :  { %v4931_v2 = vpop.permute.xlu0 %459  ;;  %v4933_v31 = vpop.permute.xlu1 %461 }
 0x1e1   :  { %9171 = vst [vmem:[#allocation34_spill] sm:$0xff] %v4931_v2  ;;  %v4935_v62 = vpop.permute.xlu2 %339  ;;  %v829_v2 = vmul.f32 %v4747_v47, %v4513_v11 }
 0x1e2   :  { %9172 = vst [vmem:[#allocation35_spill] sm:$0xff] %v4933_v31  ;;  %v830_v31 = vmul.f32 %v4747_v47, %v4527_v18 }
 0x1e3   :  { %9173 = vst [vmem:[#allocation36_spill] sm:$0xff] %v4935_v62  ;;  %v831_v62 = vmul.f32 %v4747_v47, %v4508_v10 }
 0x1e6   :  { %788 = vrot.lane.b32.xlu1 %v767_v57, %s4425_s16  ;;  %725 = vrot.lane.b32.xlu0 %v703_v55, %s4424_s15 }
 0x1e7   :  { %662 = vrot.lane.b32.xlu2 %v639_v37, %s4423_s14 }
 0x1e8   :  { %v4946_v6 = vpop.permute.xlu0 %400  ;;  %v4948_v54 = vpop.permute.xlu1 %463 }
 0x1e9   :  { %9174 = vst [vmem:[#allocation37_spill] sm:$0xff] %v4946_v6  ;;  %v4950_v49 = vpop.permute.xlu2 %528  ;;  %v512_v6 = vmul.f32 %v4730_v29, %v4554_v28  ;;  %v704_v29 = vmul.f32 %v4829_v24, %v4545_v23 }
 0x1ea   :  { %9175 = vst [vmem:[#allocation38_spill] sm:$0xff] %v4948_v54  ;;  %v576_v54 = vmul.f32 %v4753_v56, %v4540_v22 }
 0x1eb   :  { %9176 = vst [vmem:[#allocation39_spill] sm:$0xff] %v4950_v49  ;;  %v640_v49 = vmul.f32 %v4734_v34, %v4503_v9 }
 0x1ee   :  { %851 = vrot.lane.b32.xlu1 %v831_v62, %s4426_s17  ;;  %849 = vrot.lane.b32.xlu0 %v830_v31, %s4426_s17 }
 0x1ef   :  { %847 = vrot.lane.b32.xlu2 %v829_v2, %s4426_s17 }
 0x1f0   :  { %v4961_v55 = vpop.permute.xlu0 %524  ;;  %v4963_v57 = vpop.permute.xlu1 %526 }
 0x1f1   :  { %9177 = vst [vmem:[#allocation40_spill] sm:$0xff] %v4963_v57  ;;  %v4965_v37 = vpop.permute.xlu2 %591  ;;  %v768_v57 = vmul.f32 %v4770_v14, %v4532_v19 }
 0x1f2   :  { %9178 = vst [vmem:[#allocation41_spill] sm:$0xff] %v4965_v37  ;;  %v832_v37 = vmul.f32 %v4747_v47, %v4521_v15 }
 0x1f6   :  { %664 = vrot.lane.b32.xlu1 %v640_v49, %s4423_s14  ;;  %601 = vrot.lane.b32.xlu0 %v576_v54, %s4422_s13 }
 0x1f7   :  { %538 = vrot.lane.b32.xlu2 %v512_v6, %s4421_s12  ;;  %s4436_s12 = smov 44  }
 0x1f8   :  { %v4976_v2 = vpop.permute.xlu0 %402  ;;  %v4978_v31 = vpop.permute.xlu1 %465 }
 0x1f9   :  { %9179 = vst [vmem:[#allocation42_spill] sm:$0xff] %v4976_v2  ;;  %v4980_v62 = vpop.permute.xlu2 %467  ;;  %v894_v2 = vmul.f32 %v4784_v51, %v4513_v11 }
 0x1fa   :  { %9180 = vst [vmem:[#allocation43_spill] sm:$0xff] %v4978_v31  ;;  %v895_v31 = vmul.f32 %v4784_v51, %v4527_v18 }
 0x1fb   :  { %9181 = vst [vmem:[#allocation44_spill] sm:$0xff] %v4980_v62  ;;  %v896_v62 = vmul.f32 %v4784_v51, %v4508_v10 }
 0x1fe   :  { %853 = vrot.lane.b32.xlu1 %v832_v37, %s4426_s17  ;;  %790 = vrot.lane.b32.xlu0 %v768_v57, %s4425_s16 }
 0x1ff   :  { %727 = vrot.lane.b32.xlu2 %v704_v29, %s4424_s15 }
 0x200   :  { %v4991_v6 = vpop.permute.xlu0 %587  ;;  %v4993_v54 = vpop.permute.xlu1 %589 }
 0x201   :  { %9182 = vst [vmem:[#allocation45_spill] sm:$0xff] %v4991_v6  ;;  %v4995_v49 = vpop.permute.xlu2 %652  ;;  %v641_v6 = vmul.f32 %v4734_v34, %v4540_v22 }
 0x202   :  { %9183 = vst [vmem:[#allocation46_spill] sm:$0xff] %v4993_v54  ;;  %v577_v54 = vmul.f32 %v4753_v56, %v4554_v28  ;;  %v769_v56 = vmul.f32 %v4770_v14, %v4545_v23 }
 0x203   :  { %9184 = vst [vmem:[#allocation47_spill] sm:$0xff] %v4995_v49  ;;  %v705_v49 = vmul.f32 %v4829_v24, %v4503_v9 }
 0x206   :  { %916 = vrot.lane.b32.xlu1 %v896_v62, %s4427_s18  ;;  %914 = vrot.lane.b32.xlu0 %v895_v31, %s4427_s18 }
 0x207   :  { %912 = vrot.lane.b32.xlu2 %v894_v2, %s4427_s18 }
 0x208   :  { %v5006_v57 = vpop.permute.xlu0 %341  ;;  %v5008_v37 = vpop.permute.xlu1 %404 }
 0x209   :  { %9185 = vst [vmem:[#allocation48_spill] sm:$0xff] %v5008_v37  ;;  %v5010_v29 = vpop.permute.xlu2 %343  ;;  %v897_v37 = vmul.f32 %v4784_v51, %v4521_v15 }
 0x20a   :  { %9186 = vst [vmem:[#allocation49_spill] sm:$0xff] %v5010_v29  ;;  %v833_v29 = vmul.f32 %v4747_v47, %v4532_v19 }
 0x20e   :  { %729 = vrot.lane.b32.xlu1 %v705_v49, %s4424_s15  ;;  %666 = vrot.lane.b32.xlu0 %v641_v6, %s4423_s14 }
 0x20f   :  { %603 = vrot.lane.b32.xlu2 %v577_v54, %s4422_s13 }
 0x210   :  { %v5021_v2 = vpop.permute.xlu0 %530  ;;  %v5023_v31 = vpop.permute.xlu1 %593 }
 0x211   :  { %9187 = vst [vmem:[#allocation50_spill] sm:$0xff] %v5021_v2  ;;  %v5025_v62 = vpop.permute.xlu2 %532  ;;  %v959_v2 = vmul.f32 %v4766_v4, %v4513_v11 }
 0x212   :  { %9188 = vst [vmem:[#allocation51_spill] sm:$0xff] %v5023_v31  ;;  %v961_v31 = vmul.f32 %v4766_v4, %v4508_v10 }
 0x213   :  { %9189 = vst [vmem:[#allocation52_spill] sm:$0xff] %v5025_v62  ;;  %v960_v62 = vmul.f32 %v4766_v4, %v4527_v18 }
 0x216   :  { %918 = vrot.lane.b32.xlu1 %v897_v37, %s4427_s18  ;;  %855 = vrot.lane.b32.xlu0 %v833_v29, %s4426_s17 }
 0x217   :  { %792 = vrot.lane.b32.xlu2 %v769_v56, %s4425_s16 }
 0x218   :  { %v5036_v6 = vpop.permute.xlu0 %654  ;;  %v5038_v54 = vpop.permute.xlu1 %656 }
 0x219   :  { %9190 = vst [vmem:[#allocation53_spill] sm:$0xff] %v5036_v6  ;;  %v5040_v49 = vpop.permute.xlu2 %717  ;;  %v642_v6 = vmul.f32 %v4734_v34, %v4554_v28  ;;  %v834_v34 = vmul.f32 %v4747_v47, %v4545_v23 }
 0x21a   :  { %9191 = vst [vmem:[#allocation54_spill] sm:$0xff] %v5038_v54  ;;  %v706_v54 = vmul.f32 %v4829_v24, %v4540_v22 }
 0x21b   :  { %9192 = vst [vmem:[#allocation55_spill] sm:$0xff] %v5040_v49  ;;  %v770_v49 = vmul.f32 %v4770_v14, %v4503_v9 }
 0x21e   :  { %981 = vrot.lane.b32.xlu1 %v961_v31, %s4428_s19  ;;  %979 = vrot.lane.b32.xlu0 %v960_v62, %s4428_s19 }
 0x21f   :  { %977 = vrot.lane.b32.xlu2 %v959_v2, %s4428_s19 }
 0x220   :  { %v5051_v37 = vpop.permute.xlu0 %406  ;;  %v5053_v29 = vpop.permute.xlu1 %469 }
 0x221   :  { %9193 = vst [vmem:[#allocation56_spill] sm:$0xff] %v5053_v29  ;;  %v5055_v56 = vpop.permute.xlu2 %408  ;;  %v962_v29 = vmul.f32 %v4766_v4, %v4521_v15 }
 0x222   :  { %9194 = vst [vmem:[#allocation57_spill] sm:$0xff] %v5055_v56  ;;  %v898_v56 = vmul.f32 %v4784_v51, %v4532_v19 }
 0x226   :  { %794 = vrot.lane.b32.xlu1 %v770_v49, %s4425_s16  ;;  %731 = vrot.lane.b32.xlu0 %v706_v54, %s4424_s15 }
 0x227   :  { %668 = vrot.lane.b32.xlu2 %v642_v6, %s4423_s14 }
 0x228   :  { %v5066_v2 = vpop.permute.xlu0 %595  ;;  %v5068_v31 = vpop.permute.xlu1 %658 }
 0x229   :  { %9195 = vst [vmem:[#allocation58_spill] sm:$0xff] %v5066_v2  ;;  %v5070_v62 = vpop.permute.xlu2 %597  ;;  %v1024_v2 = vmul.f32 %v4847_v21, %v4513_v11 }
 0x22a   :  { %9196 = vst [vmem:[#allocation59_spill] sm:$0xff] %v5068_v31  ;;  %v1026_v31 = vmul.f32 %v4847_v21, %v4508_v10 }
 0x22b   :  { %9197 = vst [vmem:[#allocation60_spill] sm:$0xff] %v5070_v62  ;;  %v1025_v62 = vmul.f32 %v4847_v21, %v4527_v18 }
 0x22e   :  { %983 = vrot.lane.b32.xlu1 %v962_v29, %s4428_s19  ;;  %920 = vrot.lane.b32.xlu0 %v898_v56, %s4427_s18 }
 0x22f   :  { %857 = vrot.lane.b32.xlu2 %v834_v34, %s4426_s17 }
 0x230   :  { %v5081_v6 = vpop.permute.xlu0 %719  ;;  %v5083_v54 = vpop.permute.xlu1 %721 }
 0x231   :  { %9198 = vst [vmem:[#allocation61_spill] sm:$0xff] %v5081_v6  ;;  %v5085_v49 = vpop.permute.xlu2 %782  ;;  %v707_v6 = vmul.f32 %v4829_v24, %v4554_v28  ;;  %v899_v24 = vmul.f32 %v4784_v51, %v4545_v23 }
 0x232   :  { %9199 = vst [vmem:[#allocation62_spill] sm:$0xff] %v5083_v54  ;;  %v771_v54 = vmul.f32 %v4770_v14, %v4540_v22 }
 0x233   :  { %9200 = vst [vmem:[#allocation63_spill] sm:$0xff] %v5085_v49  ;;  %v835_v49 = vmul.f32 %v4747_v47, %v4503_v9 }
 0x236   :  { %1046 = vrot.lane.b32.xlu1 %v1026_v31, %s4429_s20  ;;  %1044 = vrot.lane.b32.xlu0 %v1025_v62, %s4429_s20 }
 0x237   :  { %1042 = vrot.lane.b32.xlu2 %v1024_v2, %s4429_s20 }
 0x238   :  { %v5096_v29 = vpop.permute.xlu0 %471  ;;  %v5098_v56 = vpop.permute.xlu1 %534 }
 0x239   :  { %9201 = vst [vmem:[#allocation64_spill] sm:$0xff] %v5098_v56  ;;  %v5100_v34 = vpop.permute.xlu2 %473  ;;  %v1027_v56 = vmul.f32 %v4847_v21, %v4521_v15 }
 0x23a   :  { %9202 = vst [vmem:[#allocation65_spill] sm:$0xff] %v5100_v34  ;;  %v963_v34 = vmul.f32 %v4766_v4, %v4532_v19 }
 0x23e   :  { %859 = vrot.lane.b32.xlu1 %v835_v49, %s4426_s17  ;;  %796 = vrot.lane.b32.xlu0 %v771_v54, %s4425_s16 }
 0x23f   :  { %733 = vrot.lane.b32.xlu2 %v707_v6, %s4424_s15 }
 0x240   :  { %v5111_v2 = vpop.permute.xlu0 %660  ;;  %v5113_v31 = vpop.permute.xlu1 %723 }
 0x241   :  { %9203 = vst [vmem:[#allocation66_spill] sm:$0xff] %v5111_v2  ;;  %v5115_v62 = vpop.permute.xlu2 %662  ;;  %v1089_v2 = vmul.f32 %v4797_v41, %v4513_v11  ;;  %v772_v11 = vmul.f32 %v4770_v14, %v4554_v28  ;;  %v964_v14 = vmul.f32 %v4766_v4, %v4545_v23 }
 0x242   :  { %9204 = vst [vmem:[#allocation67_spill] sm:$0xff] %v5113_v31  ;;  %v1091_v31 = vmul.f32 %v4797_v41, %v4508_v10  ;;  %v900_v10 = vmul.f32 %v4784_v51, %v4503_v9 }
 0x243   :  { %9205 = vst [vmem:[#allocation68_spill] sm:$0xff] %v5115_v62  ;;  %v1090_v62 = vmul.f32 %v4797_v41, %v4527_v18  ;;  %v836_v18 = vmul.f32 %v4747_v47, %v4540_v22 }
 0x246   :  { %1048 = vrot.lane.b32.xlu1 %v1027_v56, %s4429_s20  ;;  %985 = vrot.lane.b32.xlu0 %v963_v34, %s4428_s19 }
 0x247   :  { %922 = vrot.lane.b32.xlu2 %v899_v24, %s4427_s18 }
 0x248   :  { %v5126_v6 = vpop.permute.xlu0 %784  ;;  %v5128_v54 = vpop.permute.xlu1 %786 }
 0x249   :  { %9206 = vst [vmem:[#allocation69_spill] sm:$0xff] %v5126_v6  ;;  %v5130_v49 = vpop.permute.xlu2 %847 }
 0x24a   :  { %9207 = vst [vmem:[#allocation70_spill] sm:$0xff] %v5128_v54  ;;  %v1028_v54 = vmul.f32 %v4847_v21, %v4532_v19 }
 0x24b   :  { %9208 = vst [vmem:[#allocation71_spill] sm:$0xff] %v5130_v49  ;;  %v1092_v49 = vmul.f32 %v4797_v41, %v4521_v15  ;;  %v5180_v15 = vld [vmem:[%s8986_s0 + $0x18] sm:$0xff] }
 0x24c   :  { %9216 = vst [vmem:[#allocation79_spill] sm:$0xff] %v5180_v15 }
 0x24e   :  { %1111 = vrot.lane.b32.xlu1 %v1091_v31, %s4430_s21  ;;  %1109 = vrot.lane.b32.xlu0 %v1090_v62, %s4430_s21 }
 0x24f   :  { %1107 = vrot.lane.b32.xlu2 %v1089_v2, %s4430_s21 }
 0x250   :  { %v5141_v56 = vpop.permute.xlu0 %536  ;;  %v5143_v34 = vpop.permute.xlu1 %599 }
 0x251   :  { %9209 = vst [vmem:[#allocation72_spill] sm:$0xff] %v5143_v34  ;;  %v5145_v24 = vpop.permute.xlu2 %538  ;;  %v837_v34 = vmul.f32 %v4747_v47, %v4554_v28 }
 0x256   :  { %924 = vrot.lane.b32.xlu1 %v900_v10, %s4427_s18  ;;  %861 = vrot.lane.b32.xlu0 %v836_v18, %s4426_s17 }
 0x257   :  { %798 = vrot.lane.b32.xlu2 %v772_v11, %s4425_s16 }
 0x258   :  { %v5156_v2 = vpop.permute.xlu0 %725  ;;  %v5158_v31 = vpop.permute.xlu1 %788 }
 0x259   :  { %9210 = vst [vmem:[#allocation73_spill] sm:$0xff] %v5156_v2  ;;  %v5160_v62 = vpop.permute.xlu2 %727  ;;  %v901_v2 = vmul.f32 %v4784_v51, %v4540_v22 }
 0x25a   :  { %9211 = vst [vmem:[#allocation74_spill] sm:$0xff] %v5158_v31  ;;  %v5185_v31 = vld [vmem:[%s8986_s0 + $0x10] sm:$0xff] }
 0x25b   :  { %9212 = vst [vmem:[#allocation75_spill] sm:$0xff] %v5160_v62  ;;  %v965_v62 = vmul.f32 %v4766_v4, %v4503_v9  ;;  %v5225_v9 = vld [vmem:[%s8986_s0 + $0x20] sm:$0xff] }
 0x25c   :  { %9217 = vst [vmem:[#allocation80_spill] sm:$0xff] %v5185_v31  ;;  %v1166_v47 = vmul.f32 %v4781_v50, %v5225_v9 }
 0x25e   :  { %1113 = vrot.lane.b32.xlu1 %v1092_v49, %s4430_s21  ;;  %1050 = vrot.lane.b32.xlu0 %v1028_v54, %s4429_s20  ;;  %v5190_v54 = vld [vmem:[%s8986_s0 + $0x8] sm:$0xff]  ;;  %v1165_v49 = vmul.f32 %v4781_v50, %v5180_v15 }
 0x25f   :  { %987 = vrot.lane.b32.xlu2 %v964_v14, %s4428_s19  ;;  %9218 = vst [vmem:[#allocation81_spill] sm:$0xff] %v5190_v54  ;;  %v1164_v14 = vmul.f32 %v4781_v50, %v5185_v31 }
 0x260   :  { %v5171_v10 = vpop.permute.xlu0 %849  ;;  %v5173_v18 = vpop.permute.xlu1 %851 }
 0x261   :  { %9213 = vst [vmem:[#allocation76_spill] sm:$0xff] %v5171_v10  ;;  %v5175_v11 = vpop.permute.xlu2 %912 }
 0x262   :  { %9214 = vst [vmem:[#allocation77_spill] sm:$0xff] %v5173_v18 }
 0x263   :  { %9215 = vst [vmem:[#allocation78_spill] sm:$0xff] %v5175_v11  ;;  %v1163_v11 = vmul.f32 %v4781_v50, %v5190_v54 }
 0x266   :  { %1185 = vrot.lane.b32.xlu1 %v1165_v49, %s4431_s28  ;;  %1183 = vrot.lane.b32.xlu0 %v1164_v14, %s4431_s28 }
 0x267   :  { %1181 = vrot.lane.b32.xlu2 %v1163_v11, %s4431_s28 }
 0x268   :  { %v5201_v18 = vpop.permute.xlu0 %601  ;;  %v5203_v10 = vpop.permute.xlu1 %664 }
 0x269   :  { %9219 = vst [vmem:[#allocation82_spill] sm:$0xff] %v5203_v10  ;;  %v5205_v6 = vpop.permute.xlu2 %603 }
 0x26a   :  { %9220 = vst [vmem:[#allocation83_spill] sm:$0xff] %v5205_v6 }
 0x26e   :  { %989 = vrot.lane.b32.xlu1 %v965_v62, %s4428_s19  ;;  %926 = vrot.lane.b32.xlu0 %v901_v2, %s4427_s18  ;;  %v1093_v62 = vmul.f32 %v4797_v41, %v4532_v19  ;;  %v1229_v19 = vmul.f32 %v4810_v61, %v5185_v31 }
 0x26f   :  { %863 = vrot.lane.b32.xlu2 %v837_v34, %s4426_s17  ;;  %v1029_v34 = vmul.f32 %v4847_v21, %v4545_v23  ;;  %v1228_v23 = vmul.f32 %v4810_v61, %v5190_v54 }
 0x270   :  { %v5216_v11 = vpop.permute.xlu0 %790  ;;  %v5218_v49 = vpop.permute.xlu1 %853 }
 0x271   :  { %9221 = vst [vmem:[#allocation84_spill] sm:$0xff] %v5216_v11  ;;  %v5220_v14 = vpop.permute.xlu2 %792  ;;  %v1230_v11 = vmul.f32 %v4810_v61, %v5180_v15 }
 0x272   :  { %9222 = vst [vmem:[#allocation85_spill] sm:$0xff] %v5218_v49 }
 0x273   :  { %9223 = vst [vmem:[#allocation86_spill] sm:$0xff] %v5220_v14 }
 0x276   :  { %1187 = vrot.lane.b32.xlu1 %v1166_v47, %s4431_s28  ;;  %1115 = vrot.lane.b32.xlu0 %v1093_v62, %s4430_s21 }
 0x277   :  { %1052 = vrot.lane.b32.xlu2 %v1029_v34, %s4429_s20 }
 0x278   :  { %v5236_v2 = vpop.permute.xlu0 %914  ;;  %v5238_v49 = vpop.permute.xlu1 %916 }
 0x279   :  { %9224 = vst [vmem:[#allocation87_spill] sm:$0xff] %v5236_v2  ;;  %v5240_v14 = vpop.permute.xlu2 %977  ;;  %v966_v2 = vmul.f32 %v4766_v4, %v4540_v22  ;;  %v1231_v22 = vmul.f32 %v4810_v61, %v5225_v9 }
 0x27a   :  { %9225 = vst [vmem:[#allocation88_spill] sm:$0xff] %v5238_v49 }
 0x27b   :  { %9226 = vst [vmem:[#allocation89_spill] sm:$0xff] %v5240_v14  ;;  %v4367_v14 = vld [vmem:[%s8986_s0 + $0x30] sm:$0xff] }
 0x27c   :  { %v1030_v49 = vmul.f32 %v4367_v14, %v4847_v21 }
 0x27e   :  { %1250 = vrot.lane.b32.xlu1 %v1230_v11, %s4432_s4  ;;  %1248 = vrot.lane.b32.xlu0 %v1229_v19, %s4432_s4  ;;  %v902_v11 = vmul.f32 %v4784_v51, %v4554_v28  ;;  %v5286_v51 = vld [vmem:[%s8986_s0 + $0x28] sm:$0xff] }
 0x27f   :  { %1246 = vrot.lane.b32.xlu2 %v1228_v23, %s4432_s4  ;;  %9233 = vst [vmem:[#allocation96_spill] sm:$0xff] %v5286_v51 }
 0x280   :  { %v5251_v47 = vpop.permute.xlu0 %666  ;;  %v5253_v62 = vpop.permute.xlu1 %729 }
 0x281   :  { %9227 = vst [vmem:[#allocation90_spill] sm:$0xff] %v5251_v47  ;;  %v5255_v34 = vpop.permute.xlu2 %668 }
 0x282   :  { %9228 = vst [vmem:[#allocation91_spill] sm:$0xff] %v5253_v62 }
 0x283   :  { %9229 = vst [vmem:[#allocation92_spill] sm:$0xff] %v5255_v34  ;;  %v5277_v34 = vld [vmem:[%s8986_s0 + $0x28] sm:$0xff] }
 0x284   :  { %v1167_v28 = vmul.f32 %v4781_v50, %v5277_v34 }
 0x286   :  { %1054 = vrot.lane.b32.xlu1 %v1030_v49, %s4429_s20  ;;  %991 = vrot.lane.b32.xlu0 %v966_v2, %s4428_s19  ;;  %v1094_v49 = vmul.f32 %v5286_v51, %v4797_v41  ;;  %v1293_v51 = vmul.f32 %v4795_v1, %v5190_v54 }
 0x287   :  { %928 = vrot.lane.b32.xlu2 %v902_v11, %s4427_s18 }
 0x288   :  { %v5268_v19 = vpop.permute.xlu0 %855  ;;  %v5270_v23 = vpop.permute.xlu1 %918 }
 0x289   :  { %9230 = vst [vmem:[#allocation93_spill] sm:$0xff] %v5268_v19  ;;  %v5272_v62 = vpop.permute.xlu2 %857  ;;  %v1294_v19 = vmul.f32 %v4795_v1, %v5185_v31 }
 0x28a   :  { %9231 = vst [vmem:[#allocation94_spill] sm:$0xff] %v5270_v23 }
 0x28b   :  { %9232 = vst [vmem:[#allocation95_spill] sm:$0xff] %v5272_v62  ;;  %v1295_v62 = vmul.f32 %v4795_v1, %v5180_v15 }
 0x28e   :  { %1252 = vrot.lane.b32.xlu1 %v1231_v22, %s4432_s4  ;;  %1189 = vrot.lane.b32.xlu0 %v1167_v28, %s4431_s28 }
 0x28f   :  { %1117 = vrot.lane.b32.xlu2 %v1094_v49, %s4430_s21 }
 0x290   :  { %v5293_v2 = vpop.permute.xlu0 %979  ;;  %v5295_v11 = vpop.permute.xlu1 %981 }
 0x291   :  { %9234 = vst [vmem:[#allocation97_spill] sm:$0xff] %v5293_v2  ;;  %v5297_v23 = vpop.permute.xlu2 %1042  ;;  %v1095_v2 = vmul.f32 %v4367_v14, %v4797_v41 }
 0x292   :  { %9235 = vst [vmem:[#allocation98_spill] sm:$0xff] %v5295_v11  ;;  %v92_v11 = vsel %vm85_vm0, %v4628_v12, %v4650_v30  ;;  %v4371_v12 = vld [vmem:[%s8986_s0] sm:$0xff] }
 0x293   :  { %9236 = vst [vmem:[#allocation99_spill] sm:$0xff] %v5297_v23  ;;  %v89_v23 = vsel %vm85_vm0, %v4616_v3, %v4642_v25 }
 0x296   :  { %1315 = vrot.lane.b32.xlu1 %v1295_v62, %s4433_s11  ;;  %1313 = vrot.lane.b32.xlu0 %v1294_v19, %s4433_s11  ;;  %v4369_v62 = vld [vmem:[%s8986_s0 + $0x18] sm:$0xff] }
 0x297   :  { %1311 = vrot.lane.b32.xlu2 %v1293_v51, %s4433_s11  ;;  %v31_v19 = vmul.f32 %v4369_v62, %v4498_v7  ;;  %v34_v51 = vmul.f32 %v4367_v14, %v4498_v7  ;;  %v86_v62 = vsel %vm85_vm0, %v4630_v13, %v4635_v16  ;;  %v87_v14 = vsel %vm85_vm0, %v4635_v16, %v4606_v60  ;;  %v4373_v13 = vld [vmem:[%s8986_s0 + $0x8] sm:$0xff] }
 0x298   :  { %v5308_v22 = vpop.permute.xlu0 %731  ;;  %v5310_v28 = vpop.permute.xlu1 %794  ;;  %v29_v16 = vmul.f32 %v4373_v13, %v4498_v7 }
 0x299   :  { %9237 = vst [vmem:[#allocation100_spill] sm:$0xff] %v5308_v22  ;;  %v5312_v49 = vpop.permute.xlu2 %733  ;;  %v5346_v22 = vld [vmem:[%s8986_s0 + $0x40] sm:$0xff]  ;;  %v105_v47 = vadd.f32 %v89_v23, %v31_v19  ;;  %v108_v6 = vadd.f32 %v92_v11, %v34_v51  ;;  %v93_v23 = vsel %vm85_vm0, %v4650_v30, %v4639_v20  ;;  %v152_v11 = vsel %vm150_vm1, %v4647_v27, %v4665_v39 }
 0x29a   :  { %9238 = vst [vmem:[#allocation101_spill] sm:$0xff] %v5310_v28  ;;  %v5329_v28 = vld [vmem:[%s8986_s0 + $0x38] sm:$0xff]  ;;  %v967_v10 = vmul.f32 %v5346_v22, %v4766_v4  ;;  %v4374_v4 = vld [vmem:[%s8986_s0 + $0x20] sm:$0xff]  ;;  %v103_v13 = vadd.f32 %v87_v14, %v29_v16  ;;  %v154_v20 = vsel %vm150_vm1, %v4655_v33, %v4637_v17 }
 0x29b   :  { %9239 = vst [vmem:[#allocation102_spill] sm:$0xff] %v5312_v49  ;;  %v1031_v3 = vmul.f32 %v5329_v28, %v4847_v21  ;;  %v28_v49 = vmul.f32 %v4371_v12, %v4498_v7  ;;  %v90_v12 = vsel %vm85_vm0, %v4642_v25, %v4626_v8  ;;  %v32_v60 = vmul.f32 %v4374_v4, %v4498_v7  ;;  %v5390_v4 = vld [vmem:[%s8986_s0 + $0x30] sm:$0xff] }
 0x29c   :  { %v35_v25 = vmul.f32 %v5329_v28, %v4498_v7  ;;  %v168_v16 = vadd.f32 %v152_v11, %v103_v13  ;;  %v223_v11 = vsel %vm215_vm2, %v4709_v0, %v4697_v58 }
 0x29d   :  { %v106_v30 = vadd.f32 %v90_v12, %v32_v60  ;;  %v219_v60 = vsel %vm215_vm2, %v4659_v36, %v4699_v59  ;;  %v222_v12 = vsel %vm215_vm2, %v4667_v40, %v4709_v0  ;;  %v9242_v0 = vld [vmem:[#allocation14_spill] sm:$0xff]  ;;  %v9260_v36 = vld [vmem:[#allocation35_spill] sm:$0xff] }
 0x29e   :  { %1119 = vrot.lane.b32.xlu1 %v1095_v2, %s4430_s21  ;;  %1056 = vrot.lane.b32.xlu0 %v1031_v3, %s4429_s20  ;;  %v102_v3 = vadd.f32 %v86_v62, %v28_v49  ;;  %v151_v2 = vsel %vm150_vm1, %v4657_v35, %v4647_v27  ;;  %v109_v49 = vadd.f32 %v93_v23, %v35_v25 }
 0x29f   :  { %993 = vrot.lane.b32.xlu2 %v967_v10, %s4428_s19  ;;  %v157_v10 = vsel %vm150_vm1, %v4663_v38, %v4644_v26  ;;  %v170_v62 = vadd.f32 %v154_v20, %v105_v47  ;;  %v155_v47 = vsel %vm150_vm1, %v4637_v17, %v4671_v43  ;;  %v1296_v25 = vmul.f32 %v4795_v1, %v5225_v9 }
 0x2a0   :  { %v5375_v19 = vpop.permute.xlu0 %920  ;;  %v5377_v51 = vpop.permute.xlu1 %983  ;;  %v173_v27 = vadd.f32 %v157_v10, %v108_v6  ;;  %v167_v14 = vadd.f32 %v151_v2, %v102_v3  ;;  %v158_v6 = vsel %vm150_vm1, %v4644_v26, %v4679_v48  ;;  %v1232_v23 = vmul.f32 %v4810_v61, %v5277_v34 }
 0x2a1   :  { %v5385_v35 = vpop.permute.xlu2 %922  ;;  %v216_v3 = vsel %vm215_vm2, %v4652_v32, %v4689_v53  ;;  %v217_v2 = vsel %vm215_vm2, %v4689_v53, %v4675_v45  ;;  %v220_v17 = vsel %vm215_vm2, %v4699_v59, %v4685_v52  ;;  %v1168_v26 = vmul.f32 %v4781_v50, %v5390_v4  ;;  %v9240_v59 = vld [vmem:[#allocation10_spill] sm:$0xff]  ;;  %v9262_v52 = vld [vmem:[#allocation32_spill] sm:$0xff] }
 0x2a2   :  { %v235_v48 = vadd.f32 %v219_v60, %v170_v62  ;;  %v238_v13 = vadd.f32 %v222_v12, %v173_v27  ;;  %v171_v32 = vadd.f32 %v155_v47, %v106_v30  ;;  %v174_v20 = vadd.f32 %v158_v6, %v109_v49  ;;  %v9241_v60 = vld [vmem:[#allocation12_spill] sm:$0xff]  ;;  %v9243_v49 = vld [vmem:[#allocation15_spill] sm:$0xff] }
 0x2a3   :  { %v284_v53 = vsel %vm280_vm3, %v4718_v5, %v4673_v44  ;;  %v281_v10 = vsel %vm280_vm3, %v9240_v59, %v4707_v63  ;;  %v232_v62 = vadd.f32 %v216_v3, %v167_v14  ;;  %v282_v58 = vsel %vm280_vm3, %v4707_v63, %v9241_v60  ;;  %v9244_v27 = vld [vmem:[#allocation8_spill] sm:$0xff]  ;;  %v5447_v14 = vld [vmem:[%s8986_s0 + $0x38] sm:$0xff]  ;;  %v5457_v59 = vld [vmem:[%s8986_s0 + $0x40] sm:$0xff] }
 0x2a4   :  { %v285_v30 = vsel %vm280_vm3, %v4673_v44, %v9242_v0  ;;  %v288_v12 = vsel %vm280_vm3, %v9244_v27, %v9243_v49  ;;  %9245 = vst [vmem:[#allocation10_spill] sm:$0xff] %v5447_v14  ;;  %v9246_v63 = vld [vmem:[#allocation13_spill] sm:$0xff]  ;;  %v236_v3 = vadd.f32 %v220_v17, %v171_v32  ;;  %v239_v44 = vadd.f32 %v223_v11, %v174_v20  ;;  %v9248_v11 = vld [vmem:[#allocation24_spill] sm:$0xff] }
 0x2a5   :  { %9247 = vst [vmem:[#allocation15_spill] sm:$0xff] %v5457_v59  ;;  %v297_v49 = vadd.f32 %v281_v10, %v232_v62  ;;  %v300_v60 = vadd.f32 %v284_v53, %v235_v48  ;;  %v1169_v17 = vmul.f32 %v4781_v50, %v5447_v14  ;;  %v1360_v32 = vmul.f32 %v9248_v11, %v5180_v15 }
 0x2a6   :  { %1317 = vrot.lane.b32.xlu1 %v1296_v25, %s4433_s11  ;;  %1254 = vrot.lane.b32.xlu0 %v1232_v23, %s4432_s4  ;;  %v233_v25 = vadd.f32 %v217_v2, %v168_v16  ;;  %v287_v23 = vsel %vm280_vm3, %v9246_v63, %v9244_v27  ;;  %v301_v16 = vadd.f32 %v285_v30, %v236_v3  ;;  %v9250_v30 = vld [vmem:[#allocation21_spill] sm:$0xff] }
 0x2a7   :  { %1191 = vrot.lane.b32.xlu2 %v1168_v26, %s4431_s28  ;;  %v5459_v5 = vadd.f32 %v287_v23, %v238_v13  ;;  %v5461_v2 = vadd.f32 %v288_v12, %v239_v44  ;;  %v1359_v20 = vmul.f32 %v9248_v11, %v5185_v31  ;;  %v1096_v10 = vmul.f32 %v5329_v28, %v4797_v41  ;;  %v9249_v13 = vld [vmem:[#allocation25_spill] sm:$0xff] }
 0x2a8   :  { %v5440_v47 = vpop.permute.xlu0 %1044  ;;  %v5442_v6 = vpop.permute.xlu1 %1046  ;;  %v298_v45 = vadd.f32 %v282_v58, %v233_v25  ;;  %v5473_v48 = vmul.f32 %v4781_v50, %v5457_v59  ;;  %v346_v53 = vsel %vm345_vm4, %v4877_v42, %v9249_v13  ;;  %v1358_v62 = vmul.f32 %v9248_v11, %v5190_v54  ;;  %v9251_v25 = vld [vmem:[#allocation20_spill] sm:$0xff]  ;;  %v9261_v63 = vld [vmem:[#allocation37_spill] sm:$0xff] }
 0x2a9   :  { %v5452_v26 = vpop.permute.xlu2 %1107  ;;  %v5482_v58 = vmul.f32 %v4795_v1, %v5277_v34  ;;  %v347_v28 = vsel %vm345_vm4, %v9249_v13, %v9250_v30  ;;  %v5491_v42 = vmul.f32 %v4810_v61, %v5390_v4  ;;  %v5495_v27 = vmul.f32 %v5346_v22, %v4797_v41  ;;  %v9254_v13 = vld [vmem:[#allocation26_spill] sm:$0xff] }
 0x2aa   :  { %v1032_v12 = vmul.f32 %v5346_v22, %v4847_v21  ;;  %v5502_v23 = vmul.f32 %v9251_v25, %v5180_v15  ;;  %v5506_v3 = vmul.f32 %v4810_v61, %v5447_v14  ;;  %v362_v44 = vadd.f32 %v346_v53, %v297_v49  ;;  %v9256_v14 = vld [vmem:[#allocation27_spill] sm:$0xff]  ;;  %v9259_v61 = vld [vmem:[#allocation28_spill] sm:$0xff] }
 0x2ab   :  { %v5520_v22 = vmul.f32 %v9251_v25, %v5185_v31  ;;  %v363_v59 = vadd.f32 %v347_v28, %v298_v45  ;;  %v349_v49 = vsel %vm345_vm4, %v9256_v14, %v4916_v46  ;;  %v414_v40 = vsel %vm410_vm5, %v9262_v52, %v9261_v63  ;;  %v9267_v31 = vld [vmem:[#allocation38_spill] sm:$0xff] }
 0x2ae   :  { %1380 = vrot.lane.b32.xlu1 %v1360_v32, %s4434_s9  ;;  %1378 = vrot.lane.b32.xlu0 %v1359_v20, %s4434_s9  ;;  %v9252_v32 = vld [vmem:[#allocation30_spill] sm:$0xff]  ;;  %v9253_v20 = vld [vmem:[#allocation23_spill] sm:$0xff] }
 0x2af   :  { %1376 = vrot.lane.b32.xlu2 %v1358_v62, %s4434_s9  ;;  %v411_v41 = vsel %vm410_vm5, %v9253_v20, %v9252_v32  ;;  %v412_v62 = vsel %vm410_vm5, %v9252_v32, %v9254_v13  ;;  %v9257_v20 = vld [vmem:[#allocation31_spill] sm:$0xff]  ;;  %v9258_v13 = vld [vmem:[#allocation34_spill] sm:$0xff] }
 0x2b0   :  { %v5514_v50 = vpop.permute.xlu0 %796  ;;  %v5516_v21 = vpop.permute.xlu1 %859  ;;  %v350_v32 = vsel %vm345_vm4, %v4916_v46, %v9257_v20  ;;  %v476_v30 = vsel %vm475_vm6, %v9259_v61, %v9258_v13  ;;  %v477_v0 = vsel %vm475_vm6, %v9258_v13, %v9260_v36  ;;  %v427_v28 = vadd.f32 %v411_v41, %v362_v44  ;;  %v9263_v61 = vld [vmem:[#allocation33_spill] sm:$0xff]  ;;  %v9264_v13 = vld [vmem:[#allocation40_spill] sm:$0xff]  ;;  %v9265_v36 = vld [vmem:[#allocation42_spill] sm:$0xff] }
 0x2b1   :  { %9255 = vst [vmem:[#allocation8_spill] sm:$0xff] %v5516_v21  ;;  %v799_v53 = vpop.permute.xlu2 %798  ;;  %v428_v14 = vadd.f32 %v412_v62, %v363_v59  ;;  %v5543_v46 = vmul.f32 %v9251_v25, %v5190_v54  ;;  %v365_v20 = vadd.f32 %v349_v49, %v300_v60  ;;  %v541_v15 = vsel %vm540_vm7, %v9263_v61, %v4961_v55  ;;  %v9266_v54 = vld [vmem:[#allocation43_spill] sm:$0xff] }
 0x2b2   :  { %v5536_v45 = vsel %vm800_vm8, %v5514_v50, %v799_v53  ;;  %v542_v53 = vsel %vm540_vm7, %v4961_v55, %v9264_v13  ;;  %v415_v59 = vsel %vm410_vm5, %v9261_v63, %v9265_v36  ;;  %v366_v44 = vadd.f32 %v350_v32, %v301_v16  ;;  %v9268_v63 = vld [vmem:[#allocation36_spill] sm:$0xff]  ;;  %v9270_v16 = vld [vmem:[#allocation46_spill] sm:$0xff] }
 0x2b3   :  { %v492_v41 = vadd.f32 %v476_v30, %v427_v28  ;;  %v493_v62 = vadd.f32 %v477_v0, %v428_v14  ;;  %v430_v52 = vadd.f32 %v414_v40, %v365_v20  ;;  %v479_v60 = vsel %vm475_vm6, %v9267_v31, %v9266_v54  ;;  %v9269_v40 = vld [vmem:[#allocation44_spill] sm:$0xff]  ;;  %v9272_v30 = vld [vmem:[#allocation49_spill] sm:$0xff] }
 0x2b4   :  { %v1361_v55 = vmul.f32 %v9248_v11, %v5225_v9  ;;  %v431_v13 = vadd.f32 %v415_v59, %v366_v44  ;;  %v352_v0 = vsel %vm345_vm4, %v9268_v63, %v5006_v57  ;;  %v480_v14 = vsel %vm475_vm6, %v9266_v54, %v9269_v40  ;;  %v9274_v54 = vld [vmem:[#allocation48_spill] sm:$0xff] }
 0x2b5   :  { %v557_v49 = vadd.f32 %v541_v15, %v492_v41  ;;  %v558_v61 = vadd.f32 %v542_v53, %v493_v62  ;;  %v353_v15 = vsel %vm345_vm4, %v5006_v57, %v9272_v30  ;;  %v495_v28 = vadd.f32 %v479_v60, %v430_v52  ;;  %v9273_v53 = vld [vmem:[#allocation41_spill] sm:$0xff]  ;;  %v9276_v57 = vld [vmem:[#allocation50_spill] sm:$0xff]  ;;  %v9277_v62 = vld [vmem:[#allocation39_spill] sm:$0xff] }
 0x2b6   :  { %1193 = vrot.lane.b32.xlu1 %v1169_v17, %s4431_s28  ;;  %1121 = vrot.lane.b32.xlu0 %v1096_v10, %s4430_s21  ;;  %v9271_v17 = vld [vmem:[#allocation45_spill] sm:$0xff]  ;;  %v417_v59 = vsel %vm410_vm5, %v9274_v54, %v5051_v37  ;;  %v368_v41 = vadd.f32 %v352_v0, %v5459_v5  ;;  %v369_v31 = vadd.f32 %v353_v15, %v5461_v2  ;;  %v9279_v40 = vld [vmem:[#allocation56_spill] sm:$0xff] }
 0x2b7   :  { %1058 = vrot.lane.b32.xlu2 %v1032_v12, %s4429_s20  ;;  %v606_v10 = vsel %vm605_vm9, %v9271_v17, %v9270_v16  ;;  %v607_v12 = vsel %vm605_vm9, %v9270_v16, %v9273_v53  ;;  %v544_v17 = vsel %vm540_vm7, %v9277_v62, %v9276_v57  ;;  %v9278_v30 = vld [vmem:[#allocation57_spill] sm:$0xff]  ;;  %v496_v16 = vadd.f32 %v480_v14, %v431_v13  ;;  %s4435_s20 = smov 45  }
 0x2b8   :  { %v5574_v20 = vpop.permute.xlu0 %985  ;;  %v5576_v32 = vpop.permute.xlu1 %1048  ;;  %v418_v52 = vsel %vm410_vm5, %v5051_v37, %v9278_v30  ;;  %v622_v53 = vadd.f32 %v606_v10, %v557_v49  ;;  %v482_v5 = vsel %vm475_vm6, %v9279_v40, %v5096_v29  ;;  %v623_v0 = vadd.f32 %v607_v12, %v558_v61  ;;  %v9280_v62 = vld [vmem:[#allocation65_spill] sm:$0xff]  ;;  %v9281_v30 = vld [vmem:[#allocation52_spill] sm:$0xff]  ;;  %v9284_v10 = vld [vmem:[#allocation47_spill] sm:$0xff] }
 0x2b9   :  { %v5584_v44 = vpop.permute.xlu2 %987  ;;  %v433_v36 = vadd.f32 %v417_v59, %v368_v41  ;;  %v483_v37 = vsel %vm475_vm6, %v5096_v29, %v9280_v62  ;;  %v560_v54 = vadd.f32 %v544_v17, %v495_v28  ;;  %v434_v13 = vadd.f32 %v418_v52, %v369_v31  ;;  %v9282_v49 = vld [vmem:[#allocation64_spill] sm:$0xff]  ;;  %v9283_v14 = vld [vmem:[#allocation53_spill] sm:$0xff]  ;;  %v9285_v29 = vld [vmem:[#allocation54_spill] sm:$0xff] }
 0x2ba   :  { %9275 = vst [vmem:[#allocation24_spill] sm:$0xff] %v5584_v44  ;;  %v5596_v60 = vsel %vm995_vm11, %v5574_v20, %v5584_v44  ;;  %v545_v44 = vsel %vm540_vm7, %v9276_v57, %v9281_v30  ;;  %v547_v2 = vsel %vm540_vm7, %v9282_v49, %v5141_v56  ;;  %v671_v61 = vsel %vm670_vm10, %v9284_v10, %v9283_v14  ;;  %v9286_v28 = vld [vmem:[#allocation58_spill] sm:$0xff]  ;;  %v9287_v59 = vld [vmem:[#allocation51_spill] sm:$0xff] }
 0x2bb   :  { %v498_v15 = vadd.f32 %v482_v5, %v433_v36  ;;  %v548_v12 = vsel %vm540_vm7, %v5141_v56, %v5145_v24  ;;  %v672_v31 = vsel %vm670_vm10, %v9283_v14, %v9285_v29  ;;  %v609_v41 = vsel %vm605_vm9, %v9287_v59, %v9286_v28  ;;  %v9288_v36 = vld [vmem:[#allocation72_spill] sm:$0xff]  ;;  %v9290_v17 = vld [vmem:[#allocation83_spill] sm:$0xff]  ;;  %v9291_v10 = vld [vmem:[#allocation90_spill] sm:$0xff] }
 0x2bc   :  { %v499_v57 = vadd.f32 %v483_v37, %v434_v13  ;;  %v612_v62 = vsel %vm605_vm9, %v9288_v36, %v5201_v18  ;;  %v561_v56 = vadd.f32 %v545_v44, %v496_v16  ;;  %v9289_v24 = vld [vmem:[#allocation60_spill] sm:$0xff]  ;;  %v613_v52 = vsel %vm605_vm9, %v5201_v18, %v9290_v17  ;;  %v9292_v29 = vld [vmem:[#allocation82_spill] sm:$0xff]  ;;  %v9298_v36 = vld [vmem:[#allocation61_spill] sm:$0xff] }
 0x2bd   :  { %v687_v13 = vadd.f32 %v671_v61, %v622_v53  ;;  %v9294_v61 = vld [vmem:[#allocation66_spill] sm:$0xff]  ;;  %v9296_v59 = vld [vmem:[#allocation100_spill] sm:$0xff]  ;;  %v9299_v30 = vld [vmem:[#allocation55_spill] sm:$0xff] }
 0x2be   :  { %1382 = vrot.lane.b32.xlu1 %v1361_v55, %s4434_s9  ;;  %1319 = vrot.lane.b32.xlu0 %v5482_v58, %s4433_s11  ;;  %v610_v58 = vsel %vm605_vm9, %v9286_v28, %v9289_v24  ;;  %v563_v55 = vadd.f32 %v547_v2, %v498_v15  ;;  %v564_v14 = vadd.f32 %v548_v12, %v499_v57  ;;  %v9293_v28 = vld [vmem:[#allocation92_spill] sm:$0xff]  ;;  %v9295_v12 = vld [vmem:[#allocation59_spill] sm:$0xff] }
 0x2bf   :  { %1256 = vrot.lane.b32.xlu2 %v5491_v42, %s4432_s4  ;;  %v677_v42 = vsel %vm670_vm10, %v9292_v29, %v9291_v10  ;;  %v688_v2 = vadd.f32 %v672_v31, %v623_v0  ;;  %v625_v15 = vadd.f32 %v609_v41, %v560_v54  ;;  %v678_v17 = vsel %vm670_vm10, %v9291_v10, %v9293_v28  ;;  %v9297_v24 = vld [vmem:[#allocation91_spill] sm:$0xff]  ;;  %v9300_v54 = vld [vmem:[#allocation68_spill] sm:$0xff] }
 0x2c0   :  { %v5637_v5 = vpop.permute.xlu0 %1109  ;;  %v5639_v37 = vpop.permute.xlu1 %1111  ;;  %v628_v18 = vadd.f32 %v612_v62, %v563_v55  ;;  %v626_v53 = vadd.f32 %v610_v58, %v561_v56  ;;  %v674_v57 = vsel %vm670_vm10, %v9295_v12, %v9294_v61  ;;  %v629_v29 = vadd.f32 %v613_v52, %v564_v14  ;;  %v9301_v62 = vld [vmem:[#allocation102_spill] sm:$0xff]  ;;  %v9303_v52 = vld [vmem:[#allocation73_spill] sm:$0xff]  ;;  %v9304_v14 = vld [vmem:[#allocation67_spill] sm:$0xff] }
 0x2c1   :  { %v5647_v44 = vsel %vm1125_vm13, %v5452_v26, %v5637_v5  ;;  %v5649_v16 = vpop.permute.xlu2 %1181  ;;  %v742_v26 = vsel %vm735_vm12, %v9297_v24, %v9296_v59  ;;  %v736_v0 = vsel %vm735_vm12, %v9299_v30, %v9298_v36  ;;  %v675_v31 = vsel %vm670_vm10, %v9294_v61, %v9300_v54  ;;  %v9302_v58 = vld [vmem:[#allocation62_spill] sm:$0xff]  ;;  %v9305_v30 = vld [vmem:[#allocation101_spill] sm:$0xff]  ;;  %v9306_v61 = vld [vmem:[#allocation75_spill] sm:$0xff] }
 0x2c2   :  { %v693_v41 = vadd.f32 %v677_v42, %v628_v18  ;;  %v743_v56 = vsel %vm735_vm12, %v9296_v59, %v9301_v62  ;;  %v737_v55 = vsel %vm735_vm12, %v9298_v36, %v9302_v58  ;;  %v739_v10 = vsel %vm735_vm12, %v9304_v14, %v9303_v52  ;;  %v9308_v18 = vld [vmem:[#allocation63_spill] sm:$0xff] }
 0x2c3   :  { %v694_v28 = vadd.f32 %v678_v17, %v629_v29  ;;  %v807_v24 = vsel %vm800_vm8, %v9305_v30, %v5514_v50  ;;  %v690_v12 = vadd.f32 %v674_v57, %v625_v15  ;;  %v740_v42 = vsel %vm735_vm12, %v9303_v52, %v9306_v61  ;;  %v9307_v29 = vld [vmem:[#allocation69_spill] sm:$0xff]  ;;  %v9309_v50 = vld [vmem:[#allocation84_spill] sm:$0xff]  ;;  %v9310_v15 = vld [vmem:[#allocation74_spill] sm:$0xff] }
 0x2c4   :  { %v758_v59 = vadd.f32 %v742_v26, %v693_v41  ;;  %v691_v36 = vadd.f32 %v675_v31, %v626_v53  ;;  %v801_v17 = vsel %vm800_vm8, %v9308_v18, %v9307_v29  ;;  %v804_v57 = vsel %vm800_vm8, %v9310_v15, %v9309_v50  ;;  %v9311_v41 = vld [vmem:[#allocation86_spill] sm:$0xff]  ;;  %v9312_v18 = vld [vmem:[#allocation93_spill] sm:$0xff] }
 0x2c5   :  { %v759_v62 = vadd.f32 %v743_v56, %v694_v28  ;;  %v755_v26 = vadd.f32 %v739_v10, %v690_v12  ;;  %v9313_v30 = vld [vmem:[#allocation85_spill] sm:$0xff]  ;;  %v9314_v28 = vld [vmem:[#allocation95_spill] sm:$0xff] }
 0x2c6   :  { %1445 = vrot.lane.b32.xlu1 %v5502_v23, %s4435_s20  ;;  %1443 = vrot.lane.b32.xlu0 %v5520_v22, %s4435_s20  ;;  %v805_v23 = vsel %vm800_vm8, %v9309_v50, %v9311_v41  ;;  %v823_v22 = vadd.f32 %v807_v24, %v758_v59  ;;  %v756_v52 = vadd.f32 %v740_v42, %v691_v36  ;;  %v9315_v42 = vld [vmem:[#allocation70_spill] sm:$0xff] }
 0x2c7   :  { %1441 = vrot.lane.b32.xlu2 %v5543_v46, %s4435_s20  ;;  %v869_v58 = vsel %vm9081_vm14, %v9313_v30, %v9312_v18  ;;  %v824_v56 = vadd.f32 %v5536_v45, %v759_v62  ;;  %v820_v10 = vadd.f32 %v804_v57, %v755_v26  ;;  %v870_v50 = vsel %vm9081_vm14, %v9312_v18, %v9314_v28  ;;  %v9316_v45 = vld [vmem:[#allocation94_spill] sm:$0xff]  ;;  %v9317_v18 = vld [vmem:[#allocation76_spill] sm:$0xff] }
 0x2c8   :  { %v862_v53 = vpop.permute.xlu0 %861  ;;  %v5696_v31 = vpop.permute.xlu1 %924  ;;  %v802_v36 = vsel %vm800_vm8, %v9307_v29, %v9315_v42  ;;  %v821_v30 = vadd.f32 %v805_v23, %v756_v52  ;;  %v934_v62 = vsel %vm930_vm15, %v9316_v45, %v5375_v19  ;;  %v752_v57 = vadd.f32 %v736_v0, %v687_v13 }
 0x2c9   :  { %v872_v46 = vsel %vm9081_vm14, %v5516_v21, %v862_v53  ;;  %v864_v12 = vpop.permute.xlu2 %863  ;;  %v753_v26 = vadd.f32 %v737_v55, %v688_v2  ;;  %v885_v15 = vadd.f32 %v869_v58, %v820_v10  ;;  %v999_v52 = vsel %vm995_vm11, %v5377_v51, %v5574_v20  ;;  %v9321_v58 = vld [vmem:[#allocation78_spill] sm:$0xff] }
 0x2ca   :  { %v5707_v24 = vadd.f32 %v872_v46, %v823_v22  ;;  %v873_v59 = vsel %vm9081_vm14, %v862_v53, %v864_v12  ;;  %v935_v22 = vsel %vm930_vm15, %v5375_v19, %v5385_v35  ;;  %v9318_v53 = vld [vmem:[#allocation71_spill] sm:$0xff]  ;;  %v9319_v12 = vld [vmem:[#allocation77_spill] sm:$0xff]  ;;  %v886_v23 = vadd.f32 %v870_v50, %v821_v30 }
 0x2cb   :  { %v5716_v21 = vadd.f32 %v873_v59, %v824_v56  ;;  %v866_v46 = vsel %vm9081_vm14, %v9318_v53, %v9317_v18  ;;  %v867_v29 = vsel %vm9081_vm14, %v9317_v18, %v9319_v12  ;;  %v817_v13 = vadd.f32 %v801_v17, %v752_v57  ;;  %v9320_v19 = vld [vmem:[#allocation87_spill] sm:$0xff]  ;;  %v9322_v56 = vld [vmem:[#allocation88_spill] sm:$0xff]  ;;  %v9324_v59 = vld [vmem:[#allocation89_spill] sm:$0xff] }
 0x2cc   :  { %v818_v2 = vadd.f32 %v802_v36, %v753_v26  ;;  %v950_v0 = vadd.f32 %v934_v62, %v885_v15  ;;  %v931_v55 = vsel %vm930_vm15, %v9321_v58, %v9320_v19  ;;  %v932_v30 = vsel %vm930_vm15, %v9320_v19, %v9322_v56  ;;  %v9325_v62 = vld [vmem:[#allocation98_spill] sm:$0xff] }
 0x2cd   :  { %v951_v10 = vadd.f32 %v935_v22, %v886_v23  ;;  %v882_v20 = vadd.f32 %v866_v46, %v817_v13  ;;  %vm9082_vm14 = vcmask 56320   ;;  %v9326_v23 = vld [vmem:[#allocation99_spill] sm:$0xff]  ;;  %v1362_v19 = vmul.f32 %v9248_v11, %v5277_v34 }
 0x2ce   :  { %1195 = vrot.lane.b32.xlu0 %v5473_v48, %s4431_s28  ;;  %1258 = vrot.lane.b32.xlu1 %v5506_v3, %s4432_s4  ;;  %v883_v17 = vadd.f32 %v867_v29, %v818_v2  ;;  %v1015_v15 = vadd.f32 %v999_v52, %v950_v0  ;;  %v9323_v3 = vld [vmem:[#allocation97_spill] sm:$0xff]  ;;  %v1061_v52 = vsel %vm9082_vm14, %v9326_v23, %v5440_v47 }
 0x2cf   :  { %1123 = vrot.lane.b32.xlu2 %v5495_v27, %s4430_s21  ;;  %v996_v36 = vsel %vm995_vm11, %v9324_v59, %v9323_v3  ;;  %v997_v57 = vsel %vm995_vm11, %v9323_v3, %v9325_v62  ;;  %v1016_v26 = vadd.f32 %v5596_v60, %v951_v10  ;;  %v947_v18 = vadd.f32 %v931_v55, %v882_v20 }
 0x2d0   :  { %v1051_v48 = vpop.permute.xlu0 %1050  ;;  %v5742_v50 = vpop.permute.xlu1 %1113  ;;  %v948_v53 = vadd.f32 %v932_v30, %v883_v17  ;;  %v1062_v60 = vsel %vm9082_vm14, %v5440_v47, %v5442_v6  ;;  %v1426_v58 = vmul.f32 %v9251_v25, %v5225_v9  ;;  %v1127_v55 = vsel %vm1125_vm13, %v5637_v5, %v5639_v37  ;;  %v9327_v47 = vld [vmem:[#allocation4_spill] sm:$0xff] }
 0x2d1   :  { %v1064_v27 = vsel %vm9082_vm14, %v5576_v32, %v1051_v48  ;;  %v5753_v22 = vpop.permute.xlu2 %1052  ;;  %v1012_v2 = vadd.f32 %v996_v36, %v947_v18  ;;  %v1298_v30 = vmul.f32 %v4795_v1, %v5390_v4  ;;  %v91_v17 = vsel %vm85_vm0, %v4626_v8, %v9327_v47  ;;  %v9335_v47 = vld [vmem:[#allocation6_spill] sm:$0xff] }
 0x2d2   :  { %v5755_v46 = vadd.f32 %v1064_v27, %v1015_v15  ;;  %v1065_v29 = vsel %vm9082_vm14, %v1051_v48, %v5753_v22  ;;  %v1013_v0 = vadd.f32 %v997_v57, %v948_v53  ;;  %vm1199_vm14 = vcmask 457728   ;;  %v9328_v15 = vld [vmem:[#allocation96_spill] sm:$0xff]  ;;  %v9329_v57 = vld [vmem:[#allocation3_spill] sm:$0xff] }
 0x2d3   :  { %v5765_v13 = vadd.f32 %v1065_v29, %v1016_v26  ;;  %v1077_v10 = vadd.f32 %v1061_v52, %v1012_v2  ;;  %v33_v48 = vmul.f32 %v9328_v15, %v4498_v7  ;;  %v9330_v26 = vld [vmem:[#allocation2_spill] sm:$0xff]  ;;  %v156_v18 = vsel %vm150_vm1, %v4671_v43, %v4663_v38  ;;  %v4375_v29 = vld [vmem:[%s8986_s0 + $0x10] sm:$0xff] }
 0x2d4   :  { %v1078_v20 = vadd.f32 %v1062_v60, %v1013_v0  ;;  %v88_v27 = vsel %vm85_vm0, %v9330_v26, %v9329_v57  ;;  %v30_v23 = vmul.f32 %v4375_v29, %v4498_v7  ;;  %v153_v38 = vsel %vm150_vm1, %v4665_v39, %v4655_v33  ;;  %v9331_v0 = vld [vmem:[#allocation80_spill] sm:$0xff]  ;;  %v9337_v39 = vld [vmem:[#allocation13_spill] sm:$0xff]  ;;  %v9338_v15 = vld [vmem:[#allocation14_spill] sm:$0xff] }
 0x2d5   :  { %v1142_v5 = vadd.f32 %v5647_v44, %v1077_v10  ;;  %v107_v52 = vadd.f32 %v91_v17, %v33_v48  ;;  %v9334_v10 = vld [vmem:[#allocation81_spill] sm:$0xff]  ;;  %v286_v48 = vsel %vm280_vm3, %v9338_v15, %v9337_v39  ;;  %v9340_v26 = vld [vmem:[#allocation7_spill] sm:$0xff]  ;;  %v9347_v39 = vld [vmem:[#allocation42_spill] sm:$0xff]  ;;  %vm1264_vm0 = vcmask 449536  }
 0x2d6   :  { %1384 = vrot.lane.b32.xlu0 %v1362_v19, %s4434_s9  ;;  %1447 = vrot.lane.b32.xlu1 %v1426_v58, %s4435_s20  ;;  %v1143_v3 = vadd.f32 %v1127_v55, %v1078_v20  ;;  %v104_v43 = vadd.f32 %v88_v27, %v30_v23  ;;  %v9332_v19 = vld [vmem:[#allocation17_spill] sm:$0xff]  ;;  %v9333_v55 = vld [vmem:[#allocation79_spill] sm:$0xff]  ;;  %vm9372_vm1 = vcmask 138240  }
 0x2d7   :  { %1321 = vrot.lane.b32.xlu2 %v1298_v30, %s4433_s11  ;;  %v1489_v58 = vmul.f32 %v9332_v19, %v9331_v0  ;;  %v1490_v30 = vmul.f32 %v9332_v19, %v9333_v55  ;;  %v1488_v7 = vmul.f32 %v9332_v19, %v9334_v10  ;;  %v9336_v17 = vld [vmem:[#allocation9_spill] sm:$0xff]  ;;  %v9343_v29 = vld [vmem:[#allocation31_spill] sm:$0xff] }
 0x2d8   :  { %v1184_v59 = vpop.permute.xlu0 %1183  ;;  %v5785_v36 = vpop.permute.xlu1 %1185  ;;  %v169_v20 = vadd.f32 %v153_v38, %v104_v43  ;;  %v221_v33 = vsel %vm215_vm2, %v9336_v17, %v9335_v47  ;;  %v9339_v57 = vld [vmem:[#allocation5_spill] sm:$0xff]  ;;  %v351_v23 = vsel %vm345_vm4, %v9343_v29, %v9268_v63  ;;  %v9344_v47 = vld [vmem:[#allocation27_spill] sm:$0xff] }
 0x2d9   :  { %v1200_v8 = vsel %vm1199_vm14, %v5649_v16, %v1184_v59  ;;  %v5795_v53 = vpop.permute.xlu2 %1246  ;;  %v1201_v44 = vsel %vm1199_vm14, %v1184_v59, %v5785_v36  ;;  %v172_v16 = vadd.f32 %v156_v18, %v107_v52  ;;  %v218_v27 = vsel %vm215_vm2, %v9340_v26, %v9339_v57  ;;  %v9341_v18 = vld [vmem:[#allocation11_spill] sm:$0xff]  ;;  %v9345_v17 = vld [vmem:[#allocation21_spill] sm:$0xff]  ;;  %v9350_v26 = vld [vmem:[#allocation10_spill] sm:$0xff] }
 0x2da   :  { %v5803_v60 = vadd.f32 %v1200_v8, %v1142_v5  ;;  %v5805_v2 = vadd.f32 %v1201_v44, %v1143_v3  ;;  %v9342_v8 = vld [vmem:[#allocation12_spill] sm:$0xff]  ;;  %v234_v43 = vadd.f32 %v218_v27, %v169_v20  ;;  %v348_v63 = vsel %vm345_vm4, %v9345_v17, %v9344_v47  ;;  %vm9374_vm2 = vmmov %vm9372_vm1 }
 0x2db   :  { %v237_v5 = vadd.f32 %v221_v33, %v172_v16  ;;  %v283_v44 = vsel %vm280_vm3, %v9342_v8, %v9341_v18  ;;  %v9346_v33 = vld [vmem:[#allocation48_spill] sm:$0xff]  ;;  %v1299_v27 = vmul.f32 %v4795_v1, %v9350_v26  ;;  %v9352_v8 = vld [vmem:[#allocation26_spill] sm:$0xff]  ;;  %vm9377_vm3 = vcmask 56320  }
 0x2dc   :  { %v416_v15 = vsel %vm410_vm5, %v9347_v39, %v9346_v33  ;;  %v9351_v18 = vld [vmem:[#allocation32_spill] sm:$0xff]  ;;  %vm9378_vm4 = vmmov %vm9377_vm3 }
 0x2dd   :  { %v302_v16 = vadd.f32 %v286_v48, %v237_v5  ;;  %v9348_v5 = vld [vmem:[#allocation15_spill] sm:$0xff]  ;;  %v413_v29 = vsel %vm410_vm5, %v9352_v8, %v9351_v18  ;;  %v9354_v47 = vld [vmem:[#allocation16_spill] sm:$0xff]  ;;  %vm1329_vm5 = vcmask 441344  }
 0x2de   :  { %1508 = vrot.lane.b32.xlu0 %v1489_v58, %s4436_s12  ;;  %1510 = vrot.lane.b32.xlu1 %v1490_v30, %s4436_s12  ;;  %v9357_v17 = vld [vmem:[#allocation52_spill] sm:$0xff] }
 0x2df   :  { %1506 = vrot.lane.b32.xlu2 %v1488_v7, %s4436_s12  ;;  %v5845_v7 = vld [vmem:[%s8986_s0 + $0x48] sm:$0xff]  ;;  %v367_v48 = vadd.f32 %v351_v23, %v302_v16  ;;  %v9355_v23 = vld [vmem:[#allocation38_spill] sm:$0xff]  ;;  %v546_v33 = vsel %vm540_vm7, %v9357_v17, %v9282_v49 }
 0x2e0   :  { %v927_v3 = vpop.permute.xlu0 %926  ;;  %v5825_v59 = vpop.permute.xlu1 %989 }
 0x2e1   :  { %v937_v52 = vsel %vm930_vm15, %v5696_v31, %v927_v3  ;;  %v929_v38 = vpop.permute.xlu2 %928 }
 0x2e2   :  { %v5839_v58 = vadd.f32 %v937_v52, %v5707_v24  ;;  %v938_v30 = vsel %vm930_vm15, %v927_v3, %v929_v38  ;;  %v299_v24 = vadd.f32 %v283_v44, %v234_v43  ;;  %v9349_v3 = vld [vmem:[#allocation18_spill] sm:$0xff]  ;;  %v9353_v52 = vld [vmem:[#allocation44_spill] sm:$0xff]  ;;  %v432_v44 = vadd.f32 %v416_v15, %v367_v48  ;;  %v9356_v43 = vld [vmem:[#allocation35_spill] sm:$0xff] }
 0x2e3   :  { %v5854_v20 = vadd.f32 %v938_v30, %v5716_v21  ;;  %v1235_v57 = vmul.f32 %v9349_v3, %v9348_v5  ;;  %v481_v38 = vsel %vm475_vm6, %v9353_v52, %v9279_v40  ;;  %v1171_v21 = vmul.f32 %v9354_v47, %v5845_v7  ;;  %v9359_v15 = vld [vmem:[#allocation40_spill] sm:$0xff] }
 0x2e4   :  { %v364_v30 = vadd.f32 %v348_v63, %v299_v24  ;;  %v478_v16 = vsel %vm475_vm6, %v9356_v43, %v9355_v23  ;;  %v497_v39 = vadd.f32 %v481_v38, %v432_v44  ;;  %v9358_v63 = vld [vmem:[#allocation39_spill] sm:$0xff]  ;;  %v9360_v48 = vld [vmem:[#allocation72_spill] sm:$0xff]  ;;  %v9363_v44 = vld [vmem:[#allocation41_spill] sm:$0xff] }
 0x2e5   :  { %v543_v24 = vsel %vm540_vm7, %v9359_v15, %v9358_v63  ;;  %v9364_v43 = vld [vmem:[#allocation82_spill] sm:$0xff]  ;;  %vm9380_vm6 = vmmov %vm9377_vm3 }
 0x2e6   :  { %1260 = vrot.lane.b32.xlu0 %v1235_v57, %s4432_s4  ;;  %1323 = vrot.lane.b32.xlu1 %v1299_v27, %s4433_s11  ;;  %v429_v40 = vadd.f32 %v413_v29, %v364_v30  ;;  %v9361_v57 = vld [vmem:[#allocation60_spill] sm:$0xff]  ;;  %v9362_v30 = vld [vmem:[#allocation51_spill] sm:$0xff]  ;;  %v676_v17 = vsel %vm670_vm10, %v9300_v54, %v9364_v43  ;;  %v1363_v54 = vmul.f32 %v9248_v11, %v5390_v4  ;;  %vm9381_vm7 = vmmov %vm9377_vm3 }
 0x2e7   :  { %1197 = vrot.lane.b32.xlu2 %v1171_v21, %s4431_s28  ;;  %v611_v27 = vsel %vm605_vm9, %v9361_v57, %v9360_v48  ;;  %v562_v21 = vadd.f32 %v546_v33, %v497_v39  ;;  %v608_v23 = vsel %vm605_vm9, %v9363_v44, %v9362_v30  ;;  %v1491_v33 = vmul.f32 %v9332_v19, %v5225_v9  ;;  %v9366_v39 = vld [vmem:[#allocation54_spill] sm:$0xff]  ;;  %v9367_v48 = vld [vmem:[#allocation91_spill] sm:$0xff]  ;;  %s4437_s28 = smov 36  }
 0x2e8   :  { %v1116_v18 = vpop.permute.xlu0 %1115  ;;  %v5877_v8 = vpop.permute.xlu1 %1187  ;;  %v494_v49 = vadd.f32 %v478_v16, %v429_v40  ;;  %v9365_v40 = vld [vmem:[#allocation59_spill] sm:$0xff]  ;;  %v741_v57 = vsel %vm735_vm12, %v9306_v61, %v9367_v48  ;;  %vm1459_vm9 = vcmask 367616  }
 0x2e9   :  { %v1129_v52 = vsel %vm1125_vm13, %v5742_v50, %v1116_v18  ;;  %v5887_v47 = vpop.permute.xlu2 %1117  ;;  %v627_v16 = vadd.f32 %v611_v27, %v562_v21  ;;  %v9368_v27 = vld [vmem:[#allocation62_spill] sm:$0xff] }
 0x2ea   :  { %v5890_v29 = vadd.f32 %v1129_v52, %v5755_v46  ;;  %v1130_v38 = vsel %vm1125_vm13, %v1116_v18, %v5887_v47  ;;  %v559_v15 = vadd.f32 %v543_v24, %v494_v49  ;;  %v1427_v46 = vmul.f32 %v9251_v25, %v5277_v34  ;;  %v9369_v49 = vld [vmem:[#allocation101_spill] sm:$0xff] }
 0x2eb   :  { %v5901_v63 = vadd.f32 %v1130_v38, %v5765_v13  ;;  %v673_v18 = vsel %vm670_vm10, %v9366_v39, %v9365_v40  ;;  %v692_v24 = vadd.f32 %v676_v17, %v627_v16  ;;  %v738_v52 = vsel %vm735_vm12, %v9368_v27, %v9304_v14  ;;  %v9371_v17 = vld [vmem:[#allocation8_spill] sm:$0xff] }
 0x2ec   :  { %v624_v13 = vadd.f32 %v608_v23, %v559_v15  ;;  %v806_v21 = vsel %vm800_vm8, %v9311_v41, %v9369_v49  ;;  %v9370_v23 = vld [vmem:[#allocation74_spill] sm:$0xff]  ;;  %v871_v15 = vsel %vm9372_vm1, %v9314_v28, %v9371_v17  ;;  %v936_v28 = vsel %vm930_vm15, %v5385_v35, %v5696_v31 }
 0x2ed   :  { %v757_v38 = vadd.f32 %v741_v57, %v692_v24  ;;  %v803_v43 = vsel %vm800_vm8, %v9315_v42, %v9370_v23  ;;  %v9373_v42 = vld [vmem:[#allocation85_spill] sm:$0xff]  ;;  %v9375_v57 = vld [vmem:[#allocation22_spill] sm:$0xff]  ;;  %vm1394_vm8 = vcmask 375808   ;;  %vm1524_vm10 = vcmask 359424  }
 0x2ee   :  { %1449 = vrot.lane.b32.xlu0 %v1427_v46, %s4435_s20  ;;  %1512 = vrot.lane.b32.xlu1 %v1491_v33, %s4436_s12  ;;  %v689_v61 = vadd.f32 %v673_v18, %v624_v13  ;;  %v868_v18 = vsel %vm9374_vm2, %v9319_v12, %v9373_v42  ;;  %v9376_v13 = vld [vmem:[#allocation24_spill] sm:$0xff]  ;;  %v1553_v24 = vmul.f32 %v9375_v57, %v9334_v10  ;;  %vm1654_vm12 = vcmask 285696  }
 0x2ef   :  { %1386 = vrot.lane.b32.xlu2 %v1363_v54, %s4434_s9  ;;  %v822_v33 = vadd.f32 %v806_v21, %v757_v38  ;;  %v1554_v54 = vmul.f32 %v9375_v57, %v9331_v0  ;;  %v1001_v12 = vsel %vm995_vm11, %v9376_v13, %v5825_v59  ;;  %v998_v0 = vsel %vm995_vm11, %v9325_v62, %v5377_v51 }
 0x2f0   :  { %v1249_v30 = vpop.permute.xlu0 %1248  ;;  %v1251_v44 = vpop.permute.xlu1 %1250  ;;  %v754_v46 = vadd.f32 %v738_v52, %v689_v61  ;;  %v1063_v10 = vsel %vm9377_vm3, %v5442_v6, %v5576_v32  ;;  %v1300_v32 = vmul.f32 %v4795_v1, %v9348_v5  ;;  %v1556_v42 = vmul.f32 %v9375_v57, %v5225_v9 }
 0x2f1   :  { %v1265_v14 = vsel %vm1264_vm0, %v5795_v53, %v1249_v30  ;;  %v5932_v16 = vpop.permute.xlu2 %1311  ;;  %v1266_v41 = vsel %vm1264_vm0, %v1249_v30, %v1251_v44  ;;  %v887_v48 = vadd.f32 %v871_v15, %v822_v33  ;;  %v1128_v30 = vsel %vm1125_vm13, %v5639_v37, %v5742_v50 }
 0x2f2   :  { %v5936_v40 = vadd.f32 %v1265_v14, %v5803_v60  ;;  %v5939_v39 = vadd.f32 %v1266_v41, %v5805_v2  ;;  %v819_v53 = vadd.f32 %v803_v43, %v754_v46  ;;  %v1555_v60 = vmul.f32 %v9375_v57, %v9333_v55 }
 0x2f3   :  { %v933_v2 = vsel %vm930_vm15, %v9322_v56, %v9316_v45  ;;  %v952_v31 = vadd.f32 %v936_v28, %v887_v48  ;;  %v1492_v33 = vmul.f32 %v9332_v19, %v5277_v34  ;;  %v4376_v48 = vld [vmem:[%s8986_s0 + $0x10] sm:$0xff]  ;;  %vm1838_vm1 = vcmask 1043456  }
 0x2f4   :  { %v884_v35 = vadd.f32 %v868_v18, %v819_v53 }
 0x2f5   :  { %v1017_v56 = vadd.f32 %v1001_v12, %v952_v31 }
 0x2f6   :  { %1573 = vrot.lane.b32.xlu0 %v1554_v54, %s4437_s28  ;;  %1575 = vrot.lane.b32.xlu1 %v1555_v60, %s4437_s28  ;;  %v949_v45 = vadd.f32 %v933_v2, %v884_v35  ;;  %v9379_v54 = vld [vmem:[#allocation19_spill] sm:$0xff]  ;;  %v4377_v2 = vld [vmem:[%s8986_s0 + $0x18] sm:$0xff] }
 0x2f7   :  { %1571 = vrot.lane.b32.xlu2 %v1553_v24, %s4437_s28  ;;  %v1619_v60 = vmul.f32 %v4376_v48, %v9379_v54  ;;  %v1620_v13 = vmul.f32 %v4377_v2, %v9379_v54 }
 0x2f8   :  { %v992_v55 = vpop.permute.xlu0 %991  ;;  %v1055_v27 = vpop.permute.xlu1 %1054  ;;  %v1014_v61 = vadd.f32 %v998_v0, %v949_v45 }
 0x2f9   :  { %v1002_v52 = vsel %vm995_vm11, %v5825_v59, %v992_v55  ;;  %v994_v49 = vpop.permute.xlu2 %993  ;;  %v1066_v21 = vsel %vm9378_vm4, %v5753_v22, %v1055_v27  ;;  %v1364_v59 = vmul.f32 %v9248_v11, %v9350_v26  ;;  %v1202_v22 = vsel %vm1199_vm14, %v5785_v36, %v5877_v8 }
 0x2fa   :  { %v1018_v51 = vadd.f32 %v1002_v52, %v5839_v58  ;;  %v1003_v62 = vsel %vm995_vm11, %v992_v55, %v994_v49  ;;  %v1082_v38 = vadd.f32 %v1066_v21, %v1017_v56  ;;  %v1079_v6 = vadd.f32 %v1063_v10, %v1014_v61 }
 0x2fb   :  { %v1019_v23 = vadd.f32 %v1003_v62, %v5854_v20  ;;  %v1236_v58 = vmul.f32 %v9349_v3, %v5845_v7  ;;  %v1365_v10 = vmul.f32 %v9248_v11, %v9348_v5  ;;  %v1429_v52 = vmul.f32 %v9251_v25, %v9350_v26 }
 0x2fc   :  { %v1144_v43 = vadd.f32 %v1128_v30, %v1079_v6  ;;  %v1301_v49 = vmul.f32 %v4795_v1, %v5845_v7  ;;  %v4379_v6 = vld [vmem:[%s8986_s0 + $0x20] sm:$0xff]  ;;  %vm1589_vm11 = vcmask 293888  }
 0x2fe   :  { %1325 = vrot.lane.b32.xlu0 %v1300_v32, %s4433_s11  ;;  %1388 = vrot.lane.b32.xlu1 %v1364_v59, %s4434_s9  ;;  %v1218_v37 = vadd.f32 %v1202_v22, %v1144_v43  ;;  %v1621_v32 = vmul.f32 %v4379_v6, %v9379_v54  ;;  %v1493_v59 = vmul.f32 %v9332_v19, %v5390_v4 }
 0x2ff   :  { %1262 = vrot.lane.b32.xlu2 %v1236_v58, %s4432_s4  ;;  %s4454_s4 = smov 30  }
 0x300   :  { %v1190_v50 = vpop.permute.xlu0 %1189  ;;  %v1253_v20 = vpop.permute.xlu1 %1252 }
 0x301   :  { %v1203_v17 = vsel %vm1199_vm14, %v5877_v8, %v1190_v50  ;;  %v5992_v15 = vpop.permute.xlu2 %1191  ;;  %v1267_v36 = vsel %vm1264_vm0, %v1251_v44, %v1253_v20  ;;  %v1428_v8 = vmul.f32 %v9251_v25, %v5390_v4 }
 0x302   :  { %v1219_v14 = vadd.f32 %v1203_v17, %v5890_v29  ;;  %v1204_v3 = vsel %vm1199_vm14, %v1190_v50, %v5992_v15  ;;  %v1283_v41 = vadd.f32 %v1267_v36, %v1218_v37  ;;  %v9382_v17 = vld [vmem:[#allocation29_spill] sm:$0xff] }
 0x303   :  { %v1220_v46 = vadd.f32 %v1204_v3, %v5901_v63  ;;  %v1684_v36 = vmul.f32 %v4376_v48, %v9382_v17 }
 0x306   :  { %1514 = vrot.lane.b32.xlu0 %v1492_v33, %s4436_s12  ;;  %1577 = vrot.lane.b32.xlu1 %v1556_v42, %s4437_s28 }
 0x307   :  { %1451 = vrot.lane.b32.xlu2 %v1428_v8, %s4435_s20 }
 0x308   :  { %v1314_v29 = vpop.permute.xlu0 %1313  ;;  %v1316_v44 = vpop.permute.xlu1 %1315 }
 0x309   :  { %v1330_v63 = vsel %vm1329_vm5, %v5932_v16, %v1314_v29  ;;  %v1377_v18 = vpop.permute.xlu2 %1376  ;;  %v1331_v28 = vsel %vm1329_vm5, %v1314_v29, %v1316_v44  ;;  %v4378_v16 = vld [vmem:[%s8986_s0 + $0x8] sm:$0xff] }
 0x30a   :  { %v1346_v9 = vadd.f32 %v1330_v63, %v5936_v40  ;;  %v1347_v53 = vadd.f32 %v1331_v28, %v5939_v39  ;;  %v1618_v40 = vmul.f32 %v4378_v16, %v9379_v54  ;;  %v1683_v3 = vmul.f32 %v4378_v16, %v9382_v17 }
 0x30b   :  { %v1430_v28 = vmul.f32 %v9251_v25, %v9348_v5 }
 0x30e   :  { %1638 = vrot.lane.b32.xlu0 %v1619_v60, %s4438_s25  ;;  %1640 = vrot.lane.b32.xlu1 %v1620_v13, %s4438_s25 }
 0x30f   :  { %1636 = vrot.lane.b32.xlu2 %v1618_v40, %s4438_s25 }
 0x310   :  { %v1057_v39 = vpop.permute.xlu0 %1056  ;;  %v1120_v12 = vpop.permute.xlu1 %1119 }
 0x311   :  { %v1067_v24 = vsel %vm9380_vm6, %v1055_v27, %v1057_v39  ;;  %v1059_v35 = vpop.permute.xlu2 %1058  ;;  %v1131_v31 = vsel %vm1125_vm13, %v5887_v47, %v1120_v12 }
 0x312   :  { %v1083_v0 = vadd.f32 %v1067_v24, %v1018_v51  ;;  %v1068_v45 = vsel %vm9381_vm7, %v1057_v39, %v1059_v35  ;;  %v1147_v56 = vadd.f32 %v1131_v31, %v1082_v38  ;;  %v1686_v35 = vmul.f32 %v4379_v6, %v9382_v17 }
 0x313   :  { %v1084_v55 = vadd.f32 %v1068_v45, %v1019_v23  ;;  %v1557_v23 = vmul.f32 %v9375_v57, %v5277_v34  ;;  %v1558_v31 = vmul.f32 %v9375_v57, %v5390_v4  ;;  %v1559_v4 = vmul.f32 %v9375_v57, %v9350_v26 }
 0x316   :  { %1390 = vrot.lane.b32.xlu0 %v1365_v10, %s4434_s9  ;;  %1453 = vrot.lane.b32.xlu1 %v1429_v52, %s4435_s20 }
 0x317   :  { %1327 = vrot.lane.b32.xlu2 %v1301_v49, %s4433_s11  ;;  %s4439_s11 = smov 34  }
 0x318   :  { %v1255_v47 = vpop.permute.xlu0 %1254  ;;  %v1318_v27 = vpop.permute.xlu1 %1317 }
 0x319   :  { %v1268_v21 = vsel %vm1264_vm0, %v1253_v20, %v1255_v47  ;;  %v6042_v61 = vpop.permute.xlu2 %1256  ;;  %v1332_v51 = vsel %vm1329_vm5, %v1316_v44, %v1318_v27 }
 0x31a   :  { %v1284_v62 = vadd.f32 %v1268_v21, %v1219_v14  ;;  %v1269_v38 = vsel %vm1264_vm0, %v1255_v47, %v6042_v61  ;;  %v1348_v30 = vadd.f32 %v1332_v51, %v1283_v41  ;;  %v1685_v14 = vmul.f32 %v4377_v2, %v9382_v17 }
 0x31b   :  { %v1285_v1 = vadd.f32 %v1269_v38, %v1220_v46  ;;  %v1495_v47 = vmul.f32 %v9332_v19, %v9348_v5 }
 0x31e   :  { %1579 = vrot.lane.b32.xlu0 %v1557_v23, %s4437_s28  ;;  %1642 = vrot.lane.b32.xlu1 %v1621_v32, %s4438_s25 }
 0x31f   :  { %1516 = vrot.lane.b32.xlu2 %v1493_v59, %s4436_s12  ;;  %v1496_v59 = vmul.f32 %v9332_v19, %v5845_v7 }
 0x320   :  { %v1379_v22 = vpop.permute.xlu0 %1378  ;;  %v1381_v58 = vpop.permute.xlu1 %1380 }
 0x321   :  { %v1395_v34 = vsel %vm1394_vm8, %v1377_v18, %v1379_v22  ;;  %v1442_v43 = vpop.permute.xlu2 %1441  ;;  %v1396_v37 = vsel %vm1394_vm8, %v1379_v22, %v1381_v58  ;;  %v4381_v22 = vld [vmem:[%s8986_s0 + $0x30] sm:$0xff] }
 0x322   :  { %v1411_v50 = vadd.f32 %v1395_v34, %v1346_v9  ;;  %v1412_v20 = vadd.f32 %v1396_v37, %v1347_v53  ;;  %v1494_v9 = vmul.f32 %v9332_v19, %v9350_v26  ;;  %v1366_v53 = vmul.f32 %v9248_v11, %v5845_v7 }
 0x326   :  { %1703 = vrot.lane.b32.xlu0 %v1684_v36, %s4439_s11  ;;  %1705 = vrot.lane.b32.xlu1 %v1685_v14, %s4439_s11 }
 0x327   :  { %1701 = vrot.lane.b32.xlu2 %v1683_v3, %s4439_s11  ;;  %v1624_v3 = vmul.f32 %v9379_v54, %v9350_v26 }
 0x328   :  { %v1122_v41 = vpop.permute.xlu0 %1121  ;;  %v1194_v46 = vpop.permute.xlu1 %1193 }
 0x329   :  { %v1132_v33 = vsel %vm1125_vm13, %v1120_v12, %v1122_v41  ;;  %v1124_v42 = vpop.permute.xlu2 %1123  ;;  %v1205_v8 = vsel %vm1199_vm14, %v5992_v15, %v1194_v46  ;;  %v4380_v12 = vld [vmem:[%s8986_s0 + $0x28] sm:$0xff] }
 0x32a   :  { %v1148_v29 = vadd.f32 %v1132_v33, %v1083_v0  ;;  %v1133_v44 = vsel %vm1125_vm13, %v1122_v41, %v1124_v42  ;;  %v1221_v63 = vadd.f32 %v1205_v8, %v1147_v56  ;;  %v1622_v24 = vmul.f32 %v4380_v12, %v9379_v54 }
 0x32b   :  { %v1149_v18 = vadd.f32 %v1133_v44, %v1084_v55  ;;  %v1688_v41 = vmul.f32 %v4381_v22, %v9382_v17  ;;  %vm1719_vm13 = vcmask 277504  }
 0x32e   :  { %1455 = vrot.lane.b32.xlu0 %v1430_v28, %s4435_s20  ;;  %1518 = vrot.lane.b32.xlu1 %v1494_v9, %s4436_s12  ;;  %v4382_v28 = vld [vmem:[%s8986_s0 + $0x38] sm:$0xff] }
 0x32f   :  { %1392 = vrot.lane.b32.xlu2 %v1366_v53, %s4434_s9  ;;  %v1689_v9 = vmul.f32 %v4382_v28, %v9382_v17  ;;  %v1561_v53 = vmul.f32 %v9375_v57, %v5845_v7 }
 0x330   :  { %v1320_v15 = vpop.permute.xlu0 %1319  ;;  %v1383_v48 = vpop.permute.xlu1 %1382 }
 0x331   :  { %v1333_v60 = vsel %vm1329_vm5, %v1318_v27, %v1320_v15  ;;  %v6080_v2 = vpop.permute.xlu2 %1321  ;;  %v1397_v13 = vsel %vm1394_vm8, %v1381_v58, %v1383_v48  ;;  %v1431_v27 = vmul.f32 %v9251_v25, %v5845_v7  ;;  %v1687_v25 = vmul.f32 %v4380_v12, %v9382_v17 }
 0x332   :  { %v1349_v16 = vadd.f32 %v1333_v60, %v1284_v62  ;;  %v1334_v40 = vsel %vm1329_vm5, %v1320_v15, %v6080_v2  ;;  %v1413_v39 = vadd.f32 %v1397_v13, %v1348_v30  ;;  %v1623_v58 = vmul.f32 %v4381_v22, %v9379_v54 }
 0x333   :  { %v1350_v11 = vadd.f32 %v1334_v40, %v1285_v1 }
 0x336   :  { %1644 = vrot.lane.b32.xlu0 %v1622_v24, %s4438_s25  ;;  %1707 = vrot.lane.b32.xlu1 %v1686_v35, %s4439_s11  ;;  %v1691_v24 = vmul.f32 %v9382_v17, %v5845_v7  ;;  %v1626_v35 = vmul.f32 %v9379_v54, %v5845_v7 }
 0x337   :  { %1581 = vrot.lane.b32.xlu2 %v1558_v31, %s4437_s28 }
 0x338   :  { %v1444_v0 = vpop.permute.xlu0 %1443  ;;  %v1446_v45 = vpop.permute.xlu1 %1445 }
 0x339   :  { %v1460_v56 = vsel %vm1459_vm9, %v1442_v43, %v1444_v0  ;;  %v1507_v55 = vpop.permute.xlu2 %1506  ;;  %v1461_v10 = vsel %vm1459_vm9, %v1444_v0, %v1446_v45 }
 0x33a   :  { %v1476_v52 = vadd.f32 %v1460_v56, %v1411_v50  ;;  %v1477_v49 = vadd.f32 %v1461_v10, %v1412_v20 }
 0x33e   :  { %1520 = vrot.lane.b32.xlu0 %v1495_v47, %s4436_s12  ;;  %1583 = vrot.lane.b32.xlu1 %v1559_v4, %s4437_s28 }
 0x33f   :  { %1457 = vrot.lane.b32.xlu2 %v1431_v27, %s4435_s20 }
 0x340   :  { %v1196_v21 = vpop.permute.xlu0 %1195  ;;  %v1259_v51 = vpop.permute.xlu1 %1258 }
 0x341   :  { %v1206_v62 = vsel %vm1199_vm14, %v1194_v46, %v1196_v21  ;;  %v1198_v38 = vpop.permute.xlu2 %1197  ;;  %v1270_v30 = vsel %vm1264_vm0, %v6042_v61, %v1259_v51  ;;  %v1560_v46 = vmul.f32 %v9375_v57, %v9348_v5  ;;  %v4383_v57 = vld [vmem:[%s8986_s0 + $0x40] sm:$0xff] }
 0x342   :  { %v1222_v1 = vadd.f32 %v1206_v62, %v1148_v29  ;;  %v1207_v23 = vsel %vm1199_vm14, %v1196_v21, %v1198_v38  ;;  %v1286_v6 = vadd.f32 %v1270_v30, %v1221_v63  ;;  %v1690_v12 = vmul.f32 %v4383_v57, %v9382_v17 }
 0x343   :  { %v1223_v32 = vadd.f32 %v1207_v23, %v1149_v18  ;;  %v1625_v18 = vmul.f32 %v9379_v54, %v9348_v5 }
 0x346   :  { %1709 = vrot.lane.b32.xlu0 %v1687_v25, %s4439_s11  ;;  %1522 = vrot.lane.b32.xlu1 %v1496_v59, %s4436_s12 }
 0x347   :  { %1646 = vrot.lane.b32.xlu2 %v1623_v58, %s4438_s25 }
 0x348   :  { %v1385_v61 = vpop.permute.xlu0 %1384  ;;  %v1448_v34 = vpop.permute.xlu1 %1447 }
 0x349   :  { %v1398_v43 = vsel %vm1394_vm8, %v1383_v48, %v1385_v61  ;;  %v6121_v37 = vpop.permute.xlu2 %1386  ;;  %v1462_v19 = vsel %vm1459_vm9, %v1446_v45, %v1448_v34 }
 0x34a   :  { %v1414_v50 = vadd.f32 %v1398_v43, %v1349_v16  ;;  %v1399_v20 = vsel %vm1394_vm8, %v1385_v61, %v6121_v37  ;;  %v1478_v36 = vadd.f32 %v1462_v19, %v1413_v39 }
 0x34b   :  { %v1415_v14 = vadd.f32 %v1399_v20, %v1350_v11 }
 0x34e   :  { %1648 = vrot.lane.b32.xlu0 %v1624_v3, %s4438_s25  ;;  %1711 = vrot.lane.b32.xlu1 %v1688_v41, %s4439_s11 }
 0x34f   :  { %1585 = vrot.lane.b32.xlu2 %v1560_v46, %s4437_s28 }
 0x350   :  { %v1509_v33 = vpop.permute.xlu0 %1508  ;;  %v1511_v42 = vpop.permute.xlu1 %1510 }
 0x351   :  { %v1525_v8 = vsel %vm1524_vm10, %v1507_v55, %v1509_v33  ;;  %v1572_v29 = vpop.permute.xlu2 %1571  ;;  %v1526_v44 = vsel %vm1524_vm10, %v1509_v33, %v1511_v42 }
 0x352   :  { %v1541_v26 = vadd.f32 %v1525_v8, %v1476_v52  ;;  %v1542_v63 = vadd.f32 %v1526_v44, %v1477_v49 }
 0x356   :  { %1650 = vrot.lane.b32.xlu0 %v1625_v18, %s4438_s25  ;;  %1713 = vrot.lane.b32.xlu1 %v1689_v9, %s4439_s11 }
 0x357   :  { %1587 = vrot.lane.b32.xlu2 %v1561_v53, %s4437_s28  ;;  %s4452_s28 = smov 99  }
 0x358   :  { %v1261_v15 = vpop.permute.xlu0 %1260  ;;  %v1324_v48 = vpop.permute.xlu1 %1323 }
 0x359   :  { %v1271_v60 = vsel %vm1264_vm0, %v1259_v51, %v1261_v15  ;;  %v1263_v5 = vpop.permute.xlu2 %1262  ;;  %v1335_v13 = vsel %vm1329_vm5, %v6080_v2, %v1324_v48 }
 0x35a   :  { %v1287_v16 = vadd.f32 %v1271_v60, %v1222_v1  ;;  %v1272_v40 = vsel %vm1264_vm0, %v1261_v15, %v1263_v5  ;;  %v1351_v39 = vadd.f32 %v1335_v13, %v1286_v6 }
 0x35b   :  { %v1288_v11 = vadd.f32 %v1272_v40, %v1223_v32 }
 0x35e   :  { %1715 = vrot.lane.b32.xlu0 %v1690_v12, %s4439_s11  ;;  %1717 = vrot.lane.b32.xlu1 %v1691_v24, %s4439_s11 }
 0x35f   :  { %1652 = vrot.lane.b32.xlu2 %v1626_v35, %s4438_s25 }
 0x360   :  { %v1450_v2 = vpop.permute.xlu0 %1449  ;;  %v1513_v31 = vpop.permute.xlu1 %1512 }
 0x361   :  { %v1463_v0 = vsel %vm1459_vm9, %v1448_v34, %v1450_v2  ;;  %v1452_v45 = vpop.permute.xlu2 %1451  ;;  %v1527_v56 = vsel %vm1524_vm10, %v1511_v42, %v1513_v31 }
 0x362   :  { %v1479_v55 = vadd.f32 %v1463_v0, %v1414_v50  ;;  %v1464_v10 = vsel %vm1459_vm9, %v1450_v2, %v1452_v45  ;;  %v1543_v17 = vadd.f32 %v1527_v56, %v1478_v36 }
 0x363   :  { %v1480_v52 = vadd.f32 %v1464_v10, %v1415_v14  ;;  %v6186_v10 = vld [vmem:[%s8987_s1] sm:$0xff] }
 0x368   :  { %v1574_v7 = vpop.permute.xlu0 %1573  ;;  %v1576_v54 = vpop.permute.xlu1 %1575 }
 0x369   :  { %v1590_v49 = vsel %vm1589_vm11, %v1572_v29, %v1574_v7  ;;  %v1637_v47 = vpop.permute.xlu2 %1636  ;;  %v1591_v4 = vsel %vm1589_vm11, %v1574_v7, %v1576_v54  ;;  %v6191_v7 = vperm.slane %v6186_v10, 0 }
 0x36a   :  { %v1606_v27 = vadd.f32 %v1590_v49, %v1541_v26  ;;  %v1607_v21 = vadd.f32 %v1591_v4, %v1542_v63  ;;  %v6196_v49 = vperm.slane %v6186_v10, 1 }
 0x36b   :  { %9383 = vst [vmem:[#allocation25_spill] sm:$0xff] %v6191_v7 }
 0x36c   :  { %9384 = vst [vmem:[#allocation20_spill] sm:$0xff] %v6196_v49 }
 0x370   :  { %v1326_v51 = vpop.permute.xlu0 %1325  ;;  %v1389_v62 = vpop.permute.xlu1 %1388 }
 0x371   :  { %v1336_v38 = vsel %vm1329_vm5, %v1324_v48, %v1326_v51  ;;  %v1328_v30 = vpop.permute.xlu2 %1327  ;;  %v1400_v1 = vsel %vm1394_vm8, %v6121_v37, %v1389_v62 }
 0x372   :  { %v1352_v23 = vadd.f32 %v1336_v38, %v1287_v16  ;;  %v1337_v6 = vsel %vm1329_vm5, %v1326_v51, %v1328_v30  ;;  %v1416_v32 = vadd.f32 %v1400_v1, %v1351_v39 }
 0x373   :  { %v1353_v25 = vadd.f32 %v1337_v6, %v1288_v11 }
 0x378   :  { %v1515_v59 = vpop.permute.xlu0 %1514  ;;  %v1578_v22 = vpop.permute.xlu1 %1577 }
 0x379   :  { %v1528_v58 = vsel %vm1524_vm10, %v1513_v31, %v1515_v59  ;;  %v1517_v61 = vpop.permute.xlu2 %1516  ;;  %v1592_v34 = vsel %vm1589_vm11, %v1576_v54, %v1578_v22 }
 0x37a   :  { %v1544_v43 = vadd.f32 %v1528_v58, %v1479_v55  ;;  %v1529_v19 = vsel %vm1524_vm10, %v1515_v59, %v1517_v61  ;;  %v1608_v50 = vadd.f32 %v1592_v34, %v1543_v17 }
 0x37b   :  { %v6174_v20 = vadd.f32 %v1529_v19, %v1480_v52  ;;  %v6219_v19 = vperm.slane %v6186_v10, 3 }
 0x37d   :  { %9386 = vst [vmem:[#allocation23_spill] sm:$0xff] %v6219_v19 }
 0x380   :  { %v1639_v37 = vpop.permute.xlu0 %1638  ;;  %v1641_v36 = vpop.permute.xlu1 %1640 }
 0x381   :  { %v1655_v14 = vsel %vm1654_vm12, %v1637_v47, %v1639_v37  ;;  %v1702_v3 = vpop.permute.xlu2 %1701  ;;  %v1656_v41 = vsel %vm1654_vm12, %v1639_v37, %v1641_v36 }
 0x382   :  { %v1671_v46 = vadd.f32 %v1655_v14, %v1606_v27  ;;  %v1672_v33 = vadd.f32 %v1656_v41, %v1607_v21 }
 0x388   :  { %v1391_v42 = vpop.permute.xlu0 %1390  ;;  %v1454_v8 = vpop.permute.xlu1 %1453 }
 0x389   :  { %v1401_v29 = vsel %vm1394_vm8, %v1389_v62, %v1391_v42  ;;  %v1393_v44 = vpop.permute.xlu2 %1392  ;;  %v1465_v26 = vsel %vm1459_vm9, %v1452_v45, %v1454_v8 }
 0x38a   :  { %v1417_v63 = vadd.f32 %v1401_v29, %v1352_v23  ;;  %v1402_v18 = vsel %vm1394_vm8, %v1391_v42, %v1393_v44  ;;  %v1481_v28 = vadd.f32 %v1465_v26, %v1416_v32  ;;  %v6209_v23 = vperm.slane %v6186_v10, 2 }
 0x38b   :  { %v1418_v9 = vadd.f32 %v1402_v18, %v1353_v25  ;;  %v6233_v18 = vperm.slane %v6186_v10, 4 }
 0x38c   :  { %9385 = vst [vmem:[#allocation30_spill] sm:$0xff] %v6209_v23 }
 0x38d   :  { %9387 = vst [vmem:[#allocation34_spill] sm:$0xff] %v6233_v18 }
 0x390   :  { %v1580_v53 = vpop.permute.xlu0 %1579  ;;  %v1643_v15 = vpop.permute.xlu1 %1642 }
 0x391   :  { %v1593_v48 = vsel %vm1589_vm11, %v1578_v22, %v1580_v53  ;;  %v1657_v60 = vsel %vm1654_vm12, %v1641_v36, %v1643_v15  ;;  %v1582_v39 = vpop.permute.xlu2 %1581 }
 0x392   :  { %v1609_v5 = vadd.f32 %v1593_v48, %v1544_v43  ;;  %v1673_v13 = vadd.f32 %v1657_v60, %v1608_v50  ;;  %v1594_v62 = vsel %vm1589_vm11, %v1580_v53, %v1582_v39 }
 0x398   :  { %v1704_v16 = vpop.permute.xlu0 %1703  ;;  %v1706_v40 = vpop.permute.xlu1 %1705 }
 0x399   :  { %v1458_v12 = vpop.permute.xlu2 %1457  ;;  %v1720_v17 = vsel %vm1719_vm13, %v1702_v3, %v1704_v16  ;;  %v1721_v52 = vsel %vm1719_vm13, %v1704_v16, %v1706_v40 }
 0x39a   :  { %v6193_v54 = vadd.f32 %v1720_v17, %v1671_v46  ;;  %v6198_v47 = vadd.f32 %v1721_v52, %v1672_v33 }
 0x39c   :  { %v1762_v30 = vmul.f32 %v6191_v7, %v6193_v54  ;;  %v1763_v1 = vmul.f32 %v6196_v49, %v6198_v47 }
 0x39e   :  { %v1779_v3 = vmul.f32 %v1762_v30, %v6193_v54  ;;  %v1780_v41 = vmul.f32 %v1763_v1, %v6198_v47 }
 0x3a0   :  { %v1456_v11 = vpop.permute.xlu0 %1455  ;;  %v1519_v57 = vpop.permute.xlu1 %1518 }
 0x3a1   :  { %v1647_v2 = vpop.permute.xlu2 %1646  ;;  %v1530_v38 = vsel %vm1524_vm10, %v1517_v61, %v1519_v57  ;;  %v1610_v61 = vadd.f32 %v1594_v62, %v6174_v20  ;;  %v1466_v34 = vsel %vm1459_vm9, %v1454_v8, %v1456_v11  ;;  %v1467_v50 = vsel %vm1459_vm9, %v1456_v11, %v1458_v12 }
 0x3a2   :  { %v1546_v43 = vadd.f32 %v1530_v38, %v1481_v28  ;;  %v1482_v33 = vadd.f32 %v1466_v34, %v1417_v63  ;;  %v1483_v44 = vadd.f32 %v1467_v50, %v1418_v9 }
 0x3a8   :  { %v1645_v24 = vpop.permute.xlu0 %1644  ;;  %v1708_v35 = vpop.permute.xlu1 %1707 }
 0x3a9   :  { %v1586_v45 = vpop.permute.xlu2 %1585  ;;  %v1658_v4 = vsel %vm1654_vm12, %v1643_v15, %v1645_v24  ;;  %v1722_v27 = vsel %vm1719_vm13, %v1706_v40, %v1708_v35  ;;  %v1659_v25 = vsel %vm1654_vm12, %v1645_v24, %v1647_v2  ;;  %v1770_v40 = vadd.f32 %v1763_v1, %v1762_v30 }
 0x3aa   :  { %v1674_v59 = vadd.f32 %v1658_v4, %v1609_v5  ;;  %v6213_v22 = vadd.f32 %v1722_v27, %v1673_v13  ;;  %v1675_v46 = vadd.f32 %v1659_v25, %v1610_v61  ;;  %v6241_v13 = vperm.slane %v6186_v10, 5 }
 0x3ab   :  { %v6259_v27 = vperm.slane %v6186_v10, 7 }
 0x3ac   :  { %v1764_v42 = vmul.f32 %v6209_v23, %v6213_v22  ;;  %9388 = vst [vmem:[#allocation28_spill] sm:$0xff] %v6241_v13 }
 0x3ad   :  { %9390 = vst [vmem:[#allocation33_spill] sm:$0xff] %v6259_v27 }
 0x3ae   :  { %v1781_v9 = vmul.f32 %v1764_v42, %v6213_v22 }
 0x3b0   :  { %v1521_v31 = vpop.permute.xlu0 %1520  ;;  %v1584_v0 = vpop.permute.xlu1 %1583 }
 0x3b1   :  { %v1588_v6 = vpop.permute.xlu2 %1587  ;;  %v1595_v58 = vsel %vm1589_vm11, %v1582_v39, %v1584_v0  ;;  %v1531_v8 = vsel %vm1524_vm10, %v1519_v57, %v1521_v31  ;;  %v1787_v39 = vadd.f32 %v1780_v41, %v1779_v3  ;;  %v1596_v11 = vsel %vm1589_vm11, %v1584_v0, %v1586_v45 }
 0x3b2   :  { %v1611_v20 = vadd.f32 %v1595_v58, %v1546_v43  ;;  %v1547_v60 = vadd.f32 %v1531_v8, %v1482_v33  ;;  %v1597_v24 = vsel %vm1589_vm11, %v1586_v45, %v1588_v6  ;;  %v6256_v0 = vperm.slane %v6186_v10, 6 }
 0x3b3   :  { %v1788_v4 = vadd.f32 %v1787_v39, %v1781_v9 }
 0x3b4   :  { %9389 = vst [vmem:[#allocation37_spill] sm:$0xff] %v6256_v0 }
 0x3b8   :  { %v1710_v56 = vpop.permute.xlu0 %1709  ;;  %v1523_v55 = vpop.permute.xlu1 %1522 }
 0x3b9   :  { %v1723_v32 = vsel %vm1719_vm13, %v1708_v35, %v1710_v56  ;;  %v1532_v29 = vsel %vm1524_vm10, %v1521_v31, %v1523_v55  ;;  %v1653_v57 = vpop.permute.xlu2 %1652  ;;  %v1612_v55 = vadd.f32 %v1596_v11, %v1547_v60 }
 0x3ba   :  { %v6222_v37 = vadd.f32 %v1723_v32, %v1674_v59  ;;  %v1548_v5 = vadd.f32 %v1532_v29, %v1483_v44 }
 0x3bc   :  { %v1765_v48 = vmul.f32 %v6219_v19, %v6222_v37  ;;  %v1613_v17 = vadd.f32 %v1597_v24, %v1548_v5 }
 0x3be   :  { %v1782_v35 = vmul.f32 %v1765_v48, %v6222_v37 }
 0x3c0   :  { %v1649_v21 = vpop.permute.xlu0 %1648  ;;  %v1712_v51 = vpop.permute.xlu1 %1711  ;;  %v1789_v1 = vadd.f32 %v1788_v4, %v1782_v35 }
 0x3c1   :  { %v1660_v36 = vsel %vm1654_vm12, %v1647_v2, %v1649_v21  ;;  %v1724_v14 = vsel %vm1719_vm13, %v1710_v56, %v1712_v51  ;;  %v1771_v56 = vadd.f32 %v1770_v40, %v1764_v42 }
 0x3c2   :  { %v1676_v26 = vadd.f32 %v1660_v36, %v1611_v20  ;;  %v6235_v28 = vadd.f32 %v1724_v14, %v1675_v46 }
 0x3c3   :  { %v1772_v45 = vadd.f32 %v1771_v56, %v1765_v48 }
 0x3c4   :  { %v1766_v12 = vmul.f32 %v6233_v18, %v6235_v28 }
 0x3c6   :  { %v1773_v25 = vadd.f32 %v1772_v45, %v1766_v12 }
 0x3c8   :  { %v1651_v53 = vpop.permute.xlu0 %1650  ;;  %v1714_v15 = vpop.permute.xlu1 %1713 }
 0x3c9   :  { %v1725_v63 = vsel %vm1719_vm13, %v1712_v51, %v1714_v15  ;;  %v1661_v2 = vsel %vm1654_vm12, %v1649_v21, %v1651_v53  ;;  %v1662_v31 = vsel %vm1654_vm12, %v1651_v53, %v1653_v57  ;;  %v1783_v51 = vmul.f32 %v1766_v12, %v6235_v28 }
 0x3ca   :  { %v6243_v16 = vadd.f32 %v1725_v63, %v1676_v26  ;;  %v1677_v62 = vadd.f32 %v1661_v2, %v1612_v55  ;;  %v1678_v21 = vadd.f32 %v1662_v31, %v1613_v17  ;;  %v1809_v2 = vld [vmem:[%s8985_s2] sm:$0xf]  ;;  %v4441_v55 = vmov 27  }
 0x3cb   :  { %v1790_v10 = vadd.f32 %v1789_v1, %v1783_v51  ;;  %4266 = vset.pattern.permute.xlu1 %v4441_v55  ;;  %v4442_v51 = vmov 28   ;;  %v4384_v1 = vld [vmem:[%s8985_s2] sm:$0xff] }
 0x3cc   :  { %v1767_v52 = vmul.f32 %v6241_v13, %v6243_v16 }
 0x3ce   :  { %v1784_v59 = vmul.f32 %v1767_v52, %v6243_v16  ;;  %v1774_v50 = vadd.f32 %v1773_v25, %v1767_v52  ;;  %v4445_v25 = vmov 34  }
 0x3d0   :  { %v1716_v38 = vpop.permute.xlu0 %1715  ;;  %v1718_v30 = vpop.permute.xlu1 %1717  ;;  %v1791_v3 = vadd.f32 %v1790_v10, %v1784_v59  ;;  %v4446_v59 = vmov 38   ;;  %v4447_v10 = vmov 36  }
 0x3d1   :  { %v1726_v6 = vsel %vm1719_vm13, %v1714_v15, %v1716_v38  ;;  %v1727_v32 = vsel %vm1719_vm13, %v1716_v38, %v1718_v30  ;;  %v4443_v38 = vmov 35  }
 0x3d2   :  { %v6265_v58 = vadd.f32 %v1726_v6, %v1677_v62  ;;  %v6267_v61 = vadd.f32 %v1727_v32, %v1678_v21  ;;  %4270 = vset.pattern.permute.xlu0 %v4443_v38  ;;  %v4444_v32 = vmov 33  }
 0x3d3   :  { %4268 = vset.pattern.permute.xlu2 %v4444_v32 }
 0x3d4   :  { %v1768_v34 = vmul.f32 %v6256_v0, %v6265_v58  ;;  %v1769_v43 = vmul.f32 %v6259_v27, %v6267_v61 }
 0x3d6   :  { %v1785_v36 = vmul.f32 %v1768_v34, %v6265_v58  ;;  %v1775_v14 = vadd.f32 %v1774_v50, %v1768_v34  ;;  %v1786_v46 = vmul.f32 %v1769_v43, %v6267_v61  ;;  %v4448_v34 = vmov 40  }
 0x3d7   :  { %v4450_v50 = vmov 39  }
 0x3d8   :  { %v1776_v41 = vadd.f32 %v1775_v14, %v1769_v43  ;;  %v1792_v20 = vadd.f32 %v1791_v3, %v1785_v36  ;;  %v4449_v43 = vmov 37  }
 0x3da   :  { %1777 = vadd.xlane.f32.xlu2 %v1776_v41  ;;  %v1793_v33 = vadd.f32 %v1792_v20, %v1786_v46 }
 0x3dc   :  { %1794 = vadd.xlane.f32.xlu0 %v1793_v33 }
 0x3f0   :  { %2271 = vperm.xlu0 %4270, %v4384_v1  }
 0x3f2   :  { %2223 = vperm.xlu2 %4268, %v4384_v1  }
 0x3fa   :  { %4273 = vset.pattern.permute.xlu2 %v4446_v59 }
 0x3fb   :  { %2355 = vperm.xlu2 %4273, %v4384_v1  }
 0x403   :  { %4275 = vset.pattern.permute.xlu2 %v4448_v34 }
 0x404   :  { %2411 = vperm.xlu2 %4275, %v4384_v1  }
 0x44d   :  { %v1778_v42 = vpop.xlane.xlu2 %1777 }
 0x44e   :  { %v1797_v8 = vrot.slane %v1778_v42, 4 }
 0x44f   :  { %v1795_v29 = vpop.xlane.xlu0 %1794 }
 0x450   :  { %v1799_v44 = vadd.f32 %v1797_v8, %v1778_v42  ;;  %v1801_v26 = vrot.slane %v1795_v29, 4 }
 0x452   :  { %v1804_v53 = vmul.f32 0.0009765625, %v1799_v44  ;;  %v1803_v15 = vadd.f32 %v1801_v26, %v1795_v29 }
 0x454   :  { %v1806_v48 = vmul.f32 %v1804_v53, %v1804_v53  ;;  %v1805_v63 = vmul.f32 0.0009765625, %v1803_v15 }
 0x456   :  { %v1807_v60 = vsub.f32 %v1805_v63, %v1806_v48 }
 0x458   :  { %v1808_v5 = vmax.f32 %v1807_v60, 0.0 }
 0x45a   :  { %v1810_v9 = vadd.f32 0.001, %v1808_v5 }
 0x45c   :  { %4297 = vrsqrt.f32 %v1810_v9  ;;  %vm1817_vm15 = vweird.f32 %v1810_v9 }
 0x462   :  { %v4298_v40 = vpop.eup %4297 }
 0x463   :  { %v1812_v39 = vmul.f32 %v4298_v40, %v1810_v9  ;;  %vm1818_vm14 = vweird.f32 %v4298_v40 }
 0x464   :  { %vm1819_vm0 = vmor %vm1817_vm15, %vm1818_vm14 }
 0x465   :  { %v1813_v11 = vmul.f32 %v4298_v40, %v1812_v39 }
 0x467   :  { %v1814_v57 = vmul.f32 0.5, %v1813_v11 }
 0x469   :  { %v1815_v12 = vsub.f32 1.5, %v1814_v57 }
 0x46b   :  { %v1816_v24 = vmul.f32 %v4298_v40, %v1815_v12 }
 0x46d   :  { %v1820_v35 = vsel %vm1819_vm0, %v4298_v40, %v1816_v24 }
 0x46e   :  { %1822 = vrot.lane.b32.xlu1 %v1820_v35, %s4423_s14 }
 0x4e0   :  { %v1823_v31 = vpop.permute.xlu1 %1822 }
 0x4e1   :  { %v1825_v56 = vmul.f32 %v1823_v31, %v1809_v2 }
 0x4e3   :  { %1827 = vrot.lane.b32.xlu1 %v1825_v56, %s4440_s10  ;;  %v1836_v4 = vrot.slane %v1825_v56, 4 }
 0x4e5   :  { %v1839_v45 = vsel %vm1838_vm1, %v1825_v56, %v1836_v4 }
 0x555   :  { %v1828_v17 = vpop.permute.xlu1 %1827 }
 0x556   :  { %v1830_v52 = vmul.f32 %v1828_v17, %v1804_v53 }
 0x558   :  { %1832 = vrot.lane.b32.xlu1 %v1830_v52, %s4422_s13  ;;  %s4451_s13 = smov 29  }
 0x560   :  { %1846 = vperm.xlu1 %4266, %v1839_v45  }
 0x568   :  { %4267 = vset.pattern.permute.xlu1 %v4442_v51 }
 0x5ca   :  { %v1833_v62 = vpop.permute.xlu1 %1832 }
 0x5cb   :  { %v1835_v21 = vsub.f32 %v1809_v2, %v1833_v62 }
 0x5cd   :  { %v1841_v30 = vrot.slane %v1835_v21, 4 }
 0x5cf   :  { %v1843_v6 = vsel %vm1838_vm1, %v1835_v21, %v1841_v30 }
 0x5d0   :  { %1859 = vperm.xlu1 %4267, %v1843_v6  }
 0x5d2   :  { %v6285_v36 = vpop.permute.xlu1 %1846 }
 0x5d3   :  { %v1849_v14 = vmul.f32 %v6285_v36, %v6193_v54  ;;  %v1850_v3 = vmul.f32 %v6285_v36, %v6198_v47  ;;  %v1851_v41 = vmul.f32 %v6285_v36, %v6213_v22  ;;  %v1852_v46 = vmul.f32 %v6285_v36, %v6222_v37 }
 0x5d4   :  { %v1853_v24 = vmul.f32 %v6285_v36, %v6235_v28  ;;  %v1854_v56 = vmul.f32 %v6285_v36, %v6243_v16 }
 0x5d8   :  { %4269 = vset.pattern.permute.xlu1 %v4445_v25 }
 0x5d9   :  { %2243 = vperm.xlu1 %4269, %v4384_v1  }
 0x5e1   :  { %4271 = vset.pattern.permute.xlu1 %v4447_v10 }
 0x5e2   :  { %2299 = vperm.xlu1 %4271, %v4384_v1  }
 0x5ea   :  { %4272 = vset.pattern.permute.xlu1 %v4449_v43 }
 0x5eb   :  { %2327 = vperm.xlu1 %4272, %v4384_v1  }
 0x5f3   :  { %4274 = vset.pattern.permute.xlu1 %v4450_v50 }
 0x5f4   :  { %2383 = vperm.xlu1 %4274, %v4384_v1  }
 0x642   :  { %v6295_v20 = vpop.permute.xlu1 %1859 }
 0x643   :  { %v6298_v33 = vadd.f32 %v6295_v20, %v1849_v14  ;;  %v6301_v42 = vadd.f32 %v6295_v20, %v1850_v3  ;;  %v6304_v8 = vadd.f32 %v6295_v20, %v1851_v41  ;;  %v6307_v54 = vadd.f32 %v6295_v20, %v1852_v46 }
 0x644   :  { %v6356_v16 = vadd.f32 %v6295_v20, %v1853_v24  ;;  %v6359_v25 = vadd.f32 %v6295_v20, %v1854_v56 }
 0x645   :  { %v6310_v47 = vmul.f32 0.70710677, %v6298_v33  ;;  %v6313_v22 = vmul.f32 0.70710677, %v6301_v42  ;;  %v6316_v37 = vmul.f32 0.70710677, %v6304_v8 }
 0x646   :  { %v6319_v29 = vmul.f32 0.70710677, %v6307_v54  ;;  %v6372_v24 = vmul.f32 0.70710677, %v6356_v16 }
 0x647   :  { %v1886_v44 = vmul.f32 %v6310_v47, %v6310_v47  ;;  %v1926_v26 = vmul.f32 %v6313_v22, %v6313_v22  ;;  %v1966_v53 = vmul.f32 %v6316_v37, %v6316_v37 }
 0x648   :  { %v2006_v15 = vmul.f32 %v6319_v29, %v6319_v29 }
 0x649   :  { %v6329_v48 = vmin.f32 %v1886_v44, 16.0  ;;  %v6331_v63 = vmin.f32 %v1926_v26, 16.0  ;;  %v6333_v60 = vmin.f32 %v1966_v53, 16.0 }
 0x64a   :  { %v6335_v5 = vmin.f32 %v2006_v15, 16.0 }
 0x64b   :  { %v1888_v9 = vmul.f32 2.1237322e-06, %v6329_v48  ;;  %v1899_v40 = vmul.f32 3.8918573e-05, %v6329_v48  ;;  %v1928_v39 = vmul.f32 2.1237322e-06, %v6331_v63 }
 0x64c   :  { %v1939_v11 = vmul.f32 3.8918573e-05, %v6331_v63  ;;  %v1968_v57 = vmul.f32 2.1237322e-06, %v6333_v60  ;;  %v1979_v12 = vmul.f32 3.8918573e-05, %v6333_v60 }
 0x64d   :  { %v1889_v35 = vadd.f32 0.00028619796, %v1888_v9  ;;  %v1900_v2 = vadd.f32 0.001143296, %v1899_v40  ;;  %v1929_v31 = vadd.f32 0.00028619796, %v1928_v39  ;;  %v1855_v39 = vmul.f32 %v6285_v36, %v6265_v58 }
 0x64e   :  { %v1940_v55 = vadd.f32 0.001143296, %v1939_v11  ;;  %v1969_v17 = vadd.f32 0.00028619796, %v1968_v57  ;;  %v1980_v52 = vadd.f32 0.001143296, %v1979_v12  ;;  %v1856_v58 = vmul.f32 %v6285_v36, %v6267_v61 }
 0x64f   :  { %v1890_v4 = vmul.f32 %v1889_v35, %v6329_v48  ;;  %v1901_v45 = vmul.f32 %v1900_v2, %v6329_v48  ;;  %v1930_v51 = vmul.f32 %v1929_v31, %v6331_v63  ;;  %v2008_v62 = vmul.f32 2.1237322e-06, %v6335_v5 }
 0x650   :  { %v1941_v21 = vmul.f32 %v1940_v55, %v6331_v63  ;;  %v1970_v28 = vmul.f32 %v1969_v17, %v6333_v60  ;;  %v1981_v38 = vmul.f32 %v1980_v52, %v6333_v60  ;;  %v2019_v30 = vmul.f32 3.8918573e-05, %v6335_v5 }
 0x651   :  { %v1891_v1 = vadd.f32 0.0036580483, %v1890_v4  ;;  %v1902_v6 = vadd.f32 0.014752088, %v1901_v45  ;;  %v1931_v32 = vadd.f32 0.0036580483, %v1930_v51  ;;  %v2046_v61 = vmul.f32 %v6372_v24, %v6372_v24 }
 0x652   :  { %v1942_v59 = vadd.f32 0.014752088, %v1941_v21  ;;  %v1971_v10 = vadd.f32 0.0036580483, %v1970_v28  ;;  %v1982_v34 = vadd.f32 0.014752088, %v1981_v38 }
 0x653   :  { %v1892_v43 = vmul.f32 %v1891_v1, %v6329_v48  ;;  %v1903_v50 = vmul.f32 %v1902_v6, %v6329_v48  ;;  %v1932_v14 = vmul.f32 %v1931_v32, %v6331_v63  ;;  %v2009_v3 = vadd.f32 0.00028619796, %v2008_v62 }
 0x654   :  { %v1943_v41 = vmul.f32 %v1942_v59, %v6331_v63  ;;  %v1972_v46 = vmul.f32 %v1971_v10, %v6333_v60  ;;  %v1983_v44 = vmul.f32 %v1982_v34, %v6333_v60  ;;  %v2020_v26 = vadd.f32 0.001143296, %v2019_v30 }
 0x655   :  { %v1893_v53 = vadd.f32 0.05243302, %v1892_v43  ;;  %v1904_v15 = vadd.f32 0.112945676, %v1903_v50  ;;  %v1933_v9 = vadd.f32 0.05243302, %v1932_v14  ;;  %v2010_v40 = vmul.f32 %v2009_v3, %v6335_v5 }
 0x656   :  { %v1944_v11 = vadd.f32 0.112945676, %v1943_v41  ;;  %v1984_v57 = vadd.f32 0.112945676, %v1983_v44  ;;  %v2021_v12 = vmul.f32 %v2020_v26, %v6335_v5  ;;  %v1973_v2 = vadd.f32 0.05243302, %v1972_v46 }
 0x657   :  { %v1905_v35 = vmul.f32 %v1904_v15, %v6329_v48  ;;  %v2011_v31 = vadd.f32 0.0036580483, %v2010_v40  ;;  %v1894_v56 = vmul.f32 %v1893_v53, %v6329_v48  ;;  %v6381_v4 = vmul.f32 0.70710677, %v6359_v25 }
 0x658   :  { %v1945_v55 = vmul.f32 %v1944_v11, %v6331_v63  ;;  %v1985_v17 = vmul.f32 %v1984_v57, %v6333_v60  ;;  %v2022_v52 = vadd.f32 0.014752088, %v2021_v12  ;;  %v1934_v51 = vmul.f32 %v1933_v9, %v6331_v63 }
 0x659   :  { %v1906_v45 = vadd.f32 0.4994258, %v1905_v35  ;;  %v2012_v28 = vmul.f32 %v2011_v31, %v6335_v5  ;;  %v1868_v30 = vadd.f32 %v6295_v20, %v1855_v39  ;;  %v1974_v6 = vmul.f32 %v1973_v2, %v6333_v60 }
 0x65a   :  { %v1946_v62 = vadd.f32 0.4994258, %v1945_v55  ;;  %v1986_v21 = vadd.f32 0.4994258, %v1985_v17  ;;  %v2023_v38 = vmul.f32 %v2022_v52, %v6335_v5  ;;  %v1895_v36 = vadd.f32 0.18741608, %v1894_v56 }
 0x65b   :  { %v1907_v1 = vmul.f32 %v1906_v45, %v6329_v48  ;;  %v1869_v34 = vadd.f32 %v6295_v20, %v1856_v58  ;;  %v1935_v50 = vadd.f32 0.18741608, %v1934_v51  ;;  %v2086_v14 = vmul.f32 %v6381_v4, %v6381_v4 }
 0x65c   :  { %v1947_v32 = vmul.f32 %v1946_v62, %v6331_v63  ;;  %v1987_v59 = vmul.f32 %v1986_v21, %v6333_v60  ;;  %v2024_v10 = vadd.f32 0.112945676, %v2023_v38  ;;  %v6399_v3 = vmul.f32 0.5, %v6298_v33 }
 0x65d   :  { %v6394_v43 = vadd.f32 1.0, %v1907_v1  ;;  %v2013_v44 = vadd.f32 0.05243302, %v2012_v28  ;;  %v6406_v26 = vmul.f32 0.5, %v6301_v42  ;;  %v6409_v53 = vmul.f32 0.5, %v6304_v8 }
 0x65e   :  { %v6401_v41 = vadd.f32 1.0, %v1947_v32  ;;  %v6403_v46 = vadd.f32 1.0, %v1987_v59  ;;  %v1975_v20 = vadd.f32 0.18741608, %v1974_v6  ;;  %v1896_v15 = vmul.f32 %v1895_v36, %v6329_v48 }
 0x65f   :  { %4299 = vrcp.f32 %v6394_v43  ;;  %v2025_v33 = vmul.f32 %v2024_v10, %v6335_v5  ;;  %v6415_v9 = vmin.f32 %v2046_v61, 16.0  ;;  %v6418_v40 = vmul.f32 0.5, %v6307_v54 }
 0x660   :  { %4301 = vrcp.f32 %v6401_v41  ;;  %v6421_v42 = vmul.f32 0.5, %v6356_v16  ;;  %v1936_v8 = vmul.f32 %v1935_v50, %v6331_v63  ;;  %v6424_v39 = vmin.f32 %v2086_v14, 16.0 }
 0x661   :  { %v6427_v11 = vmul.f32 0.5, %v6359_v25  ;;  %v6429_v48 = vmul.f32 0.5, %v1868_v30  ;;  %4303 = vrcp.f32 %v6403_v46  ;;  %v2014_v57 = vmul.f32 %v2013_v44, %v6335_v5 }
 0x662   :  { %v6433_v12 = vmul.f32 0.5, %v1869_v34  ;;  %v6435_v54 = vmul.f32 0.70710677, %v1868_v30  ;;  %v6437_v35 = vmul.f32 0.70710677, %v1869_v34  ;;  %v1976_v16 = vmul.f32 %v1975_v20, %v6333_v60 }
 0x663   :  { %v1897_v63 = vadd.f32 1.1283791, %v1896_v15  ;;  %v2026_v2 = vadd.f32 0.4994258, %v2025_v33  ;;  %v2048_v31 = vmul.f32 2.1237322e-06, %v6415_v9  ;;  %vm1914_vm2 = vweird.f32 %v6394_v43 }
 0x664   :  { %v1937_v56 = vadd.f32 1.1283791, %v1936_v8  ;;  %v2059_v55 = vmul.f32 3.8918573e-05, %v6415_v9  ;;  %v2088_v17 = vmul.f32 2.1237322e-06, %v6424_v39  ;;  %v2126_v38 = vmul.f32 %v6435_v54, %v6435_v54 }
 0x665   :  { %v6441_v25 = vpop.eup %4299  ;;  %v2015_v45 = vadd.f32 0.18741608, %v2014_v57  ;;  %v2027_v51 = vmul.f32 %v2026_v2, %v6335_v5  ;;  %v2049_v60 = vadd.f32 0.00028619796, %v2048_v31  ;;  %v1920_v62 = vand.u32 2147483648, %v6394_v43 }
 0x666   :  { %v6445_v52 = vpop.eup %4301  ;;  %v1910_v58 = vmul.f32 %v6441_v25, %v6394_v43  ;;  %v1977_v28 = vadd.f32 1.1283791, %v1976_v16  ;;  %v2060_v61 = vadd.f32 0.001143296, %v2059_v55  ;;  %v2089_v36 = vadd.f32 0.00028619796, %v2088_v17 }
 0x667   :  { %v1950_v21 = vmul.f32 %v6445_v52, %v6401_v41  ;;  %v6455_v30 = vpop.eup %4303  ;;  %v6457_v1 = vadd.f32 1.0, %v2027_v51  ;;  %v2050_v6 = vmul.f32 %v2049_v60, %v6415_v9  ;;  %v6461_v32 = vmul.f32 %v1897_v63, %v6310_v47 }
 0x668   :  { %v1911_v59 = vsub.f32 1.0, %v1910_v58  ;;  %v1990_v34 = vmul.f32 %v6455_v30, %v6403_v46  ;;  %v1918_v50 = vand.u32 2147483647, %v6394_v43  ;;  %v6468_v14 = vmul.f32 %v1937_v56, %v6313_v22 }
 0x669   :  { %v1951_v10 = vsub.f32 1.0, %v1950_v21  ;;  %v2016_v44 = vmul.f32 %v2015_v45, %v6335_v5  ;;  %4305 = vrcp.f32 %v6457_v1  ;;  %vm1954_vm3 = vweird.f32 %v6401_v41 }
 0x66a   :  { %v1958_v47 = vand.u32 2147483647, %v6401_v41  ;;  %v1960_v20 = vand.u32 2147483648, %v6401_v41  ;;  %v1991_v15 = vsub.f32 1.0, %v1990_v34  ;;  %v2051_v33 = vadd.f32 0.0036580483, %v2050_v6 }
 0x66b   :  { %v1921_v8 = vor.u32 1.1754944e-38, %v1920_v62  ;;  %v6476_v57 = vmul.f32 %v1977_v28, %v6316_v37  ;;  %v2061_v16 = vmul.f32 %v2060_v61, %v6415_v9  ;;  %v2090_v22 = vmul.f32 %v2089_v36, %v6424_v39 }
 0x66c   :  { %v1912_v5 = vmul.f32 %v6441_v25, %v1911_v59  ;;  %v1952_v63 = vmul.f32 %v6445_v52, %v1951_v10  ;;  %v1998_v2 = vand.u32 2147483647, %v6403_v46  ;;  %v2000_v31 = vand.u32 2147483648, %v6403_v46 }
 0x66d   :  { %vm1994_vm4 = vweird.f32 %v6403_v46  ;;  %v2017_v56 = vadd.f32 1.1283791, %v2016_v44  ;;  %v2062_v55 = vadd.f32 0.014752088, %v2061_v16  ;;  %v2091_v17 = vadd.f32 0.0036580483, %v2090_v22 }
 0x66e   :  { %v1961_v58 = vor.u32 1.1754944e-38, %v1960_v20  ;;  %v1992_v37 = vmul.f32 %v6455_v30, %v1991_v15  ;;  %v2052_v45 = vmul.f32 %v2051_v33, %v6415_v9  ;;  %v6487_v51 = vmin.f32 %v2126_v38, 16.0 }
 0x66f   :  { %v6489_v60 = vpop.eup %4305  ;;  %vm1915_vm5 = vweird.f32 %v6441_v25  ;;  %vm6492_vm6 = vcmp.eq.f32.partialorder %v1918_v50, 8.507059e+37  ;;  %vm6496_vm7 = vcmp.eq.f32.partialorder %v1958_v47, 8.507059e+37  ;;  %v2063_v28 = vmul.f32 %v2062_v55, %v6415_v9 }
 0x670   :  { %v2092_v6 = vmul.f32 %v2091_v17, %v6424_v39  ;;  %v2099_v61 = vmul.f32 3.8918573e-05, %v6424_v39  ;;  %v1913_v38 = vadd.f32 %v6441_v25, %v1912_v5  ;;  %v1953_v36 = vadd.f32 %v6445_v52, %v1952_v63  ;;  %vm6520_vm11 = vmor %vm1914_vm2, %vm1915_vm5 }
 0x671   :  { %vm1955_vm8 = vweird.f32 %v6445_v52  ;;  %v2030_v59 = vmul.f32 %v6489_v60, %v6457_v1  ;;  %vm1995_vm9 = vweird.f32 %v6455_v30  ;;  %vm6509_vm10 = vcmp.eq.f32.partialorder %v1998_v2, 8.507059e+37 }
 0x672   :  { %v2001_v34 = vor.u32 1.1754944e-38, %v2000_v31  ;;  %v6514_v50 = vmul.f32 %v2017_v56, %v6319_v29  ;;  %v2064_v44 = vadd.f32 0.112945676, %v2063_v28  ;;  %v1993_v20 = vadd.f32 %v6455_v30, %v1992_v37  ;;  %vm6528_vm12 = vmor %vm1954_vm3, %vm1955_vm8 }
 0x673   :  { %v2031_v15 = vsub.f32 1.0, %v2030_v59  ;;  %v2038_v33 = vand.u32 2147483647, %v6457_v1  ;;  %v2053_v16 = vadd.f32 0.05243302, %v2052_v45  ;;  %vm2034_vm13 = vweird.f32 %v6457_v1  ;;  %vm6547_vm14 = vmor %vm1994_vm4, %vm1995_vm9 }
 0x674   :  { %v2065_v43 = vmul.f32 %v2064_v44, %v6415_v9  ;;  %v2093_v22 = vadd.f32 0.05243302, %v2092_v6  ;;  %v2100_v5 = vadd.f32 0.001143296, %v2099_v61  ;;  %v2128_v63 = vmul.f32 2.1237322e-06, %v6487_v51 }
 0x675   :  { %v1917_v2 = vsel %vm6520_vm11, %v6441_v25, %v1913_v38  ;;  %v1957_v41 = vsel %vm6528_vm12, %v6445_v52, %v1953_v36  ;;  %v2040_v31 = vand.u32 2147483648, %v6457_v1  ;;  %v2139_v56 = vmul.f32 3.8918573e-05, %v6487_v51 }
 0x676   :  { %v2032_v17 = vmul.f32 %v6489_v60, %v2031_v15  ;;  %v2066_v37 = vadd.f32 0.4994258, %v2065_v43  ;;  %v2101_v25 = vmul.f32 %v2100_v5, %v6424_v39  ;;  %v2129_v45 = vadd.f32 0.00028619796, %v2128_v63 }
 0x677   :  { %v1997_v52 = vsel %vm6547_vm14, %v6455_v30, %v1993_v20  ;;  %v2054_v28 = vmul.f32 %v2053_v16, %v6415_v9  ;;  %v2140_v6 = vadd.f32 0.001143296, %v2139_v56  ;;  %v2166_v46 = vmul.f32 %v6437_v35, %v6437_v35 }
 0x678   :  { %v2067_v61 = vmul.f32 %v2066_v37, %v6415_v9  ;;  %v2094_v38 = vmul.f32 %v2093_v22, %v6424_v39  ;;  %v2102_v36 = vadd.f32 0.014752088, %v2101_v25  ;;  %v2130_v59 = vmul.f32 %v2129_v45, %v6487_v51 }
 0x679   :  { %v1922_v44 = vsel %vm6492_vm6, %v1921_v8, %v1917_v2  ;;  %v1962_v47 = vsel %vm6496_vm7, %v1961_v58, %v1957_v41  ;;  %vm2035_vm15 = vweird.f32 %v6489_v60  ;;  %v2141_v30 = vmul.f32 %v2140_v6, %v6487_v51 }
 0x67a   :  { %v2033_v20 = vadd.f32 %v6489_v60, %v2032_v17  ;;  %v6569_v15 = vadd.f32 1.0, %v2067_v61  ;;  %v2103_v16 = vmul.f32 %v2102_v36, %v6424_v39  ;;  %v6572_v29 = vmin.f32 %v2166_v46, 16.0  ;;  %vm6591_vm2 = vmor %vm2034_vm13, %vm2035_vm15 }
 0x67b   :  { %v2002_v43 = vsel %vm6509_vm10, %v2001_v34, %v1997_v52  ;;  %v2055_v62 = vadd.f32 0.18741608, %v2054_v28  ;;  %v2131_v8 = vadd.f32 0.0036580483, %v2130_v59  ;;  %v2142_v22 = vadd.f32 0.014752088, %v2141_v30 }
 0x67c   :  { %v6577_v58 = vmul.f32 %v1922_v44, %v6461_v32  ;;  %vm6579_vm0 = vcmp.eq.f32.partialorder %v2038_v33, 8.507059e+37  ;;  %4307 = vrcp.f32 %v6569_v15  ;;  %v2095_v5 = vadd.f32 0.18741608, %v2094_v38 }
 0x67d   :  { %v6585_v63 = vmul.f32 %v1962_v47, %v6468_v14  ;;  %v2041_v32 = vor.u32 1.1754944e-38, %v2040_v31  ;;  %v2104_v34 = vadd.f32 0.112945676, %v2103_v16  ;;  %v2132_v33 = vmul.f32 %v2131_v8, %v6487_v51 }
 0x67e   :  { %v6597_v2 = vmul.f32 %v2002_v43, %v6476_v57  ;;  %v2037_v14 = vsel %vm6591_vm2, %v6489_v60, %v2033_v20  ;;  %v2143_v41 = vmul.f32 %v2142_v22, %v6487_v51  ;;  %v2168_v56 = vmul.f32 2.1237322e-06, %v6572_v29 }
 0x67f   :  { %v2056_v1 = vmul.f32 %v2055_v62, %v6415_v9  ;;  %v2105_v55 = vmul.f32 %v2104_v34, %v6424_v39  ;;  %v2133_v17 = vadd.f32 0.05243302, %v2132_v33  ;;  %v2179_v31 = vmul.f32 3.8918573e-05, %v6572_v29 }
 0x680   :  { %v4127_v37 = vclamps-f32 %v6577_v58, 1.0  ;;  %v2096_v57 = vmul.f32 %v2095_v5, %v6424_v39  ;;  %v2144_v25 = vadd.f32 0.112945676, %v2143_v41  ;;  %v2169_v45 = vadd.f32 0.00028619796, %v2168_v56 }
 0x681   :  { %v2042_v60 = vsel %vm6579_vm0, %v2041_v32, %v2037_v14  ;;  %v2106_v52 = vadd.f32 0.4994258, %v2105_v55  ;;  %v2134_v28 = vmul.f32 %v2133_v17, %v6487_v51  ;;  %v2180_v6 = vadd.f32 0.001143296, %v2179_v31 }
 0x682   :  { %v4308_v46 = vpop.eup %4307  ;;  %v4128_v9 = vclamps-f32 %v6585_v63, 1.0  ;;  %v4129_v61 = vclamps-f32 %v6597_v2, 1.0  ;;  %v2145_v38 = vmul.f32 %v2144_v25, %v6487_v51  ;;  %v2170_v36 = vmul.f32 %v2169_v45, %v6572_v29 }
 0x683   :  { %v2057_v59 = vadd.f32 1.1283791, %v2056_v1  ;;  %v2070_v44 = vmul.f32 %v4308_v46, %v6569_v15  ;;  %v2107_v47 = vmul.f32 %v2106_v52, %v6424_v39  ;;  %v2135_v30 = vadd.f32 0.18741608, %v2134_v28 }
 0x684   :  { %v2043_v20 = vmul.f32 %v2042_v60, %v6514_v50  ;;  %v2146_v16 = vadd.f32 0.4994258, %v2145_v38  ;;  %v2171_v43 = vadd.f32 0.0036580483, %v2170_v36  ;;  %v2181_v62 = vmul.f32 %v2180_v6, %v6572_v29 }
 0x685   :  { %v2071_v8 = vsub.f32 1.0, %v2070_v44  ;;  %v2080_v22 = vand.u32 2147483648, %v6569_v15  ;;  %v2097_v58 = vadd.f32 1.1283791, %v2096_v57  ;;  %v6621_v21 = vadd.f32 1.0, %v2107_v47 }
 0x686   :  { %v2136_v5 = vmul.f32 %v2135_v30, %v6487_v51  ;;  %v2147_v63 = vmul.f32 %v2146_v16, %v6487_v51  ;;  %v2172_v10 = vmul.f32 %v2171_v43, %v6572_v29  ;;  %v2182_v39 = vadd.f32 0.014752088, %v2181_v62 }
 0x687   :  { %v2072_v32 = vmul.f32 %v4308_v46, %v2071_v8  ;;  %vm2075_vm3 = vweird.f32 %v4308_v46  ;;  %v2078_v50 = vand.u32 2147483647, %v6569_v15  ;;  %4309 = vrcp.f32 %v6621_v21 }
 0x688   :  { %v2058_v34 = vmul.f32 %v2057_v59, %v6372_v24  ;;  %vm2074_vm4 = vweird.f32 %v6569_v15  ;;  %v6630_v33 = vadd.f32 1.0, %v2147_v63  ;;  %v2173_v2 = vadd.f32 0.05243302, %v2172_v10 }
 0x689   :  { %v4130_v14 = vclamps-f32 %v2043_v20, 1.0  ;;  %v2073_v41 = vadd.f32 %v4308_v46, %v2072_v32  ;;  %v2120_v51 = vand.u32 2147483648, %v6621_v21  ;;  %v2183_v56 = vmul.f32 %v2182_v39, %v6572_v29  ;;  %vm2076_vm5 = vmor %vm2074_vm4, %vm2075_vm3 }
 0x68a   :  { %v2081_v1 = vor.u32 1.1754944e-38, %v2080_v22  ;;  %v2118_v55 = vand.u32 2147483647, %v6621_v21  ;;  %v2137_v17 = vadd.f32 1.1283791, %v2136_v5  ;;  %4311 = vrcp.f32 %v6630_v33  ;;  %v6660_v5 = vpop.permute.xlu1 %2243 }
 0x68b   :  { %v2077_v31 = vsel %vm2076_vm5, %v4308_v46, %v2073_v41  ;;  %vm2079_vm6 = vcmp.eq.f32.partialorder %v2078_v50, 8.507059e+37  ;;  %v2098_v24 = vmul.f32 %v2097_v58, %v6381_v4  ;;  %v2174_v15 = vmul.f32 %v2173_v2, %v6572_v29 }
 0x68c   :  { %v2082_v57 = vsel %vm2079_vm6, %v2081_v1, %v2077_v31  ;;  %vm2114_vm7 = vweird.f32 %v6621_v21  ;;  %v2184_v25 = vadd.f32 0.112945676, %v2183_v56  ;;  %v2206_v45 = vadd.f32 1.0, %v4127_v37 }
 0x68d   :  { %v2207_v60 = vadd.f32 1.0, %v4128_v9  ;;  %v4310_v52 = vpop.eup %4309  ;;  %v2083_v28 = vmul.f32 %v2082_v57, %v2058_v34  ;;  %v2121_v6 = vor.u32 1.1754944e-38, %v2120_v51  ;;  %v2175_v38 = vadd.f32 0.18741608, %v2174_v15 }
 0x68e   :  { %v2208_v36 = vadd.f32 1.0, %v4129_v61  ;;  %v2110_v59 = vmul.f32 %v4310_v52, %v6621_v21  ;;  %vm6640_vm8 = vcmp.eq.f32.partialorder %v2118_v55, 8.507059e+37  ;;  %v2138_v4 = vmul.f32 %v2137_v17, %v6435_v54 }
 0x68f   :  { %v2185_v44 = vmul.f32 %v2184_v25, %v6572_v29  ;;  %v2209_v47 = vadd.f32 1.0, %v4130_v14  ;;  %v4131_v30 = vclamps-f32 %v2083_v28, 1.0  ;;  %vm2154_vm9 = vweird.f32 %v6630_v33 }
 0x690   :  { %v2158_v37 = vand.u32 2147483647, %v6630_v33  ;;  %v2176_v9 = vmul.f32 %v2175_v38, %v6572_v29  ;;  %v4312_v20 = vpop.eup %4311  ;;  %v2111_v61 = vsub.f32 1.0, %v2110_v59  ;;  %v6650_v43 = vmul.f32 %v2206_v45, %v6399_v3 }
 0x691   :  { %v2186_v16 = vadd.f32 0.4994258, %v2185_v44  ;;  %v6653_v62 = vmul.f32 %v2207_v60, %v6406_v26  ;;  %v2150_v54 = vmul.f32 %v4312_v20, %v6630_v33  ;;  %v2160_v8 = vand.u32 2147483648, %v6630_v33 }
 0x692   :  { %v2210_v22 = vadd.f32 1.0, %v4131_v30  ;;  %v6658_v58 = vmul.f32 %v2208_v36, %v6409_v53  ;;  %v2112_v63 = vmul.f32 %v4310_v52, %v2111_v61  ;;  %vm2115_vm10 = vweird.f32 %v4310_v52  ;;  %v6704_v44 = vpop.permute.xlu1 %2299 }
 0x693   :  { %v2187_v10 = vmul.f32 %v2186_v16, %v6572_v29  ;;  %v6664_v3 = vmul.f32 %v2209_v47, %v6418_v40  ;;  %v2151_v39 = vsub.f32 1.0, %v2150_v54  ;;  %vm6666_vm11 = vcmp.eq.f32.partialorder %v2158_v37, 8.507059e+37  ;;  %vm2116_vm12 = vmor %vm2114_vm7, %vm2115_vm10 }
 0x694   :  { %v2177_v32 = vadd.f32 1.1283791, %v2176_v9  ;;  %v6671_v50 = vmul.f32 %v2210_v22, %v6421_v42  ;;  %v2113_v53 = vadd.f32 %v4310_v52, %v2112_v63  ;;  %v2246_v2 = vperm.slane %v6650_v43, 1 }
 0x695   :  { %v6673_v34 = vadd.f32 1.0, %v2187_v10  ;;  %v2247_v14 = vperm.slane %v6653_v62, 1  ;;  %v2152_v40 = vmul.f32 %v4312_v20, %v2151_v39  ;;  %vm2155_vm13 = vweird.f32 %v4312_v20 }
 0x696   :  { %v2161_v29 = vor.u32 1.1754944e-38, %v2160_v8  ;;  %v2248_v41 = vperm.slane %v6658_v58, 1  ;;  %v2117_v51 = vsel %vm2116_vm12, %v4310_v52, %v2113_v53  ;;  %v2249_v42 = vperm.slane %v6664_v3, 1  ;;  %vm2156_vm14 = vmor %vm2154_vm9, %vm2155_vm13 }
 0x697   :  { %4313 = vrcp.f32 %v6673_v34  ;;  %v2250_v56 = vperm.slane %v6671_v50, 1  ;;  %v2122_v1 = vsel %vm6640_vm8, %v2121_v6, %v2117_v51  ;;  %v2153_v55 = vadd.f32 %v4312_v20, %v2152_v40 }
 0x698   :  { %v6686_v17 = vmul.f32 %v2177_v32, %v6437_v35  ;;  %v2200_v21 = vand.u32 2147483648, %v6673_v34  ;;  %v2123_v31 = vmul.f32 %v2122_v1, %v2098_v24  ;;  %v2254_v15 = vmul.f32 %v2246_v2, %v6660_v5 }
 0x699   :  { %v2255_v57 = vmul.f32 %v2247_v14, %v6660_v5  ;;  %v2302_v25 = vperm.slane %v6650_v43, 3  ;;  %v2157_v45 = vsel %vm2156_vm14, %v4312_v20, %v2153_v55  ;;  %v2198_v60 = vand.u32 2147483647, %v6673_v34  ;;  %v6732_v14 = vpop.permute.xlu2 %2223 }
 0x69a   :  { %v2256_v52 = vmul.f32 %v2248_v41, %v6660_v5  ;;  %v2303_v35 = vperm.slane %v6653_v62, 3  ;;  %v4132_v28 = vclamps-f32 %v2123_v31, 1.0  ;;  %v2162_v24 = vsel %vm6666_vm11, %v2161_v29, %v2157_v45 }
 0x69b   :  { %v2257_v33 = vmul.f32 %v2249_v42, %v6660_v5  ;;  %v2258_v6 = vmul.f32 %v2250_v56, %v6660_v5  ;;  %v2163_v38 = vmul.f32 %v2162_v24, %v2138_v4  ;;  %vm2194_vm15 = vweird.f32 %v6673_v34 }
 0x69c   :  { %v2201_v36 = vor.u32 1.1754944e-38, %v2200_v21  ;;  %v2304_v59 = vperm.slane %v6658_v58, 3  ;;  %v2305_v46 = vperm.slane %v6664_v3, 3  ;;  %v2211_v30 = vadd.f32 1.0, %v4132_v28 }
 0x69d   :  { %v4314_v47 = vpop.eup %4313  ;;  %v2306_v37 = vperm.slane %v6671_v50, 3  ;;  %v6708_v9 = vmul.f32 %v2302_v25, %v6704_v44  ;;  %v2226_v20 = vperm.slane %v6650_v43, 0  ;;  %v4133_v61 = vclamps-f32 %v2163_v38, 1.0 }
 0x69e   :  { %v2190_v4 = vmul.f32 %v4314_v47, %v6673_v34  ;;  %vm6712_vm0 = vcmp.eq.f32.partialorder %v2198_v60, 8.507059e+37  ;;  %v6717_v54 = vmul.f32 %v2303_v35, %v6704_v44  ;;  %v2227_v8 = vperm.slane %v6653_v62, 0 }
 0x69f   :  { %v6721_v22 = vmul.f32 %v2211_v30, %v6427_v11  ;;  %v2228_v63 = vperm.slane %v6658_v58, 0  ;;  %v2229_v10 = vperm.slane %v6664_v3, 0  ;;  %v2230_v39 = vperm.slane %v6671_v50, 0 }
 0x6a0   :  { %v2191_v26 = vsub.f32 1.0, %v2190_v4  ;;  %v2212_v32 = vadd.f32 1.0, %v4133_v61  ;;  %v6727_v53 = vmul.f32 %v2304_v59, %v6704_v44  ;;  %v6730_v2 = vmul.f32 %v2305_v46, %v6704_v44 }
 0x6a1   :  { %9413 = vst [vmem:[#allocation43_spill] sm:$0xff] %v6721_v22  ;;  %v2251_v40 = vperm.slane %v6721_v22, 1  ;;  %v2307_v11 = vperm.slane %v6721_v22, 3  ;;  %v2231_v29 = vperm.slane %v6721_v22, 0  ;;  %v2234_v41 = vmul.f32 %v2226_v20, %v6732_v14 }
 0x6a2   :  { %v2192_v51 = vmul.f32 %v4314_v47, %v2191_v26  ;;  %vm2195_vm2 = vweird.f32 %v4314_v47  ;;  %v6739_v42 = vmul.f32 %v2212_v32, %v6429_v48  ;;  %v2235_v56 = vmul.f32 %v2227_v8, %v6732_v14 }
 0x6a3   :  { %v6743_v1 = vmul.f32 %v2306_v37, %v6704_v44  ;;  %v2236_v55 = vmul.f32 %v2228_v63, %v6732_v14  ;;  %v2237_v21 = vmul.f32 %v2229_v10, %v6732_v14  ;;  %v2238_v31 = vmul.f32 %v2230_v39, %v6732_v14  ;;  %vm2196_vm3 = vmor %vm2194_vm15, %vm2195_vm2 }
 0x6a4   :  { %v2193_v25 = vadd.f32 %v4314_v47, %v2192_v51  ;;  %v2252_v45 = vperm.slane %v6739_v42, 1  ;;  %v2259_v60 = vmul.f32 %v2251_v40, %v6660_v5  ;;  %v2232_v35 = vperm.slane %v6739_v42, 0 }
 0x6a5   :  { %v2308_v48 = vperm.slane %v6739_v42, 3  ;;  %v6755_v28 = vmul.f32 %v2307_v11, %v6704_v44  ;;  %v2239_v24 = vmul.f32 %v2231_v29, %v6732_v14  ;;  %v6758_v38 = vadd.f32 %v2254_v15, %v2234_v41 }
 0x6a6   :  { %v2197_v59 = vsel %vm2196_vm3, %v4314_v47, %v2193_v25  ;;  %v2260_v46 = vmul.f32 %v2252_v45, %v6660_v5  ;;  %v2240_v30 = vmul.f32 %v2232_v35, %v6732_v14  ;;  %v2263_v37 = vadd.f32 %v2255_v57, %v2235_v56  ;;  %v6798_v45 = vpop.permute.xlu2 %2355 }
 0x6a7   :  { %v2202_v20 = vsel %vm6712_vm0, %v2201_v36, %v2197_v59  ;;  %v2264_v34 = vadd.f32 %v2256_v52, %v2236_v55  ;;  %v2330_v61 = vperm.slane %v6650_v43, 4  ;;  %v2331_v4 = vperm.slane %v6653_v62, 4 }
 0x6a8   :  { %v2203_v8 = vmul.f32 %v2202_v20, %v6686_v17  ;;  %v2265_v63 = vadd.f32 %v2257_v33, %v2237_v21  ;;  %v2332_v15 = vperm.slane %v6658_v58, 4  ;;  %v2333_v47 = vperm.slane %v6664_v3, 4  ;;  %v6779_v33 = vpop.permute.xlu1 %2327 }
 0x6a9   :  { %v6770_v10 = vmul.f32 %v2308_v48, %v6704_v44  ;;  %v2266_v39 = vadd.f32 %v2258_v6, %v2238_v31  ;;  %v2334_v57 = vperm.slane %v6671_v50, 4  ;;  %v2335_v36 = vperm.slane %v6721_v22, 4 }
 0x6aa   :  { %v4134_v52 = vclamps-f32 %v2203_v8, 1.0  ;;  %v6774_v16 = vadd.f32 %v2259_v60, %v2239_v24  ;;  %v6776_v26 = vadd.f32 %v2260_v46, %v2240_v30  ;;  %v2336_v17 = vperm.slane %v6739_v42, 4  ;;  %v2272_v8 = vpop.permute.xlu0 %2271 }
 0x6ab   :  { %v2338_v32 = vmul.f32 %v2330_v61, %v6779_v33  ;;  %v2339_v40 = vmul.f32 %v2331_v4, %v6779_v33  ;;  %v2340_v11 = vmul.f32 %v2332_v15, %v6779_v33  ;;  %v2358_v6 = vperm.slane %v6650_v43, 5 }
 0x6ac   :  { %v2213_v29 = vadd.f32 1.0, %v4134_v52  ;;  %v6786_v41 = vmul.f32 %v2333_v47, %v6779_v33  ;;  %v6789_v51 = vmul.f32 %v2334_v57, %v6779_v33  ;;  %v2359_v56 = vperm.slane %v6653_v62, 5 }
 0x6ad   :  { %v6793_v55 = vmul.f32 %v2335_v36, %v6779_v33  ;;  %v2360_v21 = vperm.slane %v6658_v58, 5  ;;  %v2361_v31 = vperm.slane %v6664_v3, 5  ;;  %v2362_v25 = vperm.slane %v6671_v50, 5 }
 0x6ae   :  { %v6801_v60 = vmul.f32 %v2213_v29, %v6433_v12  ;;  %v6804_v35 = vmul.f32 %v2336_v17, %v6779_v33  ;;  %v2363_v48 = vperm.slane %v6721_v22, 5  ;;  %v2366_v24 = vmul.f32 %v2358_v6, %v6798_v45 }
 0x6af   :  { %v2367_v59 = vmul.f32 %v2359_v56, %v6798_v45  ;;  %v2274_v46 = vperm.slane %v6650_v43, 2  ;;  %v2275_v30 = vperm.slane %v6653_v62, 2  ;;  %v2276_v20 = vperm.slane %v6658_v58, 2 }
 0x6b0   :  { %v2253_v61 = vperm.slane %v6801_v60, 1  ;;  %v2309_v12 = vperm.slane %v6801_v60, 3  ;;  %v2233_v4 = vperm.slane %v6801_v60, 0  ;;  %v2277_v15 = vperm.slane %v6664_v3, 2 }
 0x6b1   :  { %v2368_v47 = vmul.f32 %v2360_v21, %v6798_v45  ;;  %v6818_v57 = vmul.f32 %v2361_v31, %v6798_v45  ;;  %v6821_v36 = vmul.f32 %v2362_v25, %v6798_v45  ;;  %v2278_v52 = vperm.slane %v6671_v50, 2 }
 0x6b2   :  { %v2261_v17 = vmul.f32 %v2253_v61, %v6660_v5  ;;  %v2241_v6 = vmul.f32 %v2233_v4, %v6732_v14  ;;  %v2279_v29 = vperm.slane %v6721_v22, 2  ;;  %v2280_v56 = vperm.slane %v6739_v42, 2 }
 0x6b3   :  { %v6829_v27 = vmul.f32 %v2363_v48, %v6798_v45  ;;  %v2282_v21 = vmul.f32 %v2274_v46, %v2272_v8  ;;  %v2283_v0 = vmul.f32 %v2275_v30, %v2272_v8  ;;  %v2284_v31 = vmul.f32 %v2276_v20, %v2272_v8 }
 0x6b4   :  { %v2317_v13 = vmul.f32 %v2309_v12, %v6704_v44  ;;  %v2281_v25 = vperm.slane %v6801_v60, 2  ;;  %v2285_v18 = vmul.f32 %v2277_v15, %v2272_v8  ;;  %v2286_v19 = vmul.f32 %v2278_v52, %v2272_v8 }
 0x6b5   :  { %v2269_v23 = vadd.f32 %v2261_v17, %v2241_v6  ;;  %v2290_v5 = vadd.f32 %v2282_v21, %v6758_v38  ;;  %v2291_v14 = vadd.f32 %v2283_v0, %v2263_v37  ;;  %v2292_v61 = vadd.f32 %v2284_v31, %v2264_v34  ;;  %v6841_v38 = vpop.permute.xlu1 %2383 }
 0x6b6   :  { %v2287_v4 = vmul.f32 %v2279_v29, %v2272_v8  ;;  %v2288_v49 = vmul.f32 %v2280_v56, %v2272_v8  ;;  %v2293_v7 = vadd.f32 %v2285_v18, %v2265_v63  ;;  %v2294_v22 = vadd.f32 %v2286_v19, %v2266_v39 }
 0x6b7   :  { %v2318_v48 = vadd.f32 %v6708_v9, %v2290_v5  ;;  %v2319_v46 = vadd.f32 %v6717_v54, %v2291_v14  ;;  %v2320_v30 = vadd.f32 %v6727_v53, %v2292_v61  ;;  %v2386_v44 = vperm.slane %v6650_v43, 6  ;;  %v9414_v14 = vld [vmem:[#allocation43_spill] sm:$0xff] }
 0x6b8   :  { %v2289_v20 = vmul.f32 %v2281_v25, %v2272_v8  ;;  %v2387_v12 = vperm.slane %v6653_v62, 6  ;;  %v2388_v15 = vperm.slane %v6658_v58, 6  ;;  %v2389_v0 = vperm.slane %v6664_v3, 6 }
 0x6b9   :  { %v2390_v18 = vperm.slane %v6671_v50, 6  ;;  %v2346_v19 = vadd.f32 %v2338_v32, %v2318_v48  ;;  %v2347_v37 = vadd.f32 %v2339_v40, %v2319_v46  ;;  %v2348_v9 = vadd.f32 %v2340_v11, %v2320_v30 }
 0x6ba   :  { %v2295_v54 = vadd.f32 %v2287_v4, %v6774_v16  ;;  %v2296_v53 = vadd.f32 %v2288_v49, %v6776_v26  ;;  %v2321_v34 = vadd.f32 %v6730_v2, %v2293_v7  ;;  %v2322_v63 = vadd.f32 %v6743_v1, %v2294_v22  ;;  %v2412_v22 = vpop.permute.xlu2 %2411 }
 0x6bb   :  { %v2374_v39 = vadd.f32 %v2366_v24, %v2346_v19  ;;  %v2375_v8 = vadd.f32 %v2367_v59, %v2347_v37  ;;  %v2376_v52 = vadd.f32 %v2368_v47, %v2348_v9  ;;  %v2394_v17 = vmul.f32 %v2386_v44, %v6841_v38 }
 0x6bc   :  { %v2395_v6 = vmul.f32 %v2387_v12, %v6841_v38  ;;  %v2396_v29 = vmul.f32 %v2388_v15, %v6841_v38  ;;  %v2414_v32 = vperm.slane %v6650_v43, 7  ;;  %v2415_v40 = vperm.slane %v6653_v62, 7 }
 0x6bd   :  { %v2397_v16 = vmul.f32 %v2389_v0, %v6841_v38  ;;  %v2398_v49 = vmul.f32 %v2390_v18, %v6841_v38  ;;  %v2416_v7 = vperm.slane %v6658_v58, 7  ;;  %v2297_v2 = vadd.f32 %v2289_v20, %v2269_v23 }
 0x6be   :  { %v2402_v1 = vadd.f32 %v2394_v17, %v2374_v39  ;;  %v2403_v26 = vadd.f32 %v2395_v6, %v2375_v8  ;;  %v2404_v11 = vadd.f32 %v2396_v29, %v2376_v52  ;;  %v2417_v24 = vperm.slane %v6664_v3, 7  ;;  %v9416_v17 = vld [vmem:[#allocation20_spill] sm:$0xff]  ;;  %v9417_v6 = vld [vmem:[#allocation30_spill] sm:$0xff] }
 0x6bf   :  { %v2323_v59 = vadd.f32 %v6755_v28, %v2295_v54  ;;  %v2324_v47 = vadd.f32 %v6770_v10, %v2296_v53  ;;  %v2325_v43 = vadd.f32 %v2317_v13, %v2297_v2  ;;  %v2337_v62 = vperm.slane %v6801_v60, 4 }
 0x6c0   :  { %v2422_v56 = vmul.f32 %v2414_v32, %v2412_v22  ;;  %v2423_v21 = vmul.f32 %v2415_v40, %v2412_v22  ;;  %v2349_v31 = vadd.f32 %v6786_v41, %v2321_v34  ;;  %v2350_v58 = vadd.f32 %v6789_v51, %v2322_v63  ;;  %v9415_v63 = vld [vmem:[#allocation25_spill] sm:$0xff] }
 0x6c1   :  { %v2345_v23 = vmul.f32 %v2337_v62, %v6779_v33  ;;  %v2351_v25 = vadd.f32 %v6793_v55, %v2323_v59  ;;  %v2352_v5 = vadd.f32 %v6804_v35, %v2324_v47  ;;  %v2364_v3 = vperm.slane %v6739_v42, 5 }
 0x6c2   :  { %v2365_v28 = vperm.slane %v6801_v60, 5  ;;  %v2377_v13 = vadd.f32 %v6818_v57, %v2349_v31  ;;  %v2378_v10 = vadd.f32 %v6821_v36, %v2350_v58  ;;  %v2391_v61 = vperm.slane %v9414_v14, 6 }
 0x6c3   :  { %v2424_v4 = vmul.f32 %v2416_v7, %v2412_v22  ;;  %v2353_v41 = vadd.f32 %v2345_v23, %v2325_v43  ;;  %v2372_v51 = vmul.f32 %v2364_v3, %v6798_v45  ;;  %v2392_v33 = vperm.slane %v6739_v42, 6 }
 0x6c4   :  { %v2425_v48 = vmul.f32 %v2417_v24, %v2412_v22  ;;  %v6872_v55 = vadd.f32 %v2422_v56, %v2402_v1  ;;  %v2379_v35 = vadd.f32 %v6829_v27, %v2351_v25  ;;  %v2405_v46 = vadd.f32 %v2397_v16, %v2377_v13  ;;  %v9420_v56 = vld [vmem:[#allocation28_spill] sm:$0xff]  ;;  %v9421_v25 = vld [vmem:[#allocation37_spill] sm:$0xff] }
 0x6c5   :  { %v2373_v30 = vmul.f32 %v2365_v28, %v6798_v45  ;;  %v2380_v44 = vadd.f32 %v2372_v51, %v2352_v5  ;;  %v2393_v57 = vperm.slane %v6801_v60, 6  ;;  %v2418_v36 = vperm.slane %v6671_v50, 7  ;;  %v9422_v13 = vld [vmem:[#allocation33_spill] sm:$0xff] }
 0x6c6   :  { %v6878_v20 = vadd.f32 %v2423_v21, %v2403_v26  ;;  %v2399_v12 = vmul.f32 %v2391_v61, %v6841_v38  ;;  %v2406_v15 = vadd.f32 %v2398_v49, %v2378_v10  ;;  %v2419_v0 = vperm.slane %v9414_v14, 7  ;;  %v9418_v49 = vld [vmem:[#allocation23_spill] sm:$0xff] }
 0x6c7   :  { %v2381_v18 = vadd.f32 %v2373_v30, %v2353_v41  ;;  %v2400_v19 = vmul.f32 %v2392_v33, %v6841_v38  ;;  %v2420_v27 = vperm.slane %v6739_v42, 7  ;;  %v2426_v9 = vmul.f32 %v2418_v36, %v2412_v22 }
 0x6c8   :  { %v2407_v37 = vadd.f32 %v2399_v12, %v2379_v35  ;;  %v6884_v45 = vadd.f32 %v2424_v4, %v2404_v11  ;;  %v6886_v54 = vadd.f32 %v2425_v48, %v2405_v46  ;;  %v2401_v50 = vmul.f32 %v2393_v57, %v6841_v38  ;;  %v9419_v11 = vld [vmem:[#allocation34_spill] sm:$0xff] }
 0x6c9   :  { %v2408_v53 = vadd.f32 %v2400_v19, %v2380_v44  ;;  %v2421_v34 = vperm.slane %v6801_v60, 7  ;;  %v2438_v39 = vmul.f32 %v6872_v55, %v9415_v63  ;;  %v2427_v8 = vmul.f32 %v2419_v0, %v2412_v22 }
 0x6ca   :  { %v6892_v52 = vadd.f32 %v2426_v9, %v2406_v15  ;;  %v2439_v42 = vmul.f32 %v6878_v20, %v9416_v17  ;;  %v2440_v29 = vmul.f32 %v6884_v45, %v9417_v6  ;;  %v2409_v32 = vadd.f32 %v2401_v50, %v2381_v18 }
 0x6cb   :  { %v2428_v40 = vmul.f32 %v2420_v27, %v2412_v22  ;;  %v2455_v16 = vmul.f32 %v2438_v39, %v6872_v55  ;;  %v6899_v38 = vadd.f32 %v2427_v8, %v2407_v37  ;;  %v2441_v60 = vmul.f32 %v6886_v54, %v9418_v49 }
 0x6cc   :  { %v2446_v7 = vadd.f32 %v2439_v42, %v2438_v39  ;;  %v2456_v2 = vmul.f32 %v2439_v42, %v6878_v20  ;;  %v2429_v1 = vmul.f32 %v2421_v34, %v2412_v22  ;;  %v2442_v24 = vmul.f32 %v6892_v52, %v9419_v11 }
 0x6cd   :  { %v6904_v26 = vadd.f32 %v2428_v40, %v2408_v53  ;;  %v2457_v47 = vmul.f32 %v2440_v29, %v6884_v45  ;;  %v2443_v21 = vmul.f32 %v6899_v38, %v9420_v56  ;;  %v2458_v58 = vmul.f32 %v2441_v60, %v6886_v54 }
 0x6ce   :  { %v2447_v59 = vadd.f32 %v2446_v7, %v2440_v29  ;;  %v2463_v43 = vadd.f32 %v2456_v2, %v2455_v16  ;;  %v6909_v62 = vadd.f32 %v2429_v1, %v2409_v32  ;;  %v2459_v3 = vmul.f32 %v2442_v24, %v6892_v52  ;;  %v4385_v16 = vld [vmem:[%s8985_s2] sm:$0xf] }
 0x6cf   :  { %v2444_v22 = vmul.f32 %v6904_v26, %v9421_v25  ;;  %v2460_v61 = vmul.f32 %v2443_v21, %v6899_v38  ;;  %v4453_v7 = vmov 29  }
 0x6d0   :  { %v2448_v31 = vadd.f32 %v2447_v59, %v2441_v60  ;;  %v2464_v23 = vadd.f32 %v2463_v43, %v2457_v47  ;;  %v2445_v10 = vmul.f32 %v6909_v62, %v9422_v13  ;;  %4276 = vset.pattern.permute.xlu0 %v4453_v7  ;;  %v4455_v47 = vmov 30   ;;  %v2896_v43 = vld [vmem:[%s8985_s2] sm:$0xff] }
 0x6d1   :  { %v2461_v51 = vmul.f32 %v2444_v22, %v6904_v26  ;;  %4277 = vset.pattern.permute.xlu1 %v4455_v47 }
 0x6d2   :  { %v2449_v5 = vadd.f32 %v2448_v31, %v2442_v24  ;;  %v2465_v28 = vadd.f32 %v2464_v23, %v2458_v58  ;;  %v2462_v35 = vmul.f32 %v2445_v10, %v6909_v62  ;;  %v2897_v31 = vld [vmem:[%s8985_s2 + $0x8] sm:$0xff]  ;;  %v4457_v58 = vmov 42  }
 0x6d4   :  { %v2450_v14 = vadd.f32 %v2449_v5, %v2443_v21  ;;  %v2466_v4 = vadd.f32 %v2465_v28, %v2459_v3  ;;  %v4456_v21 = vmov 41   ;;  %v4458_v5 = vmov 43  }
 0x6d5   :  { %4278 = vset.pattern.permute.xlu2 %v4456_v21 }
 0x6d6   :  { %v2451_v41 = vadd.f32 %v2450_v14, %v2444_v22  ;;  %v2467_v33 = vadd.f32 %v2466_v4, %v2460_v61  ;;  %v4460_v14 = vmov 45   ;;  %v4461_v61 = vmov 47  }
 0x6d7   :  { %v4462_v4 = vmov 46  }
 0x6d8   :  { %v2452_v48 = vadd.f32 %v2451_v41, %v2445_v10  ;;  %v2468_v46 = vadd.f32 %v2467_v33, %v2461_v51  ;;  %v4459_v10 = vmov 44   ;;  %v4463_v41 = vmov 48  }
 0x6da   :  { %2453 = vadd.xlane.f32.xlu1 %v2452_v48  ;;  %v2469_v30 = vadd.f32 %v2468_v46, %v2462_v35 }
 0x6dc   :  { %2470 = vadd.xlane.f32.xlu2 %v2469_v30 }
 0x6f4   :  { %2900 = vperm.xlu2 %4278, %v2896_v43  }
 0x6fc   :  { %4281 = vset.pattern.permute.xlu2 %v4457_v58 }
 0x6fd   :  { %2937 = vperm.xlu2 %4281, %v2897_v31  }
 0x705   :  { %4283 = vset.pattern.permute.xlu2 %v4458_v5 }
 0x706   :  { %2985 = vperm.xlu2 %4283, %v2897_v31  }
 0x70e   :  { %4286 = vset.pattern.permute.xlu2 %v4460_v14 }
 0x70f   :  { %3077 = vperm.xlu2 %4286, %v2896_v43  }
 0x717   :  { %4288 = vset.pattern.permute.xlu2 %v4462_v4 }
 0x718   :  { %3125 = vperm.xlu2 %4288, %v2896_v43  }
 0x720   :  { %4291 = vset.pattern.permute.xlu2 %v4461_v61 }
 0x721   :  { %3177 = vperm.xlu2 %4291, %v2897_v31  }
 0x729   :  { %4293 = vset.pattern.permute.xlu2 %v4463_v41 }
 0x72a   :  { %3225 = vperm.xlu2 %4293, %v2897_v31  }
 0x74d   :  { %v2454_v44 = vpop.xlane.xlu1 %2453 }
 0x74e   :  { %v2473_v57 = vrot.slane %v2454_v44, 4 }
 0x74f   :  { %v2471_v36 = vpop.xlane.xlu2 %2470 }
 0x750   :  { %v2475_v12 = vadd.f32 %v2473_v57, %v2454_v44  ;;  %v2477_v15 = vrot.slane %v2471_v36, 4 }
 0x752   :  { %v2480_v0 = vmul.f32 0.0009765625, %v2475_v12  ;;  %v2479_v18 = vadd.f32 %v2477_v15, %v2471_v36 }
 0x754   :  { %v2482_v19 = vmul.f32 %v2480_v0, %v2480_v0  ;;  %v2481_v27 = vmul.f32 0.0009765625, %v2479_v18 }
 0x756   :  { %v2483_v37 = vsub.f32 %v2481_v27, %v2482_v19 }
 0x758   :  { %v2484_v9 = vmax.f32 %v2483_v37, 0.0 }
 0x75a   :  { %v2485_v50 = vadd.f32 0.001, %v2484_v9 }
 0x75c   :  { %4315 = vrsqrt.f32 %v2485_v50  ;;  %vm2492_vm5 = vweird.f32 %v2485_v50 }
 0x762   :  { %v4316_v53 = vpop.eup %4315 }
 0x763   :  { %v2487_v34 = vmul.f32 %v4316_v53, %v2485_v50  ;;  %vm2493_vm4 = vweird.f32 %v4316_v53 }
 0x764   :  { %vm2494_vm6 = vmor %vm2492_vm5, %vm2493_vm4 }
 0x765   :  { %v2488_v39 = vmul.f32 %v4316_v53, %v2487_v34 }
 0x767   :  { %v2489_v8 = vmul.f32 0.5, %v2488_v39 }
 0x769   :  { %v2490_v42 = vsub.f32 1.5, %v2489_v8 }
 0x76b   :  { %v2491_v29 = vmul.f32 %v4316_v53, %v2490_v42 }
 0x76d   :  { %v2495_v32 = vsel %vm2494_vm6, %v4316_v53, %v2491_v29 }
 0x76e   :  { %2497 = vrot.lane.b32.xlu0 %v2495_v32, %s4451_s13 }
 0x7e0   :  { %v2498_v40 = vpop.permute.xlu0 %2497 }
 0x7e1   :  { %v2500_v60 = vmul.f32 %v4385_v16, %v2498_v40 }
 0x7e3   :  { %2502 = vrot.lane.b32.xlu0 %v2500_v60, %s4452_s28  ;;  %v2511_v24 = vrot.slane %v2500_v60, 4 }
 0x7e5   :  { %v2513_v59 = vsel %vm1838_vm1, %v2500_v60, %v2511_v24 }
 0x855   :  { %v2503_v2 = vpop.permute.xlu0 %2502 }
 0x856   :  { %v2505_v1 = vmul.f32 %v2503_v2, %v2480_v0 }
 0x858   :  { %2507 = vrot.lane.b32.xlu0 %v2505_v1, %s4454_s4 }
 0x860   :  { %2520 = vperm.xlu0 %4276, %v2513_v59  }
 0x868   :  { %4279 = vset.pattern.permute.xlu0 %v4456_v21 }
 0x869   :  { %2905 = vperm.xlu0 %4279, %v2897_v31  }
 0x871   :  { %4280 = vset.pattern.permute.xlu0 %v4457_v58 }
 0x872   :  { %2933 = vperm.xlu0 %4280, %v2896_v43  }
 0x87a   :  { %4285 = vset.pattern.permute.xlu0 %v4459_v10 }
 0x87b   :  { %3033 = vperm.xlu0 %4285, %v2897_v31  }
 0x883   :  { %4290 = vset.pattern.permute.xlu0 %v4461_v61 }
 0x884   :  { %3173 = vperm.xlu0 %4290, %v2896_v43  }
 0x8ca   :  { %v2508_v23 = vpop.permute.xlu0 %2507 }
 0x8cb   :  { %v2510_v22 = vsub.f32 %v4385_v16, %v2508_v23 }
 0x8cd   :  { %v2515_v3 = vrot.slane %v2510_v22, 4 }
 0x8cf   :  { %v2517_v28 = vsel %vm1838_vm1, %v2510_v22, %v2515_v3 }
 0x8d0   :  { %2533 = vperm.xlu1 %4277, %v2517_v28  }
 0x8d2   :  { %v6933_v51 = vpop.permute.xlu0 %2520 }
 0x8d3   :  { %v2523_v33 = vmul.f32 %v6933_v51, %v6872_v55  ;;  %v2524_v48 = vmul.f32 %v6933_v51, %v6878_v20  ;;  %v2525_v35 = vmul.f32 %v6933_v51, %v6884_v45  ;;  %v2526_v46 = vmul.f32 %v6933_v51, %v6886_v54 }
 0x8d4   :  { %v2527_v32 = vmul.f32 %v6933_v51, %v6892_v52  ;;  %v2528_v7 = vmul.f32 %v6933_v51, %v6899_v38 }
 0x8d8   :  { %4282 = vset.pattern.permute.xlu1 %v4458_v5 }
 0x8d9   :  { %2981 = vperm.xlu1 %4282, %v2896_v43  }
 0x8e1   :  { %4284 = vset.pattern.permute.xlu1 %v4459_v10 }
 0x8e2   :  { %3029 = vperm.xlu1 %4284, %v2896_v43  }
 0x8ea   :  { %4287 = vset.pattern.permute.xlu1 %v4460_v14 }
 0x8eb   :  { %3081 = vperm.xlu1 %4287, %v2897_v31  }
 0x8f3   :  { %4289 = vset.pattern.permute.xlu1 %v4462_v4 }
 0x8f4   :  { %3129 = vperm.xlu1 %4289, %v2897_v31  }
 0x8fc   :  { %4292 = vset.pattern.permute.xlu1 %v4463_v41 }
 0x8fd   :  { %3221 = vperm.xlu1 %4292, %v2896_v43  }
 0x942   :  { %v6943_v30 = vpop.permute.xlu1 %2533 }
 0x943   :  { %v6946_v44 = vadd.f32 %v6943_v30, %v2523_v33  ;;  %v6949_v57 = vadd.f32 %v6943_v30, %v2524_v48  ;;  %v6952_v36 = vadd.f32 %v6943_v30, %v2525_v35  ;;  %v6955_v55 = vadd.f32 %v6943_v30, %v2526_v46 }
 0x944   :  { %v7004_v38 = vadd.f32 %v6943_v30, %v2527_v32  ;;  %v7007_v28 = vadd.f32 %v6943_v30, %v2528_v7  ;;  %v2529_v32 = vmul.f32 %v6933_v51, %v6904_v26 }
 0x945   :  { %v6958_v20 = vmul.f32 0.70710677, %v6946_v44  ;;  %v6961_v45 = vmul.f32 0.70710677, %v6949_v57  ;;  %v6964_v54 = vmul.f32 0.70710677, %v6952_v36 }
 0x946   :  { %v6967_v12 = vmul.f32 0.70710677, %v6955_v55 }
 0x947   :  { %v2560_v15 = vmul.f32 %v6958_v20, %v6958_v20  ;;  %v2600_v0 = vmul.f32 %v6961_v45, %v6961_v45  ;;  %v2640_v18 = vmul.f32 %v6964_v54, %v6964_v54 }
 0x948   :  { %v2680_v19 = vmul.f32 %v6967_v12, %v6967_v12 }
 0x949   :  { %v6977_v27 = vmin.f32 %v2560_v15, 16.0  ;;  %v6979_v37 = vmin.f32 %v2600_v0, 16.0  ;;  %v6981_v9 = vmin.f32 %v2640_v18, 16.0 }
 0x94a   :  { %v6983_v50 = vmin.f32 %v2680_v19, 16.0 }
 0x94b   :  { %v2562_v53 = vmul.f32 2.1237322e-06, %v6977_v27  ;;  %v2573_v34 = vmul.f32 3.8918573e-05, %v6977_v27  ;;  %v2602_v39 = vmul.f32 2.1237322e-06, %v6979_v37 }
 0x94c   :  { %v2613_v8 = vmul.f32 3.8918573e-05, %v6979_v37  ;;  %v2642_v42 = vmul.f32 2.1237322e-06, %v6981_v9  ;;  %v2653_v29 = vmul.f32 3.8918573e-05, %v6981_v9 }
 0x94d   :  { %v2563_v40 = vadd.f32 0.00028619796, %v2562_v53  ;;  %v2574_v16 = vadd.f32 0.001143296, %v2573_v34  ;;  %v2603_v60 = vadd.f32 0.00028619796, %v2602_v39 }
 0x94e   :  { %v2614_v2 = vadd.f32 0.001143296, %v2613_v8  ;;  %v2643_v1 = vadd.f32 0.00028619796, %v2642_v42  ;;  %v2654_v24 = vadd.f32 0.001143296, %v2653_v29 }
 0x94f   :  { %v2564_v59 = vmul.f32 %v2563_v40, %v6977_v27  ;;  %v2575_v47 = vmul.f32 %v2574_v16, %v6977_v27  ;;  %v2604_v43 = vmul.f32 %v2603_v60, %v6979_v37  ;;  %v2682_v21 = vmul.f32 2.1237322e-06, %v6983_v50 }
 0x950   :  { %v2615_v31 = vmul.f32 %v2614_v2, %v6979_v37  ;;  %v2644_v52 = vmul.f32 %v2643_v1, %v6981_v9  ;;  %v2655_v58 = vmul.f32 %v2654_v24, %v6981_v9  ;;  %v2693_v23 = vmul.f32 3.8918573e-05, %v6983_v50 }
 0x951   :  { %v2565_v22 = vadd.f32 0.0036580483, %v2564_v59  ;;  %v2576_v5 = vadd.f32 0.014752088, %v2575_v47  ;;  %v2605_v3 = vadd.f32 0.0036580483, %v2604_v43 }
 0x952   :  { %v2616_v10 = vadd.f32 0.014752088, %v2615_v31  ;;  %v2645_v14 = vadd.f32 0.0036580483, %v2644_v52  ;;  %v2656_v61 = vadd.f32 0.014752088, %v2655_v58  ;;  %v2530_v58 = vmul.f32 %v6933_v51, %v6909_v62 }
 0x953   :  { %v2566_v4 = vmul.f32 %v2565_v22, %v6977_v27  ;;  %v2577_v41 = vmul.f32 %v2576_v5, %v6977_v27  ;;  %v2606_v33 = vmul.f32 %v2605_v3, %v6979_v37  ;;  %v2683_v48 = vadd.f32 0.00028619796, %v2682_v21 }
 0x954   :  { %v2617_v35 = vmul.f32 %v2616_v10, %v6979_v37  ;;  %v2646_v46 = vmul.f32 %v2645_v14, %v6981_v9  ;;  %v2657_v15 = vmul.f32 %v2656_v61, %v6981_v9  ;;  %v2694_v0 = vadd.f32 0.001143296, %v2693_v23 }
 0x955   :  { %v2567_v18 = vadd.f32 0.05243302, %v2566_v4  ;;  %v2578_v19 = vadd.f32 0.112945676, %v2577_v41  ;;  %v2607_v53 = vadd.f32 0.05243302, %v2606_v33  ;;  %v2684_v34 = vmul.f32 %v2683_v48, %v6983_v50 }
 0x956   :  { %v2618_v39 = vadd.f32 0.112945676, %v2617_v35  ;;  %v2647_v8 = vadd.f32 0.05243302, %v2646_v46  ;;  %v2658_v42 = vadd.f32 0.112945676, %v2657_v15  ;;  %v2695_v29 = vmul.f32 %v2694_v0, %v6983_v50 }
 0x957   :  { %v2568_v40 = vmul.f32 %v2567_v18, %v6977_v27  ;;  %v2579_v16 = vmul.f32 %v2578_v19, %v6977_v27  ;;  %v7022_v60 = vmul.f32 0.70710677, %v7004_v38  ;;  %v7027_v24 = vmul.f32 0.70710677, %v7007_v28 }
 0x958   :  { %v2619_v7 = vmul.f32 %v2618_v39, %v6979_v37  ;;  %v2659_v2 = vmul.f32 %v2658_v42, %v6981_v9  ;;  %v2696_v1 = vadd.f32 0.014752088, %v2695_v29  ;;  %v2608_v47 = vmul.f32 %v2607_v53, %v6979_v37 }
 0x959   :  { %v2580_v59 = vadd.f32 0.4994258, %v2579_v16  ;;  %v2685_v43 = vadd.f32 0.0036580483, %v2684_v34  ;;  %v2648_v21 = vmul.f32 %v2647_v8, %v6981_v9  ;;  %v2542_v23 = vadd.f32 %v6943_v30, %v2529_v32 }
 0x95a   :  { %v2620_v26 = vadd.f32 0.4994258, %v2619_v7  ;;  %v2660_v31 = vadd.f32 0.4994258, %v2659_v2  ;;  %v2697_v52 = vmul.f32 %v2696_v1, %v6983_v50  ;;  %v2569_v22 = vadd.f32 0.18741608, %v2568_v40 }
 0x95b   :  { %v2581_v5 = vmul.f32 %v2580_v59, %v6977_v27  ;;  %v2720_v61 = vmul.f32 %v7022_v60, %v7022_v60  ;;  %v2609_v41 = vadd.f32 0.18741608, %v2608_v47  ;;  %v2686_v33 = vmul.f32 %v2685_v43, %v6983_v50 }
 0x95c   :  { %v2621_v3 = vmul.f32 %v2620_v26, %v6979_v37  ;;  %v2661_v10 = vmul.f32 %v2660_v31, %v6981_v9  ;;  %v2698_v14 = vadd.f32 0.112945676, %v2697_v52  ;;  %v2760_v62 = vmul.f32 %v7027_v24, %v7027_v24 }
 0x95d   :  { %v7040_v4 = vadd.f32 1.0, %v2581_v5  ;;  %v2543_v51 = vadd.f32 %v6943_v30, %v2530_v58  ;;  %v2649_v35 = vadd.f32 0.18741608, %v2648_v21  ;;  %v7051_v15 = vmul.f32 0.5, %v6946_v44 }
 0x95e   :  { %v7046_v48 = vadd.f32 1.0, %v2621_v3  ;;  %v7048_v46 = vadd.f32 1.0, %v2661_v10  ;;  %v7054_v0 = vmul.f32 0.5, %v6949_v57  ;;  %v2570_v18 = vmul.f32 %v2569_v22, %v6977_v27 }
 0x95f   :  { %4317 = vrcp.f32 %v7040_v4  ;;  %v7058_v19 = vmul.f32 0.70710677, %v2542_v23  ;;  %v2699_v30 = vmul.f32 %v2698_v14, %v6983_v50  ;;  %v7062_v53 = vmin.f32 %v2720_v61, 16.0 }
 0x960   :  { %4319 = vrcp.f32 %v7046_v48  ;;  %v7065_v34 = vmul.f32 0.5, %v6952_v36  ;;  %v2610_v44 = vmul.f32 %v2609_v41, %v6979_v37  ;;  %v2687_v39 = vadd.f32 0.05243302, %v2686_v33 }
 0x961   :  { %v7068_v57 = vmin.f32 %v2760_v62, 16.0  ;;  %v7071_v27 = vmul.f32 0.5, %v6955_v55  ;;  %v7074_v8 = vmul.f32 0.5, %v7004_v38  ;;  %v2650_v42 = vmul.f32 %v2649_v35, %v6981_v9 }
 0x962   :  { %4321 = vrcp.f32 %v7048_v46  ;;  %v7079_v29 = vmul.f32 0.5, %v7007_v28  ;;  %v7081_v36 = vmul.f32 0.5, %v2542_v23  ;;  %v7083_v32 = vmul.f32 0.5, %v2543_v51 }
 0x963   :  { %v2571_v37 = vadd.f32 1.1283791, %v2570_v18  ;;  %v7085_v40 = vmul.f32 0.70710677, %v2543_v51  ;;  %v2700_v16 = vadd.f32 0.4994258, %v2699_v30  ;;  %v2800_v38 = vmul.f32 %v7058_v19, %v7058_v19 }
 0x964   :  { %v2722_v55 = vmul.f32 2.1237322e-06, %v7062_v53  ;;  %v2611_v9 = vadd.f32 1.1283791, %v2610_v44  ;;  %v2688_v2 = vmul.f32 %v2687_v39, %v6983_v50  ;;  %v2733_v28 = vmul.f32 3.8918573e-05, %v7062_v53 }
 0x965   :  { %v7090_v7 = vpop.eup %4317  ;;  %v2762_v1 = vmul.f32 2.1237322e-06, %v7068_v57  ;;  %v2651_v43 = vadd.f32 1.1283791, %v2650_v42  ;;  %v2701_v26 = vmul.f32 %v2700_v16, %v6983_v50  ;;  %v7101_v31 = vmul.f32 %v2571_v37, %v6958_v20 }
 0x966   :  { %v7095_v59 = vpop.eup %4319  ;;  %v2584_v47 = vmul.f32 %v7090_v7, %v7040_v4  ;;  %v2723_v21 = vadd.f32 0.00028619796, %v2722_v55  ;;  %v2592_v52 = vand.u32 2147483647, %v7040_v4  ;;  %v2734_v23 = vadd.f32 0.001143296, %v2733_v28 }
 0x967   :  { %v2624_v58 = vmul.f32 %v7095_v59, %v7046_v48  ;;  %v7108_v3 = vadd.f32 1.0, %v2701_v26  ;;  %v2763_v14 = vadd.f32 0.00028619796, %v2762_v1  ;;  %vm2588_vm1 = vweird.f32 %v7040_v4 }
 0x968   :  { %v7106_v22 = vpop.eup %4321  ;;  %v2585_v5 = vsub.f32 1.0, %v2584_v47  ;;  %v2724_v10 = vmul.f32 %v2723_v21, %v7062_v53  ;;  %v2689_v41 = vadd.f32 0.18741608, %v2688_v2  ;;  %v2594_v62 = vand.u32 2147483648, %v7040_v4 }
 0x969   :  { %v2625_v61 = vsub.f32 1.0, %v2624_v58  ;;  %v2664_v20 = vmul.f32 %v7106_v22, %v7048_v46  ;;  %v7117_v51 = vmul.f32 %v2611_v9, %v6961_v45  ;;  %4323 = vrcp.f32 %v7108_v3 }
 0x96a   :  { %v2586_v33 = vmul.f32 %v7090_v7, %v2585_v5  ;;  %vm2628_vm7 = vweird.f32 %v7046_v48  ;;  %v2634_v35 = vand.u32 2147483648, %v7046_v48  ;;  %v2725_v30 = vadd.f32 0.0036580483, %v2724_v10 }
 0x96b   :  { %v2665_v18 = vsub.f32 1.0, %v2664_v20  ;;  %vm7122_vm8 = vcmp.eq.f32.partialorder %v2592_v52, 8.507059e+37  ;;  %v2632_v39 = vand.u32 2147483647, %v7046_v48  ;;  %v7128_v42 = vmul.f32 %v2651_v43, %v6964_v54 }
 0x96c   :  { %v2735_v45 = vmul.f32 %v2734_v23, %v7062_v53  ;;  %v2764_v37 = vmul.f32 %v2763_v14, %v7068_v57  ;;  %v2626_v16 = vmul.f32 %v7095_v59, %v2625_v61  ;;  %v2672_v55 = vand.u32 2147483647, %v7048_v46 }
 0x96d   :  { %v2674_v9 = vand.u32 2147483648, %v7048_v46  ;;  %v2690_v2 = vmul.f32 %v2689_v41, %v6983_v50  ;;  %v2587_v28 = vadd.f32 %v7090_v7, %v2586_v33  ;;  %vm2589_vm9 = vweird.f32 %v7090_v7 }
 0x96e   :  { %v2726_v1 = vmul.f32 %v2725_v30, %v7062_v53  ;;  %v2736_v54 = vadd.f32 0.014752088, %v2735_v45  ;;  %v2595_v47 = vor.u32 1.1754944e-38, %v2594_v62  ;;  %v2635_v43 = vor.u32 1.1754944e-38, %v2634_v35  ;;  %vm7153_vm12 = vmor %vm2588_vm1, %vm2589_vm9 }
 0x96f   :  { %v2666_v26 = vmul.f32 %v7106_v22, %v2665_v18  ;;  %vm2668_vm10 = vweird.f32 %v7048_v46  ;;  %v7141_v21 = vpop.eup %4323  ;;  %vm7143_vm11 = vcmp.eq.f32.partialorder %v2632_v39, 8.507059e+37  ;;  %v2765_v58 = vadd.f32 0.0036580483, %v2764_v37 }
 0x970   :  { %v2737_v50 = vmul.f32 %v2736_v54, %v7062_v53  ;;  %v2773_v23 = vmul.f32 3.8918573e-05, %v7068_v57  ;;  %v7149_v5 = vmin.f32 %v2800_v38, 16.0  ;;  %v2627_v14 = vadd.f32 %v7095_v59, %v2626_v16 }
 0x971   :  { %vm2629_vm13 = vweird.f32 %v7095_v59  ;;  %v2675_v61 = vor.u32 1.1754944e-38, %v2674_v9  ;;  %v2704_v20 = vmul.f32 %v7141_v21, %v7108_v3  ;;  %v2591_v41 = vsel %vm7153_vm12, %v7090_v7, %v2587_v28 }
 0x972   :  { %vm7164_vm14 = vcmp.eq.f32.partialorder %v2672_v55, 8.507059e+37  ;;  %v2691_v4 = vadd.f32 1.1283791, %v2690_v2  ;;  %v2727_v33 = vadd.f32 0.05243302, %v2726_v1  ;;  %v2667_v35 = vadd.f32 %v7106_v22, %v2666_v26  ;;  %vm7173_vm0 = vmor %vm2628_vm7, %vm2629_vm13 }
 0x973   :  { %v2738_v62 = vadd.f32 0.112945676, %v2737_v50  ;;  %vm2669_vm15 = vweird.f32 %v7106_v22  ;;  %v2705_v18 = vsub.f32 1.0, %v2704_v20  ;;  %v2712_v30 = vand.u32 2147483647, %v7108_v3 }
 0x974   :  { %v2766_v45 = vmul.f32 %v2765_v58, %v7068_v57  ;;  %v2774_v37 = vadd.f32 0.001143296, %v2773_v23  ;;  %v2802_v16 = vmul.f32 2.1237322e-06, %v7149_v5  ;;  %v2596_v55 = vsel %vm7122_vm8, %v2595_v47, %v2591_v41  ;;  %vm7190_vm3 = vmor %vm2668_vm10, %vm2669_vm15 }
 0x975   :  { %v2739_v7 = vmul.f32 %v2738_v62, %v7062_v53  ;;  %v2631_v9 = vsel %vm7173_vm0, %v7095_v59, %v2627_v14  ;;  %vm2708_vm2 = vweird.f32 %v7108_v3  ;;  %v2714_v48 = vand.u32 2147483648, %v7108_v3 }
 0x976   :  { %v2813_v2 = vmul.f32 3.8918573e-05, %v7149_v5  ;;  %v2728_v1 = vmul.f32 %v2727_v33, %v7062_v53  ;;  %v2775_v54 = vmul.f32 %v2774_v37, %v7068_v57  ;;  %v2803_v47 = vadd.f32 0.00028619796, %v2802_v16 }
 0x977   :  { %v2740_v44 = vadd.f32 0.4994258, %v2739_v7  ;;  %v2671_v59 = vsel %vm7190_vm3, %v7106_v22, %v2667_v35  ;;  %v2706_v26 = vmul.f32 %v7141_v21, %v2705_v18  ;;  %v2840_v46 = vmul.f32 %v7085_v40, %v7085_v40 }
 0x978   :  { %v2814_v50 = vadd.f32 0.001143296, %v2813_v2  ;;  %v2767_v23 = vadd.f32 0.05243302, %v2766_v45  ;;  %v2776_v10 = vadd.f32 0.014752088, %v2775_v54  ;;  %v2804_v14 = vmul.f32 %v2803_v47, %v7149_v5 }
 0x979   :  { %v2741_v58 = vmul.f32 %v2740_v44, %v7062_v53  ;;  %v7205_v20 = vmul.f32 %v2596_v55, %v7101_v31  ;;  %v2636_v41 = vsel %vm7143_vm11, %v2635_v43, %v2631_v9  ;;  %vm2709_vm4 = vweird.f32 %v7141_v21 }
 0x97a   :  { %v2815_v22 = vmul.f32 %v2814_v50, %v7149_v5  ;;  %v2729_v33 = vadd.f32 0.18741608, %v2728_v1  ;;  %v2777_v35 = vmul.f32 %v2776_v10, %v7068_v57  ;;  %v7214_v18 = vmin.f32 %v2840_v46, 16.0  ;;  %vm7237_vm6 = vmor %vm2708_vm2, %vm2709_vm4 }
 0x97b   :  { %v7211_v62 = vadd.f32 1.0, %v2741_v58  ;;  %v2676_v39 = vsel %vm7164_vm14, %v2675_v61, %v2671_v59  ;;  %v2707_v31 = vadd.f32 %v7141_v21, %v2706_v26  ;;  %v2805_v7 = vadd.f32 0.0036580483, %v2804_v14 }
 0x97c   :  { %v2816_v45 = vadd.f32 0.014752088, %v2815_v22  ;;  %vm7219_vm5 = vcmp.eq.f32.partialorder %v2712_v30, 8.507059e+37  ;;  %v2715_v52 = vor.u32 1.1754944e-38, %v2714_v48  ;;  %v2768_v37 = vmul.f32 %v2767_v23, %v7068_v57 }
 0x97d   :  { %4325 = vrcp.f32 %v7211_v62  ;;  %v4135_v16 = vclamps-f32 %v7205_v20, 1.0  ;;  %v7227_v55 = vmul.f32 %v2636_v41, %v7117_v51  ;;  %v2778_v38 = vadd.f32 0.112945676, %v2777_v35 }
 0x97e   :  { %v2806_v61 = vmul.f32 %v2805_v7, %v7149_v5  ;;  %v7231_v9 = vmul.f32 %v2676_v39, %v7128_v42  ;;  %v2730_v48 = vmul.f32 %v2729_v33, %v7062_v53  ;;  %v2817_v2 = vmul.f32 %v2816_v45, %v7149_v5 }
 0x97f   :  { %v2842_v51 = vmul.f32 2.1237322e-06, %v7214_v18  ;;  %v2711_v28 = vsel %vm7237_vm6, %v7141_v21, %v2707_v31  ;;  %v2779_v42 = vmul.f32 %v2778_v38, %v7068_v57  ;;  %v2853_v44 = vmul.f32 3.8918573e-05, %v7214_v18 }
 0x980   :  { %v2807_v1 = vadd.f32 0.05243302, %v2806_v61  ;;  %v2692_v3 = vmul.f32 %v2691_v4, %v6967_v12  ;;  %v2769_v54 = vadd.f32 0.18741608, %v2768_v37  ;;  %v2818_v47 = vadd.f32 0.112945676, %v2817_v2 }
 0x981   :  { %v2843_v59 = vadd.f32 0.00028619796, %v2842_v51  ;;  %v4136_v53 = vclamps-f32 %v7227_v55, 1.0  ;;  %v2780_v26 = vadd.f32 0.4994258, %v2779_v42  ;;  %v4137_v23 = vclamps-f32 %v7231_v9, 1.0 }
 0x982   :  { %v2808_v50 = vmul.f32 %v2807_v1, %v7149_v5  ;;  %v2854_v46 = vadd.f32 0.001143296, %v2853_v44  ;;  %v2716_v21 = vsel %vm7219_vm5, %v2715_v52, %v2711_v28  ;;  %v2819_v10 = vmul.f32 %v2818_v47, %v7149_v5 }
 0x983   :  { %v4326_v58 = vpop.eup %4325  ;;  %v2844_v14 = vmul.f32 %v2843_v59, %v7214_v18  ;;  %v2731_v12 = vadd.f32 1.1283791, %v2730_v48  ;;  %v2781_v41 = vmul.f32 %v2780_v26, %v7068_v57  ;;  %v2770_v33 = vmul.f32 %v2769_v54, %v7068_v57  ;;  %v7278_v59 = vpop.permute.xlu2 %2900 }
 0x984   :  { %v2744_v4 = vmul.f32 %v4326_v58, %v7211_v62  ;;  %v2809_v22 = vadd.f32 0.18741608, %v2808_v50  ;;  %v2820_v35 = vadd.f32 0.4994258, %v2819_v10  ;;  %v2855_v31 = vmul.f32 %v2854_v46, %v7214_v18 }
 0x985   :  { %v2845_v39 = vadd.f32 0.0036580483, %v2844_v14  ;;  %v2717_v7 = vmul.f32 %v2716_v21, %v2692_v3  ;;  %v2752_v43 = vand.u32 2147483647, %v7211_v62  ;;  %v7262_v52 = vadd.f32 1.0, %v2781_v41 }
 0x986   :  { %v2745_v45 = vsub.f32 1.0, %v2744_v4  ;;  %v2754_v37 = vand.u32 2147483648, %v7211_v62  ;;  %v2821_v55 = vmul.f32 %v2820_v35, %v7149_v5  ;;  %v2856_v61 = vadd.f32 0.014752088, %v2855_v31 }
 0x987   :  { %v2846_v38 = vmul.f32 %v2845_v39, %v7214_v18  ;;  %vm2749_vm1 = vweird.f32 %v4326_v58  ;;  %4327 = vrcp.f32 %v7262_v52  ;;  %v2810_v57 = vmul.f32 %v2809_v22, %v7149_v5 }
 0x988   :  { %v2746_v9 = vmul.f32 %v4326_v58, %v2745_v45  ;;  %v2732_v30 = vmul.f32 %v2731_v12, %v7022_v60  ;;  %v2771_v48 = vadd.f32 1.1283791, %v2770_v33  ;;  %v7270_v2 = vadd.f32 1.0, %v2821_v55 }
 0x989   :  { %v2847_v51 = vadd.f32 0.05243302, %v2846_v38  ;;  %v4138_v28 = vclamps-f32 %v2717_v7, 1.0  ;;  %vm2748_vm7 = vweird.f32 %v7211_v62  ;;  %v2857_v1 = vmul.f32 %v2856_v61, %v7214_v18 }
 0x98a   :  { %v2747_v42 = vadd.f32 %v4326_v58, %v2746_v9  ;;  %vm2750_vm8 = vmor %vm2748_vm7, %vm2749_vm1  ;;  %vm2753_vm9 = vcmp.eq.f32.partialorder %v2752_v43, 8.507059e+37  ;;  %v2755_v44 = vor.u32 1.1754944e-38, %v2754_v37  ;;  %v2792_v3 = vand.u32 2147483647, %v7262_v52 }
 0x98b   :  { %4329 = vrcp.f32 %v7270_v2  ;;  %v2794_v60 = vand.u32 2147483648, %v7262_v52  ;;  %v2811_v54 = vadd.f32 1.1283791, %v2810_v57  ;;  %v2848_v47 = vmul.f32 %v2847_v51, %v7214_v18 }
 0x98c   :  { %v2751_v5 = vsel %vm2750_vm8, %v4326_v58, %v2747_v42  ;;  %v2772_v62 = vmul.f32 %v2771_v48, %v7027_v24  ;;  %v2858_v50 = vadd.f32 0.112945676, %v2857_v1  ;;  %v2880_v46 = vadd.f32 1.0, %v4135_v16 }
 0x98d   :  { %v2756_v26 = vsel %vm2753_vm9, %v2755_v44, %v2751_v5  ;;  %v4328_v21 = vpop.eup %4327  ;;  %vm2788_vm10 = vweird.f32 %v7262_v52  ;;  %v2849_v14 = vadd.f32 0.18741608, %v2848_v47  ;;  %v2881_v58 = vadd.f32 1.0, %v4136_v53 }
 0x98e   :  { %v2757_v10 = vmul.f32 %v2756_v26, %v2732_v30  ;;  %v2784_v12 = vmul.f32 %v4328_v21, %v7262_v52  ;;  %vm7285_vm11 = vcmp.eq.f32.partialorder %v2792_v3, 8.507059e+37  ;;  %v2859_v41 = vmul.f32 %v2858_v50, %v7214_v18 }
 0x98f   :  { %v2882_v22 = vadd.f32 1.0, %v4137_v23  ;;  %v2883_v24 = vadd.f32 1.0, %v4138_v28  ;;  %v2795_v35 = vor.u32 1.1754944e-38, %v2794_v60  ;;  %v2812_v20 = vmul.f32 %v2811_v54, %v7058_v19 }
 0x990   :  { %v4139_v33 = vclamps-f32 %v2757_v10, 1.0  ;;  %v2832_v16 = vand.u32 2147483647, %v7270_v2  ;;  %v2785_v31 = vsub.f32 1.0, %v2784_v12  ;;  %v2850_v53 = vmul.f32 %v2849_v14, %v7214_v18 }
 0x991   :  { %v4330_v39 = vpop.eup %4329  ;;  %v2860_v7 = vadd.f32 0.4994258, %v2859_v41  ;;  %v7294_v45 = vmul.f32 %v2880_v46, %v7051_v15  ;;  %vm2789_vm12 = vweird.f32 %v4328_v21  ;;  %v7298_v23 = vmul.f32 %v2881_v58, %v7054_v0 }
 0x992   :  { %v2824_v43 = vmul.f32 %v4330_v39, %v7270_v2  ;;  %v2884_v37 = vadd.f32 1.0, %v4139_v33  ;;  %v2786_v55 = vmul.f32 %v4328_v21, %v2785_v31  ;;  %v7302_v38 = vmul.f32 %v2882_v22, %v7065_v34  ;;  %vm2790_vm14 = vmor %vm2788_vm10, %vm2789_vm12 }
 0x993   :  { %v2861_v19 = vmul.f32 %v2860_v7, %v7214_v18  ;;  %v7305_v61 = vmul.f32 %v2883_v24, %v7071_v27  ;;  %vm2828_vm13 = vweird.f32 %v7270_v2  ;;  %v2834_v15 = vand.u32 2147483648, %v7270_v2 }
 0x994   :  { %v2825_v9 = vsub.f32 1.0, %v2824_v43  ;;  %v7310_v57 = vmul.f32 %v2884_v37, %v7074_v8  ;;  %v2787_v30 = vadd.f32 %v4328_v21, %v2786_v55  ;;  %v2851_v0 = vadd.f32 1.1283791, %v2850_v53  ;;  %v7323_v8 = vpop.permute.xlu2 %2937 }
 0x995   :  { %v7312_v48 = vadd.f32 1.0, %v2861_v19  ;;  %v9114_v18 = vperm.slane %v7294_v45, 0  ;;  %vm2829_vm15 = vweird.f32 %v4330_v39  ;;  %vm7318_vm0 = vcmp.eq.f32.partialorder %v2832_v16, 8.507059e+37 }
 0x996   :  { %v2826_v34 = vmul.f32 %v4330_v39, %v2825_v9  ;;  %v9113_v51 = vperm.slane %v7298_v23, 0  ;;  %v2791_v28 = vsel %vm2790_vm14, %v4328_v21, %v2787_v30  ;;  %v9112_v42 = vperm.slane %v7302_v38, 0  ;;  %vm2830_vm2 = vmor %vm2828_vm13, %vm2829_vm15 }
 0x997   :  { %4331 = vrcp.f32 %v7312_v48  ;;  %v9111_v1 = vperm.slane %v7305_v61, 0  ;;  %v2796_v52 = vsel %vm7285_vm11, %v2795_v35, %v2791_v28  ;;  %v2874_v3 = vand.u32 2147483648, %v7312_v48 }
 0x998   :  { %v2827_v44 = vadd.f32 %v4330_v39, %v2826_v34  ;;  %v9110_v5 = vperm.slane %v7310_v57, 0  ;;  %v2797_v60 = vmul.f32 %v2796_v52, %v2772_v62  ;;  %v2835_v54 = vor.u32 1.1754944e-38, %v2834_v15 }
 0x999   :  { %v7335_v47 = vmul.f32 %v2851_v0, %v7085_v40  ;;  %v7340_v26 = vmul.f32 %v9114_v18, %v7278_v59  ;;  %v2872_v46 = vand.u32 2147483647, %v7312_v48  ;;  %v9105_v21 = vperm.slane %v7294_v45, 1 }
 0x99a   :  { %v2831_v50 = vsel %vm2830_vm2, %v4330_v39, %v2827_v44  ;;  %v9104_v10 = vperm.slane %v7298_v23, 1  ;;  %v4140_v62 = vclamps-f32 %v2797_v60, 1.0  ;;  %v7350_v40 = vmul.f32 %v9113_v51, %v7278_v59 }
 0x99b   :  { %v2836_v2 = vsel %vm7318_vm0, %v2835_v54, %v2831_v50  ;;  %v7355_v14 = vmul.f32 %v9112_v42, %v7278_v59  ;;  %vm2868_vm3 = vweird.f32 %v7312_v48  ;;  %v2875_v12 = vor.u32 1.1754944e-38, %v2874_v3 }
 0x99c   :  { %v2837_v58 = vmul.f32 %v2836_v2, %v2812_v20  ;;  %v7361_v4 = vmul.f32 %v9111_v1, %v7278_v59  ;;  %v7366_v41 = vmul.f32 %v9110_v5, %v7278_v59  ;;  %v2885_v24 = vadd.f32 1.0, %v4140_v62  ;;  %v7392_v30 = vpop.permute.xlu2 %2985 }
 0x99d   :  { %v4332_v22 = vpop.eup %4331  ;;  %v9103_v33 = vperm.slane %v7302_v38, 1  ;;  %v9102_v35 = vperm.slane %v7305_v61, 1  ;;  %v9101_v20 = vperm.slane %v7310_v57, 1  ;;  %vm7372_vm4 = vcmp.eq.f32.partialorder %v2872_v46, 8.507059e+37 }
 0x99e   :  { %v4141_v16 = vclamps-f32 %v2837_v58, 1.0  ;;  %v2864_v39 = vmul.f32 %v4332_v22, %v7312_v48  ;;  %v7379_v53 = vmul.f32 %v9105_v21, %v7323_v8  ;;  %v7384_v7 = vmul.f32 %v9104_v10, %v7323_v8 }
 0x99f   :  { %v7387_v43 = vmul.f32 %v2885_v24, %v7079_v29  ;;  %v2988_v37 = vperm.slane %v7294_v45, 2  ;;  %v2989_v55 = vperm.slane %v7298_v23, 2  ;;  %v2990_v19 = vperm.slane %v7302_v38, 2 }
 0x9a0   :  { %v2865_v9 = vsub.f32 1.0, %v2864_v39  ;;  %v2886_v15 = vadd.f32 1.0, %v4141_v16  ;;  %v2991_v0 = vperm.slane %v7305_v61, 2  ;;  %v2992_v34 = vperm.slane %v7310_v57, 2  ;;  %v7433_v16 = vpop.permute.xlu1 %2981 }
 0x9a1   :  { %v9107_v27 = vperm.slane %v7387_v43, 0  ;;  %v9106_v28 = vperm.slane %v7387_v43, 1  ;;  %v7401_v29 = vmul.f32 %v9103_v33, %v7323_v8  ;;  %v2993_v52 = vperm.slane %v7387_v43, 2 }
 0x9a2   :  { %v2866_v44 = vmul.f32 %v4332_v22, %v2865_v9  ;;  %vm2869_vm5 = vweird.f32 %v4332_v22  ;;  %v7405_v3 = vmul.f32 %v2886_v15, %v7081_v36  ;;  %v7410_v60 = vmul.f32 %v9102_v35, %v7323_v8 }
 0x9a3   :  { %v7415_v54 = vmul.f32 %v9101_v20, %v7323_v8  ;;  %v7418_v50 = vmul.f32 %v2988_v37, %v7392_v30  ;;  %v7421_v46 = vmul.f32 %v2989_v55, %v7392_v30  ;;  %v7424_v62 = vmul.f32 %v2990_v19, %v7392_v30  ;;  %vm2870_vm6 = vmor %vm2868_vm3, %vm2869_vm5 }
 0x9a4   :  { %v2867_v36 = vadd.f32 %v4332_v22, %v2866_v44  ;;  %v9108_v2 = vperm.slane %v7405_v3, 0  ;;  %v7428_v58 = vmul.f32 %v2991_v0, %v7392_v30  ;;  %v7431_v24 = vmul.f32 %v2992_v34, %v7392_v30 }
 0x9a5   :  { %v7440_v39 = vmul.f32 %v9107_v27, %v7278_v59  ;;  %v9109_v9 = vperm.slane %v7405_v3, 1  ;;  %v7446_v15 = vmul.f32 %v9106_v28, %v7323_v8  ;;  %v7449_v44 = vmul.f32 %v2993_v52, %v7392_v30 }
 0x9a6   :  { %v2871_v20 = vsel %vm2870_vm6, %v4332_v22, %v2867_v36  ;;  %v2994_v35 = vperm.slane %v7405_v3, 2  ;;  %v7453_v48 = vmul.f32 %v2988_v37, %v7433_v16  ;;  %v7456_v33 = vmul.f32 %v2989_v55, %v7433_v16 }
 0x9a7   :  { %v2876_v10 = vsel %vm7372_vm4, %v2875_v12, %v2871_v20  ;;  %v7461_v21 = vmul.f32 %v2990_v19, %v7433_v16  ;;  %v7464_v28 = vmul.f32 %v2991_v0, %v7433_v16  ;;  %v9115_v27 = vperm.slane %v7294_v45, 4 }
 0x9a8   :  { %v2877_v22 = vmul.f32 %v2876_v10, %v7335_v47  ;;  %v7471_v37 = vmul.f32 %v9108_v2, %v7278_v59  ;;  %v7474_v55 = vmul.f32 %v2992_v34, %v7433_v16  ;;  %v9116_v12 = vperm.slane %v7298_v23, 4  ;;  %v7494_v2 = vpop.permute.xlu2 %3077  ;;  %v3030_v51 = vpop.permute.xlu1 %3029 }
 0x9a9   :  { %v7480_v20 = vmul.f32 %v9109_v9, %v7323_v8  ;;  %v9117_v31 = vperm.slane %v7302_v38, 4  ;;  %v9118_v19 = vperm.slane %v7305_v61, 4  ;;  %v9119_v47 = vperm.slane %v7310_v57, 4  ;;  %9447 = vst [vmem:[#allocation45_spill] sm:$0xff] %v7494_v2 }
 0x9aa   :  { %v4142_v10 = vclamps-f32 %v2877_v22, 1.0  ;;  %v7486_v0 = vmul.f32 %v2994_v35, %v7392_v30  ;;  %v7489_v34 = vmul.f32 %v2993_v52, %v7433_v16  ;;  %v7492_v36 = vmul.f32 %v2994_v35, %v7433_v16 }
 0x9ab   :  { %v9120_v9 = vperm.slane %v7387_v43, 4  ;;  %v7501_v1 = vmul.f32 %v9115_v27, %v7494_v2  ;;  %v7507_v52 = vmul.f32 %v9116_v12, %v7494_v2  ;;  %v7514_v18 = vmul.f32 %v9117_v31, %v7494_v2  ;;  %v2906_v31 = vpop.permute.xlu0 %2905 }
 0x9ac   :  { %9445 = vst [vmem:[#allocation36_spill] sm:$0xff] %v7486_v0  ;;  %v2887_v42 = vadd.f32 1.0, %v4142_v10  ;;  %v7519_v27 = vmul.f32 %v9118_v19, %v7494_v2  ;;  %v7524_v10 = vmul.f32 %v9119_v47, %v7494_v2  ;;  %v9453_v47 = vperm.slane %v7405_v3, 4 }
 0x9ad   :  { %9446 = vst [vmem:[#allocation46_spill] sm:$0xff] %v7492_v36  ;;  %v7536_v19 = vmul.f32 %v9120_v9, %v7494_v2  ;;  %v9456_v22 = vperm.slane %v7298_v23, 3  ;;  %v9457_v56 = vperm.slane %v7302_v38, 3  ;;  %v9463_v6 = vperm.slane %v7387_v43, 3 }
 0x9ae   :  { %9448 = vst [vmem:[#allocation49_spill] sm:$0xff] %v7507_v52  ;;  %v7528_v35 = vmul.f32 %v2887_v42, %v7083_v32  ;;  %v7541_v13 = vmul.f32 %v9453_v47, %v7494_v2  ;;  %v9455_v32 = vperm.slane %v7294_v45, 3  ;;  %v9461_v2 = vperm.slane %v7310_v57, 3 }
 0x9af   :  { %9449 = vst [vmem:[#allocation50_spill] sm:$0xff] %v7514_v18  ;;  %v7549_v12 = vmul.f32 %v9456_v22, %v3030_v51  ;;  %v7556_v11 = vmul.f32 %v9457_v56, %v3030_v51  ;;  %v9459_v22 = vperm.slane %v7294_v45, 0  ;;  %v7573_v56 = vmul.f32 %v9463_v6, %v3030_v51 }
 0x9b0   :  { %9450 = vst [vmem:[#allocation57_spill] sm:$0xff] %v7519_v27  ;;  %v7545_v42 = vmul.f32 %v9455_v32, %v3030_v51  ;;  %v2915_v5 = vperm.slane %v7528_v35, 0  ;;  %v2947_v25 = vperm.slane %v7528_v35, 1  ;;  %v2995_v9 = vperm.slane %v7528_v35, 2 }
 0x9b1   :  { %9451 = vst [vmem:[#allocation56_spill] sm:$0xff] %v7524_v10  ;;  %v9458_v32 = vperm.slane %v7305_v61, 3  ;;  %v9460_v10 = vperm.slane %v7298_v23, 0  ;;  %v7569_v49 = vmul.f32 %v9461_v2, %v3030_v51  ;;  %v9465_v47 = vperm.slane %v7405_v3, 3 }
 0x9b2   :  { %9452 = vst [vmem:[#allocation65_spill] sm:$0xff] %v7536_v19  ;;  %v2924_v19 = vmul.f32 %v9459_v22, %v2906_v31  ;;  %v2923_v22 = vmul.f32 %v2915_v5, %v7278_v59  ;;  %v2963_v63 = vmul.f32 %v2947_v25, %v7323_v8  ;;  %v9469_v2 = vperm.slane %v7310_v57, 0 }
 0x9b3   :  { %9454 = vst [vmem:[#allocation64_spill] sm:$0xff] %v7541_v13  ;;  %v7561_v13 = vmul.f32 %v9458_v32, %v3030_v51  ;;  %v2925_v27 = vmul.f32 %v9460_v10, %v2906_v31  ;;  %v7577_v36 = vmul.f32 %v9465_v47, %v3030_v51  ;;  %v9467_v32 = vperm.slane %v7302_v38, 0 }
 0x9b4   :  { %9462 = vst [vmem:[#allocation53_spill] sm:$0xff] %v7569_v49  ;;  %v9468_v10 = vperm.slane %v7305_v61, 0  ;;  %v2928_v49 = vmul.f32 %v9469_v2, %v2906_v31  ;;  %v7588_v6 = vmul.f32 %v2995_v9, %v7392_v30  ;;  %v7595_v59 = vmul.f32 %v2995_v9, %v7433_v16  ;;  %v7620_v9 = vpop.permute.xlu2 %3125 }
 0x9b5   :  { %9464 = vst [vmem:[#allocation47_spill] sm:$0xff] %v7573_v56  ;;  %v2926_v17 = vmul.f32 %v9467_v32, %v2906_v31  ;;  %v9471_v56 = vperm.slane %v7387_v43, 0  ;;  %v2931_v32 = vmul.f32 %v2915_v5, %v2906_v31  ;;  %v9474_v8 = vperm.slane %v7528_v35, 3 }
 0x9b6   :  { %9466 = vst [vmem:[#allocation58_spill] sm:$0xff] %v7577_v36  ;;  %v2927_v0 = vmul.f32 %v9468_v10, %v2906_v31  ;;  %v9472_v36 = vperm.slane %v7405_v3, 0  ;;  %v7602_v10 = vadd.f32 %v7379_v53, %v2924_v19  ;;  %v7605_v30 = vadd.f32 %v7384_v7, %v2925_v27 }
 0x9b7   :  { %9470 = vst [vmem:[#allocation83_spill] sm:$0xff] %v7588_v6  ;;  %v2929_v47 = vmul.f32 %v9471_v56, %v2906_v31  ;;  %v7599_v52 = vmul.f32 %v9474_v8, %v3030_v51  ;;  %v9123_v2 = vperm.slane %v7294_v45, 5  ;;  %v9122_v56 = vperm.slane %v7298_v23, 5 }
 0x9b8   :  { %v2930_v18 = vmul.f32 %v9472_v36, %v2906_v31  ;;  %9473 = vst [vmem:[#allocation90_spill] sm:$0xff] %v7595_v59  ;;  %v9124_v36 = vperm.slane %v7302_v38, 5  ;;  %v9125_v5 = vperm.slane %v7305_v61, 5  ;;  %v7612_v16 = vadd.f32 %v7401_v29, %v2926_v17  ;;  %v7632_v29 = vpop.permute.xlu1 %3081 }
 0x9b9   :  { %9475 = vst [vmem:[#allocation92_spill] sm:$0xff] %v7599_v52  ;;  %v7615_v51 = vadd.f32 %v7410_v60, %v2927_v0  ;;  %v7618_v53 = vadd.f32 %v7415_v54, %v2928_v49  ;;  %v9126_v7 = vperm.slane %v7310_v57, 5  ;;  %v7624_v27 = vadd.f32 %v7446_v15, %v2929_v47 }
 0x9ba   :  { %9476 = vst [vmem:[#allocation66_spill] sm:$0xff] %v7620_v9  ;;  %v7627_v31 = vadd.f32 %v7480_v20, %v2930_v18  ;;  %v7629_v19 = vadd.f32 %v2963_v63, %v2931_v32  ;;  %v7637_v49 = vmul.f32 %v9123_v2, %v7620_v9  ;;  %v7642_v60 = vmul.f32 %v9122_v56, %v7620_v9  ;;  %v2934_v20 = vpop.permute.xlu0 %2933 }
 0x9bb   :  { %v9479_v18 = vperm.slane %v7294_v45, 4  ;;  %v9480_v63 = vperm.slane %v7298_v23, 4  ;;  %v7657_v0 = vmul.f32 %v9124_v36, %v7620_v9  ;;  %v7662_v47 = vmul.f32 %v9125_v5, %v7620_v9 }
 0x9bc   :  { %9477 = vst [vmem:[#allocation100_spill] sm:$0xff] %v7637_v49  ;;  %v7667_v32 = vmul.f32 %v9126_v7, %v7620_v9  ;;  %v9484_v8 = vperm.slane %v7294_v45, 1  ;;  %v9486_v2 = vperm.slane %v7302_v38, 1  ;;  %v9487_v17 = vperm.slane %v7305_v61, 1 }
 0x9bd   :  { %9478 = vst [vmem:[#allocation61_spill] sm:$0xff] %v7642_v60  ;;  %v7647_v54 = vmul.f32 %v9479_v18, %v7632_v29  ;;  %v7652_v15 = vmul.f32 %v9480_v63, %v7632_v29  ;;  %v9485_v63 = vperm.slane %v7298_v23, 1  ;;  %v9488_v5 = vperm.slane %v7310_v57, 1 }
 0x9be   :  { %9481 = vst [vmem:[#allocation55_spill] sm:$0xff] %v7657_v0  ;;  %v2948_v18 = vmul.f32 %v9484_v8, %v2934_v20  ;;  %v2950_v36 = vmul.f32 %v9486_v2, %v2934_v20  ;;  %v2951_v52 = vmul.f32 %v9487_v17, %v2934_v20  ;;  %v9489_v59 = vperm.slane %v7387_v43, 5 }
 0x9bf   :  { %9482 = vst [vmem:[#allocation68_spill] sm:$0xff] %v7662_v47  ;;  %v2949_v56 = vmul.f32 %v9485_v63, %v2934_v20  ;;  %v2952_v47 = vmul.f32 %v9488_v5, %v2934_v20  ;;  %v9492_v0 = vperm.slane %v7405_v3, 1  ;;  %v2955_v2 = vmul.f32 %v2947_v25, %v2934_v20 }
 0x9c0   :  { %9483 = vst [vmem:[#allocation102_spill] sm:$0xff] %v7667_v32  ;;  %v7682_v7 = vmul.f32 %v9489_v59, %v7620_v9  ;;  %v9491_v32 = vperm.slane %v7387_v43, 1  ;;  %v2964_v60 = vadd.f32 %v2948_v18, %v7340_v26  ;;  %v2966_v17 = vadd.f32 %v2950_v36, %v7355_v14 }
 0x9c1   :  { %v2954_v63 = vmul.f32 %v9492_v0, %v2934_v20  ;;  %v2965_v49 = vadd.f32 %v2949_v56, %v7350_v40  ;;  %v2967_v5 = vadd.f32 %v2951_v52, %v7361_v4  ;;  %v9493_v6 = vperm.slane %v7302_v38, 4 }
 0x9c2   :  { %9490 = vst [vmem:[#allocation73_spill] sm:$0xff] %v7682_v7  ;;  %v2953_v8 = vmul.f32 %v9491_v32, %v2934_v20  ;;  %v2968_v7 = vadd.f32 %v2952_v47, %v7366_v41  ;;  %v3012_v0 = vadd.f32 %v7453_v48, %v2964_v60  ;;  %v9494_v25 = vperm.slane %v7305_v61, 4 }
 0x9c3   :  { %v7695_v59 = vmul.f32 %v9493_v6, %v7632_v29  ;;  %v3013_v40 = vadd.f32 %v7456_v33, %v2965_v49  ;;  %v3014_v14 = vadd.f32 %v7461_v21, %v2966_v17  ;;  %v3015_v4 = vadd.f32 %v7464_v28, %v2967_v5  ;;  %v7730_v49 = vpop.permute.xlu2 %3177 }
 0x9c4   :  { %v2969_v32 = vadd.f32 %v2953_v8, %v7440_v39  ;;  %v7703_v26 = vmul.f32 %v9494_v25, %v7632_v29  ;;  %v9495_v52 = vperm.slane %v7310_v57, 4  ;;  %v9496_v41 = vperm.slane %v7387_v43, 4 }
 0x9c5   :  { %v9131_v48 = vperm.slane %v7294_v45, 6  ;;  %v9130_v56 = vperm.slane %v7298_v23, 6  ;;  %v9497_v33 = vperm.slane %v7405_v3, 4  ;;  %v7726_v28 = vadd.f32 %v2954_v63, %v7471_v37 }
 0x9c6   :  { %v7711_v6 = vmul.f32 %v9495_v52, %v7632_v29  ;;  %v7716_v39 = vmul.f32 %v9496_v41, %v7632_v29  ;;  %v7728_v36 = vadd.f32 %v2955_v2, %v2923_v22  ;;  %v9129_v60 = vperm.slane %v7302_v38, 6  ;;  %v7747_v2 = vpop.permute.xlu1 %3129 }
 0x9c7   :  { %v7723_v21 = vmul.f32 %v9497_v33, %v7632_v29  ;;  %v7734_v20 = vadd.f32 %v7474_v55, %v2968_v7  ;;  %v7737_v47 = vadd.f32 %v7489_v34, %v2969_v32  ;;  %v3060_v18 = vadd.f32 %v7545_v42, %v3012_v0  ;;  %v3034_v42 = vpop.permute.xlu0 %3033 }
 0x9c8   :  { %v9128_v8 = vperm.slane %v7305_v61, 6  ;;  %v3061_v17 = vadd.f32 %v7549_v12, %v3013_v40  ;;  %v3062_v37 = vadd.f32 %v7556_v11, %v3014_v14  ;;  %v7744_v22 = vadd.f32 %v7561_v13, %v3015_v4 }
 0x9c9   :  { %9498 = vst [vmem:[#allocation67_spill] sm:$0xff] %v7737_v47  ;;  %v9127_v63 = vperm.slane %v7310_v57, 6  ;;  %v3196_v55 = vmul.f32 %v9131_v48, %v7730_v49  ;;  %v3197_v34 = vmul.f32 %v9130_v56, %v7730_v49  ;;  %v7758_v12 = vmul.f32 %v9129_v60, %v7730_v49 }
 0x9ca   :  { %9499 = vst [vmem:[#allocation75_spill] sm:$0xff] %v7744_v22  ;;  %v9500_v11 = vperm.slane %v7294_v45, 5  ;;  %v9501_v7 = vperm.slane %v7298_v23, 5  ;;  %v3020_v32 = vadd.f32 %v7418_v50, %v7602_v10  ;;  %v3021_v0 = vadd.f32 %v7421_v46, %v7605_v30 }
 0x9cb   :  { %v3022_v25 = vadd.f32 %v7424_v62, %v7612_v16  ;;  %v7775_v40 = vmul.f32 %v9128_v8, %v7730_v49  ;;  %v9502_v14 = vperm.slane %v7302_v38, 5  ;;  %v3023_v52 = vadd.f32 %v7428_v58, %v7615_v51 }
 0x9cc   :  { %v3148_v13 = vmul.f32 %v9500_v11, %v7747_v2  ;;  %v3149_v5 = vmul.f32 %v9501_v7, %v7747_v2  ;;  %v9503_v50 = vperm.slane %v7294_v45, 3  ;;  %v7789_v46 = vmul.f32 %v9127_v63, %v7730_v49 }
 0x9cd   :  { %v7780_v4 = vmul.f32 %v9502_v14, %v7747_v2  ;;  %v9504_v62 = vperm.slane %v7305_v61, 5  ;;  %v9505_v16 = vperm.slane %v7298_v23, 3  ;;  %v9506_v33 = vperm.slane %v7302_v38, 3 }
 0x9ce   :  { %v3052_v10 = vmul.f32 %v9503_v50, %v3034_v42  ;;  %v9507_v58 = vperm.slane %v7310_v57, 5  ;;  %v9508_v7 = vperm.slane %v7387_v43, 5  ;;  %v9509_v50 = vperm.slane %v7305_v61, 3 }
 0x9cf   :  { %v7794_v30 = vmul.f32 %v9504_v62, %v7747_v2  ;;  %v3053_v41 = vmul.f32 %v9505_v16, %v3034_v42  ;;  %v3054_v11 = vmul.f32 %v9506_v33, %v3034_v42  ;;  %v3024_v8 = vadd.f32 %v7431_v24, %v7618_v53  ;;  %v7822_v53 = vpop.permute.xlu2 %3225  ;;  %v7836_v47 = vpop.permute.xlu0 %3173 }
 0x9d0   :  { %v3152_v51 = vmul.f32 %v9507_v58, %v7747_v2  ;;  %v7806_v14 = vmul.f32 %v9508_v7, %v7747_v2  ;;  %v3055_v63 = vmul.f32 %v9509_v50, %v3034_v42  ;;  %v3068_v62 = vadd.f32 %v3052_v10, %v3020_v32 }
 0x9d1   :  { %v3025_v16 = vadd.f32 %v7449_v44, %v7624_v27  ;;  %v3069_v33 = vadd.f32 %v3053_v41, %v3021_v0  ;;  %v3070_v60 = vadd.f32 %v3054_v11, %v3022_v25  ;;  %v3228_v48 = vperm.slane %v7294_v45, 7 }
 0x9d2   :  { %v3071_v56 = vadd.f32 %v3055_v63, %v3023_v52  ;;  %v3116_v58 = vadd.f32 %v7647_v54, %v3068_v62  ;;  %v3229_v7 = vperm.slane %v7298_v23, 7  ;;  %v9510_v9 = vperm.slane %v7310_v57, 3  ;;  %v7831_v62 = vpop.permute.xlu1 %3221 }
 0x9d3   :  { %v9511_v32 = vperm.slane %v7387_v43, 3  ;;  %v3117_v24 = vadd.f32 %v7652_v15, %v3069_v33  ;;  %v3230_v44 = vperm.slane %v7302_v38, 7  ;;  %v9512_v27 = vperm.slane %v7405_v3, 3 }
 0x9d4   :  { %v3056_v22 = vmul.f32 %v9510_v9, %v3034_v42  ;;  %v9513_v54 = vperm.slane %v7528_v35, 3  ;;  %v3164_v25 = vadd.f32 %v3148_v13, %v3116_v58  ;;  %v3231_v52 = vperm.slane %v7305_v61, 7 }
 0x9d5   :  { %v3057_v10 = vmul.f32 %v9511_v32, %v3034_v42  ;;  %v3058_v63 = vmul.f32 %v9512_v27, %v3034_v42  ;;  %v3118_v11 = vadd.f32 %v7695_v59, %v3070_v60  ;;  %v3165_v50 = vadd.f32 %v3149_v5, %v3117_v24  ;;  %v9515_v5 = vld [vmem:[#allocation50_spill] sm:$0xff]  ;;  %v9519_v24 = vld [vmem:[#allocation36_spill] sm:$0xff] }
 0x9d6   :  { %v3059_v0 = vmul.f32 %v9513_v54, %v3034_v42  ;;  %v3072_v41 = vadd.f32 %v3056_v22, %v3024_v8  ;;  %v3119_v15 = vadd.f32 %v7703_v26, %v3071_v56  ;;  %v3212_v33 = vadd.f32 %v3196_v55, %v3164_v25  ;;  %v9514_v22 = vld [vmem:[#allocation49_spill] sm:$0xff]  ;;  %v9520_v54 = vld [vmem:[#allocation83_spill] sm:$0xff] }
 0x9d7   :  { %v3073_v9 = vadd.f32 %v3057_v10, %v3025_v16  ;;  %v3244_v32 = vmul.f32 %v3228_v48, %v7822_v53  ;;  %v3245_v27 = vmul.f32 %v3229_v7, %v7822_v53  ;;  %v3213_v42 = vadd.f32 %v3197_v34, %v3165_v50  ;;  %v9522_v50 = vld [vmem:[#allocation61_spill] sm:$0xff] }
 0x9d8   :  { %v3246_v13 = vmul.f32 %v3230_v44, %v7822_v53  ;;  %v3108_v8 = vadd.f32 %v7501_v1, %v3060_v18  ;;  %v3109_v16 = vadd.f32 %v9514_v22, %v3061_v17  ;;  %v3247_v59 = vmul.f32 %v3231_v52, %v7822_v53 }
 0x9d9   :  { %v7843_v60 = vmul.f32 %v3228_v48, %v7831_v62  ;;  %v7846_v26 = vmul.f32 %v3229_v7, %v7831_v62  ;;  %v7849_v56 = vmul.f32 %v3230_v44, %v7831_v62  ;;  %v7851_v55 = vadd.f32 %v3244_v32, %v3212_v33 }
 0x9da   :  { %v7854_v34 = vmul.f32 %v3231_v52, %v7831_v62  ;;  %v3110_v1 = vadd.f32 %v9515_v5, %v3062_v37  ;;  %v9516_v18 = vperm.slane %v7294_v45, 6  ;;  %v9517_v48 = vperm.slane %v7298_v23, 6  ;;  %v9521_v52 = vld [vmem:[#allocation100_spill] sm:$0xff] }
 0x9db   :  { %v9518_v7 = vperm.slane %v7302_v38, 6  ;;  %v3026_v44 = vadd.f32 %v9519_v24, %v7627_v31  ;;  %v3027_v25 = vadd.f32 %v9520_v54, %v7629_v19  ;;  %v7872_v37 = vadd.f32 %v3245_v27, %v3213_v42  ;;  %v9523_v42 = vld [vmem:[#allocation55_spill] sm:$0xff] }
 0x9dc   :  { %v3188_v17 = vmul.f32 %v9516_v18, %v7836_v47  ;;  %v3189_v58 = vmul.f32 %v9517_v48, %v7836_v47  ;;  %v3156_v45 = vadd.f32 %v9521_v52, %v3108_v8  ;;  %v3157_v33 = vadd.f32 %v9522_v50, %v3109_v16 }
 0x9dd   :  { %v7866_v10 = vmul.f32 %v9518_v7, %v7836_v47  ;;  %v3091_v23 = vperm.slane %v7528_v35, 4  ;;  %v3074_v32 = vadd.f32 %v3058_v63, %v3026_v44  ;;  %v3075_v22 = vadd.f32 %v3059_v0, %v3027_v25 }
 0x9de   :  { %v3120_v38 = vadd.f32 %v7711_v6, %v3072_v41  ;;  %v3121_v5 = vadd.f32 %v7716_v39, %v3073_v9  ;;  %v3138_v31 = vperm.slane %v7405_v3, 5  ;;  %v3139_v19 = vperm.slane %v7528_v35, 5 }
 0x9df   :  { %v3107_v18 = vmul.f32 %v3091_v23, %v7632_v29  ;;  %v3166_v27 = vadd.f32 %v7780_v4, %v3118_v11  ;;  %v7884_v8 = vadd.f32 %v9523_v42, %v3110_v1  ;;  %v3122_v16 = vadd.f32 %v7723_v21, %v3074_v32 }
 0x9e0   :  { %v3167_v63 = vadd.f32 %v7794_v30, %v3119_v15  ;;  %v3168_v0 = vadd.f32 %v3152_v51, %v3120_v38  ;;  %v3154_v6 = vmul.f32 %v3138_v31, %v7747_v2  ;;  %v3169_v29 = vadd.f32 %v7806_v14, %v3121_v5  ;;  %v9526_v5 = vld [vmem:[#allocation25_spill] sm:$0xff] }
 0x9e1   :  { %v3123_v48 = vadd.f32 %v3107_v18, %v3075_v22  ;;  %v3185_v39 = vperm.slane %v7387_v43, 6  ;;  %v3155_v4 = vmul.f32 %v3139_v19, %v7747_v2  ;;  %v3186_v41 = vperm.slane %v7405_v3, 6 }
 0x9e2   :  { %v3187_v21 = vperm.slane %v7528_v35, 6  ;;  %v3214_v30 = vadd.f32 %v7758_v12, %v3166_v27  ;;  %v9524_v51 = vperm.slane %v7305_v61, 6  ;;  %v9525_v11 = vperm.slane %v7310_v57, 6 }
 0x9e3   :  { %v3170_v15 = vadd.f32 %v3154_v6, %v3122_v16  ;;  %v3215_v1 = vadd.f32 %v7775_v40, %v3167_v63  ;;  %v3171_v7 = vadd.f32 %v3155_v4, %v3123_v48  ;;  %v3201_v2 = vmul.f32 %v3185_v39, %v7730_v49  ;;  %v9529_v63 = vld [vmem:[#allocation30_spill] sm:$0xff] }
 0x9e4   :  { %v3191_v9 = vmul.f32 %v9524_v51, %v7836_v47  ;;  %v3192_v14 = vmul.f32 %v9525_v11, %v7836_v47  ;;  %v3232_v24 = vperm.slane %v7310_v57, 7  ;;  %v3233_v44 = vperm.slane %v7387_v43, 7  ;;  %v9530_v6 = vld [vmem:[#allocation90_spill] sm:$0xff]  ;;  %v9533_v11 = vld [vmem:[#allocation67_spill] sm:$0xff] }
 0x9e5   :  { %v3202_v12 = vmul.f32 %v3186_v41, %v7730_v49  ;;  %v3216_v61 = vadd.f32 %v7789_v46, %v3168_v0  ;;  %v3234_v54 = vperm.slane %v7405_v3, 7  ;;  %v9134_v25 = vperm.slane %v7528_v35, 7 }
 0x9e6   :  { %v3204_v52 = vadd.f32 %v3188_v17, %v3156_v45  ;;  %v3203_v40 = vmul.f32 %v3187_v21, %v7730_v49  ;;  %v3217_v50 = vadd.f32 %v3201_v2, %v3169_v29  ;;  %v7918_v32 = vadd.f32 %v3246_v13, %v3214_v30  ;;  %v9527_v45 = vld [vmem:[#allocation20_spill] sm:$0xff]  ;;  %v9535_v2 = vld [vmem:[#allocation58_spill] sm:$0xff] }
 0x9e7   :  { %v3218_v57 = vadd.f32 %v3202_v12, %v3170_v15  ;;  %v3248_v22 = vmul.f32 %v3232_v24, %v7822_v53  ;;  %v7921_v38 = vadd.f32 %v3247_v59, %v3215_v1  ;;  %v7925_v46 = vmul.f32 %v7851_v55, %v9526_v5  ;;  %v9534_v15 = vld [vmem:[#allocation47_spill] sm:$0xff] }
 0x9e8   :  { %v3205_v18 = vadd.f32 %v3189_v58, %v3157_v33  ;;  %v3219_v27 = vadd.f32 %v3203_v40, %v3171_v7  ;;  %v3249_v17 = vmul.f32 %v3233_v44, %v7822_v53  ;;  %v7932_v49 = vmul.f32 %v7872_v37, %v9527_v45  ;;  %v9528_v58 = vld [vmem:[#allocation46_spill] sm:$0xff] }
 0x9e9   :  { %v3250_v13 = vmul.f32 %v3234_v54, %v7822_v53  ;;  %v3251_v59 = vmul.f32 %v9134_v25, %v7822_v53  ;;  %v7940_v42 = vadd.f32 %v3248_v22, %v3216_v61  ;;  %v3018_v33 = vadd.f32 %v9528_v58, %v7726_v28  ;;  %v9531_v53 = vld [vmem:[#allocation23_spill] sm:$0xff]  ;;  %v9532_v28 = vld [vmem:[#allocation53_spill] sm:$0xff]  ;;  %v9536_v61 = vld [vmem:[#allocation92_spill] sm:$0xff] }
 0x9ea   :  { %v7944_v16 = vadd.f32 %v3249_v17, %v3217_v50  ;;  %v7948_v0 = vmul.f32 %v7918_v32, %v9529_v63  ;;  %v3293_v48 = vadd.f32 %v7932_v49, %v7925_v46  ;;  %v3019_v29 = vadd.f32 %v9530_v6, %v7728_v36  ;;  %v9537_v50 = vld [vmem:[#allocation45_spill] sm:$0xff]  ;;  %v9538_v22 = vld [vmem:[#allocation75_spill] sm:$0xff]  ;;  %v9540_v58 = vld [vmem:[#allocation56_spill] sm:$0xff] }
 0x9eb   :  { %v7954_v4 = vadd.f32 %v3250_v13, %v3218_v57  ;;  %v7958_v30 = vmul.f32 %v7921_v38, %v9531_v53  ;;  %v3064_v51 = vadd.f32 %v9532_v28, %v7734_v20  ;;  %v3065_v1 = vadd.f32 %v9534_v15, %v9533_v11  ;;  %v9539_v17 = vld [vmem:[#allocation57_spill] sm:$0xff]  ;;  %v9542_v28 = vld [vmem:[#allocation34_spill] sm:$0xff] }
 0x9ec   :  { %v3294_v7 = vadd.f32 %v3293_v48, %v7948_v0  ;;  %v3066_v12 = vadd.f32 %v9535_v2, %v3018_v33  ;;  %v3067_v40 = vadd.f32 %v9536_v61, %v3019_v29  ;;  %v3099_v36 = vmul.f32 %v3091_v23, %v9537_v50  ;;  %v9541_v25 = vld [vmem:[#allocation65_spill] sm:$0xff]  ;;  %v9543_v33 = vld [vmem:[#allocation64_spill] sm:$0xff]  ;;  %v9544_v2 = vld [vmem:[#allocation66_spill] sm:$0xff] }
 0x9ed   :  { %v7968_v57 = vadd.f32 %v3251_v59, %v3219_v27  ;;  %v3111_v13 = vadd.f32 %v9539_v17, %v9538_v22  ;;  %v3112_v6 = vadd.f32 %v9540_v58, %v3064_v51  ;;  %v3113_v20 = vadd.f32 %v9541_v25, %v3065_v1  ;;  %v9545_v27 = vld [vmem:[#allocation68_spill] sm:$0xff]  ;;  %v9546_v61 = vld [vmem:[#allocation102_spill] sm:$0xff]  ;;  %v9547_v51 = vld [vmem:[#allocation73_spill] sm:$0xff] }
 0x9ee   :  { %v7976_v11 = vmul.f32 %v7940_v42, %v9542_v28  ;;  %v3295_v48 = vadd.f32 %v3294_v7, %v7958_v30  ;;  %v3114_v15 = vadd.f32 %v9543_v33, %v3066_v12  ;;  %v3115_v29 = vadd.f32 %v3099_v36, %v3067_v40  ;;  %v9548_v1 = vld [vmem:[#allocation28_spill] sm:$0xff]  ;;  %v9549_v58 = vld [vmem:[#allocation37_spill] sm:$0xff] }
 0x9ef   :  { %v3146_v23 = vmul.f32 %v3138_v31, %v9544_v2  ;;  %v3159_v59 = vadd.f32 %v9545_v27, %v3111_v13  ;;  %v3160_v50 = vadd.f32 %v9546_v61, %v3112_v6  ;;  %v3161_v22 = vadd.f32 %v9547_v51, %v3113_v20 }
 0x9f0   :  { %v3206_v25 = vadd.f32 %v7866_v10, %v7884_v8  ;;  %v7990_v17 = vmul.f32 %v7944_v16, %v9548_v1  ;;  %v3296_v7 = vadd.f32 %v3295_v48, %v7976_v11  ;;  %v3147_v12 = vmul.f32 %v3139_v19, %v9544_v2  ;;  %v9550_v10 = vld [vmem:[#allocation33_spill] sm:$0xff] }
 0x9f1   :  { %v3162_v31 = vadd.f32 %v3146_v23, %v3114_v15  ;;  %v3193_v40 = vmul.f32 %v3185_v39, %v7836_v47  ;;  %v3207_v36 = vadd.f32 %v3191_v9, %v3159_v59  ;;  %v3208_v13 = vadd.f32 %v3192_v14, %v3160_v50 }
 0x9f2   :  { %v7999_v6 = vmul.f32 %v7954_v4, %v9549_v58  ;;  %v8003_v8 = vmul.f32 %v7968_v57, %v9550_v10  ;;  %v3297_v20 = vadd.f32 %v3296_v7, %v7990_v17  ;;  %v3163_v48 = vadd.f32 %v3147_v12, %v3115_v29 }
 0x9f3   :  { %v3194_v19 = vmul.f32 %v3186_v41, %v7836_v47  ;;  %v3209_v33 = vadd.f32 %v3193_v40, %v3161_v22  ;;  %v3240_v39 = vmul.f32 %v3232_v24, %v7831_v62  ;;  %v8011_v9 = vadd.f32 %v7843_v60, %v3204_v52 }
 0x9f4   :  { %v3298_v14 = vadd.f32 %v3297_v20, %v7999_v6  ;;  %v8015_v15 = vadd.f32 %v7846_v26, %v3205_v18  ;;  %v8018_v2 = vadd.f32 %v7849_v56, %v3206_v25  ;;  %v8021_v29 = vadd.f32 %v7854_v34, %v3207_v36 }
 0x9f5   :  { %v3195_v41 = vmul.f32 %v3187_v21, %v7836_v47  ;;  %v3210_v23 = vadd.f32 %v3194_v19, %v3162_v31  ;;  %v3241_v60 = vmul.f32 %v3233_v44, %v7831_v62  ;;  %v8029_v24 = vadd.f32 %v3240_v39, %v3208_v13 }
 0x9f6   :  { %v3299_v26 = vadd.f32 %v3298_v14, %v8003_v8  ;;  %v3268_v56 = vmul.f32 %v8011_v9, %v9526_v5  ;;  %v3269_v34 = vmul.f32 %v8015_v15, %v9527_v45  ;;  %v3270_v52 = vmul.f32 %v8018_v2, %v9529_v63 }
 0x9f7   :  { %v3211_v18 = vadd.f32 %v3195_v41, %v3163_v48  ;;  %v3242_v47 = vmul.f32 %v3234_v54, %v7831_v62  ;;  %v8041_v43 = vadd.f32 %v3241_v60, %v3209_v33  ;;  %v3271_v21 = vmul.f32 %v8021_v29, %v9531_v53 }
 0x9f8   :  { %3300 = vadd.xlane.f32.xlu0 %v3299_v26  ;;  %v3284_v44 = vadd.f32 %v3269_v34, %v3268_v56  ;;  %v3302_v5 = vmul.f32 %v3268_v56, %v8011_v9  ;;  %v3303_v27 = vmul.f32 %v3269_v34, %v8015_v15  ;;  %v9551_v45 = vperm.slane %v7528_v35, 7 }
 0x9f9   :  { %v8050_v59 = vadd.f32 %v3242_v47, %v3210_v23  ;;  %v3272_v3 = vmul.f32 %v8029_v24, %v9542_v28  ;;  %v3304_v61 = vmul.f32 %v3270_v52, %v8018_v2  ;;  %v3310_v53 = vmul.f32 %v7925_v46, %v7851_v55 }
 0x9fa   :  { %v3243_v63 = vmul.f32 %v9551_v45, %v7831_v62  ;;  %v3285_v54 = vadd.f32 %v3284_v44, %v3270_v52  ;;  %v3318_v50 = vadd.f32 %v3303_v27, %v3302_v5  ;;  %v3311_v22 = vmul.f32 %v7932_v49, %v7872_v37 }
 0x9fb   :  { %v3273_v35 = vmul.f32 %v8041_v43, %v9548_v1  ;;  %v3305_v25 = vmul.f32 %v3271_v21, %v8021_v29  ;;  %v3312_v28 = vmul.f32 %v7948_v0, %v7918_v32  ;;  %v3274_v31 = vmul.f32 %v8050_v59, %v9549_v58 }
 0x9fc   :  { %v8055_v51 = vadd.f32 %v3243_v63, %v3211_v18  ;;  %v3286_v62 = vadd.f32 %v3285_v54, %v3271_v21  ;;  %v3319_v7 = vadd.f32 %v3318_v50, %v3304_v61  ;;  %v3327_v12 = vadd.f32 %v3311_v22, %v3310_v53 }
 0x9fd   :  { %v3306_v46 = vmul.f32 %v3272_v3, %v8029_v24  ;;  %v3313_v49 = vmul.f32 %v7958_v30, %v7921_v38  ;;  %v3307_v48 = vmul.f32 %v3273_v35, %v8041_v43  ;;  %v3314_v0 = vmul.f32 %v7976_v11, %v7940_v42 }
 0x9fe   :  { %v3287_v40 = vadd.f32 %v3286_v62, %v3272_v3  ;;  %v3320_v36 = vadd.f32 %v3319_v7, %v3305_v25  ;;  %v3328_v13 = vadd.f32 %v3327_v12, %v3312_v28  ;;  %v3275_v1 = vmul.f32 %v8055_v51, %v9550_v10  ;;  %v4386_v28 = vld [vmem:[%s8985_s2] sm:$0xff] }
 0x9ff   :  { %v3308_v39 = vmul.f32 %v3274_v31, %v8050_v59  ;;  %v3315_v41 = vmul.f32 %v7990_v17, %v7944_v16  ;;  %v3316_v34 = vmul.f32 %v7999_v6, %v7954_v4  ;;  %v3317_v52 = vmul.f32 %v8003_v8, %v7968_v57 }
 0xa00   :  { %v3288_v20 = vadd.f32 %v3287_v40, %v3273_v35  ;;  %v3321_v19 = vadd.f32 %v3320_v36, %v3306_v46  ;;  %v3329_v33 = vadd.f32 %v3328_v13, %v3313_v49  ;;  %v3309_v60 = vmul.f32 %v3275_v1, %v8055_v51 }
 0xa01   :  { %v4464_v21 = vmov 31   ;;  %v4466_v40 = vmov 32  }
 0xa02   :  { %v3289_v58 = vadd.f32 %v3288_v20, %v3274_v31  ;;  %v3322_v14 = vadd.f32 %v3321_v19, %v3307_v48  ;;  %v3330_v30 = vadd.f32 %v3329_v33, %v3314_v0  ;;  %4294 = vset.pattern.permute.xlu0 %v4464_v21  ;;  %4295 = vset.pattern.permute.xlu1 %v4466_v40 }
 0xa04   :  { %v3290_v23 = vadd.f32 %v3289_v58, %v3275_v1  ;;  %v3323_v10 = vadd.f32 %v3322_v14, %v3308_v39  ;;  %v3331_v26 = vadd.f32 %v3330_v30, %v3315_v41 }
 0xa06   :  { %3291 = vadd.xlane.f32.xlu1 %v3290_v23  ;;  %v3324_v56 = vadd.f32 %v3323_v10, %v3309_v60  ;;  %v3332_v11 = vadd.f32 %v3331_v26, %v3316_v34 }
 0xa08   :  { %3325 = vadd.xlane.f32.xlu2 %v3324_v56  ;;  %v3333_v18 = vadd.f32 %v3332_v11, %v3317_v52 }
 0xa0e   :  { %3334 = vadd.xlane.f32.xlu1 %v3333_v18 }
 0xa6b   :  { %v3301_v17 = vpop.xlane.xlu0 %3300 }
 0xa79   :  { %v3292_v47 = vpop.xlane.xlu1 %3291 }
 0xa7a   :  { %v3336_v44 = vadd.f32 %v3301_v17, %v3292_v47 }
 0xa7b   :  { %v3326_v27 = vpop.xlane.xlu2 %3325 }
 0xa7c   :  { %v3338_v5 = vmul.f32 0.0009765625, %v3336_v44 }
 0xa7e   :  { %v3340_v3 = vmul.f32 %v3338_v5, %v3338_v5 }
 0xa81   :  { %v3335_v45 = vpop.xlane.xlu1 %3334 }
 0xa82   :  { %v3337_v63 = vadd.f32 %v3335_v45, %v3326_v27 }
 0xa84   :  { %v3339_v54 = vmul.f32 0.0009765625, %v3337_v63 }
 0xa86   :  { %v3341_v61 = vsub.f32 %v3339_v54, %v3340_v3 }
 0xa88   :  { %v3342_v6 = vmax.f32 %v3341_v61, 0.0 }
 0xa8a   :  { %v3343_v50 = vadd.f32 0.001, %v3342_v6 }
 0xa8c   :  { %4333 = vrsqrt.f32 %v3343_v50  ;;  %vm3350_vm7 = vweird.f32 %v3343_v50 }
 0xa92   :  { %v4334_v53 = vpop.eup %4333 }
 0xa93   :  { %v3345_v22 = vmul.f32 %v4334_v53, %v3343_v50  ;;  %vm3351_vm1 = vweird.f32 %v4334_v53 }
 0xa94   :  { %vm3352_vm8 = vmor %vm3350_vm7, %vm3351_vm1 }
 0xa95   :  { %v3346_v8 = vmul.f32 %v4334_v53, %v3345_v22 }
 0xa97   :  { %v3347_v35 = vmul.f32 0.5, %v3346_v8 }
 0xa99   :  { %v3348_v62 = vsub.f32 1.5, %v3347_v35 }
 0xa9b   :  { %v3349_v25 = vmul.f32 %v4334_v53, %v3348_v62 }
 0xa9d   :  { %v3353_v7 = vsel %vm3352_vm8, %v4334_v53, %v3349_v25 }
 0xa9e   :  { %v3354_v12 = vmul.f32 %v4386_v28, %v3353_v7 }
 0xaa0   :  { %3363 = vperm.xlu0 %4294, %v3354_v12   ;;  %v3355_v31 = vmul.f32 %v3354_v12, %v3338_v5 }
 0xaa2   :  { %3357 = vrot.lane.b32.xlu2 %v3355_v31, %s4465_s26 }
 0xaa8   :  { %4296 = vset.pattern.permute.xlu0 %v4466_v40 }
 0xafc   :  { %v3358_v46 = vpop.permute.xlu2 %3357 }
 0xafd   :  { %v3360_v36 = vsub.f32 %v4386_v28, %v3358_v46 }
 0xaff   :  { %3384 = vperm.xlu1 %4295, %v3360_v36  }
 0xb12   :  { %v3364_v49 = vpop.permute.xlu0 %3363 }
 0xb13   :  { %v3366_v1 = vmul.f32 %v3364_v49, %v8011_v9  ;;  %v3367_v20 = vmul.f32 %v3364_v49, %v8015_v15  ;;  %v3368_v48 = vmul.f32 %v3364_v49, %v8018_v2  ;;  %v3369_v58 = vmul.f32 %v3364_v49, %v8021_v29 }
 0xb14   :  { %v3370_v14 = vmul.f32 %v3364_v49, %v8029_v24  ;;  %v3371_v41 = vmul.f32 %v3364_v49, %v8041_v43  ;;  %v3372_v30 = vmul.f32 %v3364_v49, %v8050_v59  ;;  %v3373_v29 = vmul.f32 %v3364_v49, %v8055_v51 }
 0xb15   :  { %v3374_v23 = vmul.f32 %v3364_v49, %v7851_v55  ;;  %v3375_v60 = vmul.f32 %v3364_v49, %v7872_v37  ;;  %v3376_v26 = vmul.f32 %v3364_v49, %v7918_v32  ;;  %v3377_v56 = vmul.f32 %v3364_v49, %v7921_v38 }
 0xb16   :  { %v3378_v43 = vmul.f32 %v3364_v49, %v7940_v42  ;;  %v3379_v59 = vmul.f32 %v3364_v49, %v7944_v16  ;;  %v3380_v55 = vmul.f32 %v3364_v49, %v7954_v4  ;;  %v3381_v51 = vmul.f32 %v3364_v49, %v7968_v57 }
 0xb71   :  { %v8087_v13 = vpop.permute.xlu1 %3384 }
 0xb72   :  { %v8093_v19 = vadd.f32 %v8087_v13, %v3366_v1  ;;  %v8096_v0 = vadd.f32 %v8087_v13, %v3367_v20  ;;  %v8099_v33 = vadd.f32 %v8087_v13, %v3368_v48  ;;  %v8103_v39 = vadd.f32 %v8087_v13, %v3369_v58 }
 0xb73   :  { %v8136_v32 = vadd.f32 %v8087_v13, %v3370_v14  ;;  %v8143_v52 = vadd.f32 %v8087_v13, %v3371_v41  ;;  %v8146_v42 = vadd.f32 %v8087_v13, %v3372_v30  ;;  %v8149_v16 = vadd.f32 %v8087_v13, %v3373_v29 }
 0xb74   :  { %v8106_v9 = vmul.f32 0.70710677, %v8093_v19  ;;  %v8109_v15 = vmul.f32 0.70710677, %v8096_v0  ;;  %v8112_v2 = vmul.f32 0.70710677, %v8099_v33  ;;  %v8159_v21 = vadd.f32 %v8087_v13, %v3374_v23 }
 0xb75   :  { %v8125_v34 = vmul.f32 0.70710677, %v8103_v39  ;;  %v8165_v45 = vadd.f32 %v8087_v13, %v3375_v60  ;;  %v8168_v61 = vadd.f32 %v8087_v13, %v3376_v26  ;;  %v8176_v25 = vadd.f32 %v8087_v13, %v3377_v56 }
 0xb76   :  { %v3435_v10 = vmul.f32 %v8106_v9, %v8106_v9  ;;  %v3475_v24 = vmul.f32 %v8109_v15, %v8109_v15  ;;  %v3515_v37 = vmul.f32 %v8112_v2, %v8112_v2  ;;  %v8182_v31 = vadd.f32 %v8087_v13, %v3378_v43 }
 0xb77   :  { %v3555_v17 = vmul.f32 %v8125_v34, %v8125_v34  ;;  %v8185_v49 = vadd.f32 %v8087_v13, %v3379_v59  ;;  %v8188_v58 = vadd.f32 %v8087_v13, %v3380_v55  ;;  %v8198_v26 = vadd.f32 %v8087_v13, %v3381_v51 }
 0xb78   :  { %v8138_v38 = vmin.f32 %v3435_v10, 16.0  ;;  %v8140_v11 = vmin.f32 %v3475_v24, 16.0  ;;  %v8151_v4 = vmin.f32 %v3515_v37, 16.0  ;;  %9552 = vst [vmem:[#allocation69_spill] sm:$0xff] %v8182_v31  ;;  %v8201_v56 = vmul.f32 0.5, %v8093_v19 }
 0xb79   :  { %v8173_v62 = vmin.f32 %v3555_v17, 16.0  ;;  %9553 = vst [vmem:[#allocation63_spill] sm:$0xff] %v8185_v49  ;;  %v8204_v24 = vmul.f32 0.5, %v8096_v0  ;;  %v8207_v59 = vmul.f32 0.5, %v8099_v33  ;;  %v8217_v33 = vmul.f32 0.5, %v8103_v39 }
 0xb7a   :  { %v3437_v57 = vmul.f32 2.1237322e-06, %v8138_v38  ;;  %v3448_v18 = vmul.f32 3.8918573e-05, %v8138_v38  ;;  %v3477_v47 = vmul.f32 2.1237322e-06, %v8140_v11 }
 0xb7b   :  { %v3488_v44 = vmul.f32 3.8918573e-05, %v8140_v11  ;;  %v3517_v5 = vmul.f32 2.1237322e-06, %v8151_v4  ;;  %v3528_v27 = vmul.f32 3.8918573e-05, %v8151_v4 }
 0xb7c   :  { %v3438_v63 = vadd.f32 0.00028619796, %v3437_v57  ;;  %v3449_v3 = vadd.f32 0.001143296, %v3448_v18  ;;  %v3478_v54 = vadd.f32 0.00028619796, %v3477_v47 }
 0xb7d   :  { %v3489_v6 = vadd.f32 0.001143296, %v3488_v44  ;;  %v3518_v50 = vadd.f32 0.00028619796, %v3517_v5  ;;  %v3529_v53 = vadd.f32 0.001143296, %v3528_v27 }
 0xb7e   :  { %v3439_v22 = vmul.f32 %v3438_v63, %v8138_v38  ;;  %v3450_v8 = vmul.f32 %v3449_v3, %v8138_v38  ;;  %v3479_v35 = vmul.f32 %v3478_v54, %v8140_v11  ;;  %9554 = vst [vmem:[#allocation84_spill] sm:$0xff] %v8188_v58  ;;  %v3557_v30 = vmul.f32 2.1237322e-06, %v8173_v62 }
 0xb7f   :  { %v3490_v7 = vmul.f32 %v3489_v6, %v8140_v11  ;;  %v3519_v28 = vmul.f32 %v3518_v50, %v8151_v4  ;;  %v3530_v12 = vmul.f32 %v3529_v53, %v8151_v4  ;;  %v3568_v10 = vmul.f32 3.8918573e-05, %v8173_v62  ;;  %9555 = vst [vmem:[#allocation86_spill] sm:$0xff] %v8198_v26 }
 0xb80   :  { %v3440_v40 = vadd.f32 0.0036580483, %v3439_v22  ;;  %v3451_v46 = vadd.f32 0.014752088, %v3450_v8  ;;  %v3480_v36 = vadd.f32 0.0036580483, %v3479_v35 }
 0xb81   :  { %v3491_v1 = vadd.f32 0.014752088, %v3490_v7  ;;  %v3520_v20 = vadd.f32 0.0036580483, %v3519_v28  ;;  %v3531_v48 = vadd.f32 0.014752088, %v3530_v12 }
 0xb82   :  { %v3441_v14 = vmul.f32 %v3440_v40, %v8138_v38  ;;  %v3452_v41 = vmul.f32 %v3451_v46, %v8138_v38  ;;  %v3481_v29 = vmul.f32 %v3480_v36, %v8140_v11  ;;  %v8211_v18 = vmul.f32 0.70710677, %v8136_v32 }
 0xb83   :  { %v3492_v23 = vmul.f32 %v3491_v1, %v8140_v11  ;;  %v3532_v60 = vmul.f32 %v3531_v48, %v8151_v4  ;;  %v3521_v37 = vmul.f32 %v3520_v20, %v8151_v4  ;;  %v3558_v51 = vadd.f32 0.00028619796, %v3557_v30 }
 0xb84   :  { %v3453_v43 = vadd.f32 0.112945676, %v3452_v41  ;;  %v3442_v47 = vadd.f32 0.05243302, %v3441_v14  ;;  %v3482_v19 = vadd.f32 0.05243302, %v3481_v29  ;;  %v3595_v39 = vmul.f32 %v8211_v18, %v8211_v18 }
 0xb85   :  { %v3493_v55 = vadd.f32 0.112945676, %v3492_v23  ;;  %v3533_v57 = vadd.f32 0.112945676, %v3532_v60  ;;  %v3569_v44 = vadd.f32 0.001143296, %v3568_v10  ;;  %v3559_v63 = vmul.f32 %v3558_v51, %v8173_v62 }
 0xb86   :  { %v3454_v13 = vmul.f32 %v3453_v43, %v8138_v38  ;;  %v8220_v5 = vmul.f32 0.5, %v8136_v32  ;;  %v3522_v54 = vadd.f32 0.05243302, %v3521_v37  ;;  %v3443_v53 = vmul.f32 %v3442_v47, %v8138_v38 }
 0xb87   :  { %v3494_v17 = vmul.f32 %v3493_v55, %v8140_v11  ;;  %v3534_v0 = vmul.f32 %v3533_v57, %v8151_v4  ;;  %v3570_v50 = vmul.f32 %v3569_v44, %v8173_v62  ;;  %v3560_v8 = vadd.f32 0.0036580483, %v3559_v63 }
 0xb88   :  { %v3455_v27 = vadd.f32 0.4994258, %v3454_v13  ;;  %v3483_v35 = vmul.f32 %v3482_v19, %v8140_v11  ;;  %v8232_v12 = vmul.f32 0.5, %v8143_v52  ;;  %v8235_v40 = vmul.f32 0.5, %v8146_v42 }
 0xb89   :  { %v3495_v3 = vadd.f32 0.4994258, %v3494_v17  ;;  %v3535_v6 = vadd.f32 0.4994258, %v3534_v0  ;;  %v3571_v28 = vadd.f32 0.014752088, %v3570_v50  ;;  %v3523_v14 = vmul.f32 %v3522_v54, %v8151_v4 }
 0xb8a   :  { %v3456_v22 = vmul.f32 %v3455_v27, %v8138_v38  ;;  %v8238_v46 = vmul.f32 0.5, %v8149_v16  ;;  %v8243_v1 = vmul.f32 0.5, %v8159_v21  ;;  %v8246_v20 = vmul.f32 0.70710677, %v8143_v52 }
 0xb8b   :  { %v3496_v32 = vmul.f32 %v3495_v3, %v8140_v11  ;;  %v3536_v7 = vmul.f32 %v3535_v6, %v8151_v4  ;;  %v3444_v41 = vadd.f32 0.18741608, %v3443_v53  ;;  %v3561_v30 = vmul.f32 %v3560_v8, %v8173_v62 }
 0xb8c   :  { %v8240_v36 = vadd.f32 1.0, %v3456_v22  ;;  %v8253_v29 = vmin.f32 %v3595_v39, 16.0  ;;  %v3484_v23 = vadd.f32 0.18741608, %v3483_v35  ;;  %v3572_v10 = vmul.f32 %v3571_v28, %v8173_v62 }
 0xb8d   :  { %v8248_v48 = vadd.f32 1.0, %v3496_v32  ;;  %v8256_v60 = vadd.f32 1.0, %v3536_v7  ;;  %v8260_v52 = vmul.f32 0.5, %v8165_v45  ;;  %v8263_v43 = vmul.f32 0.5, %v8168_v61 }
 0xb8e   :  { %4335 = vrcp.f32 %v8240_v36  ;;  %v8266_v55 = vmul.f32 0.5, %v8176_v25  ;;  %v8269_v37 = vmul.f32 0.70710677, %v8146_v42  ;;  %v8272_v57 = vmul.f32 0.70710677, %v8149_v16 }
 0xb8f   :  { %4337 = vrcp.f32 %v8248_v48  ;;  %9556 = vst [vmem:[#allocation93_spill] sm:$0xff] %v8260_v52  ;;  %v8275_v47 = vmul.f32 0.70710677, %v8159_v21  ;;  %v3524_v13 = vadd.f32 0.18741608, %v3523_v14  ;;  %v3635_v51 = vmul.f32 %v8246_v20, %v8246_v20 }
 0xb90   :  { %9557 = vst [vmem:[#allocation95_spill] sm:$0xff] %v8263_v43  ;;  %v8280_v19 = vmul.f32 0.70710677, %v8165_v45  ;;  %v8283_v17 = vmul.f32 0.70710677, %v8168_v61  ;;  %v3445_v0 = vmul.f32 %v3444_v41, %v8138_v38  ;;  %v3485_v44 = vmul.f32 %v3484_v23, %v8140_v11 }
 0xb91   :  { %9558 = vst [vmem:[#allocation70_spill] sm:$0xff] %v8266_v55  ;;  %v3562_v42 = vadd.f32 0.05243302, %v3561_v30  ;;  %4339 = vrcp.f32 %v8256_v60  ;;  %v3573_v16 = vadd.f32 0.112945676, %v3572_v10  ;;  %v3525_v54 = vmul.f32 %v3524_v13, %v8151_v4 }
 0xb92   :  { %v3597_v21 = vmul.f32 2.1237322e-06, %v8253_v29  ;;  %v8292_v63 = vmul.f32 0.70710677, %v8176_v25  ;;  %v8295_v45 = vmul.f32 0.70710677, %v8182_v31  ;;  %v3675_v14 = vmul.f32 %v8269_v37, %v8269_v37 }
 0xb93   :  { %v3563_v61 = vmul.f32 %v3562_v42, %v8173_v62  ;;  %v3608_v38 = vmul.f32 3.8918573e-05, %v8253_v29  ;;  %v8302_v11 = vmul.f32 0.70710677, %v8185_v49  ;;  %v3574_v6 = vmul.f32 %v3573_v16, %v8173_v62 }
 0xb94   :  { %v8289_v27 = vpop.eup %4335  ;;  %v8306_v50 = vmin.f32 %v3635_v51, 16.0  ;;  %v8309_v25 = vmul.f32 0.70710677, %v8188_v58  ;;  %v3446_v53 = vadd.f32 1.1283791, %v3445_v0  ;;  %v8322_v41 = vmul.f32 %v8272_v57, %v8272_v57 }
 0xb95   :  { %v8299_v3 = vpop.eup %4337  ;;  %v3459_v22 = vmul.f32 %v8289_v27, %v8240_v36  ;;  %v3609_v8 = vadd.f32 0.001143296, %v3608_v38  ;;  %v3486_v39 = vadd.f32 1.1283791, %v3485_v44  ;;  %v3575_v32 = vadd.f32 0.4994258, %v3574_v6 }
 0xb96   :  { %v3499_v35 = vmul.f32 %v8299_v3, %v8248_v48  ;;  %v3598_v7 = vadd.f32 0.00028619796, %v3597_v21  ;;  %v8316_v4 = vmul.f32 0.70710677, %v8198_v26  ;;  %v3564_v28 = vadd.f32 0.18741608, %v3563_v61 }
 0xb97   :  { %v8324_v30 = vpop.eup %4339  ;;  %v3526_v23 = vadd.f32 1.1283791, %v3525_v54  ;;  %v3576_v10 = vmul.f32 %v3575_v32, %v8173_v62  ;;  %v3610_v13 = vmul.f32 %v3609_v8, %v8253_v29  ;;  %v3637_v51 = vmul.f32 2.1237322e-06, %v8306_v50 }
 0xb98   :  { %v8330_v0 = vmul.f32 %v3446_v53, %v8106_v9  ;;  %v3460_v42 = vsub.f32 1.0, %v3459_v22  ;;  %v3467_v44 = vand.u32 2147483647, %v8240_v36  ;;  %v3469_v16 = vand.u32 2147483648, %v8240_v36 }
 0xb99   :  { %v8335_v21 = vmul.f32 %v3486_v39, %v8109_v15  ;;  %v3500_v61 = vsub.f32 1.0, %v3499_v35  ;;  %v8337_v38 = vadd.f32 1.0, %v3576_v10  ;;  %v3599_v54 = vmul.f32 %v3598_v7, %v8253_v29 }
 0xb9a   :  { %vm3463_vm9 = vweird.f32 %v8240_v36  ;;  %v3509_v6 = vand.u32 2147483648, %v8248_v48  ;;  %v3539_v9 = vmul.f32 %v8324_v30, %v8256_v60  ;;  %v3565_v53 = vmul.f32 %v3564_v28, %v8173_v62 }
 0xb9b   :  { %v3611_v22 = vadd.f32 0.014752088, %v3610_v13  ;;  %vm3503_vm10 = vweird.f32 %v8248_v48  ;;  %v3549_v15 = vand.u32 2147483648, %v8256_v60  ;;  %4341 = vrcp.f32 %v8337_v38 }
 0xb9c   :  { %v3638_v8 = vadd.f32 0.00028619796, %v3637_v51  ;;  %v3461_v39 = vmul.f32 %v8289_v27, %v3460_v42  ;;  %v3470_v35 = vor.u32 1.1754944e-38, %v3469_v16  ;;  %v3507_v32 = vand.u32 2147483647, %v8248_v48 }
 0xb9d   :  { %v8351_v7 = vmul.f32 %v3526_v23, %v8112_v2  ;;  %v3501_v10 = vmul.f32 %v8299_v3, %v3500_v61  ;;  %v3547_v62 = vand.u32 2147483647, %v8256_v60  ;;  %v3600_v28 = vadd.f32 0.0036580483, %v3599_v54 }
 0xb9e   :  { %v8355_v13 = vmin.f32 %v3675_v14, 16.0  ;;  %v3510_v26 = vor.u32 1.1754944e-38, %v3509_v6  ;;  %v3540_v58 = vsub.f32 1.0, %v3539_v9  ;;  %v3566_v55 = vadd.f32 1.1283791, %v3565_v53 }
 0xb9f   :  { %v3612_v51 = vmul.f32 %v3611_v22, %v8253_v29  ;;  %vm3464_vm11 = vweird.f32 %v8289_v27  ;;  %vm8359_vm12 = vcmp.eq.f32.partialorder %v3467_v44, 8.507059e+37  ;;  %vm3504_vm13 = vweird.f32 %v8299_v3 }
 0xba0   :  { %v3550_v2 = vor.u32 1.1754944e-38, %v3549_v15  ;;  %v3639_v23 = vmul.f32 %v3638_v8, %v8306_v50  ;;  %v3462_v16 = vadd.f32 %v8289_v27, %v3461_v39  ;;  %vm8366_vm14 = vcmp.eq.f32.partialorder %v3507_v32, 8.507059e+37  ;;  %vm8389_vm2 = vmor %vm3463_vm9, %vm3464_vm11 }
 0xba1   :  { %vm3543_vm15 = vweird.f32 %v8256_v60  ;;  %vm3544_vm0 = vweird.f32 %v8324_v30  ;;  %v3613_v61 = vadd.f32 0.112945676, %v3612_v51  ;;  %v3648_v44 = vmul.f32 3.8918573e-05, %v8306_v50  ;;  %v8373_v54 = vpop.eup %4341  ;;  %vm8402_vm3 = vmor %vm3503_vm10, %vm3504_vm13 }
 0xba2   :  { %v3502_v6 = vadd.f32 %v8299_v3, %v3501_v10  ;;  %v3601_v9 = vmul.f32 %v3600_v28, %v8253_v29  ;;  %v3677_v53 = vmul.f32 2.1237322e-06, %v8355_v13  ;;  %v3688_v22 = vmul.f32 3.8918573e-05, %v8355_v13  ;;  %vm8434_vm5 = vmor %vm3543_vm15, %vm3544_vm0 }
 0xba3   :  { %v3541_v15 = vmul.f32 %v8324_v30, %v3540_v58  ;;  %v8381_v8 = vmul.f32 %v3566_v55, %v8125_v34  ;;  %v3587_v39 = vand.u32 2147483647, %v8337_v38  ;;  %v3614_v32 = vmul.f32 %v3613_v61, %v8253_v29 }
 0xba4   :  { %v3579_v28 = vmul.f32 %v8373_v54, %v8337_v38  ;;  %v3640_v51 = vadd.f32 0.0036580483, %v3639_v23  ;;  %v3649_v58 = vadd.f32 0.001143296, %v3648_v44  ;;  %v3678_v49 = vadd.f32 0.00028619796, %v3677_v53 }
 0xba5   :  { %v3466_v34 = vsel %vm8389_vm2, %v8289_v27, %v3462_v16  ;;  %vm8406_vm4 = vcmp.eq.f32.partialorder %v3547_v62, 8.507059e+37  ;;  %v3615_v61 = vadd.f32 0.4994258, %v3614_v32  ;;  %v3689_v23 = vadd.f32 0.001143296, %v3688_v22 }
 0xba6   :  { %v8411_v44 = vmin.f32 %v8322_v41, 16.0  ;;  %v3506_v27 = vsel %vm8402_vm3, %v8299_v3, %v3502_v6  ;;  %v3602_v16 = vadd.f32 0.05243302, %v3601_v9  ;;  %v3650_v48 = vmul.f32 %v3649_v58, %v8306_v50 }
 0xba7   :  { %v3679_v53 = vmul.f32 %v3678_v49, %v8355_v13  ;;  %v3542_v10 = vadd.f32 %v8324_v30, %v3541_v15  ;;  %v3616_v62 = vmul.f32 %v3615_v61, %v8253_v29  ;;  %v3690_v43 = vmul.f32 %v3689_v23, %v8355_v13 }
 0xba8   :  { %v3717_v22 = vmul.f32 2.1237322e-06, %v8411_v44  ;;  %v3580_v32 = vsub.f32 1.0, %v3579_v28  ;;  %v3641_v41 = vmul.f32 %v3640_v51, %v8306_v50  ;;  %v3651_v31 = vadd.f32 0.014752088, %v3650_v48 }
 0xba9   :  { %v3680_v52 = vadd.f32 0.0036580483, %v3679_v53  ;;  %v3471_v3 = vsel %vm8359_vm12, %v3470_v35, %v3466_v34  ;;  %v3589_v6 = vand.u32 2147483648, %v8337_v38  ;;  %v8426_v9 = vadd.f32 1.0, %v3616_v62 }
 0xbaa   :  { %v3691_v49 = vadd.f32 0.014752088, %v3690_v43  ;;  %v3511_v15 = vsel %vm8366_vm14, %v3510_v26, %v3506_v27  ;;  %v3603_v51 = vmul.f32 %v3602_v16, %v8253_v29  ;;  %v3652_v35 = vmul.f32 %v3651_v31, %v8306_v50 }
 0xbab   :  { %v3718_v42 = vadd.f32 0.00028619796, %v3717_v22  ;;  %v3546_v43 = vsel %vm8434_vm5, %v8324_v30, %v3542_v10  ;;  %4343 = vrcp.f32 %v8426_v9  ;;  %v3681_v26 = vmul.f32 %v3680_v52, %v8355_v13 }
 0xbac   :  { %v3728_v14 = vmul.f32 3.8918573e-05, %v8411_v44  ;;  %v3581_v60 = vmul.f32 %v8373_v54, %v3580_v32  ;;  %vm3583_vm6 = vweird.f32 %v8337_v38  ;;  %v3642_v58 = vadd.f32 0.05243302, %v3641_v41 }
 0xbad   :  { %v3653_v34 = vadd.f32 0.112945676, %v3652_v35  ;;  %v8449_v36 = vmul.f32 %v3471_v3, %v8330_v0  ;;  %v8452_v31 = vmul.f32 %v3511_v15, %v8335_v21  ;;  %v3590_v61 = vor.u32 1.1754944e-38, %v3589_v6 }
 0xbae   :  { %v3692_v30 = vmul.f32 %v3691_v49, %v8355_v13  ;;  %v3551_v52 = vsel %vm8406_vm4, %v3550_v2, %v3546_v43  ;;  %vm8457_vm1 = vcmp.eq.f32.partialorder %v3587_v39, 8.507059e+37  ;;  %v3604_v27 = vadd.f32 0.18741608, %v3603_v51 }
 0xbaf   :  { %v3654_v16 = vmul.f32 %v3653_v34, %v8306_v50  ;;  %v3719_v48 = vmul.f32 %v3718_v42, %v8411_v44  ;;  %vm3584_vm7 = vweird.f32 %v8373_v54  ;;  %v3682_v0 = vadd.f32 0.05243302, %v3681_v26 }
 0xbb0   :  { %v3693_v21 = vadd.f32 0.112945676, %v3692_v30  ;;  %v3729_v53 = vadd.f32 0.001143296, %v3728_v14  ;;  %v3582_v10 = vadd.f32 %v8373_v54, %v3581_v60  ;;  %v3643_v62 = vmul.f32 %v3642_v58, %v8306_v50  ;;  %vm8484_vm8 = vmor %vm3583_vm6, %vm3584_vm7 }
 0xbb1   :  { %v3655_v55 = vadd.f32 0.4994258, %v3654_v16  ;;  %v3755_v2 = vmul.f32 %v8275_v47, %v8275_v47  ;;  %v8468_v39 = vpop.eup %4343  ;;  %v4143_v22 = vclamps-f32 %v8449_v36, 1.0  ;;  %v3720_v41 = vadd.f32 0.0036580483, %v3719_v48 }
 0xbb2   :  { %v3694_v32 = vmul.f32 %v3693_v21, %v8355_v13  ;;  %v3730_v3 = vmul.f32 %v3729_v53, %v8411_v44  ;;  %v8474_v6 = vmul.f32 %v3551_v52, %v8351_v7  ;;  %v3605_v49 = vmul.f32 %v3604_v27, %v8253_v29 }
 0xbb3   :  { %v3619_v15 = vmul.f32 %v8468_v39, %v8426_v9  ;;  %v3656_v28 = vmul.f32 %v3655_v55, %v8306_v50  ;;  %v3683_v35 = vmul.f32 %v3682_v0, %v8355_v13  ;;  %v8489_v43 = vmin.f32 %v3755_v2, 16.0 }
 0xbb4   :  { %v3695_v42 = vadd.f32 0.4994258, %v3694_v32  ;;  %v3731_v7 = vadd.f32 0.014752088, %v3730_v3  ;;  %v3586_v29 = vsel %vm8484_vm8, %v8373_v54, %v3582_v10  ;;  %v3644_v14 = vadd.f32 0.18741608, %v3643_v62 }
 0xbb5   :  { %v3620_v26 = vsub.f32 1.0, %v3619_v15  ;;  %v8494_v60 = vadd.f32 1.0, %v3656_v28  ;;  %v3721_v58 = vmul.f32 %v3720_v41, %v8411_v44  ;;  %v3757_v30 = vmul.f32 2.1237322e-06, %v8489_v43 }
 0xbb6   :  { %v3696_v38 = vmul.f32 %v3695_v42, %v8355_v13  ;;  %v3732_v34 = vmul.f32 %v3731_v7, %v8411_v44  ;;  %v4144_v52 = vclamps-f32 %v8452_v31, 1.0  ;;  %v4145_v27 = vclamps-f32 %v8474_v6, 1.0 }
 0xbb7   :  { %4345 = vrcp.f32 %v8494_v60  ;;  %v3795_v54 = vmul.f32 %v8280_v19, %v8280_v19  ;;  %v3591_v16 = vsel %vm8457_vm1, %v3590_v61, %v3586_v29  ;;  %v3621_v48 = vmul.f32 %v8468_v39, %v3620_v26 }
 0xbb8   :  { %v3684_v0 = vadd.f32 0.18741608, %v3683_v35  ;;  %v8508_v21 = vadd.f32 1.0, %v3696_v38  ;;  %v3606_v53 = vadd.f32 1.1283791, %v3605_v49  ;;  %v3645_v10 = vmul.f32 %v3644_v14, %v8306_v50 }
 0xbb9   :  { %v3733_v62 = vadd.f32 0.112945676, %v3732_v34  ;;  %v3758_v55 = vadd.f32 0.00028619796, %v3757_v30  ;;  %v3627_v2 = vand.u32 2147483647, %v8426_v9  ;;  %v8515_v23 = vmul.f32 %v3591_v16, %v8381_v8 }
 0xbba   :  { %v3629_v32 = vand.u32 2147483648, %v8426_v9  ;;  %4347 = vrcp.f32 %v8508_v21  ;;  %v3722_v41 = vadd.f32 0.05243302, %v3721_v58  ;;  %vm3624_vm9 = vweird.f32 %v8468_v39 }
 0xbbb   :  { %v3734_v61 = vmul.f32 %v3733_v62, %v8411_v44  ;;  %v8519_v3 = vmin.f32 %v3795_v54, 16.0  ;;  %v3622_v50 = vadd.f32 %v8468_v39, %v3621_v48  ;;  %v3685_v49 = vmul.f32 %v3684_v0, %v8355_v13 }
 0xbbc   :  { %v3759_v15 = vmul.f32 %v3758_v55, %v8489_v43  ;;  %v3768_v28 = vmul.f32 3.8918573e-05, %v8489_v43  ;;  %v3607_v35 = vmul.f32 %v3606_v53, %v8211_v18  ;;  %vm3623_vm10 = vweird.f32 %v8426_v9 }
 0xbbd   :  { %v8525_v51 = vpop.eup %4345  ;;  %v3646_v8 = vadd.f32 1.1283791, %v3645_v10  ;;  %v3735_v42 = vadd.f32 0.4994258, %v3734_v61  ;;  %vm8529_vm11 = vcmp.eq.f32.partialorder %v3627_v2, 8.507059e+37  ;;  %v3630_v29 = vor.u32 1.1754944e-38, %v3629_v32  ;;  %vm8536_vm12 = vmor %vm3623_vm10, %vm3624_vm9 }
 0xbbe   :  { %v3723_v26 = vmul.f32 %v3722_v41, %v8411_v44  ;;  %v3769_v13 = vadd.f32 0.001143296, %v3768_v28  ;;  %v3659_v18 = vmul.f32 %v8525_v51, %v8494_v60  ;;  %v3760_v38 = vadd.f32 0.0036580483, %v3759_v15 }
 0xbbf   :  { %v3736_v9 = vmul.f32 %v3735_v42, %v8411_v44  ;;  %v3797_v58 = vmul.f32 2.1237322e-06, %v8519_v3  ;;  %v4146_v30 = vclamps-f32 %v8515_v23, 1.0  ;;  %v3626_v54 = vsel %vm8536_vm12, %v8468_v39, %v3622_v50 }
 0xbc0   :  { %v8544_v34 = vpop.eup %4347  ;;  %v3686_v16 = vadd.f32 1.1283791, %v3685_v49  ;;  %v3770_v48 = vmul.f32 %v3769_v13, %v8489_v43  ;;  %v3669_v0 = vand.u32 2147483648, %v8494_v60  ;;  %v3808_v62 = vmul.f32 3.8918573e-05, %v8519_v3 }
 0xbc1   :  { %v3699_v53 = vmul.f32 %v8544_v34, %v8508_v21  ;;  %v8554_v10 = vadd.f32 1.0, %v3736_v9  ;;  %v8558_v55 = vmul.f32 %v3646_v8, %v8246_v20  ;;  %v3724_v2 = vadd.f32 0.18741608, %v3723_v26 }
 0xbc2   :  { %v3771_v32 = vadd.f32 0.014752088, %v3770_v48  ;;  %v3798_v41 = vadd.f32 0.00028619796, %v3797_v58  ;;  %v3631_v39 = vsel %vm8529_vm11, %v3630_v29, %v3626_v54  ;;  %v3660_v61 = vsub.f32 1.0, %v3659_v18 }
 0xbc3   :  { %4349 = vrcp.f32 %v8554_v10  ;;  %v3761_v50 = vmul.f32 %v3760_v38, %v8489_v43  ;;  %v3667_v49 = vand.u32 2147483647, %v8494_v60  ;;  %v3709_v15 = vand.u32 2147483648, %v8508_v21 }
 0xbc4   :  { %v3772_v28 = vmul.f32 %v3771_v32, %v8489_v43  ;;  %v3835_v20 = vmul.f32 %v8283_v17, %v8283_v17  ;;  %vm3663_vm13 = vweird.f32 %v8494_v60  ;;  %v8571_v8 = vmul.f32 %v3686_v16, %v8269_v37 }
 0xbc5   :  { %v3700_v42 = vsub.f32 1.0, %v3699_v53  ;;  %v3799_v7 = vmul.f32 %v3798_v41, %v8519_v3  ;;  %v3809_v29 = vadd.f32 0.001143296, %v3808_v62  ;;  %v8574_v26 = vmul.f32 %v3631_v39, %v3607_v35 }
 0xbc6   :  { %v3670_v13 = vor.u32 1.1754944e-38, %v3669_v0  ;;  %v3725_v14 = vmul.f32 %v3724_v2, %v8411_v44  ;;  %v3773_v18 = vadd.f32 0.112945676, %v3772_v28  ;;  %v3661_v9 = vmul.f32 %v8525_v51, %v3660_v61 }
 0xbc7   :  { %v3762_v38 = vadd.f32 0.05243302, %v3761_v50  ;;  %v3800_v58 = vadd.f32 0.0036580483, %v3799_v7  ;;  %v3810_v54 = vmul.f32 %v3809_v29, %v8519_v3  ;;  %v3707_v48 = vand.u32 2147483647, %v8508_v21 }
 0xbc8   :  { %v3710_v37 = vor.u32 1.1754944e-38, %v3709_v15  ;;  %v3774_v16 = vmul.f32 %v3773_v18, %v8489_v43  ;;  %v8581_v53 = vmin.f32 %v3835_v20, 16.0  ;;  %vm3664_vm14 = vweird.f32 %v8525_v51 }
 0xbc9   :  { %v8583_v62 = vpop.eup %4349  ;;  %v3701_v44 = vmul.f32 %v8544_v34, %v3700_v42  ;;  %v3801_v35 = vmul.f32 %v3800_v58, %v8519_v3  ;;  %v3811_v0 = vadd.f32 0.014752088, %v3810_v54  ;;  %v4147_v2 = vclamps-f32 %v8574_v26, 1.0  ;;  %vm8614_vm3 = vmor %vm3663_vm13, %vm3664_vm14 }
 0xbca   :  { %vm8589_vm15 = vcmp.eq.f32.partialorder %v3667_v49, 8.507059e+37  ;;  %vm3704_vm0 = vweird.f32 %v8544_v34  ;;  %v3726_v41 = vadd.f32 1.1283791, %v3725_v14  ;;  %v3739_v39 = vmul.f32 %v8583_v62, %v8554_v10 }
 0xbcb   :  { %v3662_v61 = vadd.f32 %v8525_v51, %v3661_v9  ;;  %v3747_v50 = vand.u32 2147483647, %v8554_v10  ;;  %v3763_v15 = vmul.f32 %v3762_v38, %v8489_v43  ;;  %v3775_v28 = vadd.f32 0.4994258, %v3774_v16 }
 0xbcc   :  { %vm8599_vm2 = vcmp.eq.f32.partialorder %v3707_v48, 8.507059e+37  ;;  %v3740_v49 = vsub.f32 1.0, %v3739_v39  ;;  %v3812_v42 = vmul.f32 %v3811_v0, %v8519_v3  ;;  %v3837_v7 = vmul.f32 2.1237322e-06, %v8581_v53 }
 0xbcd   :  { %v3848_v29 = vmul.f32 3.8918573e-05, %v8581_v53  ;;  %v3702_v14 = vadd.f32 %v8544_v34, %v3701_v44  ;;  %v3776_v18 = vmul.f32 %v3775_v28, %v8489_v43  ;;  %v3802_v9 = vadd.f32 0.05243302, %v3801_v35 }
 0xbce   :  { %v3875_v38 = vmul.f32 %v8292_v63, %v8292_v63  ;;  %vm3703_vm4 = vweird.f32 %v8508_v21  ;;  %v3813_v54 = vadd.f32 0.112945676, %v3812_v42  ;;  %v3838_v48 = vadd.f32 0.00028619796, %v3837_v7 }
 0xbcf   :  { %v3849_v16 = vadd.f32 0.001143296, %v3848_v29  ;;  %v3666_v44 = vsel %vm8614_vm3, %v8525_v51, %v3662_v61  ;;  %v3749_v35 = vand.u32 2147483648, %v8554_v10  ;;  %v3764_v0 = vadd.f32 0.18741608, %v3763_v15  ;;  %vm8627_vm5 = vmor %vm3703_vm4, %vm3704_vm0 }
 0xbd0   :  { %v8623_v39 = vadd.f32 1.0, %v3776_v18  ;;  %v3741_v21 = vmul.f32 %v8583_v62, %v3740_v49  ;;  %v3814_v28 = vmul.f32 %v3813_v54, %v8519_v3  ;;  %v3839_v42 = vmul.f32 %v3838_v48, %v8581_v53 }
 0xbd1   :  { %v3850_v7 = vmul.f32 %v3849_v16, %v8581_v53  ;;  %v3706_v51 = vsel %vm8627_vm5, %v8544_v34, %v3702_v14  ;;  %vm3743_vm6 = vweird.f32 %v8554_v10  ;;  %v8640_v61 = vmin.f32 %v3875_v38, 16.0 }
 0xbd2   :  { %4351 = vrcp.f32 %v8623_v39  ;;  %vm8642_vm1 = vcmp.eq.f32.partialorder %v3747_v50, 8.507059e+37  ;;  %v3803_v49 = vmul.f32 %v3802_v9, %v8519_v3  ;;  %v3815_v29 = vadd.f32 0.4994258, %v3814_v28 }
 0xbd3   :  { %v3840_v18 = vadd.f32 0.0036580483, %v3839_v42  ;;  %v3915_v58 = vmul.f32 %v8295_v45, %v8295_v45  ;;  %v3671_v34 = vsel %vm8589_vm15, %v3670_v13, %v3666_v44  ;;  %v3750_v14 = vor.u32 1.1754944e-38, %v3749_v35 }
 0xbd4   :  { %v3765_v54 = vmul.f32 %v3764_v0, %v8489_v43  ;;  %v3851_v48 = vadd.f32 0.014752088, %v3850_v7  ;;  %v3742_v38 = vadd.f32 %v8583_v62, %v3741_v21  ;;  %vm3744_vm7 = vweird.f32 %v8583_v62 }
 0xbd5   :  { %v3816_v50 = vmul.f32 %v3815_v29, %v8519_v3  ;;  %v3841_v9 = vmul.f32 %v3840_v18, %v8581_v53  ;;  %v3711_v16 = vsel %vm8599_vm2, %v3710_v37, %v3706_v51  ;;  %v3877_v32 = vmul.f32 2.1237322e-06, %v8640_v61  ;;  %vm8668_vm8 = vmor %vm3743_vm6, %vm3744_vm7 }
 0xbd6   :  { %v3852_v60 = vmul.f32 %v3851_v48, %v8581_v53  ;;  %v3888_v13 = vmul.f32 3.8918573e-05, %v8640_v61  ;;  %v3804_v44 = vadd.f32 0.18741608, %v3803_v49  ;;  %v8663_v0 = vmin.f32 %v3915_v58, 16.0 }
 0xbd7   :  { %v8661_v43 = vadd.f32 1.0, %v3816_v50  ;;  %v3842_v35 = vadd.f32 0.05243302, %v3841_v9  ;;  %v3727_v28 = vmul.f32 %v3726_v41, %v8272_v57  ;;  %v3878_v42 = vadd.f32 0.00028619796, %v3877_v32 }
 0xbd8   :  { %v4352_v21 = vpop.eup %4351  ;;  %v3853_v37 = vadd.f32 0.112945676, %v3852_v60  ;;  %v3889_v7 = vadd.f32 0.001143296, %v3888_v13  ;;  %v8673_v51 = vmul.f32 %v3671_v34, %v8558_v55  ;;  %v3746_v49 = vsel %vm8668_vm8, %v8583_v62, %v3742_v38 }
 0xbd9   :  { %v3779_v29 = vmul.f32 %v4352_v21, %v8623_v39  ;;  %4353 = vrcp.f32 %v8661_v43  ;;  %v8681_v57 = vmul.f32 %v3711_v16, %v8571_v8  ;;  %v3766_v10 = vadd.f32 1.1283791, %v3765_v54 }
 0xbda   :  { %vm3783_vm9 = vweird.f32 %v8623_v39  ;;  %v3854_v41 = vmul.f32 %v3853_v37, %v8581_v53  ;;  %v3879_v55 = vmul.f32 %v3878_v42, %v8640_v61  ;;  %v3890_v58 = vmul.f32 %v3889_v7, %v8640_v61 }
 0xbdb   :  { %v3780_v18 = vsub.f32 1.0, %v3779_v29  ;;  %v3917_v34 = vmul.f32 2.1237322e-06, %v8663_v0  ;;  %v3751_v62 = vsel %vm8642_vm1, %v3750_v14, %v3746_v49  ;;  %v3805_v48 = vmul.f32 %v3804_v44, %v8519_v3 }
 0xbdc   :  { %v3843_v8 = vmul.f32 %v3842_v35, %v8581_v53  ;;  %v3855_v38 = vadd.f32 0.4994258, %v3854_v41  ;;  %v3880_v50 = vadd.f32 0.0036580483, %v3879_v55  ;;  %v3891_v9 = vadd.f32 0.014752088, %v3890_v58 }
 0xbdd   :  { %v3781_v54 = vmul.f32 %v4352_v21, %v3780_v18  ;;  %v3918_v16 = vadd.f32 0.00028619796, %v3917_v34  ;;  %v3787_v60 = vand.u32 2147483647, %v8623_v39  ;;  %v3789_v32 = vand.u32 2147483648, %v8623_v39 }
 0xbde   :  { %v3856_v13 = vmul.f32 %v3855_v38, %v8581_v53  ;;  %v3955_v20 = vmul.f32 %v8302_v11, %v8302_v11  ;;  %vm3784_vm10 = vweird.f32 %v4352_v21  ;;  %v3892_v3 = vmul.f32 %v3891_v9, %v8640_v61 }
 0xbdf   :  { %v8697_v15 = vpop.eup %4353  ;;  %v3782_v14 = vadd.f32 %v4352_v21, %v3781_v54  ;;  %v3919_v44 = vmul.f32 %v3918_v16, %v8663_v0  ;;  %v8701_v35 = vmul.f32 %v3751_v62, %v3727_v28  ;;  %v3844_v42 = vadd.f32 0.18741608, %v3843_v8  ;;  %vm8713_vm11 = vmor %vm3783_vm9, %vm3784_vm10 }
 0xbe0   :  { %v3819_v37 = vmul.f32 %v8697_v15, %v8661_v43  ;;  %v8705_v7 = vadd.f32 1.0, %v3856_v13  ;;  %v3806_v49 = vadd.f32 1.1283791, %v3805_v48  ;;  %v3881_v29 = vmul.f32 %v3880_v50, %v8640_v61 }
 0xbe1   :  { %v3893_v41 = vadd.f32 0.112945676, %v3892_v3  ;;  %v3928_v18 = vmul.f32 3.8918573e-05, %v8663_v0  ;;  %v4148_v55 = vclamps-f32 %v8673_v51, 1.0  ;;  %v3767_v62 = vmul.f32 %v3766_v10, %v8275_v47 }
 0xbe2   :  { %v3820_v34 = vsub.f32 1.0, %v3819_v37  ;;  %4355 = vrcp.f32 %v8705_v7  ;;  %v3786_v48 = vsel %vm8713_vm11, %v4352_v21, %v3782_v14  ;;  %v3920_v8 = vadd.f32 0.0036580483, %v3919_v44 }
 0xbe3   :  { %v8721_v38 = vmin.f32 %v3955_v20, 16.0  ;;  %vm3788_vm12 = vcmp.eq.f32.partialorder %v3787_v60, 8.507059e+37  ;;  %v3790_v54 = vor.u32 1.1754944e-38, %v3789_v32  ;;  %v3845_v50 = vmul.f32 %v3844_v42, %v8581_v53 }
 0xbe4   :  { %v3894_v39 = vmul.f32 %v3893_v41, %v8640_v61  ;;  %v8727_v16 = vmul.f32 %v3806_v49, %v8280_v19  ;;  %v3882_v13 = vadd.f32 0.05243302, %v3881_v29  ;;  %v3929_v3 = vadd.f32 0.001143296, %v3928_v18 }
 0xbe5   :  { %v3791_v47 = vsel %vm3788_vm12, %v3790_v54, %v3786_v48  ;;  %v3821_v10 = vmul.f32 %v8697_v15, %v3820_v34  ;;  %v3827_v21 = vand.u32 2147483647, %v8661_v43  ;;  %v3921_v60 = vmul.f32 %v3920_v8, %v8663_v0 }
 0xbe6   :  { %v3895_v20 = vadd.f32 0.4994258, %v3894_v39  ;;  %v3930_v32 = vmul.f32 %v3929_v3, %v8663_v0  ;;  %v3957_v53 = vmul.f32 2.1237322e-06, %v8721_v38  ;;  %v3968_v14 = vmul.f32 3.8918573e-05, %v8721_v38 }
 0xbe7   :  { %vm3824_vm13 = vweird.f32 %v8697_v15  ;;  %v3829_v19 = vand.u32 2147483648, %v8661_v43  ;;  %v3846_v37 = vadd.f32 1.1283791, %v3845_v50  ;;  %v8740_v49 = vmul.f32 %v3791_v47, %v3767_v62 }
 0xbe8   :  { %v8735_v44 = vpop.eup %4355  ;;  %v3896_v42 = vmul.f32 %v3895_v20, %v8640_v61  ;;  %v3883_v41 = vmul.f32 %v3882_v13, %v8640_v61  ;;  %v3931_v18 = vadd.f32 0.014752088, %v3930_v32  ;;  %v3822_v28 = vadd.f32 %v8697_v15, %v3821_v10 }
 0xbe9   :  { %v3859_v29 = vmul.f32 %v8735_v44, %v8705_v7  ;;  %v3869_v34 = vand.u32 2147483648, %v8705_v7  ;;  %v3995_v8 = vmul.f32 %v8309_v25, %v8309_v25  ;;  %v3922_v54 = vadd.f32 0.05243302, %v3921_v60 }
 0xbea   :  { %v8747_v48 = vadd.f32 1.0, %v3896_v42  ;;  %v3932_v50 = vmul.f32 %v3931_v18, %v8663_v0  ;;  %v3958_v62 = vadd.f32 0.00028619796, %v3957_v53  ;;  %v3969_v39 = vadd.f32 0.001143296, %v3968_v14 }
 0xbeb   :  { %vm3823_vm14 = vweird.f32 %v8661_v43  ;;  %vm8753_vm15 = vcmp.eq.f32.partialorder %v3827_v21, 8.507059e+37  ;;  %v3830_v13 = vor.u32 1.1754944e-38, %v3829_v19  ;;  %v8759_v47 = vmul.f32 %v3846_v37, %v8283_v17 }
 0xbec   :  { %4357 = vrcp.f32 %v8747_v48  ;;  %v3860_v10 = vsub.f32 1.0, %v3859_v29  ;;  %v3867_v20 = vand.u32 2147483647, %v8705_v7  ;;  %v3884_v60 = vadd.f32 0.18741608, %v3883_v41  ;;  %vm8764_vm0 = vmor %vm3823_vm14, %vm3824_vm13 }
 0xbed   :  { %v3933_v43 = vadd.f32 0.112945676, %v3932_v50  ;;  %v3959_v21 = vmul.f32 %v3958_v62, %v8721_v38  ;;  %v3970_v53 = vmul.f32 %v3969_v39, %v8721_v38  ;;  %v8770_v14 = vmin.f32 %v3995_v8, 16.0 }
 0xbee   :  { %v3826_v19 = vsel %vm8764_vm0, %v8697_v15, %v3822_v28  ;;  %v3870_v37 = vor.u32 1.1754944e-38, %v3869_v34  ;;  %v3923_v42 = vmul.f32 %v3922_v54, %v8663_v0  ;;  %vm3863_vm2 = vweird.f32 %v8705_v7 }
 0xbef   :  { %v3934_v29 = vmul.f32 %v3933_v43, %v8663_v0  ;;  %v3960_v41 = vadd.f32 0.0036580483, %v3959_v21  ;;  %v3971_v18 = vadd.f32 0.014752088, %v3970_v53  ;;  %v3997_v50 = vmul.f32 2.1237322e-06, %v8770_v14 }
 0xbf0   :  { %v3861_v8 = vmul.f32 %v8735_v44, %v3860_v10  ;;  %v3885_v62 = vmul.f32 %v3884_v60, %v8640_v61  ;;  %v4008_v39 = vmul.f32 3.8918573e-05, %v8770_v14  ;;  %v4035_v15 = vmul.f32 %v8316_v4, %v8316_v4 }
 0xbf1   :  { %v3831_v34 = vsel %vm8753_vm15, %v3830_v13, %v3826_v19  ;;  %v3935_v54 = vadd.f32 0.4994258, %v3934_v29  ;;  %v3961_v32 = vmul.f32 %v3960_v41, %v8721_v38  ;;  %v3972_v43 = vmul.f32 %v3971_v18, %v8721_v38 }
 0xbf2   :  { %v4358_v28 = vpop.eup %4357  ;;  %vm3864_vm3 = vweird.f32 %v8735_v44  ;;  %v3924_v21 = vadd.f32 0.18741608, %v3923_v42  ;;  %v3998_v61 = vadd.f32 0.00028619796, %v3997_v50  ;;  %vm8791_vm4 = vcmp.eq.f32.partialorder %v3867_v20, 8.507059e+37 }
 0xbf3   :  { %v3899_v10 = vmul.f32 %v4358_v28, %v8747_v48  ;;  %v3936_v53 = vmul.f32 %v3935_v54, %v8663_v0  ;;  %v3962_v17 = vadd.f32 0.05243302, %v3961_v32  ;;  %v3973_v3 = vadd.f32 0.112945676, %v3972_v43  ;;  %vm8814_vm1 = vmor %vm3863_vm2, %vm3864_vm3 }
 0xbf4   :  { %v4009_v13 = vadd.f32 0.001143296, %v4008_v39  ;;  %v3862_v19 = vadd.f32 %v8735_v44, %v3861_v8  ;;  %v3999_v41 = vmul.f32 %v3998_v61, %v8770_v14  ;;  %v8798_v18 = vmin.f32 %v4035_v15, 16.0 }
 0xbf5   :  { %v3900_v29 = vsub.f32 1.0, %v3899_v10  ;;  %v8800_v9 = vadd.f32 1.0, %v3936_v53  ;;  %v3963_v42 = vmul.f32 %v3962_v17, %v8721_v38  ;;  %v3974_v20 = vmul.f32 %v3973_v3, %v8721_v38 }
 0xbf6   :  { %v4010_v50 = vmul.f32 %v4009_v13, %v8770_v14  ;;  %vm3903_vm5 = vweird.f32 %v8747_v48  ;;  %v4000_v54 = vadd.f32 0.0036580483, %v3999_v41  ;;  %v4037_v39 = vmul.f32 2.1237322e-06, %v8798_v18 }
 0xbf7   :  { %v3901_v58 = vmul.f32 %v4358_v28, %v3900_v29  ;;  %vm3904_vm6 = vweird.f32 %v4358_v28  ;;  %v3907_v8 = vand.u32 2147483647, %v8747_v48  ;;  %4359 = vrcp.f32 %v8800_v9 }
 0xbf8   :  { %v4048_v15 = vmul.f32 3.8918573e-05, %v8798_v18  ;;  %v3909_v43 = vand.u32 2147483648, %v8747_v48  ;;  %v3925_v10 = vmul.f32 %v3924_v21, %v8663_v0  ;;  %v3975_v61 = vadd.f32 0.4994258, %v3974_v20  ;;  %vm8829_vm7 = vmor %vm3903_vm5, %vm3904_vm6 }
 0xbf9   :  { %v3902_v32 = vadd.f32 %v4358_v28, %v3901_v58  ;;  %v3866_v53 = vsel %vm8814_vm1, %v8735_v44, %v3862_v19  ;;  %v3964_v3 = vadd.f32 0.18741608, %v3963_v42  ;;  %v4011_v13 = vadd.f32 0.014752088, %v4010_v50 }
 0xbfa   :  { %v4038_v29 = vadd.f32 0.00028619796, %v4037_v39  ;;  %v8824_v41 = vmul.f32 %v3831_v34, %v8727_v16  ;;  %v3886_v7 = vadd.f32 1.1283791, %v3885_v62  ;;  %v3976_v0 = vmul.f32 %v3975_v61, %v8721_v38 }
 0xbfb   :  { %v4001_v21 = vmul.f32 %v4000_v54, %v8770_v14  ;;  %v3906_v44 = vsel %vm8829_vm7, %v4358_v28, %v3902_v32  ;;  %v4012_v19 = vmul.f32 %v4011_v13, %v8770_v14  ;;  %v4049_v34 = vadd.f32 0.001143296, %v4048_v15 }
 0xbfc   :  { %v4039_v16 = vmul.f32 %v4038_v29, %v8798_v18  ;;  %v3871_v62 = vsel %vm8791_vm4, %v3870_v37, %v3866_v53  ;;  %v3910_v48 = vor.u32 1.1754944e-38, %v3909_v43  ;;  %v3926_v42 = vadd.f32 1.1283791, %v3925_v10 }
 0xbfd   :  { %v8841_v20 = vadd.f32 1.0, %v3976_v0  ;;  %v4360_v50 = vpop.eup %4359  ;;  %vm3908_vm8 = vcmp.eq.f32.partialorder %v3907_v8, 8.507059e+37  ;;  %v3965_v39 = vmul.f32 %v3964_v3, %v8721_v38  ;;  %v4013_v54 = vadd.f32 0.112945676, %v4012_v19 }
 0xbfe   :  { %v4050_v17 = vmul.f32 %v4049_v34, %v8798_v18  ;;  %v4152_v28 = vclamps-f32 %v8824_v41, 1.0  ;;  %v3911_v32 = vsel %vm3908_vm8, %v3910_v48, %v3906_v44  ;;  %v3939_v61 = vmul.f32 %v4360_v50, %v8800_v9 }
 0xbff   :  { %v4002_v15 = vadd.f32 0.05243302, %v4001_v21  ;;  %v8848_v60 = vmul.f32 %v3871_v62, %v8759_v47  ;;  %v3887_v37 = vmul.f32 %v3886_v7, %v8292_v63  ;;  %4361 = vrcp.f32 %v8841_v20 }
 0xc00   :  { %v4040_v43 = vadd.f32 0.0036580483, %v4039_v16  ;;  %v3927_v8 = vmul.f32 %v3926_v42, %v8295_v45  ;;  %v3940_v38 = vsub.f32 1.0, %v3939_v61  ;;  %v3947_v10 = vand.u32 2147483647, %v8800_v9 }
 0xc01   :  { %v4014_v53 = vmul.f32 %v4013_v54, %v8770_v14  ;;  %v8855_v3 = vmul.f32 %v3911_v32, %v3887_v37  ;;  %v3949_v13 = vand.u32 2147483648, %v8800_v9  ;;  %v3966_v29 = vadd.f32 1.1283791, %v3965_v39 }
 0xc02   :  { %v4051_v58 = vadd.f32 0.014752088, %v4050_v17  ;;  %v3941_v47 = vmul.f32 %v4360_v50, %v3940_v38  ;;  %vm3944_vm9 = vweird.f32 %v4360_v50  ;;  %v4003_v63 = vmul.f32 %v4002_v15, %v8770_v14 }
 0xc03   :  { %v4015_v7 = vadd.f32 0.4994258, %v4014_v53  ;;  %v4153_v0 = vclamps-f32 %v8848_v60, 1.0  ;;  %vm3943_vm10 = vweird.f32 %v8800_v9  ;;  %v4041_v45 = vmul.f32 %v4040_v43, %v8798_v18 }
 0xc04   :  { %v4052_v21 = vmul.f32 %v4051_v58, %v8798_v18  ;;  %v3942_v44 = vadd.f32 %v4360_v50, %v3941_v47  ;;  %v3987_v19 = vand.u32 2147483647, %v8841_v20  ;;  %v3989_v16 = vand.u32 2147483648, %v8841_v20  ;;  %vm3945_vm11 = vmor %vm3943_vm10, %vm3944_vm9 }
 0xc05   :  { %v4016_v34 = vmul.f32 %v4015_v7, %v8770_v14  ;;  %v4362_v62 = vpop.eup %4361  ;;  %v4154_v48 = vclamps-f32 %v8855_v3, 1.0  ;;  %vm3948_vm12 = vcmp.eq.f32.partialorder %v3947_v10, 8.507059e+37  ;;  %v3950_v42 = vor.u32 1.1754944e-38, %v3949_v13 }
 0xc06   :  { %v4053_v39 = vadd.f32 0.112945676, %v4052_v21  ;;  %v3946_v54 = vsel %vm3945_vm11, %v4360_v50, %v3942_v44  ;;  %v3967_v9 = vmul.f32 %v3966_v29, %v8302_v11  ;;  %v3979_v17 = vmul.f32 %v4362_v62, %v8841_v20 }
 0xc07   :  { %v4004_v32 = vadd.f32 0.18741608, %v4003_v63  ;;  %v3951_v61 = vsel %vm3948_vm12, %v3950_v42, %v3946_v54  ;;  %v8869_v15 = vadd.f32 1.0, %v4016_v34  ;;  %v4042_v37 = vadd.f32 0.05243302, %v4041_v45  ;;  %v9609_v54 = vld [vmem:[#allocation69_spill] sm:$0xff] }
 0xc08   :  { %v4054_v43 = vmul.f32 %v4053_v39, %v8798_v18  ;;  %v3980_v38 = vsub.f32 1.0, %v3979_v17  ;;  %vm3983_vm13 = vweird.f32 %v8841_v20  ;;  %vm8873_vm14 = vcmp.eq.f32.partialorder %v3987_v19, 8.507059e+37  ;;  %v9608_v39 = vld [vmem:[#allocation93_spill] sm:$0xff]  ;;  %v9610_v17 = vld [vmem:[#allocation95_spill] sm:$0xff] }
 0xc09   :  { %v3990_v10 = vor.u32 1.1754944e-38, %v3989_v16  ;;  %v3952_v50 = vmul.f32 %v3951_v61, %v3927_v8  ;;  %4363 = vrcp.f32 %v8869_v15  ;;  %v4075_v11 = vadd.f32 1.0, %v4143_v22  ;;  %v9611_v61 = vld [vmem:[#allocation63_spill] sm:$0xff] }
 0xc0a   :  { %v4076_v3 = vadd.f32 1.0, %v4144_v52  ;;  %v3981_v13 = vmul.f32 %v4362_v62, %v3980_v38  ;;  %vm3984_vm15 = vweird.f32 %v4362_v62  ;;  %v4055_v29 = vadd.f32 0.4994258, %v4054_v43  ;;  %v9612_v38 = vld [vmem:[#allocation70_spill] sm:$0xff] }
 0xc0b   :  { %v4077_v58 = vadd.f32 1.0, %v4145_v27  ;;  %v4005_v47 = vmul.f32 %v4004_v32, %v8770_v14  ;;  %v4043_v63 = vmul.f32 %v4042_v37, %v8798_v18  ;;  %v4078_v8 = vadd.f32 1.0, %v4146_v30  ;;  %vm3985_vm0 = vmor %vm3983_vm13, %vm3984_vm15 }
 0xc0c   :  { %v4079_v36 = vadd.f32 1.0, %v4147_v2  ;;  %v3982_v22 = vadd.f32 %v4362_v62, %v3981_v13  ;;  %v4056_v31 = vmul.f32 %v4055_v29, %v8798_v18  ;;  %v4080_v52 = vadd.f32 1.0, %v4148_v55 }
 0xc0d   :  { %v9605_v7 = vclamps-f32 %v8681_v57, 1.0  ;;  %v4155_v27 = vclamps-f32 %v3952_v50, 1.0  ;;  %v9606_v14 = vclamps-f32 %v8701_v35, 1.0  ;;  %v4091_v30 = vmul.f32 %v4075_v11, %v8201_v56 }
 0xc0e   :  { %v4092_v26 = vmul.f32 %v4076_v3, %v8204_v24  ;;  %v3986_v2 = vsel %vm3985_vm0, %v4362_v62, %v3982_v22  ;;  %v8901_v45 = vadd.f32 1.0, %v4056_v31  ;;  %v9607_v51 = vclamps-f32 %v8740_v49, 1.0 }
 0xc0f   :  { %v4081_v6 = vadd.f32 1.0, %v9605_v7  ;;  %v4082_v23 = vadd.f32 1.0, %v9606_v14  ;;  %v4093_v57 = vmul.f32 %v4077_v58, %v8207_v59  ;;  %v4364_v21 = vpop.eup %4363  ;;  %v3991_v20 = vsel %vm8873_vm14, %v3990_v10, %v3986_v2  ;;  %4107 = vst [vmem:[%s8988_s3] sm:$0xff] %v4091_v30 }
 0xc10   :  { %v4083_v55 = vadd.f32 1.0, %v9607_v51  ;;  %v4084_v35 = vadd.f32 1.0, %v4152_v28  ;;  %v4094_v44 = vmul.f32 %v4078_v8, %v8217_v33  ;;  %v4095_v56 = vmul.f32 %v4079_v36, %v8220_v5  ;;  %4108 = vst [vmem:[%s8988_s3 + $0x8] sm:$0xff] %v4092_v26 }
 0xc11   :  { %v3992_v24 = vmul.f32 %v3991_v20, %v3967_v9  ;;  %v4019_v49 = vmul.f32 %v4364_v21, %v8869_v15  ;;  %4365 = vrcp.f32 %v8901_v45  ;;  %v4096_v59 = vmul.f32 %v4080_v52, %v8232_v12  ;;  %4109 = vst [vmem:[%s8988_s3 + $0x10] sm:$0xff] %v4093_v57  ;;  %v9613_v52 = vld [vmem:[#allocation84_spill] sm:$0xff] }
 0xc12   :  { %v4006_v41 = vadd.f32 1.1283791, %v4005_v47  ;;  %v4044_v28 = vadd.f32 0.18741608, %v4043_v63  ;;  %v4085_v33 = vadd.f32 1.0, %v4153_v0  ;;  %v4097_v5 = vmul.f32 %v4081_v6, %v8235_v40  ;;  %4110 = vst [vmem:[%s8988_s3 + $0x18] sm:$0xff] %v4094_v44 }
 0xc13   :  { %v4156_v19 = vclamps-f32 %v3992_v24, 1.0  ;;  %v4020_v16 = vsub.f32 1.0, %v4019_v49  ;;  %v4086_v34 = vadd.f32 1.0, %v4154_v48  ;;  %v4098_v12 = vmul.f32 %v4082_v23, %v8238_v46  ;;  %4111 = vst [vmem:[%s8988_s3 + $0x20] sm:$0xff] %v4095_v56 }
 0xc14   :  { %v4027_v62 = vand.u32 2147483647, %v8869_v15  ;;  %v4029_v60 = vand.u32 2147483648, %v8869_v15  ;;  %v4087_v0 = vadd.f32 1.0, %v4155_v27  ;;  %v4099_v40 = vmul.f32 %v4083_v55, %v8243_v1  ;;  %4112 = vst [vmem:[%s8988_s3 + $0x28] sm:$0xff] %v4096_v59  ;;  %v9614_v55 = vld [vmem:[#allocation86_spill] sm:$0xff] }
 0xc15   :  { %v4021_v42 = vmul.f32 %v4364_v21, %v4020_v16  ;;  %vm4024_vm2 = vweird.f32 %v4364_v21  ;;  %v4088_v48 = vadd.f32 1.0, %v4156_v19  ;;  %v4100_v46 = vmul.f32 %v4084_v35, %v9608_v39  ;;  %4113 = vst [vmem:[%s8988_s3 + $0x30] sm:$0xff] %v4097_v5 }
 0xc16   :  { %v3415_v9 = vmul.f32 0.5, %v9609_v54  ;;  %v4101_v32 = vmul.f32 %v4085_v33, %v9610_v17  ;;  %v3416_v37 = vmul.f32 0.5, %v9611_v61  ;;  %vm4023_vm3 = vweird.f32 %v8869_v15  ;;  %4114 = vst [vmem:[%s8988_s3 + $0x38] sm:$0xff] %v4098_v12 }
 0xc17   :  { %v4366_v1 = vpop.eup %4365  ;;  %v4022_v43 = vadd.f32 %v4364_v21, %v4021_v42  ;;  %v4102_v53 = vmul.f32 %v4086_v34, %v9612_v38  ;;  %vm4025_vm4 = vmor %vm4023_vm3, %vm4024_vm2  ;;  %v4030_v10 = vor.u32 1.1754944e-38, %v4029_v60  ;;  %v4045_v50 = vmul.f32 %v4044_v28, %v8798_v18  ;;  %4115 = vst [vmem:[%s8988_s3 + $0x40] sm:$0xff] %v4099_v40 }
 0xc18   :  { %v4059_v11 = vmul.f32 %v4366_v1, %v8901_v45  ;;  %v4103_v3 = vmul.f32 %v4087_v0, %v3415_v9  ;;  %v4007_v13 = vmul.f32 %v4006_v41, %v8309_v25  ;;  %vm4028_vm5 = vcmp.eq.f32.partialorder %v4027_v62, 8.507059e+37  ;;  %4116 = vst [vmem:[%s8988_s3 + $0x48] sm:$0xff] %v4100_v46 }
 0xc19   :  { %v4026_v15 = vsel %vm4025_vm4, %v4364_v21, %v4022_v43  ;;  %v4104_v29 = vmul.f32 %v4088_v48, %v3416_v37  ;;  %4117 = vst [vmem:[%s8988_s3 + $0x50] sm:$0xff] %v4101_v32  ;;  %v4069_v63 = vand.u32 2147483648, %v8901_v45  ;;  %v4046_v25 = vadd.f32 1.1283791, %v4045_v50 }
 0xc1a   :  { %v4031_v58 = vsel %vm4028_vm5, %v4030_v10, %v4026_v15  ;;  %v4060_v47 = vsub.f32 1.0, %v4059_v11  ;;  %4118 = vst [vmem:[%s8988_s3 + $0x58] sm:$0xff] %v4102_v53  ;;  %vm4064_vm6 = vweird.f32 %v4366_v1  ;;  %v4067_v36 = vand.u32 2147483647, %v8901_v45 }
 0xc1b   :  { %v4032_v18 = vmul.f32 %v4031_v58, %v4007_v13  ;;  %4119 = vst [vmem:[%s8988_s3 + $0x60] sm:$0xff] %v4103_v3  ;;  %vm4063_vm1 = vweird.f32 %v8901_v45  ;;  %v3417_v7 = vmul.f32 0.5, %v9613_v52  ;;  %v4070_v6 = vor.u32 1.1754944e-38, %v4069_v63 }
 0xc1c   :  { %v4061_v8 = vmul.f32 %v4366_v1, %v4060_v47  ;;  %4120 = vst [vmem:[%s8988_s3 + $0x68] sm:$0xff] %v4104_v29  ;;  %vm4065_vm7 = vmor %vm4063_vm1, %vm4064_vm6  ;;  %v4047_v14 = vmul.f32 %v4046_v25, %v8316_v4  ;;  %vm4068_vm8 = vcmp.eq.f32.partialorder %v4067_v36, 8.507059e+37  ;;  %v3418_v57 = vmul.f32 0.5, %v9614_v55 }
 0xc1d   :  { %v4157_v22 = vclamps-f32 %v4032_v18, 1.0 }
 0xc1e   :  { %v4062_v31 = vadd.f32 %v4366_v1, %v4061_v8 }
 0xc1f   :  { %v4089_v27 = vadd.f32 1.0, %v4157_v22 }
 0xc20   :  { %v4066_v23 = vsel %vm4065_vm7, %v4366_v1, %v4062_v31 }
 0xc21   :  { %v4071_v30 = vsel %vm4068_vm8, %v4070_v6, %v4066_v23  ;;  %v4105_v26 = vmul.f32 %v4089_v27, %v3417_v7 }
 0xc22   :  { %v4072_v2 = vmul.f32 %v4071_v30, %v4047_v14 }
 0xc23   :  { %4121 = vst [vmem:[%s8988_s3 + $0x70] sm:$0xff] %v4105_v26 }
 0xc24   :  { %v4158_v51 = vclamps-f32 %v4072_v2, 1.0 }
 0xc26   :  { %v4090_v45 = vadd.f32 1.0, %v4158_v51 }
 0xc28   :  { %v4106_v21 = vmul.f32 %v4090_v45, %v3418_v57 }
 0xc2a   :  { %4122 = vst [vmem:[%s8988_s3 + $0x78] sm:$0xff] %v4106_v21 }

</bundles_post_ra>
